<compile_context>
chip_gen: v6e
topology: v6e:2x2x1
jax: 0.10.0
libtpu: 0.0.40
codegen_flags: <defaults>
</compile_context>

<pallas_src>
import functools

import jax
import jax.numpy as jnp
from jax.experimental import pallas as pl
from jax.experimental.pallas import tpu as pltpu

C_IN = 1
C_OUT = 16
KH = KW = 3
H_IN = W_IN = 28
H_OUT = W_OUT = H_IN - KH + 1              # 26 (stride 1, valid padding)
M_CONV = C_OUT * W_OUT                     # 416 = (out_channel, out_col) pairs
K_CONV = KH * W_IN                         # 84  = 3 stacked input rows
FC_IN = C_OUT * H_OUT * W_OUT              # 10816
FC_OUT = 10
FC_OUT_PAD = 128                           # lane-dense FC output width


def _round_up(a, b):
    return (a + b - 1) // b * b


def _choose_tiling(batch, bt_max):
    """Pick (batch_tile, padded_batch).

    Guarantees >= 2 grid steps for batch >= 16 so the 'parallel' batch axis can shard
    across both v7x TensorCores; tiny batches use a single 8-row tile.
    """
    if batch < 16:
        bt = _round_up(max(batch, 1), 8)
        return bt, bt
    n_tiles = max(2, -(-batch // bt_max))
    bt = _round_up(-(-batch // n_tiles), 8)
    return bt, bt * n_tiles


def prepare_params(conv_w, conv_b, fc_w, fc_b):
    """One-time parameter preprocessing (outside the forward pass).

    Returns:
      t_stack:  (84, 416)  bf16  stacked banded conv matrix:
                                 t_stack[di*28 + c, oc*26 + j] = conv_w[oc, 0, di, c - j]
      bias_row: (1, 416)   f32   conv bias expanded over (oc, j)
      fcw_pad:  (26, 416, 128) bf16  fc weight regrouped per conv output row i in
                                 torch's .view(B, -1) flatten order (oc, i, j),
                                 zero-padded 10 -> 128 on the output dim
      fcb_pad:  (1, 128)   f32   fc bias, zero-padded
    """
    oc_ids = jnp.repeat(jnp.arange(C_OUT), W_OUT)            # (416,)
    j_ids = jnp.tile(jnp.arange(W_OUT), C_OUT)                # (416,)
    m_ids = jnp.arange(M_CONV)
    t_mats = jnp.zeros((KH, W_IN, M_CONV), jnp.float32)
    for di in range(KH):
        for dj in range(KW):
            t_mats = t_mats.at[di, j_ids + dj, m_ids].set(conv_w[oc_ids, 0, di, dj])
    t_stack = t_mats.reshape(K_CONV, M_CONV).astype(jnp.bfloat16)

    bias_row = jnp.repeat(conv_b, W_OUT).reshape(1, M_CONV).astype(jnp.float32)

    fcw_r = (fc_w.reshape(FC_OUT, C_OUT, H_OUT, W_OUT)        # [n, oc, i, j]
                 .transpose(2, 1, 3, 0)                       # [i, oc, j, n]
                 .reshape(H_OUT, M_CONV, FC_OUT))
    fcw_pad = (jnp.zeros((H_OUT, M_CONV, FC_OUT_PAD), jnp.float32)
                  .at[:, :, :FC_OUT].set(fcw_r)
                  .astype(jnp.bfloat16))
    fcb_pad = jnp.zeros((1, FC_OUT_PAD), jnp.float32).at[0, :FC_OUT].set(fc_b)
    return t_stack, bias_row, fcw_pad, fcb_pad


def fused_kernel(t_ref, bias_ref, fcw_ref, fcb_ref, x_ref, o_ref):
    """conv1 + ReLU + flatten + fc1 for one batch tile, entirely in VMEM.

    t_ref:    (84, 416)       bf16  stacked conv matrix (constant across grid)
    bias_ref: (1, 416)        f32   conv bias over (oc, j)
    fcw_ref:  (26, 416, 128)  bf16  fc weight per conv output row (padded)
    fcb_ref:  (1, 128)        f32   fc bias (padded)
    x_ref:    (26, BT, 84)    bf16  im2row input: row i = input rows i..i+2 concat
    o_ref:    (BT, 128)       f32   padded logits for this batch tile
    """
    bt = o_ref.shape[0]
    t = t_ref[...]                                            # (84, 416) bf16
    bias = bias_ref[...]                                      # (1, 416)  f32
    acc = jnp.zeros((bt, FC_OUT_PAD), jnp.float32)
    # 26 output rows, fully unrolled: one K=84 conv matmul + one FC matmul per row;
    # only the small (BT, 128) accumulator is carried across iterations.
    for i in range(H_OUT):
        # conv row i for all 16 channels at once: (BT, 416) with m = oc*26 + j
        y = jnp.dot(x_ref[i], t, preferred_element_type=jnp.float32)
        y = jnp.maximum(y + bias, 0.0)                        # bias (bcast) + ReLU, f32
        # FC contribution of this conv row (flatten order absorbed into fcw_ref)
        acc = acc + jnp.dot(y.astype(jnp.bfloat16), fcw_ref[i],
                            preferred_element_type=jnp.float32)
    o_ref[...] = acc + fcb_ref[...]


@functools.partial(jax.jit, static_argnames=("bt_max",))
def abc_net_forward(x, params, bt_max=256):
    """x: (B, 1, 28, 28) f32.  params from prepare_params.  Returns (B, 10) f32."""
    t_stack, bias_row, fcw_pad, fcb_pad = params
    B = x.shape[0]
    assert x.shape[1:] == (C_IN, H_IN, W_IN), x.shape
    bt, b_pad = _choose_tiling(B, bt_max)

    xr = x.reshape(B, H_IN, W_IN)
    if b_pad != B:
        xr = jnp.pad(xr, ((0, b_pad - B), (0, 0), (0, 0)))
    # Host-side im2row: x_rows[i, b, :] = concat(x[b, i, :], x[b, i+1, :], x[b, i+2, :])
    row_idx = jnp.arange(H_OUT)[:, None] + jnp.arange(KH)[None, :]   # (26, 3)
    x_rows = xr[:, row_idx, :]                                       # (B_pad, 26, 3, 28)
    x_rows = x_rows.reshape(b_pad, H_OUT, K_CONV)
    x_rows = jnp.transpose(x_rows, (1, 0, 2)).astype(jnp.bfloat16)   # (26, B_pad, 84)

    out = pl.pallas_call(
        fused_kernel,
        out_shape=jax.ShapeDtypeStruct((b_pad, FC_OUT_PAD), jnp.float32),
        grid=(b_pad // bt,),
        in_specs=[
            pl.BlockSpec((K_CONV, M_CONV), lambda t: (0, 0)),               # t_stack
            pl.BlockSpec((1, M_CONV), lambda t: (0, 0)),                    # conv bias
            pl.BlockSpec((H_OUT, M_CONV, FC_OUT_PAD), lambda t: (0, 0, 0)),  # fc weight
            pl.BlockSpec((1, FC_OUT_PAD), lambda t: (0, 0)),                # fc bias
            pl.BlockSpec((H_OUT, bt, K_CONV), lambda t: (0, t, 0)),         # im2row tile
        ],
        out_specs=pl.BlockSpec((bt, FC_OUT_PAD), lambda t: (t, 0)),
        compiler_params=pltpu.CompilerParams(
            dimension_semantics=("parallel",),
            vmem_limit_bytes=32 * 1024 * 1024,
        ),
    )(t_stack, bias_row, fcw_pad, fcb_pad, x_rows)
    return out[:B, :FC_OUT]


def reference_forward(x, conv_w, conv_b, fc_w, fc_b):
    """Pure-JAX reference matching PyTorch semantics (high precision)."""
    B = x.shape[0]
    y = jax.lax.conv_general_dilated(
        x, conv_w, window_strides=(1, 1), padding="VALID",
        dimension_numbers=("NCHW", "OIHW", "NCHW"),
        precision=jax.lax.Precision.HIGHEST,
    ) + conv_b.reshape(1, C_OUT, 1, 1)
    y = jnp.maximum(y, 0.0).reshape(B, -1)
    return jnp.dot(y, fc_w.T, precision=jax.lax.Precision.HIGHEST) + fc_b


if __name__ == "__main__":
    key = jax.random.PRNGKey(0)
    kx, kw1, kb1, kw2, kb2 = jax.random.split(key, 5)

    B = 2
    x = jax.random.normal(kx, (B, C_IN, H_IN, W_IN), jnp.float32)

    # Deterministic synthetic parameters (shapes from ABC_Net.__init__).
    conv_w = 0.1 * jax.random.normal(kw1, (C_OUT, C_IN, KH, KW), jnp.float32)
    conv_b = 0.1 * jax.random.normal(kb1, (C_OUT,), jnp.float32)
    fc_w = 0.01 * jax.random.normal(kw2, (FC_OUT, FC_IN), jnp.float32)
    fc_b = 0.01 * jax.random.normal(kb2, (FC_OUT,), jnp.float32)

    params = prepare_params(conv_w, conv_b, fc_w, fc_b)
    out = jax.block_until_ready(abc_net_forward(x, params))

    ref = reference_forward(x, conv_w, conv_b, fc_w, fc_b)
    assert out.shape == (B, FC_OUT)
    # bf16 MXU operands vs. Precision.HIGHEST reference: ~1e-3-level differences.
    assert jnp.allclose(out, ref, rtol=1e-2, atol=1e-2), (out, ref)

    print("KERNEL_OK")
</pallas_src>

<mosaic_0001>
module attributes {stable_mosaic.version = 11 : i64} {
  func.func @fused_kernel(%arg0: i32, %arg1: memref<84x416xbf16, #tpu.memory_space<vmem>>, %arg2: memref<1x416xf32, #tpu.memory_space<vmem>>, %arg3: memref<26x416x128xbf16, #tpu.memory_space<vmem>>, %arg4: memref<1x128xf32, #tpu.memory_space<vmem>>, %arg5: memref<26x8x84xbf16, #tpu.memory_space<vmem>>, %arg6: memref<8x128xf32, #tpu.memory_space<vmem>>) attributes {dimension_semantics = [#tpu.dimension_semantics<parallel>], iteration_bounds = array<i64: 1>, scalar_prefetch = 0 : i64, scratch_operands = 0 : i64, tpu.core_type = #tpu.core_type<tc>, window_params = [{pipeline_mode = #tpu.pipeline_mode<synchronous>, transform_indices = @transform_0, window_bounds = array<i64: 84, 416>}, {pipeline_mode = #tpu.pipeline_mode<synchronous>, transform_indices = @transform_1, window_bounds = array<i64: 1, 416>}, {pipeline_mode = #tpu.pipeline_mode<synchronous>, transform_indices = @transform_2, window_bounds = array<i64: 26, 416, 128>}, {pipeline_mode = #tpu.pipeline_mode<synchronous>, transform_indices = @transform_3, window_bounds = array<i64: 1, 128>}, {transform_indices = @transform_4, window_bounds = array<i64: 26, 8, 84>}, {transform_indices = @transform_5, window_bounds = array<i64: 8, 128>}]} {
    %c0 = arith.constant 0 : index
    %c0_0 = arith.constant 0 : index
    %0 = vector.load %arg1[%c0, %c0_0] : memref<84x416xbf16, #tpu.memory_space<vmem>>, vector<84x416xbf16>
    %c0_1 = arith.constant 0 : index
    %c0_2 = arith.constant 0 : index
    %1 = vector.load %arg2[%c0_1, %c0_2] : memref<1x416xf32, #tpu.memory_space<vmem>>, vector<1x416xf32>
    %cst = arith.constant 0.000000e+00 : f32
    %2 = vector.broadcast %cst : f32 to vector<8x128xf32>
    %c0_3 = arith.constant 0 : index
    %c0_4 = arith.constant 0 : index
    %c0_5 = arith.constant 0 : index
    %3 = vector.load %arg5[%c0_3, %c0_4, %c0_5] : memref<26x8x84xbf16, #tpu.memory_space<vmem>>, vector<1x8x84xbf16>
    %4 = vector.shape_cast %3 : vector<1x8x84xbf16> to vector<8x84xbf16>
    %cst_6 = arith.constant dense<0.000000e+00> : vector<8x416xf32>
    %5 = tpu.matmul %4, %0, %cst_6 {dimension_numbers = #tpu.dot_dimension_numbers<[1], [0], [0], [1], [0, 0, 1, 1], [], []>} : vector<8x84xbf16>, vector<84x416xbf16>, vector<8x416xf32> -> vector<8x416xf32>
    %6 = vector.broadcast %1 : vector<1x416xf32> to vector<8x416xf32>
    %7 = arith.addf %5, %6 : vector<8x416xf32>
    %cst_7 = arith.constant 0.000000e+00 : f32
    %8 = vector.broadcast %cst_7 : f32 to vector<8x416xf32>
    %9 = arith.maximumf %7, %8 : vector<8x416xf32>
    %10 = arith.truncf %9 : vector<8x416xf32> to vector<8x416xbf16>
    %c0_8 = arith.constant 0 : index
    %c0_9 = arith.constant 0 : index
    %c0_10 = arith.constant 0 : index
    %11 = vector.load %arg3[%c0_8, %c0_9, %c0_10] : memref<26x416x128xbf16, #tpu.memory_space<vmem>>, vector<1x416x128xbf16>
    %12 = vector.shape_cast %11 : vector<1x416x128xbf16> to vector<416x128xbf16>
    %cst_11 = arith.constant dense<0.000000e+00> : vector<8x128xf32>
    %13 = tpu.matmul %10, %12, %cst_11 {dimension_numbers = #tpu.dot_dimension_numbers<[1], [0], [0], [1], [0, 0, 1, 1], [], []>} : vector<8x416xbf16>, vector<416x128xbf16>, vector<8x128xf32> -> vector<8x128xf32>
    %14 = arith.addf %2, %13 : vector<8x128xf32>
    %c1 = arith.constant 1 : index
    %c0_12 = arith.constant 0 : index
    %c0_13 = arith.constant 0 : index
    %15 = vector.load %arg5[%c1, %c0_12, %c0_13] : memref<26x8x84xbf16, #tpu.memory_space<vmem>>, vector<1x8x84xbf16>
    %16 = vector.shape_cast %15 : vector<1x8x84xbf16> to vector<8x84xbf16>
    %cst_14 = arith.constant dense<0.000000e+00> : vector<8x416xf32>
    %17 = tpu.matmul %16, %0, %cst_14 {dimension_numbers = #tpu.dot_dimension_numbers<[1], [0], [0], [1], [0, 0, 1, 1], [], []>} : vector<8x84xbf16>, vector<84x416xbf16>, vector<8x416xf32> -> vector<8x416xf32>
    %18 = vector.broadcast %1 : vector<1x416xf32> to vector<8x416xf32>
    %19 = arith.addf %17, %18 : vector<8x416xf32>
    %cst_15 = arith.constant 0.000000e+00 : f32
    %20 = vector.broadcast %cst_15 : f32 to vector<8x416xf32>
    %21 = arith.maximumf %19, %20 : vector<8x416xf32>
    %22 = arith.truncf %21 : vector<8x416xf32> to vector<8x416xbf16>
    %c1_16 = arith.constant 1 : index
    %c0_17 = arith.constant 0 : index
    %c0_18 = arith.constant 0 : index
    %23 = vector.load %arg3[%c1_16, %c0_17, %c0_18] : memref<26x416x128xbf16, #tpu.memory_space<vmem>>, vector<1x416x128xbf16>
    %24 = vector.shape_cast %23 : vector<1x416x128xbf16> to vector<416x128xbf16>
    %cst_19 = arith.constant dense<0.000000e+00> : vector<8x128xf32>
    %25 = tpu.matmul %22, %24, %cst_19 {dimension_numbers = #tpu.dot_dimension_numbers<[1], [0], [0], [1], [0, 0, 1, 1], [], []>} : vector<8x416xbf16>, vector<416x128xbf16>, vector<8x128xf32> -> vector<8x128xf32>
    %26 = arith.addf %14, %25 : vector<8x128xf32>
    %c2 = arith.constant 2 : index
    %c0_20 = arith.constant 0 : index
    %c0_21 = arith.constant 0 : index
    %27 = vector.load %arg5[%c2, %c0_20, %c0_21] : memref<26x8x84xbf16, #tpu.memory_space<vmem>>, vector<1x8x84xbf16>
    %28 = vector.shape_cast %27 : vector<1x8x84xbf16> to vector<8x84xbf16>
    %cst_22 = arith.constant dense<0.000000e+00> : vector<8x416xf32>
    %29 = tpu.matmul %28, %0, %cst_22 {dimension_numbers = #tpu.dot_dimension_numbers<[1], [0], [0], [1], [0, 0, 1, 1], [], []>} : vector<8x84xbf16>, vector<84x416xbf16>, vector<8x416xf32> -> vector<8x416xf32>
    %30 = vector.broadcast %1 : vector<1x416xf32> to vector<8x416xf32>
    %31 = arith.addf %29, %30 : vector<8x416xf32>
    %cst_23 = arith.constant 0.000000e+00 : f32
    %32 = vector.broadcast %cst_23 : f32 to vector<8x416xf32>
    %33 = arith.maximumf %31, %32 : vector<8x416xf32>
    %34 = arith.truncf %33 : vector<8x416xf32> to vector<8x416xbf16>
    %c2_24 = arith.constant 2 : index
    %c0_25 = arith.constant 0 : index
    %c0_26 = arith.constant 0 : index
    %35 = vector.load %arg3[%c2_24, %c0_25, %c0_26] : memref<26x416x128xbf16, #tpu.memory_space<vmem>>, vector<1x416x128xbf16>
    %36 = vector.shape_cast %35 : vector<1x416x128xbf16> to vector<416x128xbf16>
    %cst_27 = arith.constant dense<0.000000e+00> : vector<8x128xf32>
    %37 = tpu.matmul %34, %36, %cst_27 {dimension_numbers = #tpu.dot_dimension_numbers<[1], [0], [0], [1], [0, 0, 1, 1], [], []>} : vector<8x416xbf16>, vector<416x128xbf16>, vector<8x128xf32> -> vector<8x128xf32>
    %38 = arith.addf %26, %37 : vector<8x128xf32>
    %c3 = arith.constant 3 : index
    %c0_28 = arith.constant 0 : index
    %c0_29 = arith.constant 0 : index
    %39 = vector.load %arg5[%c3, %c0_28, %c0_29] : memref<26x8x84xbf16, #tpu.memory_space<vmem>>, vector<1x8x84xbf16>
    %40 = vector.shape_cast %39 : vector<1x8x84xbf16> to vector<8x84xbf16>
    %cst_30 = arith.constant dense<0.000000e+00> : vector<8x416xf32>
    %41 = tpu.matmul %40, %0, %cst_30 {dimension_numbers = #tpu.dot_dimension_numbers<[1], [0], [0], [1], [0, 0, 1, 1], [], []>} : vector<8x84xbf16>, vector<84x416xbf16>, vector<8x416xf32> -> vector<8x416xf32>
    %42 = vector.broadcast %1 : vector<1x416xf32> to vector<8x416xf32>
    %43 = arith.addf %41, %42 : vector<8x416xf32>
    %cst_31 = arith.constant 0.000000e+00 : f32
    %44 = vector.broadcast %cst_31 : f32 to vector<8x416xf32>
    %45 = arith.maximumf %43, %44 : vector<8x416xf32>
    %46 = arith.truncf %45 : vector<8x416xf32> to vector<8x416xbf16>
    %c3_32 = arith.constant 3 : index
    %c0_33 = arith.constant 0 : index
    %c0_34 = arith.constant 0 : index
    %47 = vector.load %arg3[%c3_32, %c0_33, %c0_34] : memref<26x416x128xbf16, #tpu.memory_space<vmem>>, vector<1x416x128xbf16>
    %48 = vector.shape_cast %47 : vector<1x416x128xbf16> to vector<416x128xbf16>
    %cst_35 = arith.constant dense<0.000000e+00> : vector<8x128xf32>
    %49 = tpu.matmul %46, %48, %cst_35 {dimension_numbers = #tpu.dot_dimension_numbers<[1], [0], [0], [1], [0, 0, 1, 1], [], []>} : vector<8x416xbf16>, vector<416x128xbf16>, vector<8x128xf32> -> vector<8x128xf32>
    %50 = arith.addf %38, %49 : vector<8x128xf32>
    %c4 = arith.constant 4 : index
    %c0_36 = arith.constant 0 : index
    %c0_37 = arith.constant 0 : index
    %51 = vector.load %arg5[%c4, %c0_36, %c0_37] : memref<26x8x84xbf16, #tpu.memory_space<vmem>>, vector<1x8x84xbf16>
    %52 = vector.shape_cast %51 : vector<1x8x84xbf16> to vector<8x84xbf16>
    %cst_38 = arith.constant dense<0.000000e+00> : vector<8x416xf32>
    %53 = tpu.matmul %52, %0, %cst_38 {dimension_numbers = #tpu.dot_dimension_numbers<[1], [0], [0], [1], [0, 0, 1, 1], [], []>} : vector<8x84xbf16>, vector<84x416xbf16>, vector<8x416xf32> -> vector<8x416xf32>
    %54 = vector.broadcast %1 : vector<1x416xf32> to vector<8x416xf32>
    %55 = arith.addf %53, %54 : vector<8x416xf32>
    %cst_39 = arith.constant 0.000000e+00 : f32
    %56 = vector.broadcast %cst_39 : f32 to vector<8x416xf32>
    %57 = arith.maximumf %55, %56 : vector<8x416xf32>
    %58 = arith.truncf %57 : vector<8x416xf32> to vector<8x416xbf16>
    %c4_40 = arith.constant 4 : index
    %c0_41 = arith.constant 0 : index
    %c0_42 = arith.constant 0 : index
    %59 = vector.load %arg3[%c4_40, %c0_41, %c0_42] : memref<26x416x128xbf16, #tpu.memory_space<vmem>>, vector<1x416x128xbf16>
    %60 = vector.shape_cast %59 : vector<1x416x128xbf16> to vector<416x128xbf16>
    %cst_43 = arith.constant dense<0.000000e+00> : vector<8x128xf32>
    %61 = tpu.matmul %58, %60, %cst_43 {dimension_numbers = #tpu.dot_dimension_numbers<[1], [0], [0], [1], [0, 0, 1, 1], [], []>} : vector<8x416xbf16>, vector<416x128xbf16>, vector<8x128xf32> -> vector<8x128xf32>
    %62 = arith.addf %50, %61 : vector<8x128xf32>
    %c5 = arith.constant 5 : index
    %c0_44 = arith.constant 0 : index
    %c0_45 = arith.constant 0 : index
    %63 = vector.load %arg5[%c5, %c0_44, %c0_45] : memref<26x8x84xbf16, #tpu.memory_space<vmem>>, vector<1x8x84xbf16>
    %64 = vector.shape_cast %63 : vector<1x8x84xbf16> to vector<8x84xbf16>
    %cst_46 = arith.constant dense<0.000000e+00> : vector<8x416xf32>
    %65 = tpu.matmul %64, %0, %cst_46 {dimension_numbers = #tpu.dot_dimension_numbers<[1], [0], [0], [1], [0, 0, 1, 1], [], []>} : vector<8x84xbf16>, vector<84x416xbf16>, vector<8x416xf32> -> vector<8x416xf32>
    %66 = vector.broadcast %1 : vector<1x416xf32> to vector<8x416xf32>
    %67 = arith.addf %65, %66 : vector<8x416xf32>
    %cst_47 = arith.constant 0.000000e+00 : f32
    %68 = vector.broadcast %cst_47 : f32 to vector<8x416xf32>
    %69 = arith.maximumf %67, %68 : vector<8x416xf32>
    %70 = arith.truncf %69 : vector<8x416xf32> to vector<8x416xbf16>
    %c5_48 = arith.constant 5 : index
    %c0_49 = arith.constant 0 : index
    %c0_50 = arith.constant 0 : index
    %71 = vector.load %arg3[%c5_48, %c0_49, %c0_50] : memref<26x416x128xbf16, #tpu.memory_space<vmem>>, vector<1x416x128xbf16>
    %72 = vector.shape_cast %71 : vector<1x416x128xbf16> to vector<416x128xbf16>
    %cst_51 = arith.constant dense<0.000000e+00> : vector<8x128xf32>
    %73 = tpu.matmul %70, %72, %cst_51 {dimension_numbers = #tpu.dot_dimension_numbers<[1], [0], [0], [1], [0, 0, 1, 1], [], []>} : vector<8x416xbf16>, vector<416x128xbf16>, vector<8x128xf32> -> vector<8x128xf32>
    %74 = arith.addf %62, %73 : vector<8x128xf32>
    %c6 = arith.constant 6 : index
    %c0_52 = arith.constant 0 : index
    %c0_53 = arith.constant 0 : index
    %75 = vector.load %arg5[%c6, %c0_52, %c0_53] : memref<26x8x84xbf16, #tpu.memory_space<vmem>>, vector<1x8x84xbf16>
    %76 = vector.shape_cast %75 : vector<1x8x84xbf16> to vector<8x84xbf16>
    %cst_54 = arith.constant dense<0.000000e+00> : vector<8x416xf32>
    %77 = tpu.matmul %76, %0, %cst_54 {dimension_numbers = #tpu.dot_dimension_numbers<[1], [0], [0], [1], [0, 0, 1, 1], [], []>} : vector<8x84xbf16>, vector<84x416xbf16>, vector<8x416xf32> -> vector<8x416xf32>
    %78 = vector.broadcast %1 : vector<1x416xf32> to vector<8x416xf32>
    %79 = arith.addf %77, %78 : vector<8x416xf32>
    %cst_55 = arith.constant 0.000000e+00 : f32
    %80 = vector.broadcast %cst_55 : f32 to vector<8x416xf32>
    %81 = arith.maximumf %79, %80 : vector<8x416xf32>
    %82 = arith.truncf %81 : vector<8x416xf32> to vector<8x416xbf16>
    %c6_56 = arith.constant 6 : index
    %c0_57 = arith.constant 0 : index
    %c0_58 = arith.constant 0 : index
    %83 = vector.load %arg3[%c6_56, %c0_57, %c0_58] : memref<26x416x128xbf16, #tpu.memory_space<vmem>>, vector<1x416x128xbf16>
    %84 = vector.shape_cast %83 : vector<1x416x128xbf16> to vector<416x128xbf16>
    %cst_59 = arith.constant dense<0.000000e+00> : vector<8x128xf32>
    %85 = tpu.matmul %82, %84, %cst_59 {dimension_numbers = #tpu.dot_dimension_numbers<[1], [0], [0], [1], [0, 0, 1, 1], [], []>} : vector<8x416xbf16>, vector<416x128xbf16>, vector<8x128xf32> -> vector<8x128xf32>
    %86 = arith.addf %74, %85 : vector<8x128xf32>
    %c7 = arith.constant 7 : index
    %c0_60 = arith.constant 0 : index
    %c0_61 = arith.constant 0 : index
    %87 = vector.load %arg5[%c7, %c0_60, %c0_61] : memref<26x8x84xbf16, #tpu.memory_space<vmem>>, vector<1x8x84xbf16>
    %88 = vector.shape_cast %87 : vector<1x8x84xbf16> to vector<8x84xbf16>
    %cst_62 = arith.constant dense<0.000000e+00> : vector<8x416xf32>
    %89 = tpu.matmul %88, %0, %cst_62 {dimension_numbers = #tpu.dot_dimension_numbers<[1], [0], [0], [1], [0, 0, 1, 1], [], []>} : vector<8x84xbf16>, vector<84x416xbf16>, vector<8x416xf32> -> vector<8x416xf32>
    %90 = vector.broadcast %1 : vector<1x416xf32> to vector<8x416xf32>
    %91 = arith.addf %89, %90 : vector<8x416xf32>
    %cst_63 = arith.constant 0.000000e+00 : f32
    %92 = vector.broadcast %cst_63 : f32 to vector<8x416xf32>
    %93 = arith.maximumf %91, %92 : vector<8x416xf32>
    %94 = arith.truncf %93 : vector<8x416xf32> to vector<8x416xbf16>
    %c7_64 = arith.constant 7 : index
    %c0_65 = arith.constant 0 : index
    %c0_66 = arith.constant 0 : index
    %95 = vector.load %arg3[%c7_64, %c0_65, %c0_66] : memref<26x416x128xbf16, #tpu.memory_space<vmem>>, vector<1x416x128xbf16>
    %96 = vector.shape_cast %95 : vector<1x416x128xbf16> to vector<416x128xbf16>
    %cst_67 = arith.constant dense<0.000000e+00> : vector<8x128xf32>
    %97 = tpu.matmul %94, %96, %cst_67 {dimension_numbers = #tpu.dot_dimension_numbers<[1], [0], [0], [1], [0, 0, 1, 1], [], []>} : vector<8x416xbf16>, vector<416x128xbf16>, vector<8x128xf32> -> vector<8x128xf32>
    %98 = arith.addf %86, %97 : vector<8x128xf32>
    %c8 = arith.constant 8 : index
    %c0_68 = arith.constant 0 : index
    %c0_69 = arith.constant 0 : index
    %99 = vector.load %arg5[%c8, %c0_68, %c0_69] : memref<26x8x84xbf16, #tpu.memory_space<vmem>>, vector<1x8x84xbf16>
    %100 = vector.shape_cast %99 : vector<1x8x84xbf16> to vector<8x84xbf16>
    %cst_70 = arith.constant dense<0.000000e+00> : vector<8x416xf32>
    %101 = tpu.matmul %100, %0, %cst_70 {dimension_numbers = #tpu.dot_dimension_numbers<[1], [0], [0], [1], [0, 0, 1, 1], [], []>} : vector<8x84xbf16>, vector<84x416xbf16>, vector<8x416xf32> -> vector<8x416xf32>
    %102 = vector.broadcast %1 : vector<1x416xf32> to vector<8x416xf32>
    %103 = arith.addf %101, %102 : vector<8x416xf32>
    %cst_71 = arith.constant 0.000000e+00 : f32
    %104 = vector.broadcast %cst_71 : f32 to vector<8x416xf32>
    %105 = arith.maximumf %103, %104 : vector<8x416xf32>
    %106 = arith.truncf %105 : vector<8x416xf32> to vector<8x416xbf16>
    %c8_72 = arith.constant 8 : index
    %c0_73 = arith.constant 0 : index
    %c0_74 = arith.constant 0 : index
    %107 = vector.load %arg3[%c8_72, %c0_73, %c0_74] : memref<26x416x128xbf16, #tpu.memory_space<vmem>>, vector<1x416x128xbf16>
    %108 = vector.shape_cast %107 : vector<1x416x128xbf16> to vector<416x128xbf16>
    %cst_75 = arith.constant dense<0.000000e+00> : vector<8x128xf32>
    %109 = tpu.matmul %106, %108, %cst_75 {dimension_numbers = #tpu.dot_dimension_numbers<[1], [0], [0], [1], [0, 0, 1, 1], [], []>} : vector<8x416xbf16>, vector<416x128xbf16>, vector<8x128xf32> -> vector<8x128xf32>
    %110 = arith.addf %98, %109 : vector<8x128xf32>
    %c9 = arith.constant 9 : index
    %c0_76 = arith.constant 0 : index
    %c0_77 = arith.constant 0 : index
    %111 = vector.load %arg5[%c9, %c0_76, %c0_77] : memref<26x8x84xbf16, #tpu.memory_space<vmem>>, vector<1x8x84xbf16>
    %112 = vector.shape_cast %111 : vector<1x8x84xbf16> to vector<8x84xbf16>
    %cst_78 = arith.constant dense<0.000000e+00> : vector<8x416xf32>
    %113 = tpu.matmul %112, %0, %cst_78 {dimension_numbers = #tpu.dot_dimension_numbers<[1], [0], [0], [1], [0, 0, 1, 1], [], []>} : vector<8x84xbf16>, vector<84x416xbf16>, vector<8x416xf32> -> vector<8x416xf32>
    %114 = vector.broadcast %1 : vector<1x416xf32> to vector<8x416xf32>
    %115 = arith.addf %113, %114 : vector<8x416xf32>
    %cst_79 = arith.constant 0.000000e+00 : f32
    %116 = vector.broadcast %cst_79 : f32 to vector<8x416xf32>
    %117 = arith.maximumf %115, %116 : vector<8x416xf32>
    %118 = arith.truncf %117 : vector<8x416xf32> to vector<8x416xbf16>
    %c9_80 = arith.constant 9 : index
    %c0_81 = arith.constant 0 : index
    %c0_82 = arith.constant 0 : index
    %119 = vector.load %arg3[%c9_80, %c0_81, %c0_82] : memref<26x416x128xbf16, #tpu.memory_space<vmem>>, vector<1x416x128xbf16>
    %120 = vector.shape_cast %119 : vector<1x416x128xbf16> to vector<416x128xbf16>
    %cst_83 = arith.constant dense<0.000000e+00> : vector<8x128xf32>
    %121 = tpu.matmul %118, %120, %cst_83 {dimension_numbers = #tpu.dot_dimension_numbers<[1], [0], [0], [1], [0, 0, 1, 1], [], []>} : vector<8x416xbf16>, vector<416x128xbf16>, vector<8x128xf32> -> vector<8x128xf32>
    %122 = arith.addf %110, %121 : vector<8x128xf32>
    %c10 = arith.constant 10 : index
    %c0_84 = arith.constant 0 : index
    %c0_85 = arith.constant 0 : index
    %123 = vector.load %arg5[%c10, %c0_84, %c0_85] : memref<26x8x84xbf16, #tpu.memory_space<vmem>>, vector<1x8x84xbf16>
    %124 = vector.shape_cast %123 : vector<1x8x84xbf16> to vector<8x84xbf16>
    %cst_86 = arith.constant dense<0.000000e+00> : vector<8x416xf32>
    %125 = tpu.matmul %124, %0, %cst_86 {dimension_numbers = #tpu.dot_dimension_numbers<[1], [0], [0], [1], [0, 0, 1, 1], [], []>} : vector<8x84xbf16>, vector<84x416xbf16>, vector<8x416xf32> -> vector<8x416xf32>
    %126 = vector.broadcast %1 : vector<1x416xf32> to vector<8x416xf32>
    %127 = arith.addf %125, %126 : vector<8x416xf32>
    %cst_87 = arith.constant 0.000000e+00 : f32
    %128 = vector.broadcast %cst_87 : f32 to vector<8x416xf32>
    %129 = arith.maximumf %127, %128 : vector<8x416xf32>
    %130 = arith.truncf %129 : vector<8x416xf32> to vector<8x416xbf16>
    %c10_88 = arith.constant 10 : index
    %c0_89 = arith.constant 0 : index
    %c0_90 = arith.constant 0 : index
    %131 = vector.load %arg3[%c10_88, %c0_89, %c0_90] : memref<26x416x128xbf16, #tpu.memory_space<vmem>>, vector<1x416x128xbf16>
    %132 = vector.shape_cast %131 : vector<1x416x128xbf16> to vector<416x128xbf16>
    %cst_91 = arith.constant dense<0.000000e+00> : vector<8x128xf32>
    %133 = tpu.matmul %130, %132, %cst_91 {dimension_numbers = #tpu.dot_dimension_numbers<[1], [0], [0], [1], [0, 0, 1, 1], [], []>} : vector<8x416xbf16>, vector<416x128xbf16>, vector<8x128xf32> -> vector<8x128xf32>
    %134 = arith.addf %122, %133 : vector<8x128xf32>
    %c11 = arith.constant 11 : index
    %c0_92 = arith.constant 0 : index
    %c0_93 = arith.constant 0 : index
    %135 = vector.load %arg5[%c11, %c0_92, %c0_93] : memref<26x8x84xbf16, #tpu.memory_space<vmem>>, vector<1x8x84xbf16>
    %136 = vector.shape_cast %135 : vector<1x8x84xbf16> to vector<8x84xbf16>
    %cst_94 = arith.constant dense<0.000000e+00> : vector<8x416xf32>
    %137 = tpu.matmul %136, %0, %cst_94 {dimension_numbers = #tpu.dot_dimension_numbers<[1], [0], [0], [1], [0, 0, 1, 1], [], []>} : vector<8x84xbf16>, vector<84x416xbf16>, vector<8x416xf32> -> vector<8x416xf32>
    %138 = vector.broadcast %1 : vector<1x416xf32> to vector<8x416xf32>
    %139 = arith.addf %137, %138 : vector<8x416xf32>
    %cst_95 = arith.constant 0.000000e+00 : f32
    %140 = vector.broadcast %cst_95 : f32 to vector<8x416xf32>
    %141 = arith.maximumf %139, %140 : vector<8x416xf32>
    %142 = arith.truncf %141 : vector<8x416xf32> to vector<8x416xbf16>
    %c11_96 = arith.constant 11 : index
    %c0_97 = arith.constant 0 : index
    %c0_98 = arith.constant 0 : index
    %143 = vector.load %arg3[%c11_96, %c0_97, %c0_98] : memref<26x416x128xbf16, #tpu.memory_space<vmem>>, vector<1x416x128xbf16>
    %144 = vector.shape_cast %143 : vector<1x416x128xbf16> to vector<416x128xbf16>
    %cst_99 = arith.constant dense<0.000000e+00> : vector<8x128xf32>
    %145 = tpu.matmul %142, %144, %cst_99 {dimension_numbers = #tpu.dot_dimension_numbers<[1], [0], [0], [1], [0, 0, 1, 1], [], []>} : vector<8x416xbf16>, vector<416x128xbf16>, vector<8x128xf32> -> vector<8x128xf32>
    %146 = arith.addf %134, %145 : vector<8x128xf32>
    %c12 = arith.constant 12 : index
    %c0_100 = arith.constant 0 : index
    %c0_101 = arith.constant 0 : index
    %147 = vector.load %arg5[%c12, %c0_100, %c0_101] : memref<26x8x84xbf16, #tpu.memory_space<vmem>>, vector<1x8x84xbf16>
    %148 = vector.shape_cast %147 : vector<1x8x84xbf16> to vector<8x84xbf16>
    %cst_102 = arith.constant dense<0.000000e+00> : vector<8x416xf32>
    %149 = tpu.matmul %148, %0, %cst_102 {dimension_numbers = #tpu.dot_dimension_numbers<[1], [0], [0], [1], [0, 0, 1, 1], [], []>} : vector<8x84xbf16>, vector<84x416xbf16>, vector<8x416xf32> -> vector<8x416xf32>
    %150 = vector.broadcast %1 : vector<1x416xf32> to vector<8x416xf32>
    %151 = arith.addf %149, %150 : vector<8x416xf32>
    %cst_103 = arith.constant 0.000000e+00 : f32
    %152 = vector.broadcast %cst_103 : f32 to vector<8x416xf32>
    %153 = arith.maximumf %151, %152 : vector<8x416xf32>
    %154 = arith.truncf %153 : vector<8x416xf32> to vector<8x416xbf16>
    %c12_104 = arith.constant 12 : index
    %c0_105 = arith.constant 0 : index
    %c0_106 = arith.constant 0 : index
    %155 = vector.load %arg3[%c12_104, %c0_105, %c0_106] : memref<26x416x128xbf16, #tpu.memory_space<vmem>>, vector<1x416x128xbf16>
    %156 = vector.shape_cast %155 : vector<1x416x128xbf16> to vector<416x128xbf16>
    %cst_107 = arith.constant dense<0.000000e+00> : vector<8x128xf32>
    %157 = tpu.matmul %154, %156, %cst_107 {dimension_numbers = #tpu.dot_dimension_numbers<[1], [0], [0], [1], [0, 0, 1, 1], [], []>} : vector<8x416xbf16>, vector<416x128xbf16>, vector<8x128xf32> -> vector<8x128xf32>
    %158 = arith.addf %146, %157 : vector<8x128xf32>
    %c13 = arith.constant 13 : index
    %c0_108 = arith.constant 0 : index
    %c0_109 = arith.constant 0 : index
    %159 = vector.load %arg5[%c13, %c0_108, %c0_109] : memref<26x8x84xbf16, #tpu.memory_space<vmem>>, vector<1x8x84xbf16>
    %160 = vector.shape_cast %159 : vector<1x8x84xbf16> to vector<8x84xbf16>
    %cst_110 = arith.constant dense<0.000000e+00> : vector<8x416xf32>
    %161 = tpu.matmul %160, %0, %cst_110 {dimension_numbers = #tpu.dot_dimension_numbers<[1], [0], [0], [1], [0, 0, 1, 1], [], []>} : vector<8x84xbf16>, vector<84x416xbf16>, vector<8x416xf32> -> vector<8x416xf32>
    %162 = vector.broadcast %1 : vector<1x416xf32> to vector<8x416xf32>
    %163 = arith.addf %161, %162 : vector<8x416xf32>
    %cst_111 = arith.constant 0.000000e+00 : f32
    %164 = vector.broadcast %cst_111 : f32 to vector<8x416xf32>
    %165 = arith.maximumf %163, %164 : vector<8x416xf32>
    %166 = arith.truncf %165 : vector<8x416xf32> to vector<8x416xbf16>
    %c13_112 = arith.constant 13 : index
    %c0_113 = arith.constant 0 : index
    %c0_114 = arith.constant 0 : index
    %167 = vector.load %arg3[%c13_112, %c0_113, %c0_114] : memref<26x416x128xbf16, #tpu.memory_space<vmem>>, vector<1x416x128xbf16>
    %168 = vector.shape_cast %167 : vector<1x416x128xbf16> to vector<416x128xbf16>
    %cst_115 = arith.constant dense<0.000000e+00> : vector<8x128xf32>
    %169 = tpu.matmul %166, %168, %cst_115 {dimension_numbers = #tpu.dot_dimension_numbers<[1], [0], [0], [1], [0, 0, 1, 1], [], []>} : vector<8x416xbf16>, vector<416x128xbf16>, vector<8x128xf32> -> vector<8x128xf32>
    %170 = arith.addf %158, %169 : vector<8x128xf32>
    %c14 = arith.constant 14 : index
    %c0_116 = arith.constant 0 : index
    %c0_117 = arith.constant 0 : index
    %171 = vector.load %arg5[%c14, %c0_116, %c0_117] : memref<26x8x84xbf16, #tpu.memory_space<vmem>>, vector<1x8x84xbf16>
    %172 = vector.shape_cast %171 : vector<1x8x84xbf16> to vector<8x84xbf16>
    %cst_118 = arith.constant dense<0.000000e+00> : vector<8x416xf32>
    %173 = tpu.matmul %172, %0, %cst_118 {dimension_numbers = #tpu.dot_dimension_numbers<[1], [0], [0], [1], [0, 0, 1, 1], [], []>} : vector<8x84xbf16>, vector<84x416xbf16>, vector<8x416xf32> -> vector<8x416xf32>
    %174 = vector.broadcast %1 : vector<1x416xf32> to vector<8x416xf32>
    %175 = arith.addf %173, %174 : vector<8x416xf32>
    %cst_119 = arith.constant 0.000000e+00 : f32
    %176 = vector.broadcast %cst_119 : f32 to vector<8x416xf32>
    %177 = arith.maximumf %175, %176 : vector<8x416xf32>
    %178 = arith.truncf %177 : vector<8x416xf32> to vector<8x416xbf16>
    %c14_120 = arith.constant 14 : index
    %c0_121 = arith.constant 0 : index
    %c0_122 = arith.constant 0 : index
    %179 = vector.load %arg3[%c14_120, %c0_121, %c0_122] : memref<26x416x128xbf16, #tpu.memory_space<vmem>>, vector<1x416x128xbf16>
    %180 = vector.shape_cast %179 : vector<1x416x128xbf16> to vector<416x128xbf16>
    %cst_123 = arith.constant dense<0.000000e+00> : vector<8x128xf32>
    %181 = tpu.matmul %178, %180, %cst_123 {dimension_numbers = #tpu.dot_dimension_numbers<[1], [0], [0], [1], [0, 0, 1, 1], [], []>} : vector<8x416xbf16>, vector<416x128xbf16>, vector<8x128xf32> -> vector<8x128xf32>
    %182 = arith.addf %170, %181 : vector<8x128xf32>
    %c15 = arith.constant 15 : index
    %c0_124 = arith.constant 0 : index
    %c0_125 = arith.constant 0 : index
    %183 = vector.load %arg5[%c15, %c0_124, %c0_125] : memref<26x8x84xbf16, #tpu.memory_space<vmem>>, vector<1x8x84xbf16>
    %184 = vector.shape_cast %183 : vector<1x8x84xbf16> to vector<8x84xbf16>
    %cst_126 = arith.constant dense<0.000000e+00> : vector<8x416xf32>
    %185 = tpu.matmul %184, %0, %cst_126 {dimension_numbers = #tpu.dot_dimension_numbers<[1], [0], [0], [1], [0, 0, 1, 1], [], []>} : vector<8x84xbf16>, vector<84x416xbf16>, vector<8x416xf32> -> vector<8x416xf32>
    %186 = vector.broadcast %1 : vector<1x416xf32> to vector<8x416xf32>
    %187 = arith.addf %185, %186 : vector<8x416xf32>
    %cst_127 = arith.constant 0.000000e+00 : f32
    %188 = vector.broadcast %cst_127 : f32 to vector<8x416xf32>
    %189 = arith.maximumf %187, %188 : vector<8x416xf32>
    %190 = arith.truncf %189 : vector<8x416xf32> to vector<8x416xbf16>
    %c15_128 = arith.constant 15 : index
    %c0_129 = arith.constant 0 : index
    %c0_130 = arith.constant 0 : index
    %191 = vector.load %arg3[%c15_128, %c0_129, %c0_130] : memref<26x416x128xbf16, #tpu.memory_space<vmem>>, vector<1x416x128xbf16>
    %192 = vector.shape_cast %191 : vector<1x416x128xbf16> to vector<416x128xbf16>
    %cst_131 = arith.constant dense<0.000000e+00> : vector<8x128xf32>
    %193 = tpu.matmul %190, %192, %cst_131 {dimension_numbers = #tpu.dot_dimension_numbers<[1], [0], [0], [1], [0, 0, 1, 1], [], []>} : vector<8x416xbf16>, vector<416x128xbf16>, vector<8x128xf32> -> vector<8x128xf32>
    %194 = arith.addf %182, %193 : vector<8x128xf32>
    %c16 = arith.constant 16 : index
    %c0_132 = arith.constant 0 : index
    %c0_133 = arith.constant 0 : index
    %195 = vector.load %arg5[%c16, %c0_132, %c0_133] : memref<26x8x84xbf16, #tpu.memory_space<vmem>>, vector<1x8x84xbf16>
    %196 = vector.shape_cast %195 : vector<1x8x84xbf16> to vector<8x84xbf16>
    %cst_134 = arith.constant dense<0.000000e+00> : vector<8x416xf32>
    %197 = tpu.matmul %196, %0, %cst_134 {dimension_numbers = #tpu.dot_dimension_numbers<[1], [0], [0], [1], [0, 0, 1, 1], [], []>} : vector<8x84xbf16>, vector<84x416xbf16>, vector<8x416xf32> -> vector<8x416xf32>
    %198 = vector.broadcast %1 : vector<1x416xf32> to vector<8x416xf32>
    %199 = arith.addf %197, %198 : vector<8x416xf32>
    %cst_135 = arith.constant 0.000000e+00 : f32
    %200 = vector.broadcast %cst_135 : f32 to vector<8x416xf32>
    %201 = arith.maximumf %199, %200 : vector<8x416xf32>
    %202 = arith.truncf %201 : vector<8x416xf32> to vector<8x416xbf16>
    %c16_136 = arith.constant 16 : index
    %c0_137 = arith.constant 0 : index
    %c0_138 = arith.constant 0 : index
    %203 = vector.load %arg3[%c16_136, %c0_137, %c0_138] : memref<26x416x128xbf16, #tpu.memory_space<vmem>>, vector<1x416x128xbf16>
    %204 = vector.shape_cast %203 : vector<1x416x128xbf16> to vector<416x128xbf16>
    %cst_139 = arith.constant dense<0.000000e+00> : vector<8x128xf32>
    %205 = tpu.matmul %202, %204, %cst_139 {dimension_numbers = #tpu.dot_dimension_numbers<[1], [0], [0], [1], [0, 0, 1, 1], [], []>} : vector<8x416xbf16>, vector<416x128xbf16>, vector<8x128xf32> -> vector<8x128xf32>
    %206 = arith.addf %194, %205 : vector<8x128xf32>
    %c17 = arith.constant 17 : index
    %c0_140 = arith.constant 0 : index
    %c0_141 = arith.constant 0 : index
    %207 = vector.load %arg5[%c17, %c0_140, %c0_141] : memref<26x8x84xbf16, #tpu.memory_space<vmem>>, vector<1x8x84xbf16>
    %208 = vector.shape_cast %207 : vector<1x8x84xbf16> to vector<8x84xbf16>
    %cst_142 = arith.constant dense<0.000000e+00> : vector<8x416xf32>
    %209 = tpu.matmul %208, %0, %cst_142 {dimension_numbers = #tpu.dot_dimension_numbers<[1], [0], [0], [1], [0, 0, 1, 1], [], []>} : vector<8x84xbf16>, vector<84x416xbf16>, vector<8x416xf32> -> vector<8x416xf32>
    %210 = vector.broadcast %1 : vector<1x416xf32> to vector<8x416xf32>
    %211 = arith.addf %209, %210 : vector<8x416xf32>
    %cst_143 = arith.constant 0.000000e+00 : f32
    %212 = vector.broadcast %cst_143 : f32 to vector<8x416xf32>
    %213 = arith.maximumf %211, %212 : vector<8x416xf32>
    %214 = arith.truncf %213 : vector<8x416xf32> to vector<8x416xbf16>
    %c17_144 = arith.constant 17 : index
    %c0_145 = arith.constant 0 : index
    %c0_146 = arith.constant 0 : index
    %215 = vector.load %arg3[%c17_144, %c0_145, %c0_146] : memref<26x416x128xbf16, #tpu.memory_space<vmem>>, vector<1x416x128xbf16>
    %216 = vector.shape_cast %215 : vector<1x416x128xbf16> to vector<416x128xbf16>
    %cst_147 = arith.constant dense<0.000000e+00> : vector<8x128xf32>
    %217 = tpu.matmul %214, %216, %cst_147 {dimension_numbers = #tpu.dot_dimension_numbers<[1], [0], [0], [1], [0, 0, 1, 1], [], []>} : vector<8x416xbf16>, vector<416x128xbf16>, vector<8x128xf32> -> vector<8x128xf32>
    %218 = arith.addf %206, %217 : vector<8x128xf32>
    %c18 = arith.constant 18 : index
    %c0_148 = arith.constant 0 : index
    %c0_149 = arith.constant 0 : index
    %219 = vector.load %arg5[%c18, %c0_148, %c0_149] : memref<26x8x84xbf16, #tpu.memory_space<vmem>>, vector<1x8x84xbf16>
    %220 = vector.shape_cast %219 : vector<1x8x84xbf16> to vector<8x84xbf16>
    %cst_150 = arith.constant dense<0.000000e+00> : vector<8x416xf32>
    %221 = tpu.matmul %220, %0, %cst_150 {dimension_numbers = #tpu.dot_dimension_numbers<[1], [0], [0], [1], [0, 0, 1, 1], [], []>} : vector<8x84xbf16>, vector<84x416xbf16>, vector<8x416xf32> -> vector<8x416xf32>
    %222 = vector.broadcast %1 : vector<1x416xf32> to vector<8x416xf32>
    %223 = arith.addf %221, %222 : vector<8x416xf32>
    %cst_151 = arith.constant 0.000000e+00 : f32
    %224 = vector.broadcast %cst_151 : f32 to vector<8x416xf32>
    %225 = arith.maximumf %223, %224 : vector<8x416xf32>
    %226 = arith.truncf %225 : vector<8x416xf32> to vector<8x416xbf16>
    %c18_152 = arith.constant 18 : index
    %c0_153 = arith.constant 0 : index
    %c0_154 = arith.constant 0 : index
    %227 = vector.load %arg3[%c18_152, %c0_153, %c0_154] : memref<26x416x128xbf16, #tpu.memory_space<vmem>>, vector<1x416x128xbf16>
    %228 = vector.shape_cast %227 : vector<1x416x128xbf16> to vector<416x128xbf16>
    %cst_155 = arith.constant dense<0.000000e+00> : vector<8x128xf32>
    %229 = tpu.matmul %226, %228, %cst_155 {dimension_numbers = #tpu.dot_dimension_numbers<[1], [0], [0], [1], [0, 0, 1, 1], [], []>} : vector<8x416xbf16>, vector<416x128xbf16>, vector<8x128xf32> -> vector<8x128xf32>
    %230 = arith.addf %218, %229 : vector<8x128xf32>
    %c19 = arith.constant 19 : index
    %c0_156 = arith.constant 0 : index
    %c0_157 = arith.constant 0 : index
    %231 = vector.load %arg5[%c19, %c0_156, %c0_157] : memref<26x8x84xbf16, #tpu.memory_space<vmem>>, vector<1x8x84xbf16>
    %232 = vector.shape_cast %231 : vector<1x8x84xbf16> to vector<8x84xbf16>
    %cst_158 = arith.constant dense<0.000000e+00> : vector<8x416xf32>
    %233 = tpu.matmul %232, %0, %cst_158 {dimension_numbers = #tpu.dot_dimension_numbers<[1], [0], [0], [1], [0, 0, 1, 1], [], []>} : vector<8x84xbf16>, vector<84x416xbf16>, vector<8x416xf32> -> vector<8x416xf32>
    %234 = vector.broadcast %1 : vector<1x416xf32> to vector<8x416xf32>
    %235 = arith.addf %233, %234 : vector<8x416xf32>
    %cst_159 = arith.constant 0.000000e+00 : f32
    %236 = vector.broadcast %cst_159 : f32 to vector<8x416xf32>
    %237 = arith.maximumf %235, %236 : vector<8x416xf32>
    %238 = arith.truncf %237 : vector<8x416xf32> to vector<8x416xbf16>
    %c19_160 = arith.constant 19 : index
    %c0_161 = arith.constant 0 : index
    %c0_162 = arith.constant 0 : index
    %239 = vector.load %arg3[%c19_160, %c0_161, %c0_162] : memref<26x416x128xbf16, #tpu.memory_space<vmem>>, vector<1x416x128xbf16>
    %240 = vector.shape_cast %239 : vector<1x416x128xbf16> to vector<416x128xbf16>
    %cst_163 = arith.constant dense<0.000000e+00> : vector<8x128xf32>
    %241 = tpu.matmul %238, %240, %cst_163 {dimension_numbers = #tpu.dot_dimension_numbers<[1], [0], [0], [1], [0, 0, 1, 1], [], []>} : vector<8x416xbf16>, vector<416x128xbf16>, vector<8x128xf32> -> vector<8x128xf32>
    %242 = arith.addf %230, %241 : vector<8x128xf32>
    %c20 = arith.constant 20 : index
    %c0_164 = arith.constant 0 : index
    %c0_165 = arith.constant 0 : index
    %243 = vector.load %arg5[%c20, %c0_164, %c0_165] : memref<26x8x84xbf16, #tpu.memory_space<vmem>>, vector<1x8x84xbf16>
    %244 = vector.shape_cast %243 : vector<1x8x84xbf16> to vector<8x84xbf16>
    %cst_166 = arith.constant dense<0.000000e+00> : vector<8x416xf32>
    %245 = tpu.matmul %244, %0, %cst_166 {dimension_numbers = #tpu.dot_dimension_numbers<[1], [0], [0], [1], [0, 0, 1, 1], [], []>} : vector<8x84xbf16>, vector<84x416xbf16>, vector<8x416xf32> -> vector<8x416xf32>
    %246 = vector.broadcast %1 : vector<1x416xf32> to vector<8x416xf32>
    %247 = arith.addf %245, %246 : vector<8x416xf32>
    %cst_167 = arith.constant 0.000000e+00 : f32
    %248 = vector.broadcast %cst_167 : f32 to vector<8x416xf32>
    %249 = arith.maximumf %247, %248 : vector<8x416xf32>
    %250 = arith.truncf %249 : vector<8x416xf32> to vector<8x416xbf16>
    %c20_168 = arith.constant 20 : index
    %c0_169 = arith.constant 0 : index
    %c0_170 = arith.constant 0 : index
    %251 = vector.load %arg3[%c20_168, %c0_169, %c0_170] : memref<26x416x128xbf16, #tpu.memory_space<vmem>>, vector<1x416x128xbf16>
    %252 = vector.shape_cast %251 : vector<1x416x128xbf16> to vector<416x128xbf16>
    %cst_171 = arith.constant dense<0.000000e+00> : vector<8x128xf32>
    %253 = tpu.matmul %250, %252, %cst_171 {dimension_numbers = #tpu.dot_dimension_numbers<[1], [0], [0], [1], [0, 0, 1, 1], [], []>} : vector<8x416xbf16>, vector<416x128xbf16>, vector<8x128xf32> -> vector<8x128xf32>
    %254 = arith.addf %242, %253 : vector<8x128xf32>
    %c21 = arith.constant 21 : index
    %c0_172 = arith.constant 0 : index
    %c0_173 = arith.constant 0 : index
    %255 = vector.load %arg5[%c21, %c0_172, %c0_173] : memref<26x8x84xbf16, #tpu.memory_space<vmem>>, vector<1x8x84xbf16>
    %256 = vector.shape_cast %255 : vector<1x8x84xbf16> to vector<8x84xbf16>
    %cst_174 = arith.constant dense<0.000000e+00> : vector<8x416xf32>
    %257 = tpu.matmul %256, %0, %cst_174 {dimension_numbers = #tpu.dot_dimension_numbers<[1], [0], [0], [1], [0, 0, 1, 1], [], []>} : vector<8x84xbf16>, vector<84x416xbf16>, vector<8x416xf32> -> vector<8x416xf32>
    %258 = vector.broadcast %1 : vector<1x416xf32> to vector<8x416xf32>
    %259 = arith.addf %257, %258 : vector<8x416xf32>
    %cst_175 = arith.constant 0.000000e+00 : f32
    %260 = vector.broadcast %cst_175 : f32 to vector<8x416xf32>
    %261 = arith.maximumf %259, %260 : vector<8x416xf32>
    %262 = arith.truncf %261 : vector<8x416xf32> to vector<8x416xbf16>
    %c21_176 = arith.constant 21 : index
    %c0_177 = arith.constant 0 : index
    %c0_178 = arith.constant 0 : index
    %263 = vector.load %arg3[%c21_176, %c0_177, %c0_178] : memref<26x416x128xbf16, #tpu.memory_space<vmem>>, vector<1x416x128xbf16>
    %264 = vector.shape_cast %263 : vector<1x416x128xbf16> to vector<416x128xbf16>
    %cst_179 = arith.constant dense<0.000000e+00> : vector<8x128xf32>
    %265 = tpu.matmul %262, %264, %cst_179 {dimension_numbers = #tpu.dot_dimension_numbers<[1], [0], [0], [1], [0, 0, 1, 1], [], []>} : vector<8x416xbf16>, vector<416x128xbf16>, vector<8x128xf32> -> vector<8x128xf32>
    %266 = arith.addf %254, %265 : vector<8x128xf32>
    %c22 = arith.constant 22 : index
    %c0_180 = arith.constant 0 : index
    %c0_181 = arith.constant 0 : index
    %267 = vector.load %arg5[%c22, %c0_180, %c0_181] : memref<26x8x84xbf16, #tpu.memory_space<vmem>>, vector<1x8x84xbf16>
    %268 = vector.shape_cast %267 : vector<1x8x84xbf16> to vector<8x84xbf16>
    %cst_182 = arith.constant dense<0.000000e+00> : vector<8x416xf32>
    %269 = tpu.matmul %268, %0, %cst_182 {dimension_numbers = #tpu.dot_dimension_numbers<[1], [0], [0], [1], [0, 0, 1, 1], [], []>} : vector<8x84xbf16>, vector<84x416xbf16>, vector<8x416xf32> -> vector<8x416xf32>
    %270 = vector.broadcast %1 : vector<1x416xf32> to vector<8x416xf32>
    %271 = arith.addf %269, %270 : vector<8x416xf32>
    %cst_183 = arith.constant 0.000000e+00 : f32
    %272 = vector.broadcast %cst_183 : f32 to vector<8x416xf32>
    %273 = arith.maximumf %271, %272 : vector<8x416xf32>
    %274 = arith.truncf %273 : vector<8x416xf32> to vector<8x416xbf16>
    %c22_184 = arith.constant 22 : index
    %c0_185 = arith.constant 0 : index
    %c0_186 = arith.constant 0 : index
    %275 = vector.load %arg3[%c22_184, %c0_185, %c0_186] : memref<26x416x128xbf16, #tpu.memory_space<vmem>>, vector<1x416x128xbf16>
    %276 = vector.shape_cast %275 : vector<1x416x128xbf16> to vector<416x128xbf16>
    %cst_187 = arith.constant dense<0.000000e+00> : vector<8x128xf32>
    %277 = tpu.matmul %274, %276, %cst_187 {dimension_numbers = #tpu.dot_dimension_numbers<[1], [0], [0], [1], [0, 0, 1, 1], [], []>} : vector<8x416xbf16>, vector<416x128xbf16>, vector<8x128xf32> -> vector<8x128xf32>
    %278 = arith.addf %266, %277 : vector<8x128xf32>
    %c23 = arith.constant 23 : index
    %c0_188 = arith.constant 0 : index
    %c0_189 = arith.constant 0 : index
    %279 = vector.load %arg5[%c23, %c0_188, %c0_189] : memref<26x8x84xbf16, #tpu.memory_space<vmem>>, vector<1x8x84xbf16>
    %280 = vector.shape_cast %279 : vector<1x8x84xbf16> to vector<8x84xbf16>
    %cst_190 = arith.constant dense<0.000000e+00> : vector<8x416xf32>
    %281 = tpu.matmul %280, %0, %cst_190 {dimension_numbers = #tpu.dot_dimension_numbers<[1], [0], [0], [1], [0, 0, 1, 1], [], []>} : vector<8x84xbf16>, vector<84x416xbf16>, vector<8x416xf32> -> vector<8x416xf32>
    %282 = vector.broadcast %1 : vector<1x416xf32> to vector<8x416xf32>
    %283 = arith.addf %281, %282 : vector<8x416xf32>
    %cst_191 = arith.constant 0.000000e+00 : f32
    %284 = vector.broadcast %cst_191 : f32 to vector<8x416xf32>
    %285 = arith.maximumf %283, %284 : vector<8x416xf32>
    %286 = arith.truncf %285 : vector<8x416xf32> to vector<8x416xbf16>
    %c23_192 = arith.constant 23 : index
    %c0_193 = arith.constant 0 : index
    %c0_194 = arith.constant 0 : index
    %287 = vector.load %arg3[%c23_192, %c0_193, %c0_194] : memref<26x416x128xbf16, #tpu.memory_space<vmem>>, vector<1x416x128xbf16>
    %288 = vector.shape_cast %287 : vector<1x416x128xbf16> to vector<416x128xbf16>
    %cst_195 = arith.constant dense<0.000000e+00> : vector<8x128xf32>
    %289 = tpu.matmul %286, %288, %cst_195 {dimension_numbers = #tpu.dot_dimension_numbers<[1], [0], [0], [1], [0, 0, 1, 1], [], []>} : vector<8x416xbf16>, vector<416x128xbf16>, vector<8x128xf32> -> vector<8x128xf32>
    %290 = arith.addf %278, %289 : vector<8x128xf32>
    %c24 = arith.constant 24 : index
    %c0_196 = arith.constant 0 : index
    %c0_197 = arith.constant 0 : index
    %291 = vector.load %arg5[%c24, %c0_196, %c0_197] : memref<26x8x84xbf16, #tpu.memory_space<vmem>>, vector<1x8x84xbf16>
    %292 = vector.shape_cast %291 : vector<1x8x84xbf16> to vector<8x84xbf16>
    %cst_198 = arith.constant dense<0.000000e+00> : vector<8x416xf32>
    %293 = tpu.matmul %292, %0, %cst_198 {dimension_numbers = #tpu.dot_dimension_numbers<[1], [0], [0], [1], [0, 0, 1, 1], [], []>} : vector<8x84xbf16>, vector<84x416xbf16>, vector<8x416xf32> -> vector<8x416xf32>
    %294 = vector.broadcast %1 : vector<1x416xf32> to vector<8x416xf32>
    %295 = arith.addf %293, %294 : vector<8x416xf32>
    %cst_199 = arith.constant 0.000000e+00 : f32
    %296 = vector.broadcast %cst_199 : f32 to vector<8x416xf32>
    %297 = arith.maximumf %295, %296 : vector<8x416xf32>
    %298 = arith.truncf %297 : vector<8x416xf32> to vector<8x416xbf16>
    %c24_200 = arith.constant 24 : index
    %c0_201 = arith.constant 0 : index
    %c0_202 = arith.constant 0 : index
    %299 = vector.load %arg3[%c24_200, %c0_201, %c0_202] : memref<26x416x128xbf16, #tpu.memory_space<vmem>>, vector<1x416x128xbf16>
    %300 = vector.shape_cast %299 : vector<1x416x128xbf16> to vector<416x128xbf16>
    %cst_203 = arith.constant dense<0.000000e+00> : vector<8x128xf32>
    %301 = tpu.matmul %298, %300, %cst_203 {dimension_numbers = #tpu.dot_dimension_numbers<[1], [0], [0], [1], [0, 0, 1, 1], [], []>} : vector<8x416xbf16>, vector<416x128xbf16>, vector<8x128xf32> -> vector<8x128xf32>
    %302 = arith.addf %290, %301 : vector<8x128xf32>
    %c25 = arith.constant 25 : index
    %c0_204 = arith.constant 0 : index
    %c0_205 = arith.constant 0 : index
    %303 = vector.load %arg5[%c25, %c0_204, %c0_205] : memref<26x8x84xbf16, #tpu.memory_space<vmem>>, vector<1x8x84xbf16>
    %304 = vector.shape_cast %303 : vector<1x8x84xbf16> to vector<8x84xbf16>
    %cst_206 = arith.constant dense<0.000000e+00> : vector<8x416xf32>
    %305 = tpu.matmul %304, %0, %cst_206 {dimension_numbers = #tpu.dot_dimension_numbers<[1], [0], [0], [1], [0, 0, 1, 1], [], []>} : vector<8x84xbf16>, vector<84x416xbf16>, vector<8x416xf32> -> vector<8x416xf32>
    %306 = vector.broadcast %1 : vector<1x416xf32> to vector<8x416xf32>
    %307 = arith.addf %305, %306 : vector<8x416xf32>
    %cst_207 = arith.constant 0.000000e+00 : f32
    %308 = vector.broadcast %cst_207 : f32 to vector<8x416xf32>
    %309 = arith.maximumf %307, %308 : vector<8x416xf32>
    %310 = arith.truncf %309 : vector<8x416xf32> to vector<8x416xbf16>
    %c25_208 = arith.constant 25 : index
    %c0_209 = arith.constant 0 : index
    %c0_210 = arith.constant 0 : index
    %311 = vector.load %arg3[%c25_208, %c0_209, %c0_210] : memref<26x416x128xbf16, #tpu.memory_space<vmem>>, vector<1x416x128xbf16>
    %312 = vector.shape_cast %311 : vector<1x416x128xbf16> to vector<416x128xbf16>
    %cst_211 = arith.constant dense<0.000000e+00> : vector<8x128xf32>
    %313 = tpu.matmul %310, %312, %cst_211 {dimension_numbers = #tpu.dot_dimension_numbers<[1], [0], [0], [1], [0, 0, 1, 1], [], []>} : vector<8x416xbf16>, vector<416x128xbf16>, vector<8x128xf32> -> vector<8x128xf32>
    %314 = arith.addf %302, %313 : vector<8x128xf32>
    %c0_212 = arith.constant 0 : index
    %c0_213 = arith.constant 0 : index
    %315 = vector.load %arg4[%c0_212, %c0_213] : memref<1x128xf32, #tpu.memory_space<vmem>>, vector<1x128xf32>
    %316 = vector.broadcast %315 : vector<1x128xf32> to vector<8x128xf32>
    %317 = arith.addf %314, %316 : vector<8x128xf32>
    %c0_214 = arith.constant 0 : index
    %c0_215 = arith.constant 0 : index
    %318 = vector.load %arg6[%c0_214, %c0_215] : memref<8x128xf32, #tpu.memory_space<vmem>>, vector<8x128xf32>
    tpu.vector_store %arg6[%c0_214, %c0_215], %317 {strides = array<i32>} : memref<8x128xf32, #tpu.memory_space<vmem>>, vector<8x128xf32>,
    return
  }
  func.func @transform_0(%arg0: i32) -> (i32, i32) {
    %c0_i32 = arith.constant 0 : i32
    %c0_i32_0 = arith.constant 0 : i32
    %c0_i32_1 = arith.constant 0 : i32
    return %c0_i32, %c0_i32_0 : i32, i32
  }
  func.func @transform_1(%arg0: i32) -> (i32, i32) {
    %c0_i32 = arith.constant 0 : i32
    %c0_i32_0 = arith.constant 0 : i32
    %c0_i32_1 = arith.constant 0 : i32
    return %c0_i32, %c0_i32_0 : i32, i32
  }
  func.func @transform_2(%arg0: i32) -> (i32, i32, i32) {
    %c0_i32 = arith.constant 0 : i32
    %c0_i32_0 = arith.constant 0 : i32
    %c0_i32_1 = arith.constant 0 : i32
    %c0_i32_2 = arith.constant 0 : i32
    return %c0_i32, %c0_i32_0, %c0_i32_1 : i32, i32, i32
  }
  func.func @transform_3(%arg0: i32) -> (i32, i32) {
    %c0_i32 = arith.constant 0 : i32
    %c0_i32_0 = arith.constant 0 : i32
    %c0_i32_1 = arith.constant 0 : i32
    return %c0_i32, %c0_i32_0 : i32, i32
  }
  func.func @transform_4(%arg0: i32) -> (i32, i32, i32) {
    %c0_i32 = arith.constant 0 : i32
    %c0_i32_0 = arith.constant 0 : i32
    %c0_i32_1 = arith.constant 0 : i32
    return %c0_i32, %arg0, %c0_i32_0 : i32, i32, i32
  }
  func.func @transform_5(%arg0: i32) -> (i32, i32) {
    %c0_i32 = arith.constant 0 : i32
    %c0_i32_0 = arith.constant 0 : i32
    return %arg0, %c0_i32 : i32, i32
  }
}

</mosaic_0001>

<bundles_post_ra>
// kernel: abc_net_forward.1
= control target key start
LH: loop header
LB: loop body
LE: loop exit
PB: predicated region body
PF: predicated region fallthrough
CT: control target
= control target key end

     0   :  { %10 = vsyncpa [#allocation3], 0  ;;  %s14246_s0 = inlined_call_operand.hbm [shape: bf16[84,416], index: 0, kind: input, shape index: {}]   ;;  %s14247_s1 = inlined_call_operand.hbm [shape: f32[1,416], index: 1, kind: input, shape index: {}]   ;;  %s14248_s2 = inlined_call_operand.hbm [shape: bf16[26,416,128], index: 2, kind: input, shape index: {}]   ;;  %s14249_s3 = inlined_call_operand.hbm [shape: f32[1,128], index: 3, kind: input, shape index: {}]   ;;  %s14250_s4 = inlined_call_operand.vmem [shape: bf16[26,8,84], index: 4, kind: input, shape index: {}]   ;;  %s14251_s5 = inlined_call_operand.vmem [shape: f32[8,128], index: 5, kind: output, shape index: {}]  }
   0x1   :  { %11 = vsyncpa [#allocation5], 0 }
   0x2   :  { %12 = vsyncpa [#allocation8], 0  ;;  %s12694_s18 = smov [#allocation4]   ;;  %s12695_s20 = smov [#allocation2]  }
   0x3   :  { %s31_s19 = sshll.u32 %s12694_s18, 4  ;;  %s18_s21 = sshll.u32 %s12695_s20, 4  ;;  %s32_s19 = int_to_ptr.vmem [resolvable:$true] %s31_s19  ;;  %s19_s21 = int_to_ptr.vmem [resolvable:$true] %s18_s21 }
   0x4   :  { %s12616_s22 = scalar_lea.vmem %s32_s19, 64  ;;  %p12621_p1 = scmp.lt.s32.totalorder %s32_s19, %s32_s19 }
   0x5   :  { %p12617_p0 = scmp.ne.s32.totalorder %s32_s19, %s12616_s22  ;;  %p12622_p2 = scmp.lt.s32.totalorder %s12616_s22, %s12616_s22 }
   0x7   :  { %p12623_p3 = por %p12622_p2, %p12621_p1 }
   0x9   :  { %p12624_p4 = pnand %p12623_p3, %p12617_p0 }
   0xb   :  { %12627 = shalt.err (!%p12624_p4)
}
   0xc   :  { %34 = dma.hbm_to_vmem [thread:$0]  %s14247_s1, 64, %s32_s19, [#allocation5]  }
   0xd   :  { %s12636_s25 = scalar_lea.vmem %s19_s21, 2816  ;;  %p12641_p6 = scmp.lt.s32.totalorder %s19_s21, %s19_s21 }
   0xe   :  { %p12637_p5 = scmp.ne.s32.totalorder %s19_s21, %s12636_s25  ;;  %p12642_p7 = scmp.lt.s32.totalorder %s12636_s25, %s12636_s25 }
  0x10   :  { %p12643_p8 = por %p12642_p7, %p12641_p6 }
  0x12   :  { %p12644_p9 = pnand %p12643_p8, %p12637_p5 }
  0x14   :  { %12647 = shalt.err (!%p12644_p9)
}
  0x15   :  { %s12696_s26 = smov 256   ;;  %s12697_s27 = smov 16  }
  0x16   :  { %24 = dma.hbm_to_vmem [thread:$0]  %s14246_s0, 2816, %s19_s21, [#allocation3], %s12696_s26, %s12696_s26, %s12697_s27  }
  0x17   :  { %s12698_s30 = smov [#allocation6]  }
  0x18   :  { %s40_s6 = sshll.u32 %s12698_s30, 4  ;;  %s41_s6 = int_to_ptr.vmem [resolvable:$true] %s40_s6 }
  0x19   :  { %s12656_s7 = scalar_lea.vmem %s41_s6, 86528  ;;  %p12661_p11 = scmp.lt.s32.totalorder %s41_s6, %s41_s6 }
  0x1a   :  { %p12657_p10 = scmp.ne.s32.totalorder %s41_s6, %s12656_s7  ;;  %p12662_p12 = scmp.lt.s32.totalorder %s12656_s7, %s12656_s7 }
  0x1c   :  { %p12663_p13 = por %p12662_p12, %p12661_p11 }
  0x1e   :  { %p12664_p0 = pnand %p12663_p13, %p12657_p10 }
  0x20   :  { %12667 = shalt.err (!%p12664_p0)
}
  0x21   :  { %s12699_s1 = smov 64   ;;  %s12700_s8 = smov 4  }
  0x22   :  { %46 = dma.hbm_to_vmem [thread:$0]  %s14248_s2, 86528, %s41_s6, [#allocation5], %s12699_s1, %s12699_s1, %s12700_s8  }
  0x23   :  { %s12701_s11 = smov [#allocation7]  }
  0x24   :  { %s53_s12 = sshll.u32 %s12701_s11, 4  ;;  %s54_s12 = int_to_ptr.vmem [resolvable:$true] %s53_s12 }
  0x25   :  { %s12676_s0 = scalar_lea.vmem %s54_s12, 16  ;;  %s12680_s13 = scalar_lea.vmem %s54_s12, 32 }
  0x26   :  { %p12677_p1 = scmp.ne.s32.totalorder %s54_s12, %s12676_s0  ;;  %p12681_p2 = scmp.lt.s32.totalorder %s54_s12, %s54_s12 }
  0x27   :  { %p12682_p3 = scmp.lt.s32.totalorder %s12680_s13, %s12676_s0 }
  0x29   :  { %p12683_p4 = por %p12682_p3, %p12681_p2 }
  0x2b   :  { %p12684_p5 = pnand %p12683_p4, %p12677_p1 }
  0x2d   :  { %12687 = shalt.err (!%p12684_p5)
}
  0x2e   :  { %56 = dma.hbm_to_vmem [thread:$0]  %s14249_s3, 16, %s54_s12, [#allocation8]  }
  0x2f   :  { %12688 = dma.done.wait [#allocation3], 2816  }
  0x30   :  { %12689 = vsyncadd [#allocation3], 4294964480 }
  0x31   :  { %12690 = dma.done.wait [#allocation5], 86592  }
  0x32   :  { %12691 = vsyncadd [#allocation5], 4294880704 }
  0x33   :  { %12692 = dma.done.wait [#allocation8], 16  }
  0x34   :  { %12693 = vsyncadd [#allocation8], 4294967280  ;;  %v12702_v0 = vmov 0   ;;  %v92_v1 = vld [vmem:[#allocation2 + $0xa0] sm:$0x33]  ;;  %vm231_vm0 = vcmask 1041408   ;;  %v97_v58 = vlaneseq }
  0x35   :  { %423 = vmatprep.mubr.bf16.mxu0 %v12702_v0  ;;  %276 = vmatprep.mubr.bf16.mxu1 %v12702_v0  ;;  %v12747_v2 = vcombine.high %v92_v1, %v92_v1  ;;  %v10361_v3 = vcombine.low %v92_v1, %v92_v1  ;;  %v11780_v4 = vld [vmem:[#allocation2 + $0x84] ss:$16 sps:$4 sm:$0xff]   ;;  %v11782_v6 = vld [vmem:[#allocation2 + $0x80] ss:$16 sps:$4 sm:$0xff]   ;;  %v93_v14 = vld [vmem:[#allocation2 + $0xa8] sm:$0x33] }
  0x36   :  { %v11783_v7 = vld [vmem:[#allocation2 + $0x64] ss:$16 sps:$4 sm:$0xff]   ;;  %v11785_v8 = vld [vmem:[#allocation2 + $0x60] ss:$16 sps:$4 sm:$0xff]   ;;  %v12758_v16 = vcombine.high %v93_v14, %v93_v14  ;;  %vm227_vm1 = vcmask 687104   ;;  %v10363_v17 = vcombine.low %v93_v14, %v93_v14  ;;  %v12796_v59 = vshrl.u32 %v97_v58, 7 }
  0x37   :  { %10365 = vmatprep.subr.msk.bf16.mxu1 %vm231_vm0, %v12747_v2  ;;  %10370 = vmatprep.subr.msk.bf16.mxu0 %vm231_vm0, %v12747_v2  ;;  %v12754_v5 = vsel %vm231_vm0, %v10361_v3, 0  ;;  %v11786_v9 = vld [vmem:[#allocation2 + $0x44] ss:$16 sps:$4 sm:$0xff]   ;;  %v11788_v10 = vld [vmem:[#allocation2 + $0x40] ss:$16 sps:$4 sm:$0xff]   ;;  %vm690_vm2 = vcmask 261120  }
  0x38   :  { %249 = vmatpush1.bf16.msra.mxu1 %v12754_v5  ;;  %396 = vmatpush1.bf16.msra.mxu0 %v12754_v5  ;;  %v11789_v11 = vld [vmem:[#allocation2 + $0x24] ss:$16 sps:$4 sm:$0xff]   ;;  %v11791_v12 = vld [vmem:[#allocation2 + $0x20] ss:$16 sps:$4 sm:$0xff]   ;;  %v11797_v21 = vld [vmem:[#allocation2 + $0x8c] ss:$16 sps:$4 sm:$0xff]  }
  0x39   :  { %250 = vmatprep.subr.bf16.mxu1 %v11780_v4  ;;  %397 = vmatprep.subr.bf16.mxu0 %v11780_v4  ;;  %v11792_v13 = vld [vmem:[#allocation2 + $0x4] ss:$16 sps:$4 sm:$0xff]   ;;  %v11794_v15 = vld [vmem:[#allocation2] ss:$16 sps:$4 sm:$0xff]   ;;  %v12771_v22 = vsel %vm231_vm0, %v10363_v17, 0  ;;  %v99_v60 = vsub.s32 0, %v12796_v59 }
  0x3a   :  { %v11812_v18 = vld [vmem:[#allocation6 + $0x148] sm:$0xff]   ;;  %v12763_v19 = vld [vmem:[%s14250_s4 + $0x4] sm:$0xf]  ;;  %v11799_v24 = vld [vmem:[#allocation2 + $0x88] ss:$16 sps:$4 sm:$0xff]   ;;  %v103_v61 = vsub.s32 1, %v12796_v59 }
  0x3b   :  { %v95_v20 = vld [vmem:[%s14250_s4] sm:$0xf]  ;;  %v11814_v25 = vld [vmem:[#allocation6 + $0x140] sm:$0xff]   ;;  %v11800_v26 = vld [vmem:[#allocation2 + $0x6c] ss:$16 sps:$4 sm:$0xff]  }
  0x3c   :  { %251 = vmatpush1.bf16.msra.mxu1 %v11782_v6  ;;  %398 = vmatpush1.bf16.msra.mxu0 %v11782_v6  ;;  %v11813_v23 = vld [vmem:[#allocation6 + $0x108] sm:$0xff]   ;;  %v11815_v27 = vld [vmem:[#allocation6 + $0x100] sm:$0xff]   ;;  %v11816_v28 = vld [vmem:[#allocation6 + $0x138] sm:$0xff]  }
  0x3d   :  { %252 = vmatprep.subr.bf16.mxu1 %v11783_v7  ;;  %399 = vmatprep.subr.bf16.mxu0 %v11783_v7  ;;  %v11802_v29 = vld [vmem:[#allocation2 + $0x68] ss:$16 sps:$4 sm:$0xff]   ;;  %v11803_v30 = vld [vmem:[#allocation2 + $0x4c] ss:$16 sps:$4 sm:$0xff]   ;;  %v12800_v62 = vld [vmem:[#allocation4] sm:$0xf] }
  0x3e   :  { %v11817_v31 = vld [vmem:[#allocation6 + $0xf8] sm:$0xff]   ;;  %v11818_v32 = vld [vmem:[#allocation6 + $0x130] sm:$0xff]   ;;  %v11820_v36 = vld [vmem:[#allocation6 + $0x128] sm:$0xff]   ;;  %v12803_v63 = vrot.slane %v12800_v62, %v99_v60  ;;  %v12806_v1 = vrot.slane %v12800_v62, %v103_v61 }
  0x3f   :  { %v11805_v33 = vld [vmem:[#allocation2 + $0x48] ss:$16 sps:$4 sm:$0xff]   ;;  %v11806_v34 = vld [vmem:[#allocation2 + $0x2c] ss:$16 sps:$4 sm:$0xff]   ;;  %v12491_v60 = vld [vmem:[#allocation2 + $0x60] ss:$16 sps:$4 sm:$0xff]  }
  0x40   :  { %253 = vmatpush1.bf16.msra.mxu1 %v11785_v8  ;;  %400 = vmatpush1.bf16.msra.mxu0 %v11785_v8  ;;  %v11819_v35 = vld [vmem:[#allocation6 + $0xf0] sm:$0xff]   ;;  %v11809_v38 = vld [vmem:[#allocation2 + $0xc] ss:$16 sps:$4 sm:$0xff]   ;;  %v11822_v40 = vld [vmem:[#allocation6 + $0x120] sm:$0xff]  }
  0x41   :  { %254 = vmatprep.subr.bf16.mxu1 %v11786_v9  ;;  %401 = vmatprep.subr.bf16.mxu0 %v11786_v9  ;;  %v11808_v37 = vld [vmem:[#allocation2 + $0x28] ss:$16 sps:$4 sm:$0xff]   ;;  %v11821_v39 = vld [vmem:[#allocation6 + $0xe8] sm:$0xff]   ;;  %v11824_v43 = vld [vmem:[#allocation6 + $0x118] sm:$0xff]  }
  0x42   :  { %v11811_v41 = vld [vmem:[#allocation2 + $0x8] ss:$16 sps:$4 sm:$0xff]   ;;  %v11825_v44 = vld [vmem:[#allocation6 + $0xd8] sm:$0xff]   ;;  %v11833_v48 = vld [vmem:[#allocation6 + $0x188] sm:$0xff]  }
  0x43   :  { %v11823_v42 = vld [vmem:[#allocation6 + $0xe0] sm:$0xff]   ;;  %v11826_v45 = vld [vmem:[#allocation6 + $0x110] sm:$0xff]   ;;  %v11828_v47 = vld [vmem:[#allocation6 + $0x78] sm:$0xff]  }
  0x44   :  { %255 = vmatpush1.bf16.msra.mxu1 %v11788_v10  ;;  %402 = vmatpush1.bf16.msra.mxu0 %v11788_v10  ;;  %v11827_v46 = vld [vmem:[#allocation6 + $0xd0] sm:$0xff]   ;;  %v11836_v49 = vld [vmem:[#allocation6 + $0x180] sm:$0xff]   ;;  %v11839_v50 = vld [vmem:[#allocation6 + $0x178] sm:$0xff]  }
  0x45   :  { %256 = vmatprep.subr.bf16.mxu1 %v11789_v11  ;;  %403 = vmatprep.subr.bf16.mxu0 %v11789_v11  ;;  %v11842_v51 = vld [vmem:[#allocation6 + $0x170] sm:$0xff]   ;;  %v11845_v52 = vld [vmem:[#allocation6 + $0x168] sm:$0xff]   ;;  %v11848_v53 = vld [vmem:[#allocation6 + $0x160] sm:$0xff]  }
  0x46   :  { %v11850_v54 = vld [vmem:[#allocation6 + $0x158] sm:$0xff]   ;;  %v11851_v55 = vld [vmem:[#allocation6 + $0x150] sm:$0xff]  }
  0x47   :  { %v11852_v56 = vld [vmem:[#allocation6 + $0x198] sm:$0xff]   ;;  %v11853_v57 = vld [vmem:[#allocation6 + $0x190] sm:$0xff]  }
  0x48   :  { %257 = vmatpush1.bf16.msra.mxu1 %v11791_v12  ;;  %404 = vmatpush1.bf16.msra.mxu0 %v11791_v12  ;;  %v12492_v61 = vld [vmem:[#allocation2 + $0x44] ss:$16 sps:$4 sm:$0xff]  }
  0x49   :  { %258 = vmatprep.subr.bf16.mxu1 %v11792_v13  ;;  %405 = vmatprep.subr.bf16.mxu0 %v11792_v13 }
  0x4c   :  { %259 = vmatpush1.bf16.msra.mxu1 %v11794_v15  ;;  %406 = vmatpush1.bf16.msra.mxu0 %v11794_v15  ;;  %v11829_v15 = vld [vmem:[#allocation6 + $0x38] sm:$0xff]  }
  0x4d   :  { %10367 = vmatprep.subr.msk.bf16.mxu1 %vm231_vm0, %v12758_v16  ;;  %11197 = vmatprep.subr.bf16.mxu0 %v11812_v18 }
  0x4f   :  { %10371 = vmatmul.mubr.msk.bf16.vlgmr.msra.gmra.mxu0 %vm227_vm1, %v12763_v19  ;;  %10366 = vmatmul.mubr.msk.bf16.vlgmr.msra.gmra.mxu1 %vm227_vm1, %v95_v20 }
  0x50   :  { %290 = vmatpush1.bf16.msra.mxu1 %v12771_v22  ;;  %317 = vmatprep.mubr.bf16.mxu1 %v12702_v0 }
  0x51   :  { %291 = vmatprep.subr.bf16.mxu1 %v11797_v21  ;;  %11198 = vmatpush3.bf16.msra.mxu0 %v11813_v23 }
  0x52   :  { %11199 = vmatprep.subr.bf16.mxu0 %v11814_v25  ;;  %v11831_v25 = vld [vmem:[#allocation6 + $0x30] sm:$0xff]  }
  0x54   :  { %292 = vmatpush1.bf16.msra.mxu1 %v11799_v24 }
  0x55   :  { %293 = vmatprep.subr.bf16.mxu1 %v11800_v26  ;;  %11200 = vmatpush3.bf16.msra.mxu0 %v11815_v27  ;;  %v11834_v27 = vld [vmem:[#allocation6 + $0x28] sm:$0xff]  }
  0x56   :  { %11201 = vmatprep.subr.bf16.mxu0 %v11816_v28  ;;  %v11835_v28 = vld [vmem:[#allocation6 + $0x60] sm:$0xff]  }
  0x58   :  { %294 = vmatpush1.bf16.msra.mxu1 %v11802_v29 }
  0x59   :  { %295 = vmatprep.subr.bf16.mxu1 %v11803_v30  ;;  %11202 = vmatpush3.bf16.msra.mxu0 %v11817_v31  ;;  %v11840_v31 = vld [vmem:[#allocation6 + $0x18] sm:$0xff]  }
  0x5a   :  { %11203 = vmatprep.subr.bf16.mxu0 %v11818_v32  ;;  %v11841_v32 = vld [vmem:[#allocation6 + $0x50] sm:$0xff]  }
  0x5c   :  { %296 = vmatpush1.bf16.msra.mxu1 %v11805_v33 }
  0x5d   :  { %297 = vmatprep.subr.bf16.mxu1 %v11806_v34  ;;  %11204 = vmatpush3.bf16.msra.mxu0 %v11819_v35  ;;  %v11843_v35 = vld [vmem:[#allocation6 + $0x10] sm:$0xff]  }
  0x5e   :  { %11205 = vmatprep.subr.bf16.mxu0 %v11820_v36 }
  0x60   :  { %298 = vmatpush1.bf16.msra.mxu1 %v11808_v37 }
  0x61   :  { %299 = vmatprep.subr.bf16.mxu1 %v11809_v38  ;;  %11206 = vmatpush3.bf16.msra.mxu0 %v11821_v39 }
  0x62   :  { %11207 = vmatprep.subr.bf16.mxu0 %v11822_v40 }
  0x64   :  { %300 = vmatpush1.bf16.msra.mxu1 %v11811_v41 }
  0x65   :  { %10372 = vmatprep.subr.msk.bf16.mxu1 %vm231_vm0, %v12758_v16  ;;  %11208 = vmatpush3.bf16.msra.mxu0 %v11823_v42  ;;  %v111_v42 = vsub.s32 3, %v12796_v59 }
  0x66   :  { %11209 = vmatprep.subr.bf16.mxu0 %v11824_v43  ;;  %v11847_v43 = vld [vmem:[#allocation6 + $0x40] sm:$0xff]  }
  0x67   :  { %10368 = vmatmul.mubr.msk.bf16.vlgmr.msra.gmra.mxu1 %vm227_vm1, %v95_v20 }
  0x68   :  { %437 = vmatpush1.bf16.msra.mxu1 %v12771_v22  ;;  %464 = vmatprep.mubr.bf16.mxu1 %v12702_v0 }
  0x69   :  { %438 = vmatprep.subr.bf16.mxu1 %v11797_v21  ;;  %11210 = vmatpush3.bf16.msra.mxu0 %v11825_v44 }
  0x6a   :  { %11211 = vmatprep.subr.bf16.mxu0 %v11826_v45  ;;  %v11849_v45 = vld [vmem:[#allocation6] sm:$0xff]  }
  0x6c   :  { %439 = vmatpush1.bf16.msra.mxu1 %v11799_v24 }
  0x6d   :  { %440 = vmatprep.subr.bf16.mxu1 %v11800_v26  ;;  %11212 = vmatpush3.bf16.msra.mxu0 %v11827_v46  ;;  %v11832_v26 = vld [vmem:[#allocation6 + $0x68] sm:$0xff]  }
  0x6e   :  { %11219 = vmatprep.subr.bf16.mxu0 %v11828_v47  ;;  %v12488_v47 = vld [vmem:[#allocation2 + $0x84] ss:$16 sps:$4 sm:$0xff]  }
  0x70   :  { %441 = vmatpush1.bf16.msra.mxu1 %v11802_v29  ;;  %v11837_v29 = vld [vmem:[#allocation6 + $0x20] sm:$0xff]  }
  0x71   :  { %442 = vmatprep.subr.bf16.mxu1 %v11803_v30  ;;  %v11838_v30 = vld [vmem:[#allocation6 + $0x58] sm:$0xff]  }
  0x74   :  { %443 = vmatpush1.bf16.msra.mxu1 %v11805_v33 }
  0x75   :  { %444 = vmatprep.subr.bf16.mxu1 %v11806_v34 }
  0x78   :  { %445 = vmatpush1.bf16.msra.mxu1 %v11808_v37  ;;  %v11844_v37 = vld [vmem:[#allocation6 + $0x48] sm:$0xff]  }
  0x79   :  { %446 = vmatprep.subr.bf16.mxu1 %v11809_v38  ;;  %v107_v38 = vsub.s32 2, %v12796_v59 }
  0x7c   :  { %447 = vmatpush1.bf16.msra.mxu1 %v11811_v41  ;;  %v11846_v41 = vld [vmem:[#allocation6 + $0x8] sm:$0xff]  }
  0x7d   :  { %734 = vmatprep.subr.bf16.mxu1 %v12702_v0 }
  0x7f   :  { %10373 = vmatmul.mubr.msk.bf16.vlgmr.msra.gmra.mxu1 %vm227_vm1, %v12763_v19  ;;  %v11830_v19 = vld [vmem:[#allocation6 + $0x70] sm:$0xff]  }
  0x80   :  { %735 = vmatpush1.bf16.msra.mxu1 %v11833_v48  ;;  %v12819_v48 = vrot.slane %v12800_v62, %v107_v38  ;;  %v12503_v38 = vld [vmem:[#allocation2 + $0x48] ss:$16 sps:$4 sm:$0xff]  }
  0x81   :  { %736 = vmatprep.subr.bf16.mxu1 %v12702_v0 }
  0x84   :  { %737 = vmatpush1.bf16.msra.mxu1 %v11836_v49 }
  0x85   :  { %738 = vmatprep.subr.bf16.mxu1 %v12702_v0 }
  0x88   :  { %739 = vmatpush1.bf16.msra.mxu1 %v11839_v50  ;;  %v12825_v50 = vrot.slane %v12800_v62, %v111_v42  ;;  %v11870_v42 = vld [vmem:[#allocation6 + $0x200] sm:$0xff]  }
  0x89   :  { %740 = vmatprep.subr.bf16.mxu1 %v12702_v0 }
  0x8c   :  { %741 = vmatpush1.bf16.msra.mxu1 %v11842_v51  ;;  %v12489_v51 = vld [vmem:[#allocation2 + $0x80] ss:$16 sps:$4 sm:$0xff]  }
  0x8d   :  { %742 = vmatprep.subr.bf16.mxu1 %v12702_v0 }
  0x90   :  { %743 = vmatpush1.bf16.msra.mxu1 %v11845_v52 }
  0x91   :  { %744 = vmatprep.subr.bf16.mxu1 %v12702_v0 }
  0x94   :  { %745 = vmatpush1.bf16.msra.mxu1 %v11848_v53  ;;  %v12490_v53 = vld [vmem:[#allocation2 + $0x64] ss:$16 sps:$4 sm:$0xff]  }
  0x95   :  { %746 = vmatprep.subr.bf16.mxu1 %v12702_v0 }
  0x98   :  { %747 = vmatpush1.bf16.msra.mxu1 %v11850_v54 }
  0x99   :  { %748 = vmatprep.subr.bf16.mxu1 %v12702_v0 }
  0x9c   :  { %749 = vmatpush1.bf16.msra.mxu1 %v11851_v55 }
  0x9d   :  { %762 = vmatprep.subr.bf16.mxu1 %v12702_v0 }
  0xa0   :  { %763 = vmatpush2.bf16.msra.mxu1 %v11852_v56 }
  0xa1   :  { %764 = vmatprep.subr.bf16.mxu1 %v12702_v0 }
  0xa4   :  { %765 = vmatpush2.bf16.msra.mxu1 %v11853_v57 }
  0xa5   :  { %973 = vmatprep.subr.bf16.mxu1 %v12702_v0 }
 0x10f   :  { %v425_v3 = vpop.f32.mrf.mxu0  ;;  %v278_v4 = vpop.f32.mrf.mxu1 }
 0x110   :  { %v426_v6 = vadd.f32 %v425_v3, %v12803_v63  ;;  %v279_v34 = vadd.f32 %v278_v4, %v12803_v63 }
 0x111   :  { %v427_v7 = vpop.f32.mrf.mxu0  ;;  %v280_v8 = vpop.f32.mrf.mxu1 }
 0x112   :  { %v473_v9 = vmax.f32 %v426_v6, 0.0  ;;  %v428_v10 = vadd.f32 %v427_v7, %v12806_v1  ;;  %v281_v11 = vadd.f32 %v280_v8, %v12806_v1  ;;  %v326_v40 = vmax.f32 %v279_v34, 0.0  ;;  %v11854_v6 = vld [vmem:[#allocation6 + $0xb8] sm:$0xff]   ;;  %v12501_v34 = vld [vmem:[#allocation2 + $0x68] ss:$16 sps:$4 sm:$0xff]  }
 0x113   :  { %v429_v12 = vpop.f32.mrf.mxu0  ;;  %v282_v13 = vpop.f32.mrf.mxu1 }
 0x114   :  { %v474_v14 = vmax.f32 %v428_v10, 0.0  ;;  %v327_v17 = vmax.f32 %v281_v11, 0.0  ;;  %v477_v24 = vpack.c.bf16 %v473_v9, %v473_v9  ;;  %v330_v46 = vpack.c.bf16 %v326_v40, %v326_v40  ;;  %v12493_v10 = vld [vmem:[#allocation2 + $0x40] ss:$16 sps:$4 sm:$0xff]   ;;  %v12494_v11 = vld [vmem:[#allocation2 + $0x24] ss:$16 sps:$4 sm:$0xff]  }
 0x115   :  { %v430_v18 = vpop.f32.mrf.mxu0  ;;  %v283_v20 = vpop.f32.mrf.mxu1  ;;  %v11855_v13 = vld [vmem:[#allocation6 + $0xb0] sm:$0xff]   ;;  %v11868_v40 = vld [vmem:[#allocation6 + $0x208] sm:$0xff]  }
 0x116   :  { %v478_v21 = vpack.c.bf16 %v474_v14, %v474_v14  ;;  %v331_v23 = vpack.c.bf16 %v327_v17, %v327_v17  ;;  %v12495_v14 = vld [vmem:[#allocation2 + $0x20] ss:$16 sps:$4 sm:$0xff]   ;;  %v12836_v17 = vld [vmem:[%s14250_s4 + $0x8] sm:$0xf]  ;;  %v11857_v20 = vld [vmem:[#allocation6 + $0xa0] sm:$0xff]  }
 0x117   :  { %v11856_v18 = vld [vmem:[#allocation6 + $0xa8] sm:$0xff]  }
 0x118   :  { %726 = vmatprep.mubr.bf16.mxu0 %v478_v21  ;;  %v11858_v21 = vld [vmem:[#allocation6 + $0x98] sm:$0xff]  }
 0x119   :  { %727 = vmatmul.mubr.bf16.vlgmr.msra.gmra.mxu0 %v477_v24  ;;  %v11860_v24 = vld [vmem:[#allocation6 + $0x88] sm:$0xff]  }
 0x11a   :  { %11220 = vmatpush3.bf16.msra.mxu0 %v11829_v15  ;;  %965 = vmatprep.mubr.bf16.mxu0 %v331_v23  ;;  %v12496_v15 = vld [vmem:[#allocation2 + $0x4] ss:$16 sps:$4 sm:$0xff]  }
 0x11b   :  { %11221 = vmatprep.subr.bf16.mxu0 %v11830_v19  ;;  %v12497_v19 = vld [vmem:[#allocation2] ss:$16 sps:$4 sm:$0xff]   ;;  %v11859_v23 = vld [vmem:[#allocation6 + $0x90] sm:$0xff]  }
 0x11e   :  { %11222 = vmatpush3.bf16.msra.mxu0 %v11831_v25  ;;  %v11861_v25 = vld [vmem:[#allocation6 + $0x80] sm:$0xff]  }
 0x11f   :  { %11223 = vmatprep.subr.bf16.mxu0 %v11832_v26  ;;  %v11862_v26 = vld [vmem:[#allocation6 + $0xc8] sm:$0xff]  }
 0x122   :  { %11224 = vmatpush3.bf16.msra.mxu0 %v11834_v27  ;;  %v11863_v27 = vld [vmem:[#allocation6 + $0xc0] sm:$0xff]  }
 0x123   :  { %11225 = vmatprep.subr.bf16.mxu0 %v11835_v28 }
 0x126   :  { %11226 = vmatpush3.bf16.msra.mxu0 %v11837_v29  ;;  %v12498_v29 = vld [vmem:[#allocation2 + $0x8c] ss:$16 sps:$4 sm:$0xff]  }
 0x127   :  { %11227 = vmatprep.subr.bf16.mxu0 %v11838_v30  ;;  %v319_v33 = vpop.f32.mrf.mxu1  ;;  %v12499_v30 = vld [vmem:[#allocation2 + $0x88] ss:$16 sps:$4 sm:$0xff]  }
 0x128   :  { %v12822_v49 = vadd.f32 %v319_v33, %v12819_v48  ;;  %v11865_v33 = vld [vmem:[#allocation6 + $0x1d8] sm:$0xff]  }
 0x129   :  { %v321_v36 = vpop.f32.mrf.mxu1 }
 0x12a   :  { %11228 = vmatpush3.bf16.msra.mxu0 %v11840_v31  ;;  %v322_v54 = vadd.f32 %v321_v36, %v12825_v50  ;;  %v328_v57 = vmax.f32 %v12822_v49, 0.0  ;;  %v12500_v31 = vld [vmem:[#allocation2 + $0x6c] ss:$16 sps:$4 sm:$0xff]   ;;  %v11866_v36 = vld [vmem:[#allocation6 + $0x210] sm:$0xff]  }
 0x12b   :  { %11229 = vmatprep.subr.bf16.mxu0 %v11841_v32  ;;  %v323_v39 = vpop.f32.mrf.mxu1  ;;  %v11864_v32 = vld [vmem:[#allocation6 + $0x218] sm:$0xff]  }
 0x12c   :  { %v329_v3 = vmax.f32 %v322_v54, 0.0  ;;  %v332_v28 = vpack.c.bf16 %v328_v57, %v328_v57  ;;  %v12504_v39 = vld [vmem:[#allocation2 + $0x2c] ss:$16 sps:$4 sm:$0xff]  }
 0x12d   :  { %v324_v44 = vpop.f32.mrf.mxu1  ;;  %v11873_v49 = vld [vmem:[#allocation6 + $0x1b8] sm:$0xff]   ;;  %v11877_v54 = vld [vmem:[#allocation6 + $0x1a8] sm:$0xff]  }
 0x12e   :  { %11230 = vmatpush3.bf16.msra.mxu0 %v11843_v35  ;;  %v333_v12 = vpack.c.bf16 %v329_v3, %v329_v3  ;;  %v12502_v35 = vld [vmem:[#allocation2 + $0x4c] ss:$16 sps:$4 sm:$0xff]   ;;  %v12505_v44 = vld [vmem:[#allocation2 + $0x28] ss:$16 sps:$4 sm:$0xff]  }
 0x12f   :  { %11231 = vmatprep.subr.bf16.mxu0 %v11844_v37  ;;  %v11867_v37 = vld [vmem:[#allocation6 + $0x1d0] sm:$0xff]   ;;  %v11880_v57 = vld [vmem:[#allocation6 + $0x258] sm:$0xff]   ;;  %v11886_v3 = vld [vmem:[#allocation6 + $0x228] sm:$0xff]  }
 0x132   :  { %11232 = vmatpush3.bf16.msra.mxu0 %v11846_v41  ;;  %v11869_v41 = vld [vmem:[#allocation6 + $0x1c8] sm:$0xff]  }
 0x133   :  { %11233 = vmatprep.subr.bf16.mxu0 %v11847_v43  ;;  %v11871_v43 = vld [vmem:[#allocation6 + $0x1c0] sm:$0xff]  }
 0x136   :  { %11234 = vmatpush3.bf16.msra.mxu0 %v11849_v45  ;;  %v12506_v45 = vld [vmem:[#allocation2 + $0xc] ss:$16 sps:$4 sm:$0xff]  }
 0x137   :  { %10429 = vmatprep.subr.msk.bf16.mxu0 %vm231_vm0, %v12747_v2 }
 0x139   :  { %966 = vmatmul.mubr.bf16.vlgmr.msra.gmra.mxu0 %v330_v46  ;;  %v12507_v46 = vld [vmem:[#allocation2 + $0x8] ss:$16 sps:$4 sm:$0xff]  }
 0x13a   :  { %1023 = vmatpush1.bf16.msra.mxu0 %v12754_v5  ;;  %1050 = vmatprep.mubr.bf16.mxu0 %v12702_v0 }
 0x13b   :  { %1024 = vmatprep.subr.bf16.mxu0 %v12488_v47  ;;  %v11872_v47 = vld [vmem:[#allocation6 + $0x1f8] sm:$0xff]  }
 0x13e   :  { %1025 = vmatpush1.bf16.msra.mxu0 %v12489_v51  ;;  %v11874_v51 = vld [vmem:[#allocation6 + $0x1f0] sm:$0xff]  }
 0x13f   :  { %v466_v52 = vpop.f32.mrf.mxu1  ;;  %1026 = vmatprep.subr.bf16.mxu0 %v12490_v53  ;;  %v11876_v53 = vld [vmem:[#allocation6 + $0x1e8] sm:$0xff]  }
 0x140   :  { %v467_v55 = vadd.f32 %v466_v52, %v12819_v48  ;;  %v11875_v52 = vld [vmem:[#allocation6 + $0x1b0] sm:$0xff]  }
 0x141   :  { %v468_v56 = vpop.f32.mrf.mxu1 }
 0x142   :  { %v475_v58 = vmax.f32 %v467_v55, 0.0  ;;  %v469_v59 = vadd.f32 %v468_v56, %v12825_v50  ;;  %1027 = vmatpush1.bf16.msra.mxu0 %v12491_v60  ;;  %v11878_v55 = vld [vmem:[#allocation6 + $0x1e0] sm:$0xff]  }
 0x143   :  { %1028 = vmatprep.subr.bf16.mxu0 %v12492_v61  ;;  %v470_v62 = vpop.f32.mrf.mxu1  ;;  %v11879_v56 = vld [vmem:[#allocation6 + $0x1a0] sm:$0xff]   ;;  %v11884_v61 = vld [vmem:[#allocation6 + $0x238] sm:$0xff]  }
 0x144   :  { %v476_v4 = vmax.f32 %v469_v59, 0.0  ;;  %v479_v7 = vpack.c.bf16 %v475_v58, %v475_v58  ;;  %v11881_v58 = vld [vmem:[#allocation6 + $0x250] sm:$0xff]   ;;  %v11882_v59 = vld [vmem:[#allocation6 + $0x248] sm:$0xff]   ;;  %v11883_v60 = vld [vmem:[#allocation6 + $0x240] sm:$0xff]  }
 0x145   :  { %v471_v8 = vpop.f32.mrf.mxu1  ;;  %v11885_v62 = vld [vmem:[#allocation6 + $0x230] sm:$0xff]  }
 0x146   :  { %v480_v9 = vpack.c.bf16 %v476_v4, %v476_v4  ;;  %1029 = vmatpush1.bf16.msra.mxu0 %v12493_v10  ;;  %v11887_v4 = vld [vmem:[#allocation6 + $0x220] sm:$0xff]  }
 0x147   :  { %1030 = vmatprep.subr.bf16.mxu0 %v12494_v11 }
 0x148   :  { %10400 = vmatprep.mubr.msk.bf16.mxu1 %vm690_vm2, %v480_v9 }
 0x149   :  { %767 = vmatmul.mubr.bf16.vlgmr.msra.gmra.mxu1 %v479_v7  ;;  %v11889_v7 = vld [vmem:[#allocation6 + $0x260] sm:$0xff]  }
 0x14a   :  { %974 = vmatpush1.bf16.msra.mxu1 %v11854_v6  ;;  %1031 = vmatpush1.bf16.msra.mxu0 %v12495_v14  ;;  %v11888_v6 = vld [vmem:[#allocation6 + $0x268] sm:$0xff]  }
 0x14b   :  { %975 = vmatprep.subr.bf16.mxu1 %v12702_v0  ;;  %1032 = vmatprep.subr.bf16.mxu0 %v12496_v15 }
 0x14c   :  { %10427 = vmatprep.mubr.msk.bf16.mxu1 %vm690_vm2, %v333_v12 }
 0x14e   :  { %976 = vmatpush1.bf16.msra.mxu1 %v11855_v13  ;;  %1033 = vmatpush1.bf16.msra.mxu0 %v12497_v19 }
 0x14f   :  { %977 = vmatprep.subr.bf16.mxu1 %v12702_v0  ;;  %11241 = vmatprep.subr.bf16.mxu0 %v11864_v32 }
 0x151   :  { %10430 = vmatmul.mubr.msk.bf16.vlgmr.msra.gmra.mxu0 %vm227_vm1, %v12836_v17 }
 0x152   :  { %978 = vmatpush1.bf16.msra.mxu1 %v11856_v18  ;;  %11242 = vmatpush3.bf16.msra.mxu0 %v11865_v33 }
 0x153   :  { %979 = vmatprep.subr.bf16.mxu1 %v12702_v0  ;;  %11243 = vmatprep.subr.bf16.mxu0 %v11866_v36  ;;  %v12871_v36 = vld [vmem:[#allocation2 + $0x84] ss:$16 sps:$4 sm:$0xff]  }
 0x156   :  { %980 = vmatpush1.bf16.msra.mxu1 %v11857_v20  ;;  %11244 = vmatpush3.bf16.msra.mxu0 %v11867_v37  ;;  %v12874_v37 = vld [vmem:[#allocation2 + $0x80] ss:$16 sps:$4 sm:$0xff]  }
 0x157   :  { %981 = vmatprep.subr.bf16.mxu1 %v12702_v0  ;;  %11245 = vmatprep.subr.bf16.mxu0 %v11868_v40  ;;  %v12883_v40 = vld [vmem:[#allocation2 + $0x44] ss:$16 sps:$4 sm:$0xff]  }
 0x15a   :  { %982 = vmatpush1.bf16.msra.mxu1 %v11858_v21  ;;  %11246 = vmatpush3.bf16.msra.mxu0 %v11869_v41  ;;  %v12886_v41 = vld [vmem:[#allocation2 + $0x40] ss:$16 sps:$4 sm:$0xff]  }
 0x15b   :  { %983 = vmatprep.subr.bf16.mxu1 %v12702_v0  ;;  %11247 = vmatprep.subr.bf16.mxu0 %v11870_v42  ;;  %v12889_v42 = vld [vmem:[#allocation2 + $0x24] ss:$16 sps:$4 sm:$0xff]  }
 0x15e   :  { %984 = vmatpush1.bf16.msra.mxu1 %v11859_v23  ;;  %11248 = vmatpush3.bf16.msra.mxu0 %v11871_v43  ;;  %v12892_v43 = vld [vmem:[#allocation2 + $0x20] ss:$16 sps:$4 sm:$0xff]  }
 0x15f   :  { %985 = vmatprep.subr.bf16.mxu1 %v12702_v0  ;;  %11249 = vmatprep.subr.bf16.mxu0 %v11872_v47 }
 0x162   :  { %986 = vmatpush1.bf16.msra.mxu1 %v11860_v24  ;;  %11250 = vmatpush3.bf16.msra.mxu0 %v11873_v49 }
 0x163   :  { %987 = vmatprep.subr.bf16.mxu1 %v12702_v0  ;;  %11251 = vmatprep.subr.bf16.mxu0 %v11874_v51 }
 0x166   :  { %988 = vmatpush1.bf16.msra.mxu1 %v11861_v25  ;;  %11252 = vmatpush3.bf16.msra.mxu0 %v11875_v52  ;;  %v12911_v52 = vld [vmem:[#allocation2 + $0x8c] ss:$16 sps:$4 sm:$0xff]  }
 0x167   :  { %1001 = vmatprep.subr.bf16.mxu1 %v12702_v0  ;;  %11253 = vmatprep.subr.bf16.mxu0 %v11876_v53 }
 0x16a   :  { %1002 = vmatpush2.bf16.msra.mxu1 %v11862_v26  ;;  %11254 = vmatpush3.bf16.msra.mxu0 %v11877_v54 }
 0x16b   :  { %1003 = vmatprep.subr.bf16.mxu1 %v12702_v0  ;;  %11255 = vmatprep.subr.bf16.mxu0 %v11878_v55  ;;  %v12914_v55 = vld [vmem:[#allocation2 + $0x88] ss:$16 sps:$4 sm:$0xff]  }
 0x16e   :  { %1004 = vmatpush2.bf16.msra.mxu1 %v11863_v27  ;;  %11256 = vmatpush3.bf16.msra.mxu0 %v11879_v56  ;;  %v12917_v56 = vld [vmem:[#allocation2 + $0x6c] ss:$16 sps:$4 sm:$0xff]  }
 0x16f   :  { %10431 = vmatprep.subr.msk.bf16.mxu1 %vm231_vm0, %v12758_v16  ;;  %10461 = vmatprep.subr.msk.bf16.mxu0 %vm231_vm0, %v12747_v2 }
 0x171   :  { %1006 = vmatmul.mubr.bf16.vlgmr.msra.gmra.mxu1 %v332_v28 }
 0x172   :  { %1064 = vmatpush1.bf16.msra.mxu1 %v12771_v22  ;;  %1091 = vmatprep.mubr.bf16.mxu1 %v12702_v0 }
 0x173   :  { %1065 = vmatprep.subr.bf16.mxu1 %v12498_v29 }
 0x176   :  { %1066 = vmatpush1.bf16.msra.mxu1 %v12499_v30 }
 0x177   :  { %1067 = vmatprep.subr.bf16.mxu1 %v12500_v31 }
 0x17a   :  { %1068 = vmatpush1.bf16.msra.mxu1 %v12501_v34 }
 0x17b   :  { %1069 = vmatprep.subr.bf16.mxu1 %v12502_v35 }
 0x17e   :  { %1070 = vmatpush1.bf16.msra.mxu1 %v12503_v38  ;;  %v12877_v38 = vld [vmem:[#allocation2 + $0x64] ss:$16 sps:$4 sm:$0xff]  }
 0x17f   :  { %1071 = vmatprep.subr.bf16.mxu1 %v12504_v39  ;;  %v12880_v39 = vld [vmem:[#allocation2 + $0x60] ss:$16 sps:$4 sm:$0xff]  }
 0x182   :  { %1072 = vmatpush1.bf16.msra.mxu1 %v12505_v44  ;;  %v12895_v44 = vld [vmem:[#allocation2 + $0x4] ss:$16 sps:$4 sm:$0xff]  }
 0x183   :  { %1073 = vmatprep.subr.bf16.mxu1 %v12506_v45  ;;  %v12898_v45 = vld [vmem:[#allocation2] ss:$16 sps:$4 sm:$0xff]  }
 0x186   :  { %1074 = vmatpush1.bf16.msra.mxu1 %v12507_v46  ;;  %v10460_v46 = vld [vmem:[%s14250_s4 + $0xc] sm:$0xf] }
 0x187   :  { %1360 = vmatprep.subr.bf16.mxu1 %v12702_v0 }
 0x189   :  { %10432 = vmatmul.mubr.msk.bf16.vlgmr.msra.gmra.mxu1 %vm227_vm1, %v12836_v17 }
 0x18a   :  { %1361 = vmatpush1.bf16.msra.mxu1 %v11880_v57  ;;  %v12920_v57 = vld [vmem:[#allocation2 + $0x68] ss:$16 sps:$4 sm:$0xff]  }
 0x18b   :  { %1362 = vmatprep.subr.bf16.mxu1 %v12702_v0 }
 0x18e   :  { %1363 = vmatpush1.bf16.msra.mxu1 %v11881_v58  ;;  %v12923_v58 = vld [vmem:[#allocation2 + $0x4c] ss:$16 sps:$4 sm:$0xff]  }
 0x18f   :  { %1364 = vmatprep.subr.bf16.mxu1 %v12702_v0 }
 0x192   :  { %1365 = vmatpush1.bf16.msra.mxu1 %v11882_v59  ;;  %v12926_v59 = vld [vmem:[#allocation2 + $0x48] ss:$16 sps:$4 sm:$0xff]  }
 0x193   :  { %1366 = vmatprep.subr.bf16.mxu1 %v12702_v0 }
 0x196   :  { %1367 = vmatpush1.bf16.msra.mxu1 %v11883_v60  ;;  %v12929_v60 = vld [vmem:[#allocation2 + $0x2c] ss:$16 sps:$4 sm:$0xff]  }
 0x197   :  { %1368 = vmatprep.subr.bf16.mxu1 %v12702_v0 }
 0x19a   :  { %1369 = vmatpush1.bf16.msra.mxu1 %v11884_v61  ;;  %v12932_v61 = vld [vmem:[#allocation2 + $0x28] ss:$16 sps:$4 sm:$0xff]  }
 0x19b   :  { %1370 = vmatprep.subr.bf16.mxu1 %v12702_v0 }
 0x19e   :  { %1371 = vmatpush1.bf16.msra.mxu1 %v11885_v62  ;;  %v12935_v62 = vld [vmem:[#allocation2 + $0xc] ss:$16 sps:$4 sm:$0xff]  }
 0x19f   :  { %1372 = vmatprep.subr.bf16.mxu1 %v12702_v0 }
 0x1a2   :  { %1373 = vmatpush1.bf16.msra.mxu1 %v11886_v3  ;;  %v12938_v3 = vld [vmem:[#allocation2 + $0x8] ss:$16 sps:$4 sm:$0xff]  }
 0x1a3   :  { %1374 = vmatprep.subr.bf16.mxu1 %v12702_v0 }
 0x1a6   :  { %1375 = vmatpush1.bf16.msra.mxu1 %v11887_v4 }
 0x1a7   :  { %1388 = vmatprep.subr.bf16.mxu1 %v12702_v0 }
 0x1aa   :  { %1389 = vmatpush2.bf16.msra.mxu1 %v11888_v6 }
 0x1ab   :  { %1390 = vmatprep.subr.bf16.mxu1 %v12702_v0 }
 0x1ae   :  { %1391 = vmatpush2.bf16.msra.mxu1 %v11889_v7 }
 0x1d9   :  { %v11213_v8 = vpop.f32.mrf.mxu0 }
 0x1db   :  { %v11214_v9 = vpop.f32.mrf.mxu0 }
 0x1dc   :  { %v11215_v10 = vadd.f32 %v11214_v9, %v11213_v8 }
 0x1dd   :  { %v11216_v11 = vpop.f32.mrf.mxu0 }
 0x1df   :  { %v11217_v12 = vpop.f32.mrf.mxu0 }
 0x1f9   :  { %v11235_v13 = vpop.f32.mrf.mxu0 }
 0x1fb   :  { %v11236_v14 = vpop.f32.mrf.mxu0 }
 0x1fc   :  { %v11237_v15 = vadd.f32 %v11236_v14, %v11235_v13 }
 0x1fd   :  { %v11238_v17 = vpop.f32.mrf.mxu0 }
 0x1fe   :  { %v11891_v17 = vld [vmem:[#allocation6 + $0x2a8] sm:$0xff]  }
 0x1ff   :  { %v11239_v18 = vpop.f32.mrf.mxu0 }
 0x200   :  { %v11892_v18 = vld [vmem:[#allocation6 + $0x2e0] sm:$0xff]  }
 0x209   :  { %v768_v19 = vpop.f32.mrf.mxu1 }
 0x20a   :  { %v769_v20 = vadd.f32 %v11215_v10, %v768_v19  ;;  %v11893_v19 = vld [vmem:[#allocation6 + $0x2a0] sm:$0xff]  }
 0x20b   :  { %v770_v21 = vpop.f32.mrf.mxu1 }
 0x20c   :  { %v968_v23 = vadd.f32 %v11237_v15, %v769_v20  ;;  %v11890_v15 = vld [vmem:[#allocation6 + $0x2e8] sm:$0xff]   ;;  %v11894_v20 = vld [vmem:[#allocation6 + $0x2d8] sm:$0xff]  }
 0x20d   :  { %v771_v24 = vpop.f32.mrf.mxu1  ;;  %11263 = vmatprep.subr.bf16.mxu1 %v11890_v15  ;;  %v11895_v21 = vld [vmem:[#allocation6 + $0x298] sm:$0xff]  }
 0x20e   :  { %v11900_v24 = vld [vmem:[#allocation6 + $0x328] sm:$0xff]  }
 0x20f   :  { %v772_v25 = vpop.f32.mrf.mxu1 }
 0x210   :  { %v11897_v25 = vld [vmem:[#allocation6 + $0x290] sm:$0xff]  }
 0x211   :  { %v1052_v26 = vpop.f32.mrf.mxu0 }
 0x212   :  { %v1053_v27 = vadd.f32 %v1052_v26, %v12803_v63  ;;  %v11903_v26 = vld [vmem:[#allocation6 + $0x320] sm:$0xff]  }
 0x213   :  { %v1054_v28 = vpop.f32.mrf.mxu0 }
 0x214   :  { %v1100_v29 = vmax.f32 %v1053_v27, 0.0  ;;  %v1055_v30 = vadd.f32 %v1054_v28, %v12806_v1  ;;  %v11898_v27 = vld [vmem:[#allocation6 + $0x2c8] sm:$0xff]  }
 0x215   :  { %v1056_v31 = vpop.f32.mrf.mxu0  ;;  %v11899_v28 = vld [vmem:[#allocation6 + $0x288] sm:$0xff]  }
 0x216   :  { %v1101_v32 = vmax.f32 %v1055_v30, 0.0  ;;  %v1104_v35 = vpack.c.bf16 %v1100_v29, %v1100_v29  ;;  %v11901_v29 = vld [vmem:[#allocation6 + $0x2c0] sm:$0xff]   ;;  %v11904_v31 = vld [vmem:[#allocation6 + $0x2b8] sm:$0xff]  }
 0x217   :  { %v1057_v33 = vpop.f32.mrf.mxu0  ;;  %v11902_v30 = vld [vmem:[#allocation6 + $0x280] sm:$0xff]  }
 0x218   :  { %v1105_v34 = vpack.c.bf16 %v1101_v32, %v1101_v32  ;;  %v11905_v32 = vld [vmem:[#allocation6 + $0x278] sm:$0xff]  }
 0x219   :  { %v11906_v33 = vld [vmem:[#allocation6 + $0x318] sm:$0xff]  }
 0x21a   :  { %1352 = vmatprep.mubr.bf16.mxu0 %v1105_v34  ;;  %v11907_v34 = vld [vmem:[#allocation6 + $0x2b0] sm:$0xff]  }
 0x21b   :  { %1353 = vmatmul.mubr.bf16.vlgmr.msra.gmra.mxu0 %v1104_v35  ;;  %v11908_v35 = vld [vmem:[#allocation6 + $0x270] sm:$0xff]  }
 0x21c   :  { %1411 = vmatpush1.bf16.msra.mxu0 %v12754_v5  ;;  %1438 = vmatprep.mubr.bf16.mxu0 %v12702_v0 }
 0x21d   :  { %1412 = vmatprep.subr.bf16.mxu0 %v12871_v36 }
 0x220   :  { %1413 = vmatpush1.bf16.msra.mxu0 %v12874_v37 }
 0x221   :  { %1414 = vmatprep.subr.bf16.mxu0 %v12877_v38 }
 0x224   :  { %1415 = vmatpush1.bf16.msra.mxu0 %v12880_v39 }
 0x225   :  { %1416 = vmatprep.subr.bf16.mxu0 %v12883_v40 }
 0x228   :  { %1417 = vmatpush1.bf16.msra.mxu0 %v12886_v41 }
 0x229   :  { %1418 = vmatprep.subr.bf16.mxu0 %v12889_v42 }
 0x22c   :  { %1419 = vmatpush1.bf16.msra.mxu0 %v12892_v43 }
 0x22d   :  { %1420 = vmatprep.subr.bf16.mxu0 %v12895_v44 }
 0x230   :  { %1421 = vmatpush1.bf16.msra.mxu0 %v12898_v45 }
 0x231   :  { %v1007_v47 = vpop.f32.mrf.mxu1  ;;  %10463 = vmatprep.subr.msk.bf16.mxu0 %vm231_vm0, %v12758_v16 }
 0x232   :  { %v12906_v49 = vadd.f32 %v1007_v47, %v968_v23  ;;  %v11896_v23 = vld [vmem:[#allocation6 + $0x2d0] sm:$0xff]   ;;  %v11910_v47 = vld [vmem:[#allocation6 + $0x308] sm:$0xff]  }
 0x233   :  { %10462 = vmatmul.mubr.msk.bf16.vlgmr.msra.gmra.mxu0 %vm227_vm1, %v10460_v46  ;;  %v1009_v51 = vpop.f32.mrf.mxu1 }
 0x234   :  { %1452 = vmatpush1.bf16.msra.mxu0 %v12771_v22  ;;  %1479 = vmatprep.mubr.bf16.mxu0 %v12702_v0  ;;  %v11911_v51 = vld [vmem:[#allocation6 + $0x300] sm:$0xff]  }
 0x235   :  { %1453 = vmatprep.subr.bf16.mxu0 %v12911_v52  ;;  %v1010_v53 = vpop.f32.mrf.mxu1 }
 0x236   :  { %v11912_v53 = vld [vmem:[#allocation6 + $0x2f8] sm:$0xff]  }
 0x237   :  { %v1011_v54 = vpop.f32.mrf.mxu1 }
 0x238   :  { %1454 = vmatpush1.bf16.msra.mxu0 %v12914_v55  ;;  %v11913_v54 = vld [vmem:[#allocation6 + $0x2f0] sm:$0xff]  }
 0x239   :  { %1455 = vmatprep.subr.bf16.mxu0 %v12917_v56 }
 0x23c   :  { %1456 = vmatpush1.bf16.msra.mxu0 %v12920_v57 }
 0x23d   :  { %1457 = vmatprep.subr.bf16.mxu0 %v12923_v58 }
 0x240   :  { %1458 = vmatpush1.bf16.msra.mxu0 %v12926_v59 }
 0x241   :  { %1459 = vmatprep.subr.bf16.mxu0 %v12929_v60 }
 0x244   :  { %1460 = vmatpush1.bf16.msra.mxu0 %v12932_v61 }
 0x245   :  { %1461 = vmatprep.subr.bf16.mxu0 %v12935_v62 }
 0x248   :  { %1462 = vmatpush1.bf16.msra.mxu0 %v12938_v3 }
 0x249   :  { %v1093_v4 = vpop.f32.mrf.mxu1  ;;  %1748 = vmatprep.subr.bf16.mxu0 %v12702_v0 }
 0x24a   :  { %v1094_v6 = vadd.f32 %v1093_v4, %v12819_v48  ;;  %v11914_v4 = vld [vmem:[#allocation6 + $0x338] sm:$0xff]  }
 0x24b   :  { %10464 = vmatmul.mubr.msk.bf16.vlgmr.msra.gmra.mxu0 %vm227_vm1, %v10460_v46  ;;  %v1095_v7 = vpop.f32.mrf.mxu1  ;;  %v11909_v46 = vld [vmem:[#allocation6 + $0x310] sm:$0xff]  }
 0x24c   :  { %v1102_v8 = vmax.f32 %v1094_v6, 0.0  ;;  %v1096_v9 = vadd.f32 %v1095_v7, %v12825_v50  ;;  %1749 = vmatpush1.bf16.msra.mxu0 %v11900_v24  ;;  %v11915_v6 = vld [vmem:[#allocation6 + $0x330] sm:$0xff]  }
 0x24d   :  { %v1097_v10 = vpop.f32.mrf.mxu1  ;;  %1750 = vmatprep.subr.bf16.mxu0 %v12702_v0 }
 0x24e   :  { %v1103_v11 = vmax.f32 %v1096_v9, 0.0  ;;  %v1106_v12 = vpack.c.bf16 %v1102_v8, %v1102_v8 }
 0x24f   :  { %v1098_v13 = vpop.f32.mrf.mxu1 }
 0x250   :  { %v1107_v14 = vpack.c.bf16 %v1103_v11, %v1103_v11  ;;  %1751 = vmatpush1.bf16.msra.mxu0 %v11903_v26 }
 0x251   :  { %1752 = vmatprep.subr.bf16.mxu0 %v12702_v0 }
 0x252   :  { %10459 = vmatprep.mubr.msk.bf16.mxu1 %vm690_vm2, %v1107_v14 }
 0x253   :  { %1393 = vmatmul.mubr.bf16.vlgmr.msra.gmra.mxu1 %v1106_v12 }
 0x254   :  { %11264 = vmatpush3.bf16.msra.mxu1 %v11891_v17  ;;  %1753 = vmatpush1.bf16.msra.mxu0 %v11906_v33 }
 0x255   :  { %11265 = vmatprep.subr.bf16.mxu1 %v11892_v18  ;;  %1754 = vmatprep.subr.bf16.mxu0 %v12702_v0 }
 0x258   :  { %11266 = vmatpush3.bf16.msra.mxu1 %v11893_v19  ;;  %1755 = vmatpush1.bf16.msra.mxu0 %v11909_v46 }
 0x259   :  { %11267 = vmatprep.subr.bf16.mxu1 %v11894_v20  ;;  %1756 = vmatprep.subr.bf16.mxu0 %v12702_v0 }
 0x25c   :  { %11268 = vmatpush3.bf16.msra.mxu1 %v11895_v21  ;;  %1757 = vmatpush1.bf16.msra.mxu0 %v11910_v47 }
 0x25d   :  { %11269 = vmatprep.subr.bf16.mxu1 %v11896_v23  ;;  %1758 = vmatprep.subr.bf16.mxu0 %v12702_v0 }
 0x260   :  { %11270 = vmatpush3.bf16.msra.mxu1 %v11897_v25  ;;  %1759 = vmatpush1.bf16.msra.mxu0 %v11911_v51 }
 0x261   :  { %11271 = vmatprep.subr.bf16.mxu1 %v11898_v27  ;;  %1760 = vmatprep.subr.bf16.mxu0 %v12702_v0 }
 0x264   :  { %11272 = vmatpush3.bf16.msra.mxu1 %v11899_v28  ;;  %1761 = vmatpush1.bf16.msra.mxu0 %v11912_v53 }
 0x265   :  { %11273 = vmatprep.subr.bf16.mxu1 %v11901_v29  ;;  %1762 = vmatprep.subr.bf16.mxu0 %v12702_v0 }
 0x268   :  { %11274 = vmatpush3.bf16.msra.mxu1 %v11902_v30  ;;  %1763 = vmatpush1.bf16.msra.mxu0 %v11913_v54 }
 0x269   :  { %11275 = vmatprep.subr.bf16.mxu1 %v11904_v31  ;;  %1776 = vmatprep.subr.bf16.mxu0 %v12702_v0 }
 0x26c   :  { %11276 = vmatpush3.bf16.msra.mxu1 %v11905_v32  ;;  %1777 = vmatpush2.bf16.msra.mxu0 %v11914_v4  ;;  %v11917_v4 = vld [vmem:[#allocation6 + $0x378] sm:$0xff]  }
 0x26d   :  { %11277 = vmatprep.subr.bf16.mxu1 %v11907_v34  ;;  %1778 = vmatprep.subr.bf16.mxu0 %v12702_v0  ;;  %v10492_v34 = vld [vmem:[%s14250_s4 + $0x10] sm:$0xf] }
 0x270   :  { %11278 = vmatpush3.bf16.msra.mxu1 %v11908_v35  ;;  %1779 = vmatpush2.bf16.msra.mxu0 %v11915_v6  ;;  %v11918_v6 = vld [vmem:[#allocation6 + $0x3b0] sm:$0xff]  }
 0x271   :  { %10493 = vmatprep.subr.msk.bf16.mxu1 %vm231_vm0, %v12747_v2 }
 0x2db   :  { %v11257_v7 = vpop.f32.mrf.mxu0 }
 0x2dd   :  { %v11258_v8 = vpop.f32.mrf.mxu0 }
 0x2de   :  { %v11259_v9 = vadd.f32 %v11258_v8, %v11257_v7  ;;  %v11919_v7 = vld [vmem:[#allocation6 + $0x370] sm:$0xff]   ;;  %v11920_v8 = vld [vmem:[#allocation6 + $0x3a8] sm:$0xff]  }
 0x2df   :  { %v11260_v10 = vpop.f32.mrf.mxu0 }
 0x2e0   :  { %v11922_v10 = vld [vmem:[#allocation6 + $0x3a0] sm:$0xff]  }
 0x2e1   :  { %v11261_v11 = vpop.f32.mrf.mxu0 }
 0x2e2   :  { %v11926_v11 = vld [vmem:[#allocation6 + $0x3f8] sm:$0xff]  }
 0x2f3   :  { %v1440_v12 = vpop.f32.mrf.mxu0 }
 0x2f4   :  { %v1441_v13 = vadd.f32 %v1440_v12, %v12803_v63  ;;  %v11923_v12 = vld [vmem:[#allocation6 + $0x360] sm:$0xff]  }
 0x2f5   :  { %v1442_v14 = vpop.f32.mrf.mxu0 }
 0x2f6   :  { %v1443_v15 = vadd.f32 %v1442_v14, %v12806_v1  ;;  %v1488_v17 = vmax.f32 %v1441_v13, 0.0  ;;  %v11929_v13 = vld [vmem:[#allocation6 + $0x3f0] sm:$0xff]   ;;  %v11924_v14 = vld [vmem:[#allocation6 + $0x398] sm:$0xff]  }
 0x2f7   :  { %v1444_v18 = vpop.f32.mrf.mxu0 }
 0x2f8   :  { %v1489_v19 = vmax.f32 %v1443_v15, 0.0  ;;  %v1492_v23 = vpack.c.bf16 %v1488_v17, %v1488_v17  ;;  %v11925_v15 = vld [vmem:[#allocation6 + $0x358] sm:$0xff]   ;;  %v11927_v17 = vld [vmem:[#allocation6 + $0x390] sm:$0xff]  }
 0x2f9   :  { %v1445_v20 = vpop.f32.mrf.mxu0  ;;  %v11928_v18 = vld [vmem:[#allocation6 + $0x350] sm:$0xff]  }
 0x2fa   :  { %v1493_v21 = vpack.c.bf16 %v1489_v19, %v1489_v19  ;;  %v11930_v19 = vld [vmem:[#allocation6 + $0x388] sm:$0xff]  }
 0x2fb   :  { %v11931_v20 = vld [vmem:[#allocation6 + $0x348] sm:$0xff]  }
 0x2fc   :  { %1740 = vmatprep.mubr.bf16.mxu1 %v1493_v21  ;;  %v11932_v21 = vld [vmem:[#allocation6 + $0x3e8] sm:$0xff]  }
 0x2fd   :  { %1741 = vmatmul.mubr.bf16.vlgmr.msra.gmra.mxu1 %v1492_v23  ;;  %v11933_v23 = vld [vmem:[#allocation6 + $0x380] sm:$0xff]  }
 0x2fe   :  { %1799 = vmatpush1.bf16.msra.mxu1 %v12754_v5  ;;  %1826 = vmatprep.mubr.bf16.mxu1 %v12702_v0 }
 0x2ff   :  { %1800 = vmatprep.subr.bf16.mxu1 %v12871_v36 }
 0x302   :  { %1801 = vmatpush1.bf16.msra.mxu1 %v12874_v37 }
 0x303   :  { %1802 = vmatprep.subr.bf16.mxu1 %v12877_v38 }
 0x306   :  { %1803 = vmatpush1.bf16.msra.mxu1 %v12880_v39 }
 0x307   :  { %1804 = vmatprep.subr.bf16.mxu1 %v12883_v40 }
 0x30a   :  { %1805 = vmatpush1.bf16.msra.mxu1 %v12886_v41 }
 0x30b   :  { %v1481_v24 = vpop.f32.mrf.mxu0  ;;  %1806 = vmatprep.subr.bf16.mxu1 %v12889_v42 }
 0x30c   :  { %v1482_v25 = vadd.f32 %v1481_v24, %v12819_v48  ;;  %v11934_v24 = vld [vmem:[#allocation6 + $0x340] sm:$0xff]  }
 0x30d   :  { %v1483_v26 = vpop.f32.mrf.mxu0 }
 0x30e   :  { %v1490_v27 = vmax.f32 %v1482_v25, 0.0  ;;  %v1484_v28 = vadd.f32 %v1483_v26, %v12825_v50  ;;  %1807 = vmatpush1.bf16.msra.mxu1 %v12892_v43  ;;  %v11935_v25 = vld [vmem:[#allocation6 + $0x3e0] sm:$0xff]   ;;  %v11936_v26 = vld [vmem:[#allocation6 + $0x3d8] sm:$0xff]  }
 0x30f   :  { %1808 = vmatprep.subr.bf16.mxu1 %v12895_v44  ;;  %v1485_v29 = vpop.f32.mrf.mxu0 }
 0x310   :  { %v1491_v30 = vmax.f32 %v1484_v28, 0.0  ;;  %v1494_v31 = vpack.c.bf16 %v1490_v27, %v1490_v27  ;;  %v11937_v27 = vld [vmem:[#allocation6 + $0x3d0] sm:$0xff]   ;;  %v11938_v28 = vld [vmem:[#allocation6 + $0x3c8] sm:$0xff]   ;;  %v11939_v29 = vld [vmem:[#allocation6 + $0x3c0] sm:$0xff]  }
 0x311   :  { %v1486_v32 = vpop.f32.mrf.mxu0 }
 0x312   :  { %v1495_v33 = vpack.c.bf16 %v1491_v30, %v1491_v30  ;;  %1809 = vmatpush1.bf16.msra.mxu1 %v12898_v45  ;;  %v11940_v30 = vld [vmem:[#allocation6 + $0x408] sm:$0xff]  }
 0x313   :  { %v1394_v35 = vpop.f32.mrf.mxu1  ;;  %10495 = vmatprep.subr.msk.bf16.mxu1 %vm231_vm0, %v12758_v16 }
 0x314   :  { %v1395_v46 = vadd.f32 %v11259_v9, %v1394_v35  ;;  %10491 = vmatprep.mubr.msk.bf16.mxu0 %vm690_vm2, %v1495_v33  ;;  %v11921_v9 = vld [vmem:[#allocation6 + $0x368] sm:$0xff]  }
 0x315   :  { %10494 = vmatmul.mubr.msk.bf16.vlgmr.msra.gmra.mxu1 %vm227_vm1, %v10492_v34  ;;  %1781 = vmatmul.mubr.bf16.vlgmr.msra.gmra.mxu0 %v1494_v31  ;;  %v1396_v47 = vpop.f32.mrf.mxu1  ;;  %v11941_v31 = vld [vmem:[#allocation6 + $0x400] sm:$0xff]  }
 0x316   :  { %v12981_v51 = vadd.f32 %v1395_v46, %v12906_v49  ;;  %1840 = vmatpush1.bf16.msra.mxu1 %v12771_v22  ;;  %1867 = vmatprep.mubr.bf16.mxu1 %v12702_v0  ;;  %v11916_v49 = vld [vmem:[#allocation6 + $0x3b8] sm:$0xff]  }
 0x317   :  { %1841 = vmatprep.subr.bf16.mxu1 %v12911_v52  ;;  %v1397_v53 = vpop.f32.mrf.mxu1  ;;  %11285 = vmatprep.subr.bf16.mxu0 %v11916_v49 }
 0x318   :  { %11286 = vmatpush3.bf16.msra.mxu0 %v11917_v4 }
 0x319   :  { %v1398_v54 = vpop.f32.mrf.mxu1  ;;  %11287 = vmatprep.subr.bf16.mxu0 %v11918_v6 }
 0x31a   :  { %1842 = vmatpush1.bf16.msra.mxu1 %v12914_v55 }
 0x31b   :  { %1843 = vmatprep.subr.bf16.mxu1 %v12917_v56 }
 0x31c   :  { %11288 = vmatpush3.bf16.msra.mxu0 %v11919_v7 }
 0x31d   :  { %11289 = vmatprep.subr.bf16.mxu0 %v11920_v8 }
 0x31e   :  { %1844 = vmatpush1.bf16.msra.mxu1 %v12920_v57 }
 0x31f   :  { %1845 = vmatprep.subr.bf16.mxu1 %v12923_v58 }
 0x320   :  { %11290 = vmatpush3.bf16.msra.mxu0 %v11921_v9 }
 0x321   :  { %11291 = vmatprep.subr.bf16.mxu0 %v11922_v10 }
 0x322   :  { %1846 = vmatpush1.bf16.msra.mxu1 %v12926_v59 }
 0x323   :  { %1847 = vmatprep.subr.bf16.mxu1 %v12929_v60 }
 0x324   :  { %11292 = vmatpush3.bf16.msra.mxu0 %v11923_v12 }
 0x325   :  { %11293 = vmatprep.subr.bf16.mxu0 %v11924_v14 }
 0x326   :  { %1848 = vmatpush1.bf16.msra.mxu1 %v12932_v61 }
 0x327   :  { %1849 = vmatprep.subr.bf16.mxu1 %v12935_v62 }
 0x328   :  { %11294 = vmatpush3.bf16.msra.mxu0 %v11925_v15 }
 0x329   :  { %11295 = vmatprep.subr.bf16.mxu0 %v11927_v17 }
 0x32a   :  { %1850 = vmatpush1.bf16.msra.mxu1 %v12938_v3 }
 0x32b   :  { %2136 = vmatprep.subr.bf16.mxu1 %v12702_v0 }
 0x32c   :  { %11296 = vmatpush3.bf16.msra.mxu0 %v11928_v18 }
 0x32d   :  { %10496 = vmatmul.mubr.msk.bf16.vlgmr.msra.gmra.mxu1 %vm227_vm1, %v10492_v34  ;;  %11297 = vmatprep.subr.bf16.mxu0 %v11930_v19 }
 0x32e   :  { %2137 = vmatpush1.bf16.msra.mxu1 %v11926_v11 }
 0x32f   :  { %2138 = vmatprep.subr.bf16.mxu1 %v12702_v0 }
 0x330   :  { %11298 = vmatpush3.bf16.msra.mxu0 %v11931_v20 }
 0x331   :  { %11299 = vmatprep.subr.bf16.mxu0 %v11933_v23 }
 0x332   :  { %2139 = vmatpush1.bf16.msra.mxu1 %v11929_v13 }
 0x333   :  { %2140 = vmatprep.subr.bf16.mxu1 %v12702_v0 }
 0x334   :  { %11300 = vmatpush3.bf16.msra.mxu0 %v11934_v24 }
 0x335   :  { %10525 = vmatprep.subr.msk.bf16.mxu0 %vm231_vm0, %v12747_v2 }
 0x336   :  { %2141 = vmatpush1.bf16.msra.mxu1 %v11932_v21 }
 0x337   :  { %2142 = vmatprep.subr.bf16.mxu1 %v12702_v0 }
 0x33a   :  { %2143 = vmatpush1.bf16.msra.mxu1 %v11935_v25 }
 0x33b   :  { %2144 = vmatprep.subr.bf16.mxu1 %v12702_v0 }
 0x33e   :  { %2145 = vmatpush1.bf16.msra.mxu1 %v11936_v26 }
 0x33f   :  { %2146 = vmatprep.subr.bf16.mxu1 %v12702_v0 }
 0x342   :  { %2147 = vmatpush1.bf16.msra.mxu1 %v11937_v27 }
 0x343   :  { %2148 = vmatprep.subr.bf16.mxu1 %v12702_v0 }
 0x346   :  { %2149 = vmatpush1.bf16.msra.mxu1 %v11938_v28  ;;  %v10524_v28 = vld [vmem:[%s14250_s4 + $0x14] sm:$0xf] }
 0x347   :  { %2150 = vmatprep.subr.bf16.mxu1 %v12702_v0 }
 0x34a   :  { %2151 = vmatpush1.bf16.msra.mxu1 %v11939_v29  ;;  %v11942_v29 = vld [vmem:[#allocation6 + $0x488] sm:$0xff]  }
 0x34b   :  { %2164 = vmatprep.subr.bf16.mxu1 %v12702_v0 }
 0x34e   :  { %2165 = vmatpush2.bf16.msra.mxu1 %v11940_v30  ;;  %v11943_v30 = vld [vmem:[#allocation6 + $0x448] sm:$0xff]  }
 0x34f   :  { %2166 = vmatprep.subr.bf16.mxu1 %v12702_v0 }
 0x352   :  { %2167 = vmatpush2.bf16.msra.mxu1 %v11941_v31  ;;  %v11944_v31 = vld [vmem:[#allocation6 + $0x480] sm:$0xff]  }
 0x353   :  { %11307 = vmatprep.subr.bf16.mxu1 %v11942_v29 }
 0x3bd   :  { %v11279_v32 = vpop.f32.mrf.mxu1 }
 0x3bf   :  { %v11280_v33 = vpop.f32.mrf.mxu1 }
 0x3c0   :  { %v11281_v34 = vadd.f32 %v11280_v33, %v11279_v32  ;;  %v11945_v32 = vld [vmem:[#allocation6 + $0x440] sm:$0xff]   ;;  %v11946_v33 = vld [vmem:[#allocation6 + $0x478] sm:$0xff]  }
 0x3c1   :  { %v11282_v35 = vpop.f32.mrf.mxu1 }
 0x3c2   :  { %v11948_v35 = vld [vmem:[#allocation6 + $0x470] sm:$0xff]  }
 0x3c3   :  { %v11283_v46 = vpop.f32.mrf.mxu1 }
 0x3c4   :  { %v11952_v46 = vld [vmem:[#allocation6 + $0x4c8] sm:$0xff]  }
 0x3d5   :  { %v1828_v47 = vpop.f32.mrf.mxu1  ;;  %v1782_v53 = vpop.f32.mrf.mxu0 }
 0x3d6   :  { %v1829_v54 = vadd.f32 %v1828_v47, %v12803_v63  ;;  %v1783_v49 = vadd.f32 %v11281_v34, %v1782_v53  ;;  %v11947_v34 = vld [vmem:[#allocation6 + $0x438] sm:$0xff]   ;;  %v11949_v47 = vld [vmem:[#allocation6 + $0x430] sm:$0xff]   ;;  %v11955_v53 = vld [vmem:[#allocation6 + $0x4c0] sm:$0xff]  }
 0x3d7   :  { %v1830_v4 = vpop.f32.mrf.mxu1  ;;  %v1784_v6 = vpop.f32.mrf.mxu0 }
 0x3d8   :  { %v13010_v7 = vadd.f32 %v1783_v49, %v12981_v51  ;;  %v1831_v8 = vadd.f32 %v1830_v4, %v12806_v1  ;;  %v1876_v9 = vmax.f32 %v1829_v54, 0.0  ;;  %v11950_v54 = vld [vmem:[#allocation6 + $0x468] sm:$0xff]   ;;  %v11953_v4 = vld [vmem:[#allocation6 + $0x460] sm:$0xff]  }
 0x3d9   :  { %v1832_v10 = vpop.f32.mrf.mxu1  ;;  %v1785_v11 = vpop.f32.mrf.mxu0  ;;  %v11951_v49 = vld [vmem:[#allocation6 + $0x428] sm:$0xff]   ;;  %v11954_v6 = vld [vmem:[#allocation6 + $0x420] sm:$0xff]  }
 0x3da   :  { %v1877_v12 = vmax.f32 %v1831_v8, 0.0  ;;  %v1880_v17 = vpack.c.bf16 %v1876_v9, %v1876_v9  ;;  %v11956_v8 = vld [vmem:[#allocation6 + $0x458] sm:$0xff]   ;;  %v11959_v11 = vld [vmem:[#allocation6 + $0x450] sm:$0xff]  }
 0x3db   :  { %v1833_v13 = vpop.f32.mrf.mxu1  ;;  %v1786_v14 = vpop.f32.mrf.mxu0  ;;  %v11957_v9 = vld [vmem:[#allocation6 + $0x418] sm:$0xff]  }
 0x3dc   :  { %v1881_v15 = vpack.c.bf16 %v1877_v12, %v1877_v12  ;;  %v11958_v10 = vld [vmem:[#allocation6 + $0x4b8] sm:$0xff]   ;;  %v11960_v12 = vld [vmem:[#allocation6 + $0x410] sm:$0xff]   ;;  %v11962_v14 = vld [vmem:[#allocation6 + $0x4a8] sm:$0xff]  }
 0x3dd   :  { %v11961_v13 = vld [vmem:[#allocation6 + $0x4b0] sm:$0xff]  }
 0x3de   :  { %2128 = vmatprep.mubr.bf16.mxu0 %v1881_v15  ;;  %v11963_v15 = vld [vmem:[#allocation6 + $0x4a0] sm:$0xff]  }
 0x3df   :  { %2129 = vmatmul.mubr.bf16.vlgmr.msra.gmra.mxu0 %v1880_v17  ;;  %v11964_v17 = vld [vmem:[#allocation6 + $0x498] sm:$0xff]  }
 0x3e0   :  { %2187 = vmatpush1.bf16.msra.mxu0 %v12754_v5  ;;  %2214 = vmatprep.mubr.bf16.mxu0 %v12702_v0 }
 0x3e1   :  { %2188 = vmatprep.subr.bf16.mxu0 %v12871_v36 }
 0x3e4   :  { %2189 = vmatpush1.bf16.msra.mxu0 %v12874_v37 }
 0x3e5   :  { %2190 = vmatprep.subr.bf16.mxu0 %v12877_v38 }
 0x3e8   :  { %2191 = vmatpush1.bf16.msra.mxu0 %v12880_v39 }
 0x3e9   :  { %2192 = vmatprep.subr.bf16.mxu0 %v12883_v40 }
 0x3ec   :  { %2193 = vmatpush1.bf16.msra.mxu0 %v12886_v41 }
 0x3ed   :  { %v1869_v51 = vpop.f32.mrf.mxu1  ;;  %2194 = vmatprep.subr.bf16.mxu0 %v12889_v42 }
 0x3ee   :  { %v1870_v18 = vadd.f32 %v1869_v51, %v12819_v48  ;;  %v11965_v51 = vld [vmem:[#allocation6 + $0x490] sm:$0xff]  }
 0x3ef   :  { %v1871_v19 = vpop.f32.mrf.mxu1 }
 0x3f0   :  { %v1878_v20 = vmax.f32 %v1870_v18, 0.0  ;;  %v1872_v21 = vadd.f32 %v1871_v19, %v12825_v50  ;;  %2195 = vmatpush1.bf16.msra.mxu0 %v12892_v43  ;;  %v11966_v18 = vld [vmem:[#allocation6 + $0x4d8] sm:$0xff]   ;;  %v11967_v19 = vld [vmem:[#allocation6 + $0x4d0] sm:$0xff]  }
 0x3f1   :  { %2196 = vmatprep.subr.bf16.mxu0 %v12895_v44  ;;  %v1873_v23 = vpop.f32.mrf.mxu1 }
 0x3f2   :  { %v1879_v24 = vmax.f32 %v1872_v21, 0.0  ;;  %v1882_v25 = vpack.c.bf16 %v1878_v20, %v1878_v20 }
 0x3f3   :  { %v1874_v26 = vpop.f32.mrf.mxu1 }
 0x3f4   :  { %v1883_v27 = vpack.c.bf16 %v1879_v24, %v1879_v24  ;;  %2197 = vmatpush1.bf16.msra.mxu0 %v12898_v45 }
 0x3f5   :  { %10527 = vmatprep.subr.msk.bf16.mxu0 %vm231_vm0, %v12758_v16 }
 0x3f6   :  { %10523 = vmatprep.mubr.msk.bf16.mxu1 %vm690_vm2, %v1883_v27 }
 0x3f7   :  { %10526 = vmatmul.mubr.msk.bf16.vlgmr.msra.gmra.mxu0 %vm227_vm1, %v10524_v28  ;;  %2169 = vmatmul.mubr.bf16.vlgmr.msra.gmra.mxu1 %v1882_v25 }
 0x3f8   :  { %2228 = vmatpush1.bf16.msra.mxu0 %v12771_v22  ;;  %2255 = vmatprep.mubr.bf16.mxu0 %v12702_v0 }
 0x3f9   :  { %2229 = vmatprep.subr.bf16.mxu0 %v12911_v52  ;;  %11308 = vmatpush3.bf16.msra.mxu1 %v11943_v30 }
 0x3fa   :  { %11309 = vmatprep.subr.bf16.mxu1 %v11944_v31 }
 0x3fc   :  { %2230 = vmatpush1.bf16.msra.mxu0 %v12914_v55 }
 0x3fd   :  { %2231 = vmatprep.subr.bf16.mxu0 %v12917_v56  ;;  %11310 = vmatpush3.bf16.msra.mxu1 %v11945_v32 }
 0x3fe   :  { %11311 = vmatprep.subr.bf16.mxu1 %v11946_v33 }
 0x400   :  { %2232 = vmatpush1.bf16.msra.mxu0 %v12920_v57 }
 0x401   :  { %2233 = vmatprep.subr.bf16.mxu0 %v12923_v58  ;;  %11312 = vmatpush3.bf16.msra.mxu1 %v11947_v34 }
 0x402   :  { %11313 = vmatprep.subr.bf16.mxu1 %v11948_v35 }
 0x404   :  { %2234 = vmatpush1.bf16.msra.mxu0 %v12926_v59 }
 0x405   :  { %2235 = vmatprep.subr.bf16.mxu0 %v12929_v60  ;;  %11314 = vmatpush3.bf16.msra.mxu1 %v11949_v47 }
 0x406   :  { %11315 = vmatprep.subr.bf16.mxu1 %v11950_v54 }
 0x408   :  { %2236 = vmatpush1.bf16.msra.mxu0 %v12932_v61 }
 0x409   :  { %2237 = vmatprep.subr.bf16.mxu0 %v12935_v62  ;;  %11316 = vmatpush3.bf16.msra.mxu1 %v11951_v49 }
 0x40a   :  { %11317 = vmatprep.subr.bf16.mxu1 %v11953_v4 }
 0x40c   :  { %2238 = vmatpush1.bf16.msra.mxu0 %v12938_v3 }
 0x40d   :  { %2524 = vmatprep.subr.bf16.mxu0 %v12702_v0  ;;  %11318 = vmatpush3.bf16.msra.mxu1 %v11954_v6 }
 0x40e   :  { %11319 = vmatprep.subr.bf16.mxu1 %v11956_v8 }
 0x40f   :  { %10528 = vmatmul.mubr.msk.bf16.vlgmr.msra.gmra.mxu0 %vm227_vm1, %v10524_v28 }
 0x410   :  { %2525 = vmatpush1.bf16.msra.mxu0 %v11952_v46 }
 0x411   :  { %2526 = vmatprep.subr.bf16.mxu0 %v12702_v0  ;;  %11320 = vmatpush3.bf16.msra.mxu1 %v11957_v9 }
 0x412   :  { %11321 = vmatprep.subr.bf16.mxu1 %v11959_v11 }
 0x414   :  { %2527 = vmatpush1.bf16.msra.mxu0 %v11955_v53 }
 0x415   :  { %2528 = vmatprep.subr.bf16.mxu0 %v12702_v0  ;;  %11322 = vmatpush3.bf16.msra.mxu1 %v11960_v12 }
 0x416   :  { %10557 = vmatprep.subr.msk.bf16.mxu1 %vm231_vm0, %v12747_v2 }
 0x418   :  { %2529 = vmatpush1.bf16.msra.mxu0 %v11958_v10 }
 0x419   :  { %2530 = vmatprep.subr.bf16.mxu0 %v12702_v0 }
 0x41c   :  { %2531 = vmatpush1.bf16.msra.mxu0 %v11961_v13  ;;  %v10556_v13 = vld [vmem:[%s14250_s4 + $0x18] sm:$0xf] }
 0x41d   :  { %2532 = vmatprep.subr.bf16.mxu0 %v12702_v0 }
 0x420   :  { %2533 = vmatpush1.bf16.msra.mxu0 %v11962_v14  ;;  %v11980_v14 = vld [vmem:[#allocation6 + $0x4f0] sm:$0xff]  }
 0x421   :  { %2534 = vmatprep.subr.bf16.mxu0 %v12702_v0 }
 0x424   :  { %2535 = vmatpush1.bf16.msra.mxu0 %v11963_v15  ;;  %v11982_v15 = vld [vmem:[#allocation6 + $0x528] sm:$0xff]  }
 0x425   :  { %2536 = vmatprep.subr.bf16.mxu0 %v12702_v0 }
 0x428   :  { %2537 = vmatpush1.bf16.msra.mxu0 %v11964_v17  ;;  %v11983_v17 = vld [vmem:[#allocation6 + $0x4e8] sm:$0xff]  }
 0x429   :  { %2538 = vmatprep.subr.bf16.mxu0 %v12702_v0 }
 0x42c   :  { %2539 = vmatpush1.bf16.msra.mxu0 %v11965_v51  ;;  %v11984_v51 = vld [vmem:[#allocation6 + $0x588] sm:$0xff]  }
 0x42d   :  { %2552 = vmatprep.subr.bf16.mxu0 %v12702_v0 }
 0x430   :  { %2553 = vmatpush2.bf16.msra.mxu0 %v11966_v18  ;;  %v11985_v18 = vld [vmem:[#allocation6 + $0x520] sm:$0xff]  }
 0x431   :  { %2554 = vmatprep.subr.bf16.mxu0 %v12702_v0 }
 0x434   :  { %2555 = vmatpush2.bf16.msra.mxu0 %v11967_v19  ;;  %v11986_v19 = vld [vmem:[#allocation6 + $0x4e0] sm:$0xff]  }
 0x49f   :  { %v11301_v20 = vpop.f32.mrf.mxu0 }
 0x4a1   :  { %v11302_v21 = vpop.f32.mrf.mxu0 }
 0x4a2   :  { %v11303_v23 = vadd.f32 %v11302_v21, %v11301_v20  ;;  %v11987_v20 = vld [vmem:[#allocation6 + $0x580] sm:$0xff]   ;;  %v11988_v21 = vld [vmem:[#allocation6 + $0x578] sm:$0xff]  }
 0x4a3   :  { %v11304_v24 = vpop.f32.mrf.mxu0 }
 0x4a4   :  { %v11990_v24 = vld [vmem:[#allocation6 + $0x568] sm:$0xff]  }
 0x4a5   :  { %v11305_v25 = vpop.f32.mrf.mxu0 }
 0x4a6   :  { %v11991_v25 = vld [vmem:[#allocation6 + $0x560] sm:$0xff]  }
 0x4b7   :  { %v2216_v26 = vpop.f32.mrf.mxu0  ;;  %v2170_v27 = vpop.f32.mrf.mxu1 }
 0x4b8   :  { %v2217_v28 = vadd.f32 %v2216_v26, %v12803_v63  ;;  %v2171_v29 = vadd.f32 %v11303_v23, %v2170_v27  ;;  %v11989_v23 = vld [vmem:[#allocation6 + $0x570] sm:$0xff]   ;;  %v11992_v26 = vld [vmem:[#allocation6 + $0x5a8] sm:$0xff]   ;;  %v11993_v27 = vld [vmem:[#allocation6 + $0x5a0] sm:$0xff]  }
 0x4b9   :  { %v2218_v30 = vpop.f32.mrf.mxu0  ;;  %v2172_v31 = vpop.f32.mrf.mxu1 }
 0x4ba   :  { %v13061_v32 = vadd.f32 %v2171_v29, %v13010_v7  ;;  %v2219_v33 = vadd.f32 %v2218_v30, %v12806_v1  ;;  %v2264_v34 = vmax.f32 %v2217_v28, 0.0 }
 0x4bb   :  { %v2220_v35 = vpop.f32.mrf.mxu0  ;;  %v2173_v46 = vpop.f32.mrf.mxu1 }
 0x4bc   :  { %v2265_v47 = vmax.f32 %v2219_v33, 0.0  ;;  %v2268_v4 = vpack.c.bf16 %v2264_v34, %v2264_v34 }
 0x4bd   :  { %v2221_v53 = vpop.f32.mrf.mxu0  ;;  %v2174_v54 = vpop.f32.mrf.mxu1 }
 0x4be   :  { %v2269_v49 = vpack.c.bf16 %v2265_v47, %v2265_v47 }
 0x4c0   :  { %2516 = vmatprep.mubr.bf16.mxu1 %v2269_v49 }
 0x4c1   :  { %2517 = vmatmul.mubr.bf16.vlgmr.msra.gmra.mxu1 %v2268_v4 }
 0x4c2   :  { %2575 = vmatpush1.bf16.msra.mxu1 %v12754_v5  ;;  %2602 = vmatprep.mubr.bf16.mxu1 %v12702_v0 }
 0x4c3   :  { %2576 = vmatprep.subr.bf16.mxu1 %v12871_v36 }
 0x4c6   :  { %2577 = vmatpush1.bf16.msra.mxu1 %v12874_v37 }
 0x4c7   :  { %2578 = vmatprep.subr.bf16.mxu1 %v12877_v38 }
 0x4ca   :  { %2579 = vmatpush1.bf16.msra.mxu1 %v12880_v39 }
 0x4cb   :  { %2580 = vmatprep.subr.bf16.mxu1 %v12883_v40 }
 0x4ce   :  { %2581 = vmatpush1.bf16.msra.mxu1 %v12886_v41 }
 0x4cf   :  { %v2257_v7 = vpop.f32.mrf.mxu0  ;;  %2582 = vmatprep.subr.bf16.mxu1 %v12889_v42 }
 0x4d0   :  { %v2258_v6 = vadd.f32 %v2257_v7, %v12819_v48 }
 0x4d1   :  { %v2259_v8 = vpop.f32.mrf.mxu0 }
 0x4d2   :  { %v2266_v9 = vmax.f32 %v2258_v6, 0.0  ;;  %v2260_v10 = vadd.f32 %v2259_v8, %v12825_v50  ;;  %2583 = vmatpush1.bf16.msra.mxu1 %v12892_v43  ;;  %v11968_v43 = vld [vmem:[#allocation6 + $0x558] sm:$0xff]  }
 0x4d3   :  { %2584 = vmatprep.subr.bf16.mxu1 %v12895_v44  ;;  %v2261_v36 = vpop.f32.mrf.mxu0  ;;  %v11969_v44 = vld [vmem:[#allocation6 + $0x518] sm:$0xff]   ;;  %11329 = vmatprep.subr.bf16.mxu0 %v11968_v43 }
 0x4d4   :  { %v2267_v37 = vmax.f32 %v2260_v10, 0.0  ;;  %v2270_v38 = vpack.c.bf16 %v2266_v9, %v2266_v9 }
 0x4d5   :  { %v2262_v11 = vpop.f32.mrf.mxu0 }
 0x4d6   :  { %v2271_v12 = vpack.c.bf16 %v2267_v37, %v2267_v37  ;;  %2585 = vmatpush1.bf16.msra.mxu1 %v12898_v45  ;;  %v11970_v45 = vld [vmem:[#allocation6 + $0x550] sm:$0xff]  }
 0x4d7   :  { %10559 = vmatprep.subr.msk.bf16.mxu1 %vm231_vm0, %v12758_v16  ;;  %v13117_v11 = vld [vmem:[#allocation2 + $0x84] ss:$16 sps:$4 sm:$0xff]  }
 0x4d8   :  { %10555 = vmatprep.mubr.msk.bf16.mxu0 %vm690_vm2, %v2271_v12  ;;  %v13123_v12 = vld [vmem:[#allocation2 + $0x64] ss:$16 sps:$4 sm:$0xff]  }
 0x4d9   :  { %10558 = vmatmul.mubr.msk.bf16.vlgmr.msra.gmra.mxu1 %vm227_vm1, %v10556_v13  ;;  %2557 = vmatmul.mubr.bf16.vlgmr.msra.gmra.mxu0 %v2270_v38 }
 0x4da   :  { %2616 = vmatpush1.bf16.msra.mxu1 %v12771_v22  ;;  %2643 = vmatprep.mubr.bf16.mxu1 %v12702_v0 }
 0x4db   :  { %2617 = vmatprep.subr.bf16.mxu1 %v12911_v52  ;;  %11330 = vmatpush3.bf16.msra.mxu0 %v11969_v44  ;;  %v11971_v52 = vld [vmem:[#allocation6 + $0x510] sm:$0xff]  }
 0x4dc   :  { %11331 = vmatprep.subr.bf16.mxu0 %v11970_v45 }
 0x4de   :  { %2618 = vmatpush1.bf16.msra.mxu1 %v12914_v55  ;;  %v11972_v55 = vld [vmem:[#allocation6 + $0x548] sm:$0xff]  }
 0x4df   :  { %2619 = vmatprep.subr.bf16.mxu1 %v12917_v56  ;;  %11332 = vmatpush3.bf16.msra.mxu0 %v11971_v52  ;;  %v11973_v56 = vld [vmem:[#allocation6 + $0x508] sm:$0xff]  }
 0x4e0   :  { %11333 = vmatprep.subr.bf16.mxu0 %v11972_v55  ;;  %v13132_v55 = vld [vmem:[#allocation2 + $0x20] ss:$16 sps:$4 sm:$0xff]  }
 0x4e2   :  { %2620 = vmatpush1.bf16.msra.mxu1 %v12920_v57  ;;  %v11974_v57 = vld [vmem:[#allocation6 + $0x540] sm:$0xff]  }
 0x4e3   :  { %2621 = vmatprep.subr.bf16.mxu1 %v12923_v58  ;;  %v11978_v58 = vld [vmem:[#allocation6 + $0x598] sm:$0xff]   ;;  %11334 = vmatpush3.bf16.msra.mxu0 %v11973_v56  ;;  %v13135_v56 = vld [vmem:[#allocation2 + $0x4] ss:$16 sps:$4 sm:$0xff]  }
 0x4e4   :  { %11335 = vmatprep.subr.bf16.mxu0 %v11974_v57 }
 0x4e6   :  { %2622 = vmatpush1.bf16.msra.mxu1 %v12926_v59  ;;  %v11975_v59 = vld [vmem:[#allocation6 + $0x500] sm:$0xff]  }
 0x4e7   :  { %2623 = vmatprep.subr.bf16.mxu1 %v12929_v60  ;;  %v11981_v60 = vld [vmem:[#allocation6 + $0x590] sm:$0xff]   ;;  %11336 = vmatpush3.bf16.msra.mxu0 %v11975_v59  ;;  %v10588_v59 = vld [vmem:[%s14250_s4 + $0x1c] sm:$0xf] }
 0x4ea   :  { %2624 = vmatpush1.bf16.msra.mxu1 %v12932_v61  ;;  %v11976_v61 = vld [vmem:[#allocation6 + $0x538] sm:$0xff]  }
 0x4eb   :  { %2625 = vmatprep.subr.bf16.mxu1 %v12935_v62  ;;  %v11977_v62 = vld [vmem:[#allocation6 + $0x4f8] sm:$0xff]   ;;  %11337 = vmatprep.subr.bf16.mxu0 %v11976_v61  ;;  %v13153_v61 = vld [vmem:[#allocation2 + $0x88] ss:$16 sps:$4 sm:$0xff]  }
 0x4ec   :  { %11338 = vmatpush3.bf16.msra.mxu0 %v11977_v62  ;;  %v13156_v62 = vld [vmem:[#allocation2 + $0x6c] ss:$16 sps:$4 sm:$0xff]  }
 0x4ee   :  { %2626 = vmatpush1.bf16.msra.mxu1 %v12938_v3  ;;  %v11979_v3 = vld [vmem:[#allocation6 + $0x530] sm:$0xff]  }
 0x4ef   :  { %2912 = vmatprep.subr.bf16.mxu1 %v12702_v0  ;;  %11339 = vmatprep.subr.bf16.mxu0 %v11979_v3  ;;  %v13159_v3 = vld [vmem:[#allocation2 + $0x68] ss:$16 sps:$4 sm:$0xff]  }
 0x4f0   :  { %11340 = vmatpush3.bf16.msra.mxu0 %v11980_v14  ;;  %v13162_v14 = vld [vmem:[#allocation2 + $0x4c] ss:$16 sps:$4 sm:$0xff]  }
 0x4f1   :  { %10560 = vmatmul.mubr.msk.bf16.vlgmr.msra.gmra.mxu1 %vm227_vm1, %v10556_v13  ;;  %11341 = vmatprep.subr.bf16.mxu0 %v11982_v15  ;;  %v13165_v15 = vld [vmem:[#allocation2 + $0x48] ss:$16 sps:$4 sm:$0xff]  }
 0x4f2   :  { %2913 = vmatpush1.bf16.msra.mxu1 %v11978_v58 }
 0x4f3   :  { %2914 = vmatprep.subr.bf16.mxu1 %v12702_v0 }
 0x4f4   :  { %11342 = vmatpush3.bf16.msra.mxu0 %v11983_v17  ;;  %v13168_v17 = vld [vmem:[#allocation2 + $0x2c] ss:$16 sps:$4 sm:$0xff]  }
 0x4f5   :  { %11343 = vmatprep.subr.bf16.mxu0 %v11985_v18  ;;  %v13174_v18 = vld [vmem:[#allocation2 + $0xc] ss:$16 sps:$4 sm:$0xff]  }
 0x4f6   :  { %2915 = vmatpush1.bf16.msra.mxu1 %v11981_v60  ;;  %v13150_v60 = vld [vmem:[#allocation2 + $0x8c] ss:$16 sps:$4 sm:$0xff]  }
 0x4f7   :  { %2916 = vmatprep.subr.bf16.mxu1 %v12702_v0 }
 0x4f8   :  { %11344 = vmatpush3.bf16.msra.mxu0 %v11986_v19  ;;  %v13177_v19 = vld [vmem:[#allocation2 + $0x8] ss:$16 sps:$4 sm:$0xff]  }
 0x4f9   :  { %10589 = vmatprep.subr.msk.bf16.mxu0 %vm231_vm0, %v12747_v2 }
 0x4fa   :  { %2917 = vmatpush1.bf16.msra.mxu1 %v11984_v51  ;;  %v13171_v51 = vld [vmem:[#allocation2 + $0x28] ss:$16 sps:$4 sm:$0xff]  }
 0x4fb   :  { %2918 = vmatprep.subr.bf16.mxu1 %v12702_v0 }
 0x4fe   :  { %2919 = vmatpush1.bf16.msra.mxu1 %v11987_v20  ;;  %v11994_v20 = vld [vmem:[#allocation6 + $0x628] sm:$0xff]  }
 0x4ff   :  { %2920 = vmatprep.subr.bf16.mxu1 %v12702_v0 }
 0x502   :  { %2921 = vmatpush1.bf16.msra.mxu1 %v11988_v21  ;;  %v11995_v21 = vld [vmem:[#allocation6 + $0x5e8] sm:$0xff]  }
 0x503   :  { %2922 = vmatprep.subr.bf16.mxu1 %v12702_v0 }
 0x506   :  { %2923 = vmatpush1.bf16.msra.mxu1 %v11989_v23  ;;  %v11996_v23 = vld [vmem:[#allocation6 + $0x620] sm:$0xff]  }
 0x507   :  { %2924 = vmatprep.subr.bf16.mxu1 %v12702_v0 }
 0x50a   :  { %2925 = vmatpush1.bf16.msra.mxu1 %v11990_v24  ;;  %v11997_v24 = vld [vmem:[#allocation6 + $0x5e0] sm:$0xff]  }
 0x50b   :  { %2926 = vmatprep.subr.bf16.mxu1 %v12702_v0 }
 0x50e   :  { %2927 = vmatpush1.bf16.msra.mxu1 %v11991_v25  ;;  %v11998_v25 = vld [vmem:[#allocation6 + $0x618] sm:$0xff]  }
 0x50f   :  { %2940 = vmatprep.subr.bf16.mxu1 %v12702_v0 }
 0x512   :  { %2941 = vmatpush2.bf16.msra.mxu1 %v11992_v26  ;;  %v11999_v26 = vld [vmem:[#allocation6 + $0x5d8] sm:$0xff]  }
 0x513   :  { %2942 = vmatprep.subr.bf16.mxu1 %v12702_v0 }
 0x516   :  { %2943 = vmatpush2.bf16.msra.mxu1 %v11993_v27  ;;  %v12000_v27 = vld [vmem:[#allocation6 + $0x610] sm:$0xff]  }
 0x517   :  { %11351 = vmatprep.subr.bf16.mxu1 %v11994_v20 }
 0x581   :  { %v11323_v28 = vpop.f32.mrf.mxu1 }
 0x583   :  { %v11324_v29 = vpop.f32.mrf.mxu1 }
 0x584   :  { %v11325_v30 = vadd.f32 %v11324_v29, %v11323_v28  ;;  %v12004_v28 = vld [vmem:[#allocation6 + $0x668] sm:$0xff]   ;;  %v12001_v29 = vld [vmem:[#allocation6 + $0x5d0] sm:$0xff]  }
 0x585   :  { %v11326_v31 = vpop.f32.mrf.mxu1 }
 0x586   :  { %v12002_v31 = vld [vmem:[#allocation6 + $0x608] sm:$0xff]  }
 0x587   :  { %v11327_v33 = vpop.f32.mrf.mxu1 }
 0x588   :  { %v12003_v33 = vld [vmem:[#allocation6 + $0x5c8] sm:$0xff]  }
 0x599   :  { %v2604_v34 = vpop.f32.mrf.mxu1  ;;  %v2558_v35 = vpop.f32.mrf.mxu0 }
 0x59a   :  { %v2605_v46 = vadd.f32 %v2604_v34, %v12803_v63  ;;  %v2559_v47 = vadd.f32 %v11325_v30, %v2558_v35  ;;  %v12007_v30 = vld [vmem:[#allocation6 + $0x660] sm:$0xff]  }
 0x59b   :  { %v2606_v53 = vpop.f32.mrf.mxu1  ;;  %v2560_v54 = vpop.f32.mrf.mxu0  ;;  %v12005_v34 = vld [vmem:[#allocation6 + $0x600] sm:$0xff]  }
 0x59c   :  { %v13112_v49 = vadd.f32 %v2559_v47, %v13061_v32  ;;  %v2607_v4 = vadd.f32 %v2606_v53, %v12806_v1  ;;  %v2652_v7 = vmax.f32 %v2605_v46, 0.0  ;;  %v13120_v32 = vld [vmem:[#allocation2 + $0x80] ss:$16 sps:$4 sm:$0xff]   ;;  %v12006_v35 = vld [vmem:[#allocation6 + $0x5c0] sm:$0xff]   ;;  %v12011_v54 = vld [vmem:[#allocation6 + $0x5f0] sm:$0xff]  }
 0x59d   :  { %v2608_v6 = vpop.f32.mrf.mxu1  ;;  %v2561_v8 = vpop.f32.mrf.mxu0  ;;  %v12008_v46 = vld [vmem:[#allocation6 + $0x5f8] sm:$0xff]  }
 0x59e   :  { %v2653_v9 = vmax.f32 %v2607_v4, 0.0  ;;  %v2656_v38 = vpack.c.bf16 %v2652_v7, %v2652_v7  ;;  %v12009_v47 = vld [vmem:[#allocation6 + $0x5b8] sm:$0xff]   ;;  %v12012_v4 = vld [vmem:[#allocation6 + $0x5b0] sm:$0xff]   ;;  %v12014_v6 = vld [vmem:[#allocation6 + $0x648] sm:$0xff]  }
 0x59f   :  { %v2609_v10 = vpop.f32.mrf.mxu1  ;;  %v2562_v36 = vpop.f32.mrf.mxu0  ;;  %v12010_v53 = vld [vmem:[#allocation6 + $0x658] sm:$0xff]   ;;  %v12013_v7 = vld [vmem:[#allocation6 + $0x650] sm:$0xff]   ;;  %v12015_v8 = vld [vmem:[#allocation6 + $0x640] sm:$0xff]  }
 0x5a0   :  { %v2657_v37 = vpack.c.bf16 %v2653_v9, %v2653_v9  ;;  %v12016_v9 = vld [vmem:[#allocation6 + $0x638] sm:$0xff]   ;;  %v12017_v10 = vld [vmem:[#allocation6 + $0x630] sm:$0xff]  }
 0x5a1   :  { %v12018_v36 = vld [vmem:[#allocation6 + $0x678] sm:$0xff]  }
 0x5a2   :  { %2904 = vmatprep.mubr.bf16.mxu0 %v2657_v37  ;;  %v12019_v37 = vld [vmem:[#allocation6 + $0x670] sm:$0xff]  }
 0x5a3   :  { %2905 = vmatmul.mubr.bf16.vlgmr.msra.gmra.mxu0 %v2656_v38 }
 0x5a4   :  { %2963 = vmatpush1.bf16.msra.mxu0 %v12754_v5  ;;  %2990 = vmatprep.mubr.bf16.mxu0 %v12702_v0 }
 0x5a5   :  { %2964 = vmatprep.subr.bf16.mxu0 %v13117_v11 }
 0x5a8   :  { %2965 = vmatpush1.bf16.msra.mxu0 %v13120_v32 }
 0x5a9   :  { %2966 = vmatprep.subr.bf16.mxu0 %v13123_v12 }
 0x5ac   :  { %2967 = vmatpush1.bf16.msra.mxu0 %v12880_v39 }
 0x5ad   :  { %2968 = vmatprep.subr.bf16.mxu0 %v12883_v40 }
 0x5b0   :  { %2969 = vmatpush1.bf16.msra.mxu0 %v12886_v41 }
 0x5b1   :  { %v2645_v13 = vpop.f32.mrf.mxu1  ;;  %2970 = vmatprep.subr.bf16.mxu0 %v12889_v42  ;;  %v13138_v42 = vld [vmem:[#allocation2] ss:$16 sps:$4 sm:$0xff]  }
 0x5b2   :  { %v2646_v43 = vadd.f32 %v2645_v13, %v12819_v48 }
 0x5b3   :  { %v2647_v44 = vpop.f32.mrf.mxu1 }
 0x5b4   :  { %v2654_v45 = vmax.f32 %v2646_v43, 0.0  ;;  %v2648_v52 = vadd.f32 %v2647_v44, %v12825_v50  ;;  %2971 = vmatpush1.bf16.msra.mxu0 %v13132_v55 }
 0x5b5   :  { %2972 = vmatprep.subr.bf16.mxu0 %v13135_v56  ;;  %v2649_v39 = vpop.f32.mrf.mxu1 }
 0x5b6   :  { %v2655_v40 = vmax.f32 %v2648_v52, 0.0  ;;  %v2658_v41 = vpack.c.bf16 %v2654_v45, %v2654_v45 }
 0x5b7   :  { %v2650_v57 = vpop.f32.mrf.mxu1 }
 0x5b8   :  { %v2659_v58 = vpack.c.bf16 %v2655_v40, %v2655_v40  ;;  %2973 = vmatpush1.bf16.msra.mxu0 %v13138_v42 }
 0x5b9   :  { %10591 = vmatprep.subr.msk.bf16.mxu0 %vm231_vm0, %v12758_v16 }
 0x5ba   :  { %10587 = vmatprep.mubr.msk.bf16.mxu1 %vm690_vm2, %v2659_v58 }
 0x5bb   :  { %10590 = vmatmul.mubr.msk.bf16.vlgmr.msra.gmra.mxu0 %vm227_vm1, %v10588_v59  ;;  %2945 = vmatmul.mubr.bf16.vlgmr.msra.gmra.mxu1 %v2658_v41 }
 0x5bc   :  { %3004 = vmatpush1.bf16.msra.mxu0 %v12771_v22  ;;  %3031 = vmatprep.mubr.bf16.mxu0 %v12702_v0 }
 0x5bd   :  { %3005 = vmatprep.subr.bf16.mxu0 %v13150_v60  ;;  %11352 = vmatpush3.bf16.msra.mxu1 %v11995_v21 }
 0x5be   :  { %11353 = vmatprep.subr.bf16.mxu1 %v11996_v23 }
 0x5c0   :  { %3006 = vmatpush1.bf16.msra.mxu0 %v13153_v61 }
 0x5c1   :  { %3007 = vmatprep.subr.bf16.mxu0 %v13156_v62  ;;  %11354 = vmatpush3.bf16.msra.mxu1 %v11997_v24 }
 0x5c2   :  { %11355 = vmatprep.subr.bf16.mxu1 %v11998_v25 }
 0x5c4   :  { %3008 = vmatpush1.bf16.msra.mxu0 %v13159_v3 }
 0x5c5   :  { %3009 = vmatprep.subr.bf16.mxu0 %v13162_v14  ;;  %11356 = vmatpush3.bf16.msra.mxu1 %v11999_v26 }
 0x5c6   :  { %11357 = vmatprep.subr.bf16.mxu1 %v12000_v27 }
 0x5c8   :  { %3010 = vmatpush1.bf16.msra.mxu0 %v13165_v15 }
 0x5c9   :  { %3011 = vmatprep.subr.bf16.mxu0 %v13168_v17  ;;  %11358 = vmatpush3.bf16.msra.mxu1 %v12001_v29 }
 0x5ca   :  { %11359 = vmatprep.subr.bf16.mxu1 %v12002_v31  ;;  %v13209_v31 = vld [vmem:[#allocation2 + $0x40] ss:$16 sps:$4 sm:$0xff]  }
 0x5cc   :  { %3012 = vmatpush1.bf16.msra.mxu0 %v13171_v51 }
 0x5cd   :  { %3013 = vmatprep.subr.bf16.mxu0 %v13174_v18  ;;  %11360 = vmatpush3.bf16.msra.mxu1 %v12003_v33 }
 0x5ce   :  { %11361 = vmatprep.subr.bf16.mxu1 %v12005_v34  ;;  %v13212_v34 = vld [vmem:[#allocation2 + $0x24] ss:$16 sps:$4 sm:$0xff]  }
 0x5d0   :  { %3014 = vmatpush1.bf16.msra.mxu0 %v13177_v19 }
 0x5d1   :  { %3300 = vmatprep.subr.bf16.mxu0 %v12702_v0  ;;  %11362 = vmatpush3.bf16.msra.mxu1 %v12006_v35 }
 0x5d2   :  { %11363 = vmatprep.subr.bf16.mxu1 %v12008_v46 }
 0x5d3   :  { %10592 = vmatmul.mubr.msk.bf16.vlgmr.msra.gmra.mxu0 %vm227_vm1, %v10588_v59 }
 0x5d4   :  { %3301 = vmatpush1.bf16.msra.mxu0 %v12004_v28 }
 0x5d5   :  { %3302 = vmatprep.subr.bf16.mxu0 %v12702_v0  ;;  %11364 = vmatpush3.bf16.msra.mxu1 %v12009_v47 }
 0x5d6   :  { %11365 = vmatprep.subr.bf16.mxu1 %v12011_v54 }
 0x5d8   :  { %3303 = vmatpush1.bf16.msra.mxu0 %v12007_v30  ;;  %v13206_v30 = vld [vmem:[#allocation2 + $0x44] ss:$16 sps:$4 sm:$0xff]  }
 0x5d9   :  { %3304 = vmatprep.subr.bf16.mxu0 %v12702_v0  ;;  %11366 = vmatpush3.bf16.msra.mxu1 %v12012_v4 }
 0x5da   :  { %10621 = vmatprep.subr.msk.bf16.mxu1 %vm231_vm0, %v12747_v2 }
 0x5dc   :  { %3305 = vmatpush1.bf16.msra.mxu0 %v12010_v53 }
 0x5dd   :  { %3306 = vmatprep.subr.bf16.mxu0 %v12702_v0 }
 0x5e0   :  { %3307 = vmatpush1.bf16.msra.mxu0 %v12013_v7 }
 0x5e1   :  { %3308 = vmatprep.subr.bf16.mxu0 %v12702_v0 }
 0x5e4   :  { %3309 = vmatpush1.bf16.msra.mxu0 %v12014_v6 }
 0x5e5   :  { %3310 = vmatprep.subr.bf16.mxu0 %v12702_v0 }
 0x5e8   :  { %3311 = vmatpush1.bf16.msra.mxu0 %v12015_v8 }
 0x5e9   :  { %3312 = vmatprep.subr.bf16.mxu0 %v12702_v0 }
 0x5ec   :  { %3313 = vmatpush1.bf16.msra.mxu0 %v12016_v9  ;;  %v10620_v9 = vld [vmem:[%s14250_s4 + $0x20] sm:$0xf] }
 0x5ed   :  { %3314 = vmatprep.subr.bf16.mxu0 %v12702_v0 }
 0x5f0   :  { %3315 = vmatpush1.bf16.msra.mxu0 %v12017_v10  ;;  %v12020_v10 = vld [vmem:[#allocation6 + $0x6f8] sm:$0xff]  }
 0x5f1   :  { %3328 = vmatprep.subr.bf16.mxu0 %v12702_v0 }
 0x5f4   :  { %3329 = vmatpush2.bf16.msra.mxu0 %v12018_v36  ;;  %v12021_v36 = vld [vmem:[#allocation6 + $0x6b8] sm:$0xff]  }
 0x5f5   :  { %3330 = vmatprep.subr.bf16.mxu0 %v12702_v0 }
 0x5f8   :  { %3331 = vmatpush2.bf16.msra.mxu0 %v12019_v37  ;;  %v12022_v37 = vld [vmem:[#allocation6 + $0x6f0] sm:$0xff]  }
 0x5f9   :  { %11373 = vmatprep.subr.bf16.mxu0 %v12020_v10 }
 0x663   :  { %v11345_v38 = vpop.f32.mrf.mxu0 }
 0x665   :  { %v11346_v13 = vpop.f32.mrf.mxu0 }
 0x666   :  { %v11347_v43 = vadd.f32 %v11346_v13, %v11345_v38  ;;  %v12023_v38 = vld [vmem:[#allocation6 + $0x6b0] sm:$0xff]   ;;  %v12024_v13 = vld [vmem:[#allocation6 + $0x6e8] sm:$0xff]  }
 0x667   :  { %v11348_v44 = vpop.f32.mrf.mxu0 }
 0x668   :  { %v12026_v44 = vld [vmem:[#allocation6 + $0x6e0] sm:$0xff]  }
 0x669   :  { %v11349_v45 = vpop.f32.mrf.mxu0 }
 0x66a   :  { %v12030_v45 = vld [vmem:[#allocation6 + $0x738] sm:$0xff]  }
 0x67b   :  { %v2992_v52 = vpop.f32.mrf.mxu0  ;;  %v2946_v39 = vpop.f32.mrf.mxu1 }
 0x67c   :  { %v2993_v40 = vadd.f32 %v2992_v52, %v12803_v63  ;;  %v2947_v41 = vadd.f32 %v11347_v43, %v2946_v39  ;;  %v12025_v43 = vld [vmem:[#allocation6 + $0x6a8] sm:$0xff]   ;;  %v12027_v52 = vld [vmem:[#allocation6 + $0x6a0] sm:$0xff]   ;;  %v12033_v39 = vld [vmem:[#allocation6 + $0x730] sm:$0xff]  }
 0x67d   :  { %v2994_v57 = vpop.f32.mrf.mxu0  ;;  %v2948_v58 = vpop.f32.mrf.mxu1 }
 0x67e   :  { %v13195_v59 = vadd.f32 %v2947_v41, %v13112_v49  ;;  %v2995_v20 = vadd.f32 %v2994_v57, %v12806_v1  ;;  %v3040_v21 = vmax.f32 %v2993_v40, 0.0  ;;  %v13203_v49 = vld [vmem:[#allocation2 + $0x60] ss:$16 sps:$4 sm:$0xff]   ;;  %v12031_v57 = vld [vmem:[#allocation6 + $0x6d0] sm:$0xff]  }
 0x67f   :  { %v2996_v23 = vpop.f32.mrf.mxu0  ;;  %v2949_v24 = vpop.f32.mrf.mxu1  ;;  %v12028_v40 = vld [vmem:[#allocation6 + $0x6d8] sm:$0xff]   ;;  %v12032_v58 = vld [vmem:[#allocation6 + $0x690] sm:$0xff]  }
 0x680   :  { %v3041_v25 = vmax.f32 %v2995_v20, 0.0  ;;  %v3044_v29 = vpack.c.bf16 %v3040_v21, %v3040_v21  ;;  %v12029_v41 = vld [vmem:[#allocation6 + $0x698] sm:$0xff]   ;;  %v12034_v20 = vld [vmem:[#allocation6 + $0x6c8] sm:$0xff]   ;;  %v12037_v24 = vld [vmem:[#allocation6 + $0x6c0] sm:$0xff]  }
 0x681   :  { %v2997_v26 = vpop.f32.mrf.mxu0  ;;  %v2950_v27 = vpop.f32.mrf.mxu1  ;;  %v12035_v21 = vld [vmem:[#allocation6 + $0x688] sm:$0xff]  }
 0x682   :  { %v3045_v28 = vpack.c.bf16 %v3041_v25, %v3041_v25  ;;  %v12036_v23 = vld [vmem:[#allocation6 + $0x728] sm:$0xff]   ;;  %v12038_v25 = vld [vmem:[#allocation6 + $0x680] sm:$0xff]   ;;  %v12040_v27 = vld [vmem:[#allocation6 + $0x718] sm:$0xff]  }
 0x683   :  { %v12039_v26 = vld [vmem:[#allocation6 + $0x720] sm:$0xff]  }
 0x684   :  { %3292 = vmatprep.mubr.bf16.mxu1 %v3045_v28  ;;  %v12041_v28 = vld [vmem:[#allocation6 + $0x710] sm:$0xff]  }
 0x685   :  { %3293 = vmatmul.mubr.bf16.vlgmr.msra.gmra.mxu1 %v3044_v29  ;;  %v12042_v29 = vld [vmem:[#allocation6 + $0x708] sm:$0xff]  }
 0x686   :  { %3351 = vmatpush1.bf16.msra.mxu1 %v12754_v5  ;;  %3378 = vmatprep.mubr.bf16.mxu1 %v12702_v0 }
 0x687   :  { %3352 = vmatprep.subr.bf16.mxu1 %v13117_v11 }
 0x68a   :  { %3353 = vmatpush1.bf16.msra.mxu1 %v13120_v32 }
 0x68b   :  { %3354 = vmatprep.subr.bf16.mxu1 %v13123_v12 }
 0x68e   :  { %3355 = vmatpush1.bf16.msra.mxu1 %v13203_v49 }
 0x68f   :  { %3356 = vmatprep.subr.bf16.mxu1 %v13206_v30 }
 0x692   :  { %3357 = vmatpush1.bf16.msra.mxu1 %v13209_v31 }
 0x693   :  { %v3033_v33 = vpop.f32.mrf.mxu0  ;;  %3358 = vmatprep.subr.bf16.mxu1 %v13212_v34 }
 0x694   :  { %v3034_v35 = vadd.f32 %v3033_v33, %v12819_v48  ;;  %v12043_v33 = vld [vmem:[#allocation6 + $0x700] sm:$0xff]  }
 0x695   :  { %v3035_v46 = vpop.f32.mrf.mxu0 }
 0x696   :  { %v3042_v47 = vmax.f32 %v3034_v35, 0.0  ;;  %v3036_v53 = vadd.f32 %v3035_v46, %v12825_v50  ;;  %3359 = vmatpush1.bf16.msra.mxu1 %v13132_v55  ;;  %v12044_v35 = vld [vmem:[#allocation6 + $0x748] sm:$0xff]   ;;  %v12045_v46 = vld [vmem:[#allocation6 + $0x740] sm:$0xff]  }
 0x697   :  { %3360 = vmatprep.subr.bf16.mxu1 %v13135_v56  ;;  %v3037_v54 = vpop.f32.mrf.mxu0 }
 0x698   :  { %v3043_v4 = vmax.f32 %v3036_v53, 0.0  ;;  %v3046_v7 = vpack.c.bf16 %v3042_v47, %v3042_v47 }
 0x699   :  { %v3038_v6 = vpop.f32.mrf.mxu0 }
 0x69a   :  { %v3047_v8 = vpack.c.bf16 %v3043_v4, %v3043_v4  ;;  %3361 = vmatpush1.bf16.msra.mxu1 %v13138_v42 }
 0x69b   :  { %10623 = vmatprep.subr.msk.bf16.mxu1 %vm231_vm0, %v12758_v16 }
 0x69c   :  { %10619 = vmatprep.mubr.msk.bf16.mxu0 %vm690_vm2, %v3047_v8 }
 0x69d   :  { %10622 = vmatmul.mubr.msk.bf16.vlgmr.msra.gmra.mxu1 %vm227_vm1, %v10620_v9  ;;  %3333 = vmatmul.mubr.bf16.vlgmr.msra.gmra.mxu0 %v3046_v7 }
 0x69e   :  { %3392 = vmatpush1.bf16.msra.mxu1 %v12771_v22  ;;  %3419 = vmatprep.mubr.bf16.mxu1 %v12702_v0 }
 0x69f   :  { %3393 = vmatprep.subr.bf16.mxu1 %v13150_v60  ;;  %11374 = vmatpush3.bf16.msra.mxu0 %v12021_v36 }
 0x6a0   :  { %11375 = vmatprep.subr.bf16.mxu0 %v12022_v37 }
 0x6a2   :  { %3394 = vmatpush1.bf16.msra.mxu1 %v13153_v61 }
 0x6a3   :  { %3395 = vmatprep.subr.bf16.mxu1 %v13156_v62  ;;  %11376 = vmatpush3.bf16.msra.mxu0 %v12023_v38 }
 0x6a4   :  { %11377 = vmatprep.subr.bf16.mxu0 %v12024_v13 }
 0x6a6   :  { %3396 = vmatpush1.bf16.msra.mxu1 %v13159_v3 }
 0x6a7   :  { %3397 = vmatprep.subr.bf16.mxu1 %v13162_v14  ;;  %11378 = vmatpush3.bf16.msra.mxu0 %v12025_v43 }
 0x6a8   :  { %11379 = vmatprep.subr.bf16.mxu0 %v12026_v44 }
 0x6aa   :  { %3398 = vmatpush1.bf16.msra.mxu1 %v13165_v15 }
 0x6ab   :  { %3399 = vmatprep.subr.bf16.mxu1 %v13168_v17  ;;  %11380 = vmatpush3.bf16.msra.mxu0 %v12027_v52 }
 0x6ac   :  { %11381 = vmatprep.subr.bf16.mxu0 %v12028_v40 }
 0x6ae   :  { %3400 = vmatpush1.bf16.msra.mxu1 %v13171_v51 }
 0x6af   :  { %3401 = vmatprep.subr.bf16.mxu1 %v13174_v18  ;;  %11382 = vmatpush3.bf16.msra.mxu0 %v12029_v41 }
 0x6b0   :  { %11383 = vmatprep.subr.bf16.mxu0 %v12031_v57 }
 0x6b2   :  { %3402 = vmatpush1.bf16.msra.mxu1 %v13177_v19 }
 0x6b3   :  { %3688 = vmatprep.subr.bf16.mxu1 %v12702_v0  ;;  %11384 = vmatpush3.bf16.msra.mxu0 %v12032_v58 }
 0x6b4   :  { %11385 = vmatprep.subr.bf16.mxu0 %v12034_v20 }
 0x6b5   :  { %10624 = vmatmul.mubr.msk.bf16.vlgmr.msra.gmra.mxu1 %vm227_vm1, %v10620_v9 }
 0x6b6   :  { %3689 = vmatpush1.bf16.msra.mxu1 %v12030_v45 }
 0x6b7   :  { %3690 = vmatprep.subr.bf16.mxu1 %v12702_v0  ;;  %11386 = vmatpush3.bf16.msra.mxu0 %v12035_v21 }
 0x6b8   :  { %11387 = vmatprep.subr.bf16.mxu0 %v12037_v24 }
 0x6ba   :  { %3691 = vmatpush1.bf16.msra.mxu1 %v12033_v39 }
 0x6bb   :  { %3692 = vmatprep.subr.bf16.mxu1 %v12702_v0  ;;  %11388 = vmatpush3.bf16.msra.mxu0 %v12038_v25 }
 0x6bc   :  { %10653 = vmatprep.subr.msk.bf16.mxu0 %vm231_vm0, %v12747_v2 }
 0x6be   :  { %3693 = vmatpush1.bf16.msra.mxu1 %v12036_v23 }
 0x6bf   :  { %3694 = vmatprep.subr.bf16.mxu1 %v12702_v0 }
 0x6c2   :  { %3695 = vmatpush1.bf16.msra.mxu1 %v12039_v26 }
 0x6c3   :  { %3696 = vmatprep.subr.bf16.mxu1 %v12702_v0 }
 0x6c6   :  { %3697 = vmatpush1.bf16.msra.mxu1 %v12040_v27 }
 0x6c7   :  { %3698 = vmatprep.subr.bf16.mxu1 %v12702_v0 }
 0x6ca   :  { %3699 = vmatpush1.bf16.msra.mxu1 %v12041_v28 }
 0x6cb   :  { %3700 = vmatprep.subr.bf16.mxu1 %v12702_v0 }
 0x6ce   :  { %3701 = vmatpush1.bf16.msra.mxu1 %v12042_v29  ;;  %v10652_v29 = vld [vmem:[%s14250_s4 + $0x24] sm:$0xf] }
 0x6cf   :  { %3702 = vmatprep.subr.bf16.mxu1 %v12702_v0 }
 0x6d2   :  { %3703 = vmatpush1.bf16.msra.mxu1 %v12043_v33  ;;  %v12046_v33 = vld [vmem:[#allocation6 + $0x7c8] sm:$0xff]  }
 0x6d3   :  { %3716 = vmatprep.subr.bf16.mxu1 %v12702_v0 }
 0x6d6   :  { %3717 = vmatpush2.bf16.msra.mxu1 %v12044_v35  ;;  %v12047_v35 = vld [vmem:[#allocation6 + $0x788] sm:$0xff]  }
 0x6d7   :  { %3718 = vmatprep.subr.bf16.mxu1 %v12702_v0 }
 0x6da   :  { %3719 = vmatpush2.bf16.msra.mxu1 %v12045_v46  ;;  %v12048_v46 = vld [vmem:[#allocation6 + $0x7c0] sm:$0xff]  }
 0x6db   :  { %11395 = vmatprep.subr.bf16.mxu1 %v12046_v33 }
 0x745   :  { %v11367_v47 = vpop.f32.mrf.mxu1 }
 0x747   :  { %v11368_v53 = vpop.f32.mrf.mxu1 }
 0x748   :  { %v11369_v54 = vadd.f32 %v11368_v53, %v11367_v47  ;;  %v12049_v47 = vld [vmem:[#allocation6 + $0x780] sm:$0xff]   ;;  %v12050_v53 = vld [vmem:[#allocation6 + $0x7b8] sm:$0xff]  }
 0x749   :  { %v11370_v4 = vpop.f32.mrf.mxu1 }
 0x74a   :  { %v12052_v4 = vld [vmem:[#allocation6 + $0x7b0] sm:$0xff]  }
 0x74b   :  { %v11371_v7 = vpop.f32.mrf.mxu1 }
 0x74c   :  { %v12056_v7 = vld [vmem:[#allocation6 + $0x808] sm:$0xff]  }
 0x75d   :  { %v3380_v6 = vpop.f32.mrf.mxu1  ;;  %v3334_v8 = vpop.f32.mrf.mxu0 }
 0x75e   :  { %v3381_v9 = vadd.f32 %v3380_v6, %v12803_v63  ;;  %v3335_v10 = vadd.f32 %v11369_v54, %v3334_v8  ;;  %v12051_v54 = vld [vmem:[#allocation6 + $0x778] sm:$0xff]   ;;  %v12053_v6 = vld [vmem:[#allocation6 + $0x770] sm:$0xff]   ;;  %v12059_v8 = vld [vmem:[#allocation6 + $0x800] sm:$0xff]  }
 0x75f   :  { %v3382_v36 = vpop.f32.mrf.mxu1  ;;  %v3336_v37 = vpop.f32.mrf.mxu0 }
 0x760   :  { %v13254_v38 = vadd.f32 %v3335_v10, %v13195_v59  ;;  %v3383_v13 = vadd.f32 %v3382_v36, %v12806_v1  ;;  %v3428_v43 = vmax.f32 %v3381_v9, 0.0  ;;  %v12054_v9 = vld [vmem:[#allocation6 + $0x7a8] sm:$0xff]   ;;  %v12057_v36 = vld [vmem:[#allocation6 + $0x7a0] sm:$0xff]  }
 0x761   :  { %v3384_v44 = vpop.f32.mrf.mxu1  ;;  %v3337_v45 = vpop.f32.mrf.mxu0  ;;  %v12055_v10 = vld [vmem:[#allocation6 + $0x768] sm:$0xff]   ;;  %v12058_v37 = vld [vmem:[#allocation6 + $0x760] sm:$0xff]  }
 0x762   :  { %v3429_v52 = vmax.f32 %v3383_v13, 0.0  ;;  %v3432_v57 = vpack.c.bf16 %v3428_v43, %v3428_v43  ;;  %v12060_v13 = vld [vmem:[#allocation6 + $0x798] sm:$0xff]   ;;  %v12063_v45 = vld [vmem:[#allocation6 + $0x790] sm:$0xff]  }
 0x763   :  { %v3385_v39 = vpop.f32.mrf.mxu1  ;;  %v3338_v40 = vpop.f32.mrf.mxu0  ;;  %v12061_v43 = vld [vmem:[#allocation6 + $0x758] sm:$0xff]  }
 0x764   :  { %v3433_v41 = vpack.c.bf16 %v3429_v52, %v3429_v52  ;;  %v12062_v44 = vld [vmem:[#allocation6 + $0x7f8] sm:$0xff]   ;;  %v12064_v52 = vld [vmem:[#allocation6 + $0x750] sm:$0xff]   ;;  %v12066_v40 = vld [vmem:[#allocation6 + $0x7e8] sm:$0xff]  }
 0x765   :  { %v12065_v39 = vld [vmem:[#allocation6 + $0x7f0] sm:$0xff]  }
 0x766   :  { %3680 = vmatprep.mubr.bf16.mxu0 %v3433_v41  ;;  %v12067_v41 = vld [vmem:[#allocation6 + $0x7e0] sm:$0xff]  }
 0x767   :  { %3681 = vmatmul.mubr.bf16.vlgmr.msra.gmra.mxu0 %v3432_v57  ;;  %v12068_v57 = vld [vmem:[#allocation6 + $0x7d8] sm:$0xff]  }
 0x768   :  { %3739 = vmatpush1.bf16.msra.mxu0 %v12754_v5  ;;  %3766 = vmatprep.mubr.bf16.mxu0 %v12702_v0 }
 0x769   :  { %3740 = vmatprep.subr.bf16.mxu0 %v13117_v11 }
 0x76c   :  { %3741 = vmatpush1.bf16.msra.mxu0 %v13120_v32 }
 0x76d   :  { %3742 = vmatprep.subr.bf16.mxu0 %v13123_v12 }
 0x770   :  { %3743 = vmatpush1.bf16.msra.mxu0 %v13203_v49 }
 0x771   :  { %3744 = vmatprep.subr.bf16.mxu0 %v13206_v30 }
 0x774   :  { %3745 = vmatpush1.bf16.msra.mxu0 %v13209_v31 }
 0x775   :  { %v3421_v59 = vpop.f32.mrf.mxu1  ;;  %3746 = vmatprep.subr.bf16.mxu0 %v13212_v34 }
 0x776   :  { %v3422_v58 = vadd.f32 %v3421_v59, %v12819_v48  ;;  %v12069_v59 = vld [vmem:[#allocation6 + $0x7d0] sm:$0xff]  }
 0x777   :  { %v3423_v20 = vpop.f32.mrf.mxu1 }
 0x778   :  { %v3430_v21 = vmax.f32 %v3422_v58, 0.0  ;;  %v3424_v23 = vadd.f32 %v3423_v20, %v12825_v50  ;;  %3747 = vmatpush1.bf16.msra.mxu0 %v13132_v55  ;;  %v12070_v58 = vld [vmem:[#allocation6 + $0x818] sm:$0xff]   ;;  %v12071_v20 = vld [vmem:[#allocation6 + $0x810] sm:$0xff]  }
 0x779   :  { %3748 = vmatprep.subr.bf16.mxu0 %v13135_v56  ;;  %v3425_v24 = vpop.f32.mrf.mxu1 }
 0x77a   :  { %v3431_v25 = vmax.f32 %v3424_v23, 0.0  ;;  %v3434_v26 = vpack.c.bf16 %v3430_v21, %v3430_v21 }
 0x77b   :  { %v3426_v27 = vpop.f32.mrf.mxu1 }
 0x77c   :  { %v3435_v28 = vpack.c.bf16 %v3431_v25, %v3431_v25  ;;  %3749 = vmatpush1.bf16.msra.mxu0 %v13138_v42 }
 0x77d   :  { %10655 = vmatprep.subr.msk.bf16.mxu0 %vm231_vm0, %v12758_v16 }
 0x77e   :  { %10651 = vmatprep.mubr.msk.bf16.mxu1 %vm690_vm2, %v3435_v28 }
 0x77f   :  { %10654 = vmatmul.mubr.msk.bf16.vlgmr.msra.gmra.mxu0 %vm227_vm1, %v10652_v29  ;;  %3721 = vmatmul.mubr.bf16.vlgmr.msra.gmra.mxu1 %v3434_v26 }
 0x780   :  { %3780 = vmatpush1.bf16.msra.mxu0 %v12771_v22  ;;  %3807 = vmatprep.mubr.bf16.mxu0 %v12702_v0 }
 0x781   :  { %3781 = vmatprep.subr.bf16.mxu0 %v13150_v60  ;;  %11396 = vmatpush3.bf16.msra.mxu1 %v12047_v35 }
 0x782   :  { %11397 = vmatprep.subr.bf16.mxu1 %v12048_v46 }
 0x784   :  { %3782 = vmatpush1.bf16.msra.mxu0 %v13153_v61 }
 0x785   :  { %3783 = vmatprep.subr.bf16.mxu0 %v13156_v62  ;;  %11398 = vmatpush3.bf16.msra.mxu1 %v12049_v47 }
 0x786   :  { %11399 = vmatprep.subr.bf16.mxu1 %v12050_v53 }
 0x788   :  { %3784 = vmatpush1.bf16.msra.mxu0 %v13159_v3 }
 0x789   :  { %3785 = vmatprep.subr.bf16.mxu0 %v13162_v14  ;;  %11400 = vmatpush3.bf16.msra.mxu1 %v12051_v54 }
 0x78a   :  { %11401 = vmatprep.subr.bf16.mxu1 %v12052_v4 }
 0x78c   :  { %3786 = vmatpush1.bf16.msra.mxu0 %v13165_v15 }
 0x78d   :  { %3787 = vmatprep.subr.bf16.mxu0 %v13168_v17  ;;  %11402 = vmatpush3.bf16.msra.mxu1 %v12053_v6 }
 0x78e   :  { %11403 = vmatprep.subr.bf16.mxu1 %v12054_v9 }
 0x790   :  { %3788 = vmatpush1.bf16.msra.mxu0 %v13171_v51 }
 0x791   :  { %3789 = vmatprep.subr.bf16.mxu0 %v13174_v18  ;;  %11404 = vmatpush3.bf16.msra.mxu1 %v12055_v10 }
 0x792   :  { %11405 = vmatprep.subr.bf16.mxu1 %v12057_v36 }
 0x794   :  { %3790 = vmatpush1.bf16.msra.mxu0 %v13177_v19 }
 0x795   :  { %4076 = vmatprep.subr.bf16.mxu0 %v12702_v0  ;;  %11406 = vmatpush3.bf16.msra.mxu1 %v12058_v37 }
 0x796   :  { %11407 = vmatprep.subr.bf16.mxu1 %v12060_v13 }
 0x797   :  { %10656 = vmatmul.mubr.msk.bf16.vlgmr.msra.gmra.mxu0 %vm227_vm1, %v10652_v29 }
 0x798   :  { %4077 = vmatpush1.bf16.msra.mxu0 %v12056_v7 }
 0x799   :  { %4078 = vmatprep.subr.bf16.mxu0 %v12702_v0  ;;  %11408 = vmatpush3.bf16.msra.mxu1 %v12061_v43 }
 0x79a   :  { %11409 = vmatprep.subr.bf16.mxu1 %v12063_v45 }
 0x79c   :  { %4079 = vmatpush1.bf16.msra.mxu0 %v12059_v8 }
 0x79d   :  { %4080 = vmatprep.subr.bf16.mxu0 %v12702_v0  ;;  %11410 = vmatpush3.bf16.msra.mxu1 %v12064_v52 }
 0x79e   :  { %10685 = vmatprep.subr.msk.bf16.mxu1 %vm231_vm0, %v12747_v2 }
 0x7a0   :  { %4081 = vmatpush1.bf16.msra.mxu0 %v12062_v44 }
 0x7a1   :  { %4082 = vmatprep.subr.bf16.mxu0 %v12702_v0 }
 0x7a4   :  { %4083 = vmatpush1.bf16.msra.mxu0 %v12065_v39 }
 0x7a5   :  { %4084 = vmatprep.subr.bf16.mxu0 %v12702_v0 }
 0x7a8   :  { %4085 = vmatpush1.bf16.msra.mxu0 %v12066_v40 }
 0x7a9   :  { %4086 = vmatprep.subr.bf16.mxu0 %v12702_v0 }
 0x7ac   :  { %4087 = vmatpush1.bf16.msra.mxu0 %v12067_v41 }
 0x7ad   :  { %4088 = vmatprep.subr.bf16.mxu0 %v12702_v0 }
 0x7b0   :  { %4089 = vmatpush1.bf16.msra.mxu0 %v12068_v57  ;;  %v10684_v57 = vld [vmem:[%s14250_s4 + $0x28] sm:$0xf] }
 0x7b1   :  { %4090 = vmatprep.subr.bf16.mxu0 %v12702_v0 }
 0x7b4   :  { %4091 = vmatpush1.bf16.msra.mxu0 %v12069_v59  ;;  %v12072_v59 = vld [vmem:[#allocation6 + $0x898] sm:$0xff]  }
 0x7b5   :  { %4104 = vmatprep.subr.bf16.mxu0 %v12702_v0 }
 0x7b8   :  { %4105 = vmatpush2.bf16.msra.mxu0 %v12070_v58  ;;  %v12073_v58 = vld [vmem:[#allocation6 + $0x858] sm:$0xff]  }
 0x7b9   :  { %4106 = vmatprep.subr.bf16.mxu0 %v12702_v0 }
 0x7bc   :  { %4107 = vmatpush2.bf16.msra.mxu0 %v12071_v20  ;;  %v12074_v20 = vld [vmem:[#allocation6 + $0x890] sm:$0xff]  }
 0x7bd   :  { %11417 = vmatprep.subr.bf16.mxu0 %v12072_v59 }
 0x827   :  { %v11389_v21 = vpop.f32.mrf.mxu0 }
 0x829   :  { %v11390_v23 = vpop.f32.mrf.mxu0 }
 0x82a   :  { %v11391_v24 = vadd.f32 %v11390_v23, %v11389_v21  ;;  %v12075_v21 = vld [vmem:[#allocation6 + $0x850] sm:$0xff]   ;;  %v12076_v23 = vld [vmem:[#allocation6 + $0x888] sm:$0xff]  }
 0x82b   :  { %v11392_v25 = vpop.f32.mrf.mxu0 }
 0x82c   :  { %v12078_v25 = vld [vmem:[#allocation6 + $0x880] sm:$0xff]  }
 0x82d   :  { %v11393_v26 = vpop.f32.mrf.mxu0 }
 0x82e   :  { %v12082_v26 = vld [vmem:[#allocation6 + $0x8d8] sm:$0xff]  }
 0x83f   :  { %v3768_v27 = vpop.f32.mrf.mxu0  ;;  %v3722_v28 = vpop.f32.mrf.mxu1 }
 0x840   :  { %v3769_v29 = vadd.f32 %v3768_v27, %v12803_v63  ;;  %v3723_v33 = vadd.f32 %v11391_v24, %v3722_v28  ;;  %v12077_v24 = vld [vmem:[#allocation6 + $0x848] sm:$0xff]   ;;  %v12079_v27 = vld [vmem:[#allocation6 + $0x840] sm:$0xff]   ;;  %v12085_v28 = vld [vmem:[#allocation6 + $0x8d0] sm:$0xff]  }
 0x841   :  { %v3770_v35 = vpop.f32.mrf.mxu0  ;;  %v3724_v46 = vpop.f32.mrf.mxu1 }
 0x842   :  { %v13305_v47 = vadd.f32 %v3723_v33, %v13254_v38  ;;  %v3771_v53 = vadd.f32 %v3770_v35, %v12806_v1  ;;  %v3816_v54 = vmax.f32 %v3769_v29, 0.0  ;;  %v12080_v29 = vld [vmem:[#allocation6 + $0x878] sm:$0xff]   ;;  %v12083_v35 = vld [vmem:[#allocation6 + $0x870] sm:$0xff]  }
 0x843   :  { %v3772_v4 = vpop.f32.mrf.mxu0  ;;  %v3725_v7 = vpop.f32.mrf.mxu1  ;;  %v12081_v33 = vld [vmem:[#allocation6 + $0x838] sm:$0xff]   ;;  %v12084_v46 = vld [vmem:[#allocation6 + $0x830] sm:$0xff]  }
 0x844   :  { %v3817_v6 = vmax.f32 %v3771_v53, 0.0  ;;  %v3820_v36 = vpack.c.bf16 %v3816_v54, %v3816_v54  ;;  %v12086_v53 = vld [vmem:[#allocation6 + $0x868] sm:$0xff]   ;;  %v12089_v7 = vld [vmem:[#allocation6 + $0x860] sm:$0xff]  }
 0x845   :  { %v3773_v8 = vpop.f32.mrf.mxu0  ;;  %v3726_v9 = vpop.f32.mrf.mxu1  ;;  %v12087_v54 = vld [vmem:[#allocation6 + $0x828] sm:$0xff]  }
 0x846   :  { %v3821_v10 = vpack.c.bf16 %v3817_v6, %v3817_v6  ;;  %v12088_v4 = vld [vmem:[#allocation6 + $0x8c8] sm:$0xff]   ;;  %v12090_v6 = vld [vmem:[#allocation6 + $0x820] sm:$0xff]   ;;  %v12092_v9 = vld [vmem:[#allocation6 + $0x8b8] sm:$0xff]  }
 0x847   :  { %v12091_v8 = vld [vmem:[#allocation6 + $0x8c0] sm:$0xff]  }
 0x848   :  { %4068 = vmatprep.mubr.bf16.mxu1 %v3821_v10  ;;  %v12093_v10 = vld [vmem:[#allocation6 + $0x8b0] sm:$0xff]  }
 0x849   :  { %4069 = vmatmul.mubr.bf16.vlgmr.msra.gmra.mxu1 %v3820_v36  ;;  %v12094_v36 = vld [vmem:[#allocation6 + $0x8a8] sm:$0xff]  }
 0x84a   :  { %4127 = vmatpush1.bf16.msra.mxu1 %v12754_v5  ;;  %4154 = vmatprep.mubr.bf16.mxu1 %v12702_v0 }
 0x84b   :  { %4128 = vmatprep.subr.bf16.mxu1 %v13117_v11 }
 0x84e   :  { %4129 = vmatpush1.bf16.msra.mxu1 %v13120_v32 }
 0x84f   :  { %4130 = vmatprep.subr.bf16.mxu1 %v13123_v12 }
 0x852   :  { %4131 = vmatpush1.bf16.msra.mxu1 %v13203_v49 }
 0x853   :  { %4132 = vmatprep.subr.bf16.mxu1 %v13206_v30 }
 0x856   :  { %4133 = vmatpush1.bf16.msra.mxu1 %v13209_v31 }
 0x857   :  { %v3809_v38 = vpop.f32.mrf.mxu0  ;;  %4134 = vmatprep.subr.bf16.mxu1 %v13212_v34 }
 0x858   :  { %v3810_v37 = vadd.f32 %v3809_v38, %v12819_v48  ;;  %v12095_v38 = vld [vmem:[#allocation6 + $0x8a0] sm:$0xff]  }
 0x859   :  { %v3811_v13 = vpop.f32.mrf.mxu0 }
 0x85a   :  { %v3818_v43 = vmax.f32 %v3810_v37, 0.0  ;;  %v3812_v44 = vadd.f32 %v3811_v13, %v12825_v50  ;;  %4135 = vmatpush1.bf16.msra.mxu1 %v13132_v55  ;;  %v12096_v37 = vld [vmem:[#allocation6 + $0x8e8] sm:$0xff]   ;;  %v12097_v13 = vld [vmem:[#allocation6 + $0x8e0] sm:$0xff]  }
 0x85b   :  { %4136 = vmatprep.subr.bf16.mxu1 %v13135_v56  ;;  %v3813_v45 = vpop.f32.mrf.mxu0 }
 0x85c   :  { %v3819_v52 = vmax.f32 %v3812_v44, 0.0  ;;  %v3822_v39 = vpack.c.bf16 %v3818_v43, %v3818_v43 }
 0x85d   :  { %v3814_v40 = vpop.f32.mrf.mxu0 }
 0x85e   :  { %v3823_v41 = vpack.c.bf16 %v3819_v52, %v3819_v52  ;;  %4137 = vmatpush1.bf16.msra.mxu1 %v13138_v42 }
 0x85f   :  { %10687 = vmatprep.subr.msk.bf16.mxu1 %vm231_vm0, %v12758_v16 }
 0x860   :  { %10683 = vmatprep.mubr.msk.bf16.mxu0 %vm690_vm2, %v3823_v41 }
 0x861   :  { %10686 = vmatmul.mubr.msk.bf16.vlgmr.msra.gmra.mxu1 %vm227_vm1, %v10684_v57  ;;  %4109 = vmatmul.mubr.bf16.vlgmr.msra.gmra.mxu0 %v3822_v39 }
 0x862   :  { %4168 = vmatpush1.bf16.msra.mxu1 %v12771_v22  ;;  %4195 = vmatprep.mubr.bf16.mxu1 %v12702_v0 }
 0x863   :  { %4169 = vmatprep.subr.bf16.mxu1 %v13150_v60  ;;  %11418 = vmatpush3.bf16.msra.mxu0 %v12073_v58 }
 0x864   :  { %11419 = vmatprep.subr.bf16.mxu0 %v12074_v20 }
 0x866   :  { %4170 = vmatpush1.bf16.msra.mxu1 %v13153_v61 }
 0x867   :  { %4171 = vmatprep.subr.bf16.mxu1 %v13156_v62  ;;  %11420 = vmatpush3.bf16.msra.mxu0 %v12075_v21 }
 0x868   :  { %11421 = vmatprep.subr.bf16.mxu0 %v12076_v23 }
 0x86a   :  { %4172 = vmatpush1.bf16.msra.mxu1 %v13159_v3 }
 0x86b   :  { %4173 = vmatprep.subr.bf16.mxu1 %v13162_v14  ;;  %11422 = vmatpush3.bf16.msra.mxu0 %v12077_v24 }
 0x86c   :  { %11423 = vmatprep.subr.bf16.mxu0 %v12078_v25 }
 0x86e   :  { %4174 = vmatpush1.bf16.msra.mxu1 %v13165_v15 }
 0x86f   :  { %4175 = vmatprep.subr.bf16.mxu1 %v13168_v17  ;;  %11424 = vmatpush3.bf16.msra.mxu0 %v12079_v27 }
 0x870   :  { %11425 = vmatprep.subr.bf16.mxu0 %v12080_v29 }
 0x872   :  { %4176 = vmatpush1.bf16.msra.mxu1 %v13171_v51 }
 0x873   :  { %4177 = vmatprep.subr.bf16.mxu1 %v13174_v18  ;;  %11426 = vmatpush3.bf16.msra.mxu0 %v12081_v33 }
 0x874   :  { %11427 = vmatprep.subr.bf16.mxu0 %v12083_v35 }
 0x876   :  { %4178 = vmatpush1.bf16.msra.mxu1 %v13177_v19 }
 0x877   :  { %4464 = vmatprep.subr.bf16.mxu1 %v12702_v0  ;;  %11428 = vmatpush3.bf16.msra.mxu0 %v12084_v46 }
 0x878   :  { %11429 = vmatprep.subr.bf16.mxu0 %v12086_v53 }
 0x879   :  { %10688 = vmatmul.mubr.msk.bf16.vlgmr.msra.gmra.mxu1 %vm227_vm1, %v10684_v57 }
 0x87a   :  { %4465 = vmatpush1.bf16.msra.mxu1 %v12082_v26 }
 0x87b   :  { %4466 = vmatprep.subr.bf16.mxu1 %v12702_v0  ;;  %11430 = vmatpush3.bf16.msra.mxu0 %v12087_v54 }
 0x87c   :  { %11431 = vmatprep.subr.bf16.mxu0 %v12089_v7 }
 0x87e   :  { %4467 = vmatpush1.bf16.msra.mxu1 %v12085_v28 }
 0x87f   :  { %4468 = vmatprep.subr.bf16.mxu1 %v12702_v0  ;;  %11432 = vmatpush3.bf16.msra.mxu0 %v12090_v6 }
 0x880   :  { %10717 = vmatprep.subr.msk.bf16.mxu0 %vm231_vm0, %v12747_v2 }
 0x882   :  { %4469 = vmatpush1.bf16.msra.mxu1 %v12088_v4 }
 0x883   :  { %4470 = vmatprep.subr.bf16.mxu1 %v12702_v0 }
 0x886   :  { %4471 = vmatpush1.bf16.msra.mxu1 %v12091_v8  ;;  %v10716_v8 = vld [vmem:[%s14250_s4 + $0x2c] sm:$0xf] }
 0x887   :  { %4472 = vmatprep.subr.bf16.mxu1 %v12702_v0 }
 0x88a   :  { %4473 = vmatpush1.bf16.msra.mxu1 %v12092_v9  ;;  %v12110_v9 = vld [vmem:[#allocation6 + $0x900] sm:$0xff]  }
 0x88b   :  { %4474 = vmatprep.subr.bf16.mxu1 %v12702_v0 }
 0x88e   :  { %4475 = vmatpush1.bf16.msra.mxu1 %v12093_v10  ;;  %v12112_v10 = vld [vmem:[#allocation6 + $0x938] sm:$0xff]  }
 0x88f   :  { %4476 = vmatprep.subr.bf16.mxu1 %v12702_v0 }
 0x892   :  { %4477 = vmatpush1.bf16.msra.mxu1 %v12094_v36  ;;  %v12113_v36 = vld [vmem:[#allocation6 + $0x8f8] sm:$0xff]  }
 0x893   :  { %4478 = vmatprep.subr.bf16.mxu1 %v12702_v0 }
 0x896   :  { %4479 = vmatpush1.bf16.msra.mxu1 %v12095_v38  ;;  %v12114_v38 = vld [vmem:[#allocation6 + $0x998] sm:$0xff]  }
 0x897   :  { %4492 = vmatprep.subr.bf16.mxu1 %v12702_v0 }
 0x89a   :  { %4493 = vmatpush2.bf16.msra.mxu1 %v12096_v37  ;;  %v12115_v37 = vld [vmem:[#allocation6 + $0x930] sm:$0xff]  }
 0x89b   :  { %4494 = vmatprep.subr.bf16.mxu1 %v12702_v0 }
 0x89e   :  { %4495 = vmatpush2.bf16.msra.mxu1 %v12097_v13  ;;  %v12116_v13 = vld [vmem:[#allocation6 + $0x8f0] sm:$0xff]  }
 0x909   :  { %v11411_v43 = vpop.f32.mrf.mxu1 }
 0x90b   :  { %v11412_v44 = vpop.f32.mrf.mxu1 }
 0x90c   :  { %v11413_v45 = vadd.f32 %v11412_v44, %v11411_v43  ;;  %v12117_v43 = vld [vmem:[#allocation6 + $0x990] sm:$0xff]   ;;  %v12118_v44 = vld [vmem:[#allocation6 + $0x988] sm:$0xff]  }
 0x90d   :  { %v11414_v52 = vpop.f32.mrf.mxu1 }
 0x90e   :  { %v12120_v52 = vld [vmem:[#allocation6 + $0x978] sm:$0xff]  }
 0x90f   :  { %v11415_v39 = vpop.f32.mrf.mxu1 }
 0x910   :  { %v12121_v39 = vld [vmem:[#allocation6 + $0x970] sm:$0xff]  }
 0x921   :  { %v4156_v40 = vpop.f32.mrf.mxu1  ;;  %v4110_v41 = vpop.f32.mrf.mxu0 }
 0x922   :  { %v4157_v57 = vadd.f32 %v4156_v40, %v12803_v63  ;;  %v4111_v59 = vadd.f32 %v11413_v45, %v4110_v41  ;;  %v12119_v45 = vld [vmem:[#allocation6 + $0x980] sm:$0xff]   ;;  %v12122_v40 = vld [vmem:[#allocation6 + $0x9b8] sm:$0xff]   ;;  %v12123_v41 = vld [vmem:[#allocation6 + $0x9b0] sm:$0xff]  }
 0x923   :  { %v4158_v58 = vpop.f32.mrf.mxu1  ;;  %v4112_v20 = vpop.f32.mrf.mxu0 }
 0x924   :  { %v13356_v21 = vadd.f32 %v4111_v59, %v13305_v47  ;;  %v4159_v23 = vadd.f32 %v4158_v58, %v12806_v1  ;;  %v4204_v24 = vmax.f32 %v4157_v57, 0.0 }
 0x925   :  { %v4160_v25 = vpop.f32.mrf.mxu1  ;;  %v4113_v26 = vpop.f32.mrf.mxu0 }
 0x926   :  { %v4205_v27 = vmax.f32 %v4159_v23, 0.0  ;;  %v4208_v35 = vpack.c.bf16 %v4204_v24, %v4204_v24 }
 0x927   :  { %v4161_v28 = vpop.f32.mrf.mxu1  ;;  %v4114_v29 = vpop.f32.mrf.mxu0 }
 0x928   :  { %v4209_v33 = vpack.c.bf16 %v4205_v27, %v4205_v27 }
 0x92a   :  { %4456 = vmatprep.mubr.bf16.mxu0 %v4209_v33 }
 0x92b   :  { %4457 = vmatmul.mubr.bf16.vlgmr.msra.gmra.mxu0 %v4208_v35 }
 0x92c   :  { %4515 = vmatpush1.bf16.msra.mxu0 %v12754_v5  ;;  %4542 = vmatprep.mubr.bf16.mxu0 %v12702_v0 }
 0x92d   :  { %4516 = vmatprep.subr.bf16.mxu0 %v13117_v11 }
 0x930   :  { %4517 = vmatpush1.bf16.msra.mxu0 %v13120_v32 }
 0x931   :  { %4518 = vmatprep.subr.bf16.mxu0 %v13123_v12 }
 0x934   :  { %4519 = vmatpush1.bf16.msra.mxu0 %v13203_v49 }
 0x935   :  { %4520 = vmatprep.subr.bf16.mxu0 %v13206_v30 }
 0x938   :  { %4521 = vmatpush1.bf16.msra.mxu0 %v13209_v31 }
 0x939   :  { %v4197_v47 = vpop.f32.mrf.mxu1  ;;  %4522 = vmatprep.subr.bf16.mxu0 %v13212_v34 }
 0x93a   :  { %v4198_v46 = vadd.f32 %v4197_v47, %v12819_v48 }
 0x93b   :  { %v4199_v53 = vpop.f32.mrf.mxu1 }
 0x93c   :  { %v4206_v54 = vmax.f32 %v4198_v46, 0.0  ;;  %v4200_v4 = vadd.f32 %v4199_v53, %v12825_v50  ;;  %4523 = vmatpush1.bf16.msra.mxu0 %v13132_v55  ;;  %v12098_v55 = vld [vmem:[#allocation6 + $0x968] sm:$0xff]  }
 0x93d   :  { %4524 = vmatprep.subr.bf16.mxu0 %v13135_v56  ;;  %v4201_v11 = vpop.f32.mrf.mxu1  ;;  %v12099_v56 = vld [vmem:[#allocation6 + $0x928] sm:$0xff]   ;;  %11439 = vmatprep.subr.bf16.mxu1 %v12098_v55 }
 0x93e   :  { %v4207_v32 = vmax.f32 %v4200_v4, 0.0  ;;  %v4210_v12 = vpack.c.bf16 %v4206_v54, %v4206_v54 }
 0x93f   :  { %v4202_v7 = vpop.f32.mrf.mxu1 }
 0x940   :  { %v4211_v6 = vpack.c.bf16 %v4207_v32, %v4207_v32  ;;  %4525 = vmatpush1.bf16.msra.mxu0 %v13138_v42  ;;  %v12100_v42 = vld [vmem:[#allocation6 + $0x960] sm:$0xff]  }
 0x941   :  { %10719 = vmatprep.subr.msk.bf16.mxu0 %vm231_vm0, %v12758_v16  ;;  %v13412_v7 = vld [vmem:[#allocation2 + $0x84] ss:$16 sps:$4 sm:$0xff]  }
 0x942   :  { %10715 = vmatprep.mubr.msk.bf16.mxu1 %vm690_vm2, %v4211_v6  ;;  %v13418_v6 = vld [vmem:[#allocation2 + $0x64] ss:$16 sps:$4 sm:$0xff]  }
 0x943   :  { %10718 = vmatmul.mubr.msk.bf16.vlgmr.msra.gmra.mxu0 %vm227_vm1, %v10716_v8  ;;  %4497 = vmatmul.mubr.bf16.vlgmr.msra.gmra.mxu1 %v4210_v12 }
 0x944   :  { %4556 = vmatpush1.bf16.msra.mxu0 %v12771_v22  ;;  %4583 = vmatprep.mubr.bf16.mxu0 %v12702_v0 }
 0x945   :  { %4557 = vmatprep.subr.bf16.mxu0 %v13150_v60  ;;  %11440 = vmatpush3.bf16.msra.mxu1 %v12099_v56  ;;  %v12101_v60 = vld [vmem:[#allocation6 + $0x920] sm:$0xff]  }
 0x946   :  { %11441 = vmatprep.subr.bf16.mxu1 %v12100_v42 }
 0x948   :  { %4558 = vmatpush1.bf16.msra.mxu0 %v13153_v61  ;;  %v12102_v61 = vld [vmem:[#allocation6 + $0x958] sm:$0xff]  }
 0x949   :  { %4559 = vmatprep.subr.bf16.mxu0 %v13156_v62  ;;  %11442 = vmatpush3.bf16.msra.mxu1 %v12101_v60  ;;  %v12103_v62 = vld [vmem:[#allocation6 + $0x918] sm:$0xff]  }
 0x94a   :  { %11443 = vmatprep.subr.bf16.mxu1 %v12102_v61  ;;  %v13427_v61 = vld [vmem:[#allocation2 + $0x20] ss:$16 sps:$4 sm:$0xff]  }
 0x94c   :  { %4560 = vmatpush1.bf16.msra.mxu0 %v13159_v3  ;;  %v12104_v3 = vld [vmem:[#allocation6 + $0x950] sm:$0xff]  }
 0x94d   :  { %4561 = vmatprep.subr.bf16.mxu0 %v13162_v14  ;;  %v12108_v14 = vld [vmem:[#allocation6 + $0x9a8] sm:$0xff]   ;;  %11444 = vmatpush3.bf16.msra.mxu1 %v12103_v62  ;;  %v13430_v62 = vld [vmem:[#allocation2 + $0x4] ss:$16 sps:$4 sm:$0xff]  }
 0x94e   :  { %11445 = vmatprep.subr.bf16.mxu1 %v12104_v3 }
 0x950   :  { %4562 = vmatpush1.bf16.msra.mxu0 %v13165_v15  ;;  %v12105_v15 = vld [vmem:[#allocation6 + $0x910] sm:$0xff]  }
 0x951   :  { %4563 = vmatprep.subr.bf16.mxu0 %v13168_v17  ;;  %v12111_v17 = vld [vmem:[#allocation6 + $0x9a0] sm:$0xff]   ;;  %11446 = vmatpush3.bf16.msra.mxu1 %v12105_v15  ;;  %v10748_v15 = vld [vmem:[%s14250_s4 + $0x30] sm:$0xf] }
 0x954   :  { %4564 = vmatpush1.bf16.msra.mxu0 %v13171_v51  ;;  %v12106_v51 = vld [vmem:[#allocation6 + $0x948] sm:$0xff]  }
 0x955   :  { %4565 = vmatprep.subr.bf16.mxu0 %v13174_v18  ;;  %v12107_v18 = vld [vmem:[#allocation6 + $0x908] sm:$0xff]   ;;  %11447 = vmatprep.subr.bf16.mxu1 %v12106_v51  ;;  %v13448_v51 = vld [vmem:[#allocation2 + $0x88] ss:$16 sps:$4 sm:$0xff]  }
 0x956   :  { %11448 = vmatpush3.bf16.msra.mxu1 %v12107_v18  ;;  %v13451_v18 = vld [vmem:[#allocation2 + $0x6c] ss:$16 sps:$4 sm:$0xff]  }
 0x958   :  { %4566 = vmatpush1.bf16.msra.mxu0 %v13177_v19  ;;  %v12109_v19 = vld [vmem:[#allocation6 + $0x940] sm:$0xff]  }
 0x959   :  { %4852 = vmatprep.subr.bf16.mxu0 %v12702_v0  ;;  %11449 = vmatprep.subr.bf16.mxu1 %v12109_v19  ;;  %v13454_v19 = vld [vmem:[#allocation2 + $0x68] ss:$16 sps:$4 sm:$0xff]  }
 0x95a   :  { %11450 = vmatpush3.bf16.msra.mxu1 %v12110_v9  ;;  %v13457_v9 = vld [vmem:[#allocation2 + $0x4c] ss:$16 sps:$4 sm:$0xff]  }
 0x95b   :  { %10720 = vmatmul.mubr.msk.bf16.vlgmr.msra.gmra.mxu0 %vm227_vm1, %v10716_v8  ;;  %11451 = vmatprep.subr.bf16.mxu1 %v12112_v10  ;;  %v13460_v10 = vld [vmem:[#allocation2 + $0x48] ss:$16 sps:$4 sm:$0xff]  }
 0x95c   :  { %4853 = vmatpush1.bf16.msra.mxu0 %v12108_v14 }
 0x95d   :  { %4854 = vmatprep.subr.bf16.mxu0 %v12702_v0 }
 0x95e   :  { %11452 = vmatpush3.bf16.msra.mxu1 %v12113_v36  ;;  %v13463_v36 = vld [vmem:[#allocation2 + $0x2c] ss:$16 sps:$4 sm:$0xff]  }
 0x95f   :  { %11453 = vmatprep.subr.bf16.mxu1 %v12115_v37  ;;  %v13469_v37 = vld [vmem:[#allocation2 + $0xc] ss:$16 sps:$4 sm:$0xff]  }
 0x960   :  { %4855 = vmatpush1.bf16.msra.mxu0 %v12111_v17  ;;  %v13445_v17 = vld [vmem:[#allocation2 + $0x8c] ss:$16 sps:$4 sm:$0xff]  }
 0x961   :  { %4856 = vmatprep.subr.bf16.mxu0 %v12702_v0 }
 0x962   :  { %11454 = vmatpush3.bf16.msra.mxu1 %v12116_v13  ;;  %v13472_v13 = vld [vmem:[#allocation2 + $0x8] ss:$16 sps:$4 sm:$0xff]  }
 0x963   :  { %10749 = vmatprep.subr.msk.bf16.mxu1 %vm231_vm0, %v12747_v2 }
 0x964   :  { %4857 = vmatpush1.bf16.msra.mxu0 %v12114_v38  ;;  %v13466_v38 = vld [vmem:[#allocation2 + $0x28] ss:$16 sps:$4 sm:$0xff]  }
 0x965   :  { %4858 = vmatprep.subr.bf16.mxu0 %v12702_v0 }
 0x968   :  { %4859 = vmatpush1.bf16.msra.mxu0 %v12117_v43  ;;  %v12124_v43 = vld [vmem:[#allocation6 + $0xa38] sm:$0xff]  }
 0x969   :  { %4860 = vmatprep.subr.bf16.mxu0 %v12702_v0 }
 0x96c   :  { %4861 = vmatpush1.bf16.msra.mxu0 %v12118_v44  ;;  %v12125_v44 = vld [vmem:[#allocation6 + $0x9f8] sm:$0xff]  }
 0x96d   :  { %4862 = vmatprep.subr.bf16.mxu0 %v12702_v0 }
 0x970   :  { %4863 = vmatpush1.bf16.msra.mxu0 %v12119_v45  ;;  %v12126_v45 = vld [vmem:[#allocation6 + $0xa30] sm:$0xff]  }
 0x971   :  { %4864 = vmatprep.subr.bf16.mxu0 %v12702_v0 }
 0x974   :  { %4865 = vmatpush1.bf16.msra.mxu0 %v12120_v52  ;;  %v12127_v52 = vld [vmem:[#allocation6 + $0x9f0] sm:$0xff]  }
 0x975   :  { %4866 = vmatprep.subr.bf16.mxu0 %v12702_v0 }
 0x978   :  { %4867 = vmatpush1.bf16.msra.mxu0 %v12121_v39  ;;  %v12128_v39 = vld [vmem:[#allocation6 + $0xa28] sm:$0xff]  }
 0x979   :  { %4880 = vmatprep.subr.bf16.mxu0 %v12702_v0 }
 0x97c   :  { %4881 = vmatpush2.bf16.msra.mxu0 %v12122_v40  ;;  %v12129_v40 = vld [vmem:[#allocation6 + $0x9e8] sm:$0xff]  }
 0x97d   :  { %4882 = vmatprep.subr.bf16.mxu0 %v12702_v0 }
 0x980   :  { %4883 = vmatpush2.bf16.msra.mxu0 %v12123_v41  ;;  %v12130_v41 = vld [vmem:[#allocation6 + $0xa20] sm:$0xff]  }
 0x981   :  { %11461 = vmatprep.subr.bf16.mxu0 %v12124_v43 }
 0x9eb   :  { %v11433_v57 = vpop.f32.mrf.mxu0 }
 0x9ed   :  { %v11434_v59 = vpop.f32.mrf.mxu0 }
 0x9ee   :  { %v11435_v58 = vadd.f32 %v11434_v59, %v11433_v57  ;;  %v12134_v57 = vld [vmem:[#allocation6 + $0xa78] sm:$0xff]   ;;  %v12131_v59 = vld [vmem:[#allocation6 + $0x9e0] sm:$0xff]  }
 0x9ef   :  { %v11436_v20 = vpop.f32.mrf.mxu0 }
 0x9f0   :  { %v12132_v20 = vld [vmem:[#allocation6 + $0xa18] sm:$0xff]  }
 0x9f1   :  { %v11437_v23 = vpop.f32.mrf.mxu0 }
 0x9f2   :  { %v12133_v23 = vld [vmem:[#allocation6 + $0x9d8] sm:$0xff]  }
 0xa03   :  { %v4544_v24 = vpop.f32.mrf.mxu0  ;;  %v4498_v25 = vpop.f32.mrf.mxu1 }
 0xa04   :  { %v4545_v26 = vadd.f32 %v4544_v24, %v12803_v63  ;;  %v4499_v27 = vadd.f32 %v11435_v58, %v4498_v25  ;;  %v12137_v58 = vld [vmem:[#allocation6 + $0xa70] sm:$0xff]  }
 0xa05   :  { %v4546_v28 = vpop.f32.mrf.mxu0  ;;  %v4500_v29 = vpop.f32.mrf.mxu1  ;;  %v12135_v24 = vld [vmem:[#allocation6 + $0xa10] sm:$0xff]  }
 0xa06   :  { %v13407_v33 = vadd.f32 %v4499_v27, %v13356_v21  ;;  %v4547_v35 = vadd.f32 %v4546_v28, %v12806_v1  ;;  %v4592_v47 = vmax.f32 %v4545_v26, 0.0  ;;  %v13415_v21 = vld [vmem:[#allocation2 + $0x80] ss:$16 sps:$4 sm:$0xff]   ;;  %v12136_v25 = vld [vmem:[#allocation6 + $0x9d0] sm:$0xff]   ;;  %v12141_v29 = vld [vmem:[#allocation6 + $0xa00] sm:$0xff]  }
 0xa07   :  { %v4548_v46 = vpop.f32.mrf.mxu0  ;;  %v4501_v53 = vpop.f32.mrf.mxu1  ;;  %v12138_v26 = vld [vmem:[#allocation6 + $0xa08] sm:$0xff]  }
 0xa08   :  { %v4593_v54 = vmax.f32 %v4547_v35, 0.0  ;;  %v4596_v12 = vpack.c.bf16 %v4592_v47, %v4592_v47  ;;  %v12139_v27 = vld [vmem:[#allocation6 + $0x9c8] sm:$0xff]   ;;  %v12142_v35 = vld [vmem:[#allocation6 + $0x9c0] sm:$0xff]   ;;  %v12144_v46 = vld [vmem:[#allocation6 + $0xa58] sm:$0xff]  }
 0xa09   :  { %v4549_v4 = vpop.f32.mrf.mxu0  ;;  %v4502_v11 = vpop.f32.mrf.mxu1  ;;  %v12140_v28 = vld [vmem:[#allocation6 + $0xa68] sm:$0xff]   ;;  %v12143_v47 = vld [vmem:[#allocation6 + $0xa60] sm:$0xff]   ;;  %v12145_v53 = vld [vmem:[#allocation6 + $0xa50] sm:$0xff]  }
 0xa0a   :  { %v4597_v32 = vpack.c.bf16 %v4593_v54, %v4593_v54  ;;  %v12146_v54 = vld [vmem:[#allocation6 + $0xa48] sm:$0xff]   ;;  %v12147_v4 = vld [vmem:[#allocation6 + $0xa40] sm:$0xff]  }
 0xa0b   :  { %v12148_v11 = vld [vmem:[#allocation6 + $0xa88] sm:$0xff]  }
 0xa0c   :  { %4844 = vmatprep.mubr.bf16.mxu1 %v4597_v32  ;;  %v12149_v32 = vld [vmem:[#allocation6 + $0xa80] sm:$0xff]  }
 0xa0d   :  { %4845 = vmatmul.mubr.bf16.vlgmr.msra.gmra.mxu1 %v4596_v12 }
 0xa0e   :  { %4903 = vmatpush1.bf16.msra.mxu1 %v12754_v5  ;;  %4930 = vmatprep.mubr.bf16.mxu1 %v12702_v0 }
 0xa0f   :  { %4904 = vmatprep.subr.bf16.mxu1 %v13412_v7 }
 0xa12   :  { %4905 = vmatpush1.bf16.msra.mxu1 %v13415_v21 }
 0xa13   :  { %4906 = vmatprep.subr.bf16.mxu1 %v13418_v6 }
 0xa16   :  { %4907 = vmatpush1.bf16.msra.mxu1 %v13203_v49 }
 0xa17   :  { %4908 = vmatprep.subr.bf16.mxu1 %v13206_v30 }
 0xa1a   :  { %4909 = vmatpush1.bf16.msra.mxu1 %v13209_v31 }
 0xa1b   :  { %v4585_v8 = vpop.f32.mrf.mxu0  ;;  %4910 = vmatprep.subr.bf16.mxu1 %v13212_v34  ;;  %v13433_v34 = vld [vmem:[#allocation2] ss:$16 sps:$4 sm:$0xff]  }
 0xa1c   :  { %v4586_v55 = vadd.f32 %v4585_v8, %v12819_v48 }
 0xa1d   :  { %v4587_v56 = vpop.f32.mrf.mxu0 }
 0xa1e   :  { %v4594_v42 = vmax.f32 %v4586_v55, 0.0  ;;  %v4588_v60 = vadd.f32 %v4587_v56, %v12825_v50  ;;  %4911 = vmatpush1.bf16.msra.mxu1 %v13427_v61 }
 0xa1f   :  { %4912 = vmatprep.subr.bf16.mxu1 %v13430_v62  ;;  %v4589_v49 = vpop.f32.mrf.mxu0 }
 0xa20   :  { %v4595_v30 = vmax.f32 %v4588_v60, 0.0  ;;  %v4598_v31 = vpack.c.bf16 %v4594_v42, %v4594_v42 }
 0xa21   :  { %v4590_v3 = vpop.f32.mrf.mxu0 }
 0xa22   :  { %v4599_v14 = vpack.c.bf16 %v4595_v30, %v4595_v30  ;;  %4913 = vmatpush1.bf16.msra.mxu1 %v13433_v34 }
 0xa23   :  { %10751 = vmatprep.subr.msk.bf16.mxu1 %vm231_vm0, %v12758_v16 }
 0xa24   :  { %10747 = vmatprep.mubr.msk.bf16.mxu0 %vm690_vm2, %v4599_v14 }
 0xa25   :  { %10750 = vmatmul.mubr.msk.bf16.vlgmr.msra.gmra.mxu1 %vm227_vm1, %v10748_v15  ;;  %4885 = vmatmul.mubr.bf16.vlgmr.msra.gmra.mxu0 %v4598_v31 }
 0xa26   :  { %4944 = vmatpush1.bf16.msra.mxu1 %v12771_v22  ;;  %4971 = vmatprep.mubr.bf16.mxu1 %v12702_v0 }
 0xa27   :  { %4945 = vmatprep.subr.bf16.mxu1 %v13445_v17  ;;  %11462 = vmatpush3.bf16.msra.mxu0 %v12125_v44 }
 0xa28   :  { %11463 = vmatprep.subr.bf16.mxu0 %v12126_v45 }
 0xa2a   :  { %4946 = vmatpush1.bf16.msra.mxu1 %v13448_v51 }
 0xa2b   :  { %4947 = vmatprep.subr.bf16.mxu1 %v13451_v18  ;;  %11464 = vmatpush3.bf16.msra.mxu0 %v12127_v52 }
 0xa2c   :  { %11465 = vmatprep.subr.bf16.mxu0 %v12128_v39 }
 0xa2e   :  { %4948 = vmatpush1.bf16.msra.mxu1 %v13454_v19 }
 0xa2f   :  { %4949 = vmatprep.subr.bf16.mxu1 %v13457_v9  ;;  %11466 = vmatpush3.bf16.msra.mxu0 %v12129_v40 }
 0xa30   :  { %11467 = vmatprep.subr.bf16.mxu0 %v12130_v41 }
 0xa32   :  { %4950 = vmatpush1.bf16.msra.mxu1 %v13460_v10 }
 0xa33   :  { %4951 = vmatprep.subr.bf16.mxu1 %v13463_v36  ;;  %11468 = vmatpush3.bf16.msra.mxu0 %v12131_v59 }
 0xa34   :  { %11469 = vmatprep.subr.bf16.mxu0 %v12132_v20  ;;  %v13504_v20 = vld [vmem:[#allocation2 + $0x40] ss:$16 sps:$4 sm:$0xff]  }
 0xa36   :  { %4952 = vmatpush1.bf16.msra.mxu1 %v13466_v38 }
 0xa37   :  { %4953 = vmatprep.subr.bf16.mxu1 %v13469_v37  ;;  %11470 = vmatpush3.bf16.msra.mxu0 %v12133_v23 }
 0xa38   :  { %11471 = vmatprep.subr.bf16.mxu0 %v12135_v24  ;;  %v13507_v24 = vld [vmem:[#allocation2 + $0x24] ss:$16 sps:$4 sm:$0xff]  }
 0xa3a   :  { %4954 = vmatpush1.bf16.msra.mxu1 %v13472_v13 }
 0xa3b   :  { %5240 = vmatprep.subr.bf16.mxu1 %v12702_v0  ;;  %11472 = vmatpush3.bf16.msra.mxu0 %v12136_v25 }
 0xa3c   :  { %11473 = vmatprep.subr.bf16.mxu0 %v12138_v26 }
 0xa3d   :  { %10752 = vmatmul.mubr.msk.bf16.vlgmr.msra.gmra.mxu1 %vm227_vm1, %v10748_v15 }
 0xa3e   :  { %5241 = vmatpush1.bf16.msra.mxu1 %v12134_v57 }
 0xa3f   :  { %5242 = vmatprep.subr.bf16.mxu1 %v12702_v0  ;;  %11474 = vmatpush3.bf16.msra.mxu0 %v12139_v27 }
 0xa40   :  { %11475 = vmatprep.subr.bf16.mxu0 %v12141_v29 }
 0xa42   :  { %5243 = vmatpush1.bf16.msra.mxu1 %v12137_v58  ;;  %v13501_v58 = vld [vmem:[#allocation2 + $0x44] ss:$16 sps:$4 sm:$0xff]  }
 0xa43   :  { %5244 = vmatprep.subr.bf16.mxu1 %v12702_v0  ;;  %11476 = vmatpush3.bf16.msra.mxu0 %v12142_v35 }
 0xa44   :  { %10781 = vmatprep.subr.msk.bf16.mxu0 %vm231_vm0, %v12747_v2 }
 0xa46   :  { %5245 = vmatpush1.bf16.msra.mxu1 %v12140_v28 }
 0xa47   :  { %5246 = vmatprep.subr.bf16.mxu1 %v12702_v0 }
 0xa4a   :  { %5247 = vmatpush1.bf16.msra.mxu1 %v12143_v47 }
 0xa4b   :  { %5248 = vmatprep.subr.bf16.mxu1 %v12702_v0 }
 0xa4e   :  { %5249 = vmatpush1.bf16.msra.mxu1 %v12144_v46 }
 0xa4f   :  { %5250 = vmatprep.subr.bf16.mxu1 %v12702_v0 }
 0xa52   :  { %5251 = vmatpush1.bf16.msra.mxu1 %v12145_v53 }
 0xa53   :  { %5252 = vmatprep.subr.bf16.mxu1 %v12702_v0 }
 0xa56   :  { %5253 = vmatpush1.bf16.msra.mxu1 %v12146_v54  ;;  %v10780_v54 = vld [vmem:[%s14250_s4 + $0x34] sm:$0xf] }
 0xa57   :  { %5254 = vmatprep.subr.bf16.mxu1 %v12702_v0 }
 0xa5a   :  { %5255 = vmatpush1.bf16.msra.mxu1 %v12147_v4  ;;  %v12150_v4 = vld [vmem:[#allocation6 + $0xb08] sm:$0xff]  }
 0xa5b   :  { %5268 = vmatprep.subr.bf16.mxu1 %v12702_v0 }
 0xa5e   :  { %5269 = vmatpush2.bf16.msra.mxu1 %v12148_v11  ;;  %v12151_v11 = vld [vmem:[#allocation6 + $0xac8] sm:$0xff]  }
 0xa5f   :  { %5270 = vmatprep.subr.bf16.mxu1 %v12702_v0 }
 0xa62   :  { %5271 = vmatpush2.bf16.msra.mxu1 %v12149_v32  ;;  %v12152_v32 = vld [vmem:[#allocation6 + $0xb00] sm:$0xff]  }
 0xa63   :  { %11483 = vmatprep.subr.bf16.mxu1 %v12150_v4 }
 0xacd   :  { %v11455_v12 = vpop.f32.mrf.mxu1 }
 0xacf   :  { %v11456_v8 = vpop.f32.mrf.mxu1 }
 0xad0   :  { %v11457_v55 = vadd.f32 %v11456_v8, %v11455_v12  ;;  %v12153_v12 = vld [vmem:[#allocation6 + $0xac0] sm:$0xff]   ;;  %v12154_v8 = vld [vmem:[#allocation6 + $0xaf8] sm:$0xff]  }
 0xad1   :  { %v11458_v56 = vpop.f32.mrf.mxu1 }
 0xad2   :  { %v12156_v56 = vld [vmem:[#allocation6 + $0xaf0] sm:$0xff]  }
 0xad3   :  { %v11459_v42 = vpop.f32.mrf.mxu1 }
 0xad4   :  { %v12160_v42 = vld [vmem:[#allocation6 + $0xb48] sm:$0xff]  }
 0xae5   :  { %v4932_v60 = vpop.f32.mrf.mxu1  ;;  %v4886_v49 = vpop.f32.mrf.mxu0 }
 0xae6   :  { %v4933_v30 = vadd.f32 %v4932_v60, %v12803_v63  ;;  %v4887_v31 = vadd.f32 %v11457_v55, %v4886_v49  ;;  %v12155_v55 = vld [vmem:[#allocation6 + $0xab8] sm:$0xff]   ;;  %v12157_v60 = vld [vmem:[#allocation6 + $0xab0] sm:$0xff]   ;;  %v12163_v49 = vld [vmem:[#allocation6 + $0xb40] sm:$0xff]  }
 0xae7   :  { %v4934_v3 = vpop.f32.mrf.mxu1  ;;  %v4888_v14 = vpop.f32.mrf.mxu0 }
 0xae8   :  { %v13490_v15 = vadd.f32 %v4887_v31, %v13407_v33  ;;  %v4935_v43 = vadd.f32 %v4934_v3, %v12806_v1  ;;  %v4980_v44 = vmax.f32 %v4933_v30, 0.0  ;;  %v13498_v33 = vld [vmem:[#allocation2 + $0x60] ss:$16 sps:$4 sm:$0xff]   ;;  %v12161_v3 = vld [vmem:[#allocation6 + $0xae0] sm:$0xff]  }
 0xae9   :  { %v4936_v45 = vpop.f32.mrf.mxu1  ;;  %v4889_v52 = vpop.f32.mrf.mxu0  ;;  %v12158_v30 = vld [vmem:[#allocation6 + $0xae8] sm:$0xff]   ;;  %v12162_v14 = vld [vmem:[#allocation6 + $0xaa0] sm:$0xff]  }
 0xaea   :  { %v4981_v39 = vmax.f32 %v4935_v43, 0.0  ;;  %v4984_v59 = vpack.c.bf16 %v4980_v44, %v4980_v44  ;;  %v12159_v31 = vld [vmem:[#allocation6 + $0xaa8] sm:$0xff]   ;;  %v12164_v43 = vld [vmem:[#allocation6 + $0xad8] sm:$0xff]   ;;  %v12167_v52 = vld [vmem:[#allocation6 + $0xad0] sm:$0xff]  }
 0xaeb   :  { %v4937_v40 = vpop.f32.mrf.mxu1  ;;  %v4890_v41 = vpop.f32.mrf.mxu0  ;;  %v12165_v44 = vld [vmem:[#allocation6 + $0xa98] sm:$0xff]  }
 0xaec   :  { %v4985_v57 = vpack.c.bf16 %v4981_v39, %v4981_v39  ;;  %v12166_v45 = vld [vmem:[#allocation6 + $0xb38] sm:$0xff]   ;;  %v12168_v39 = vld [vmem:[#allocation6 + $0xa90] sm:$0xff]   ;;  %v12170_v41 = vld [vmem:[#allocation6 + $0xb28] sm:$0xff]  }
 0xaed   :  { %v12169_v40 = vld [vmem:[#allocation6 + $0xb30] sm:$0xff]  }
 0xaee   :  { %5232 = vmatprep.mubr.bf16.mxu0 %v4985_v57  ;;  %v12171_v57 = vld [vmem:[#allocation6 + $0xb20] sm:$0xff]  }
 0xaef   :  { %5233 = vmatmul.mubr.bf16.vlgmr.msra.gmra.mxu0 %v4984_v59  ;;  %v12172_v59 = vld [vmem:[#allocation6 + $0xb18] sm:$0xff]  }
 0xaf0   :  { %5291 = vmatpush1.bf16.msra.mxu0 %v12754_v5  ;;  %5318 = vmatprep.mubr.bf16.mxu0 %v12702_v0 }
 0xaf1   :  { %5292 = vmatprep.subr.bf16.mxu0 %v13412_v7 }
 0xaf4   :  { %5293 = vmatpush1.bf16.msra.mxu0 %v13415_v21 }
 0xaf5   :  { %5294 = vmatprep.subr.bf16.mxu0 %v13418_v6 }
 0xaf8   :  { %5295 = vmatpush1.bf16.msra.mxu0 %v13498_v33 }
 0xaf9   :  { %5296 = vmatprep.subr.bf16.mxu0 %v13501_v58 }
 0xafc   :  { %5297 = vmatpush1.bf16.msra.mxu0 %v13504_v20 }
 0xafd   :  { %v4973_v23 = vpop.f32.mrf.mxu1  ;;  %5298 = vmatprep.subr.bf16.mxu0 %v13507_v24 }
 0xafe   :  { %v4974_v25 = vadd.f32 %v4973_v23, %v12819_v48  ;;  %v12173_v23 = vld [vmem:[#allocation6 + $0xb10] sm:$0xff]  }
 0xaff   :  { %v4975_v26 = vpop.f32.mrf.mxu1 }
 0xb00   :  { %v4982_v27 = vmax.f32 %v4974_v25, 0.0  ;;  %v4976_v28 = vadd.f32 %v4975_v26, %v12825_v50  ;;  %5299 = vmatpush1.bf16.msra.mxu0 %v13427_v61  ;;  %v12174_v25 = vld [vmem:[#allocation6 + $0xb58] sm:$0xff]   ;;  %v12175_v26 = vld [vmem:[#allocation6 + $0xb50] sm:$0xff]  }
 0xb01   :  { %5300 = vmatprep.subr.bf16.mxu0 %v13430_v62  ;;  %v4977_v29 = vpop.f32.mrf.mxu1 }
 0xb02   :  { %v4983_v35 = vmax.f32 %v4976_v28, 0.0  ;;  %v4986_v47 = vpack.c.bf16 %v4982_v27, %v4982_v27 }
 0xb03   :  { %v4978_v46 = vpop.f32.mrf.mxu1 }
 0xb04   :  { %v4987_v53 = vpack.c.bf16 %v4983_v35, %v4983_v35  ;;  %5301 = vmatpush1.bf16.msra.mxu0 %v13433_v34 }
 0xb05   :  { %10783 = vmatprep.subr.msk.bf16.mxu0 %vm231_vm0, %v12758_v16 }
 0xb06   :  { %10779 = vmatprep.mubr.msk.bf16.mxu1 %vm690_vm2, %v4987_v53 }
 0xb07   :  { %10782 = vmatmul.mubr.msk.bf16.vlgmr.msra.gmra.mxu0 %vm227_vm1, %v10780_v54  ;;  %5273 = vmatmul.mubr.bf16.vlgmr.msra.gmra.mxu1 %v4986_v47 }
 0xb08   :  { %5332 = vmatpush1.bf16.msra.mxu0 %v12771_v22  ;;  %5359 = vmatprep.mubr.bf16.mxu0 %v12702_v0 }
 0xb09   :  { %5333 = vmatprep.subr.bf16.mxu0 %v13445_v17  ;;  %11484 = vmatpush3.bf16.msra.mxu1 %v12151_v11 }
 0xb0a   :  { %11485 = vmatprep.subr.bf16.mxu1 %v12152_v32 }
 0xb0c   :  { %5334 = vmatpush1.bf16.msra.mxu0 %v13448_v51 }
 0xb0d   :  { %5335 = vmatprep.subr.bf16.mxu0 %v13451_v18  ;;  %11486 = vmatpush3.bf16.msra.mxu1 %v12153_v12 }
 0xb0e   :  { %11487 = vmatprep.subr.bf16.mxu1 %v12154_v8 }
 0xb10   :  { %5336 = vmatpush1.bf16.msra.mxu0 %v13454_v19 }
 0xb11   :  { %5337 = vmatprep.subr.bf16.mxu0 %v13457_v9  ;;  %11488 = vmatpush3.bf16.msra.mxu1 %v12155_v55 }
 0xb12   :  { %11489 = vmatprep.subr.bf16.mxu1 %v12156_v56 }
 0xb14   :  { %5338 = vmatpush1.bf16.msra.mxu0 %v13460_v10 }
 0xb15   :  { %5339 = vmatprep.subr.bf16.mxu0 %v13463_v36  ;;  %11490 = vmatpush3.bf16.msra.mxu1 %v12157_v60 }
 0xb16   :  { %11491 = vmatprep.subr.bf16.mxu1 %v12158_v30 }
 0xb18   :  { %5340 = vmatpush1.bf16.msra.mxu0 %v13466_v38 }
 0xb19   :  { %5341 = vmatprep.subr.bf16.mxu0 %v13469_v37  ;;  %11492 = vmatpush3.bf16.msra.mxu1 %v12159_v31 }
 0xb1a   :  { %11493 = vmatprep.subr.bf16.mxu1 %v12161_v3 }
 0xb1c   :  { %5342 = vmatpush1.bf16.msra.mxu0 %v13472_v13 }
 0xb1d   :  { %5628 = vmatprep.subr.bf16.mxu0 %v12702_v0  ;;  %11494 = vmatpush3.bf16.msra.mxu1 %v12162_v14 }
 0xb1e   :  { %11495 = vmatprep.subr.bf16.mxu1 %v12164_v43 }
 0xb1f   :  { %10784 = vmatmul.mubr.msk.bf16.vlgmr.msra.gmra.mxu0 %vm227_vm1, %v10780_v54 }
 0xb20   :  { %5629 = vmatpush1.bf16.msra.mxu0 %v12160_v42 }
 0xb21   :  { %5630 = vmatprep.subr.bf16.mxu0 %v12702_v0  ;;  %11496 = vmatpush3.bf16.msra.mxu1 %v12165_v44 }
 0xb22   :  { %11497 = vmatprep.subr.bf16.mxu1 %v12167_v52 }
 0xb24   :  { %5631 = vmatpush1.bf16.msra.mxu0 %v12163_v49 }
 0xb25   :  { %5632 = vmatprep.subr.bf16.mxu0 %v12702_v0  ;;  %11498 = vmatpush3.bf16.msra.mxu1 %v12168_v39 }
 0xb26   :  { %10813 = vmatprep.subr.msk.bf16.mxu1 %vm231_vm0, %v12747_v2 }
 0xb28   :  { %5633 = vmatpush1.bf16.msra.mxu0 %v12166_v45 }
 0xb29   :  { %5634 = vmatprep.subr.bf16.mxu0 %v12702_v0 }
 0xb2c   :  { %5635 = vmatpush1.bf16.msra.mxu0 %v12169_v40 }
 0xb2d   :  { %5636 = vmatprep.subr.bf16.mxu0 %v12702_v0 }
 0xb30   :  { %5637 = vmatpush1.bf16.msra.mxu0 %v12170_v41 }
 0xb31   :  { %5638 = vmatprep.subr.bf16.mxu0 %v12702_v0 }
 0xb34   :  { %5639 = vmatpush1.bf16.msra.mxu0 %v12171_v57 }
 0xb35   :  { %5640 = vmatprep.subr.bf16.mxu0 %v12702_v0 }
 0xb38   :  { %5641 = vmatpush1.bf16.msra.mxu0 %v12172_v59  ;;  %v10812_v59 = vld [vmem:[%s14250_s4 + $0x38] sm:$0xf] }
 0xb39   :  { %5642 = vmatprep.subr.bf16.mxu0 %v12702_v0 }
 0xb3c   :  { %5643 = vmatpush1.bf16.msra.mxu0 %v12173_v23  ;;  %v12176_v23 = vld [vmem:[#allocation6 + $0xbd8] sm:$0xff]  }
 0xb3d   :  { %5656 = vmatprep.subr.bf16.mxu0 %v12702_v0 }
 0xb40   :  { %5657 = vmatpush2.bf16.msra.mxu0 %v12174_v25  ;;  %v12177_v25 = vld [vmem:[#allocation6 + $0xb98] sm:$0xff]  }
 0xb41   :  { %5658 = vmatprep.subr.bf16.mxu0 %v12702_v0 }
 0xb44   :  { %5659 = vmatpush2.bf16.msra.mxu0 %v12175_v26  ;;  %v12178_v26 = vld [vmem:[#allocation6 + $0xbd0] sm:$0xff]  }
 0xb45   :  { %11505 = vmatprep.subr.bf16.mxu0 %v12176_v23 }
 0xbaf   :  { %v11477_v27 = vpop.f32.mrf.mxu0 }
 0xbb1   :  { %v11478_v28 = vpop.f32.mrf.mxu0 }
 0xbb2   :  { %v11479_v29 = vadd.f32 %v11478_v28, %v11477_v27  ;;  %v12179_v27 = vld [vmem:[#allocation6 + $0xb90] sm:$0xff]   ;;  %v12180_v28 = vld [vmem:[#allocation6 + $0xbc8] sm:$0xff]  }
 0xbb3   :  { %v11480_v35 = vpop.f32.mrf.mxu0 }
 0xbb4   :  { %v12182_v35 = vld [vmem:[#allocation6 + $0xbc0] sm:$0xff]  }
 0xbb5   :  { %v11481_v47 = vpop.f32.mrf.mxu0 }
 0xbb6   :  { %v12186_v47 = vld [vmem:[#allocation6 + $0xc18] sm:$0xff]  }
 0xbc7   :  { %v5320_v46 = vpop.f32.mrf.mxu0  ;;  %v5274_v53 = vpop.f32.mrf.mxu1 }
 0xbc8   :  { %v5321_v54 = vadd.f32 %v5320_v46, %v12803_v63  ;;  %v5275_v4 = vadd.f32 %v11479_v29, %v5274_v53  ;;  %v12181_v29 = vld [vmem:[#allocation6 + $0xb88] sm:$0xff]   ;;  %v12183_v46 = vld [vmem:[#allocation6 + $0xb80] sm:$0xff]   ;;  %v12189_v53 = vld [vmem:[#allocation6 + $0xc10] sm:$0xff]  }
 0xbc9   :  { %v5322_v11 = vpop.f32.mrf.mxu0  ;;  %v5276_v32 = vpop.f32.mrf.mxu1 }
 0xbca   :  { %v13549_v12 = vadd.f32 %v5275_v4, %v13490_v15  ;;  %v5323_v8 = vadd.f32 %v5322_v11, %v12806_v1  ;;  %v5368_v55 = vmax.f32 %v5321_v54, 0.0  ;;  %v12184_v54 = vld [vmem:[#allocation6 + $0xbb8] sm:$0xff]   ;;  %v12187_v11 = vld [vmem:[#allocation6 + $0xbb0] sm:$0xff]  }
 0xbcb   :  { %v5324_v56 = vpop.f32.mrf.mxu0  ;;  %v5277_v42 = vpop.f32.mrf.mxu1  ;;  %v12185_v4 = vld [vmem:[#allocation6 + $0xb78] sm:$0xff]   ;;  %v12188_v32 = vld [vmem:[#allocation6 + $0xb70] sm:$0xff]  }
 0xbcc   :  { %v5369_v60 = vmax.f32 %v5323_v8, 0.0  ;;  %v5372_v3 = vpack.c.bf16 %v5368_v55, %v5368_v55  ;;  %v12190_v8 = vld [vmem:[#allocation6 + $0xba8] sm:$0xff]   ;;  %v12193_v42 = vld [vmem:[#allocation6 + $0xba0] sm:$0xff]  }
 0xbcd   :  { %v5325_v49 = vpop.f32.mrf.mxu0  ;;  %v5278_v30 = vpop.f32.mrf.mxu1  ;;  %v12191_v55 = vld [vmem:[#allocation6 + $0xb68] sm:$0xff]  }
 0xbce   :  { %v5373_v31 = vpack.c.bf16 %v5369_v60, %v5369_v60  ;;  %v12192_v56 = vld [vmem:[#allocation6 + $0xc08] sm:$0xff]   ;;  %v12194_v60 = vld [vmem:[#allocation6 + $0xb60] sm:$0xff]   ;;  %v12196_v30 = vld [vmem:[#allocation6 + $0xbf8] sm:$0xff]  }
 0xbcf   :  { %v12195_v49 = vld [vmem:[#allocation6 + $0xc00] sm:$0xff]  }
 0xbd0   :  { %5620 = vmatprep.mubr.bf16.mxu1 %v5373_v31  ;;  %v12197_v31 = vld [vmem:[#allocation6 + $0xbf0] sm:$0xff]  }
 0xbd1   :  { %5621 = vmatmul.mubr.bf16.vlgmr.msra.gmra.mxu1 %v5372_v3  ;;  %v12198_v3 = vld [vmem:[#allocation6 + $0xbe8] sm:$0xff]  }
 0xbd2   :  { %5679 = vmatpush1.bf16.msra.mxu1 %v12754_v5  ;;  %5706 = vmatprep.mubr.bf16.mxu1 %v12702_v0 }
 0xbd3   :  { %5680 = vmatprep.subr.bf16.mxu1 %v13412_v7 }
 0xbd6   :  { %5681 = vmatpush1.bf16.msra.mxu1 %v13415_v21 }
 0xbd7   :  { %5682 = vmatprep.subr.bf16.mxu1 %v13418_v6 }
 0xbda   :  { %5683 = vmatpush1.bf16.msra.mxu1 %v13498_v33 }
 0xbdb   :  { %5684 = vmatprep.subr.bf16.mxu1 %v13501_v58 }
 0xbde   :  { %5685 = vmatpush1.bf16.msra.mxu1 %v13504_v20 }
 0xbdf   :  { %v5361_v15 = vpop.f32.mrf.mxu0  ;;  %5686 = vmatprep.subr.bf16.mxu1 %v13507_v24 }
 0xbe0   :  { %v5362_v14 = vadd.f32 %v5361_v15, %v12819_v48  ;;  %v12199_v15 = vld [vmem:[#allocation6 + $0xbe0] sm:$0xff]  }
 0xbe1   :  { %v5363_v43 = vpop.f32.mrf.mxu0 }
 0xbe2   :  { %v5370_v44 = vmax.f32 %v5362_v14, 0.0  ;;  %v5364_v45 = vadd.f32 %v5363_v43, %v12825_v50  ;;  %5687 = vmatpush1.bf16.msra.mxu1 %v13427_v61  ;;  %v12200_v14 = vld [vmem:[#allocation6 + $0xc28] sm:$0xff]   ;;  %v12201_v43 = vld [vmem:[#allocation6 + $0xc20] sm:$0xff]  }
 0xbe3   :  { %5688 = vmatprep.subr.bf16.mxu1 %v13430_v62  ;;  %v5365_v52 = vpop.f32.mrf.mxu0 }
 0xbe4   :  { %v5371_v39 = vmax.f32 %v5364_v45, 0.0  ;;  %v5374_v40 = vpack.c.bf16 %v5370_v44, %v5370_v44 }
 0xbe5   :  { %v5366_v41 = vpop.f32.mrf.mxu0 }
 0xbe6   :  { %v5375_v57 = vpack.c.bf16 %v5371_v39, %v5371_v39  ;;  %5689 = vmatpush1.bf16.msra.mxu1 %v13433_v34 }
 0xbe7   :  { %10815 = vmatprep.subr.msk.bf16.mxu1 %vm231_vm0, %v12758_v16 }
 0xbe8   :  { %10811 = vmatprep.mubr.msk.bf16.mxu0 %vm690_vm2, %v5375_v57 }
 0xbe9   :  { %10814 = vmatmul.mubr.msk.bf16.vlgmr.msra.gmra.mxu1 %vm227_vm1, %v10812_v59  ;;  %5661 = vmatmul.mubr.bf16.vlgmr.msra.gmra.mxu0 %v5374_v40 }
 0xbea   :  { %5720 = vmatpush1.bf16.msra.mxu1 %v12771_v22  ;;  %5747 = vmatprep.mubr.bf16.mxu1 %v12702_v0 }
 0xbeb   :  { %5721 = vmatprep.subr.bf16.mxu1 %v13445_v17  ;;  %11506 = vmatpush3.bf16.msra.mxu0 %v12177_v25 }
 0xbec   :  { %11507 = vmatprep.subr.bf16.mxu0 %v12178_v26 }
 0xbee   :  { %5722 = vmatpush1.bf16.msra.mxu1 %v13448_v51 }
 0xbef   :  { %5723 = vmatprep.subr.bf16.mxu1 %v13451_v18  ;;  %11508 = vmatpush3.bf16.msra.mxu0 %v12179_v27 }
 0xbf0   :  { %11509 = vmatprep.subr.bf16.mxu0 %v12180_v28 }
 0xbf2   :  { %5724 = vmatpush1.bf16.msra.mxu1 %v13454_v19 }
 0xbf3   :  { %5725 = vmatprep.subr.bf16.mxu1 %v13457_v9  ;;  %11510 = vmatpush3.bf16.msra.mxu0 %v12181_v29 }
 0xbf4   :  { %11511 = vmatprep.subr.bf16.mxu0 %v12182_v35 }
 0xbf6   :  { %5726 = vmatpush1.bf16.msra.mxu1 %v13460_v10 }
 0xbf7   :  { %5727 = vmatprep.subr.bf16.mxu1 %v13463_v36  ;;  %11512 = vmatpush3.bf16.msra.mxu0 %v12183_v46 }
 0xbf8   :  { %11513 = vmatprep.subr.bf16.mxu0 %v12184_v54 }
 0xbfa   :  { %5728 = vmatpush1.bf16.msra.mxu1 %v13466_v38 }
 0xbfb   :  { %5729 = vmatprep.subr.bf16.mxu1 %v13469_v37  ;;  %11514 = vmatpush3.bf16.msra.mxu0 %v12185_v4 }
 0xbfc   :  { %11515 = vmatprep.subr.bf16.mxu0 %v12187_v11 }
 0xbfe   :  { %5730 = vmatpush1.bf16.msra.mxu1 %v13472_v13 }
 0xbff   :  { %6016 = vmatprep.subr.bf16.mxu1 %v12702_v0  ;;  %11516 = vmatpush3.bf16.msra.mxu0 %v12188_v32 }
 0xc00   :  { %11517 = vmatprep.subr.bf16.mxu0 %v12190_v8 }
 0xc01   :  { %10816 = vmatmul.mubr.msk.bf16.vlgmr.msra.gmra.mxu1 %vm227_vm1, %v10812_v59 }
 0xc02   :  { %6017 = vmatpush1.bf16.msra.mxu1 %v12186_v47 }
 0xc03   :  { %6018 = vmatprep.subr.bf16.mxu1 %v12702_v0  ;;  %11518 = vmatpush3.bf16.msra.mxu0 %v12191_v55 }
 0xc04   :  { %11519 = vmatprep.subr.bf16.mxu0 %v12193_v42 }
 0xc06   :  { %6019 = vmatpush1.bf16.msra.mxu1 %v12189_v53 }
 0xc07   :  { %6020 = vmatprep.subr.bf16.mxu1 %v12702_v0  ;;  %11520 = vmatpush3.bf16.msra.mxu0 %v12194_v60 }
 0xc08   :  { %10845 = vmatprep.subr.msk.bf16.mxu0 %vm231_vm0, %v12747_v2 }
 0xc0a   :  { %6021 = vmatpush1.bf16.msra.mxu1 %v12192_v56 }
 0xc0b   :  { %6022 = vmatprep.subr.bf16.mxu1 %v12702_v0 }
 0xc0e   :  { %6023 = vmatpush1.bf16.msra.mxu1 %v12195_v49 }
 0xc0f   :  { %6024 = vmatprep.subr.bf16.mxu1 %v12702_v0 }
 0xc12   :  { %6025 = vmatpush1.bf16.msra.mxu1 %v12196_v30 }
 0xc13   :  { %6026 = vmatprep.subr.bf16.mxu1 %v12702_v0 }
 0xc16   :  { %6027 = vmatpush1.bf16.msra.mxu1 %v12197_v31 }
 0xc17   :  { %6028 = vmatprep.subr.bf16.mxu1 %v12702_v0 }
 0xc1a   :  { %6029 = vmatpush1.bf16.msra.mxu1 %v12198_v3  ;;  %v10844_v3 = vld [vmem:[%s14250_s4 + $0x3c] sm:$0xf] }
 0xc1b   :  { %6030 = vmatprep.subr.bf16.mxu1 %v12702_v0 }
 0xc1e   :  { %6031 = vmatpush1.bf16.msra.mxu1 %v12199_v15  ;;  %v12202_v15 = vld [vmem:[#allocation6 + $0xca8] sm:$0xff]  }
 0xc1f   :  { %6044 = vmatprep.subr.bf16.mxu1 %v12702_v0 }
 0xc22   :  { %6045 = vmatpush2.bf16.msra.mxu1 %v12200_v14  ;;  %v12203_v14 = vld [vmem:[#allocation6 + $0xc68] sm:$0xff]  }
 0xc23   :  { %6046 = vmatprep.subr.bf16.mxu1 %v12702_v0 }
 0xc26   :  { %6047 = vmatpush2.bf16.msra.mxu1 %v12201_v43  ;;  %v12204_v43 = vld [vmem:[#allocation6 + $0xca0] sm:$0xff]  }
 0xc27   :  { %11527 = vmatprep.subr.bf16.mxu1 %v12202_v15 }
 0xc91   :  { %v11499_v44 = vpop.f32.mrf.mxu1 }
 0xc93   :  { %v11500_v45 = vpop.f32.mrf.mxu1 }
 0xc94   :  { %v11501_v52 = vadd.f32 %v11500_v45, %v11499_v44  ;;  %v12205_v44 = vld [vmem:[#allocation6 + $0xc60] sm:$0xff]   ;;  %v12206_v45 = vld [vmem:[#allocation6 + $0xc98] sm:$0xff]  }
 0xc95   :  { %v11502_v39 = vpop.f32.mrf.mxu1 }
 0xc96   :  { %v12208_v39 = vld [vmem:[#allocation6 + $0xc90] sm:$0xff]  }
 0xc97   :  { %v11503_v40 = vpop.f32.mrf.mxu1 }
 0xc98   :  { %v12212_v40 = vld [vmem:[#allocation6 + $0xce8] sm:$0xff]  }
 0xca9   :  { %v5708_v41 = vpop.f32.mrf.mxu1  ;;  %v5662_v57 = vpop.f32.mrf.mxu0 }
 0xcaa   :  { %v5709_v59 = vadd.f32 %v5708_v41, %v12803_v63  ;;  %v5663_v23 = vadd.f32 %v11501_v52, %v5662_v57  ;;  %v12207_v52 = vld [vmem:[#allocation6 + $0xc58] sm:$0xff]   ;;  %v12209_v41 = vld [vmem:[#allocation6 + $0xc50] sm:$0xff]   ;;  %v12215_v57 = vld [vmem:[#allocation6 + $0xce0] sm:$0xff]  }
 0xcab   :  { %v5710_v25 = vpop.f32.mrf.mxu1  ;;  %v5664_v26 = vpop.f32.mrf.mxu0 }
 0xcac   :  { %v13600_v27 = vadd.f32 %v5663_v23, %v13549_v12  ;;  %v5711_v28 = vadd.f32 %v5710_v25, %v12806_v1  ;;  %v5756_v29 = vmax.f32 %v5709_v59, 0.0  ;;  %v12210_v59 = vld [vmem:[#allocation6 + $0xc88] sm:$0xff]   ;;  %v12213_v25 = vld [vmem:[#allocation6 + $0xc80] sm:$0xff]  }
 0xcad   :  { %v5712_v35 = vpop.f32.mrf.mxu1  ;;  %v5665_v47 = vpop.f32.mrf.mxu0  ;;  %v12211_v23 = vld [vmem:[#allocation6 + $0xc48] sm:$0xff]   ;;  %v12214_v26 = vld [vmem:[#allocation6 + $0xc40] sm:$0xff]  }
 0xcae   :  { %v5757_v46 = vmax.f32 %v5711_v28, 0.0  ;;  %v5760_v11 = vpack.c.bf16 %v5756_v29, %v5756_v29  ;;  %v12216_v28 = vld [vmem:[#allocation6 + $0xc78] sm:$0xff]   ;;  %v12219_v47 = vld [vmem:[#allocation6 + $0xc70] sm:$0xff]  }
 0xcaf   :  { %v5713_v53 = vpop.f32.mrf.mxu1  ;;  %v5666_v54 = vpop.f32.mrf.mxu0  ;;  %v12217_v29 = vld [vmem:[#allocation6 + $0xc38] sm:$0xff]  }
 0xcb0   :  { %v5761_v4 = vpack.c.bf16 %v5757_v46, %v5757_v46  ;;  %v12218_v35 = vld [vmem:[#allocation6 + $0xcd8] sm:$0xff]   ;;  %v12220_v46 = vld [vmem:[#allocation6 + $0xc30] sm:$0xff]   ;;  %v12222_v54 = vld [vmem:[#allocation6 + $0xcc8] sm:$0xff]  }
 0xcb1   :  { %v12221_v53 = vld [vmem:[#allocation6 + $0xcd0] sm:$0xff]  }
 0xcb2   :  { %6008 = vmatprep.mubr.bf16.mxu0 %v5761_v4  ;;  %v12223_v4 = vld [vmem:[#allocation6 + $0xcc0] sm:$0xff]  }
 0xcb3   :  { %6009 = vmatmul.mubr.bf16.vlgmr.msra.gmra.mxu0 %v5760_v11  ;;  %v12224_v11 = vld [vmem:[#allocation6 + $0xcb8] sm:$0xff]  }
 0xcb4   :  { %6067 = vmatpush1.bf16.msra.mxu0 %v12754_v5  ;;  %6094 = vmatprep.mubr.bf16.mxu0 %v12702_v0 }
 0xcb5   :  { %6068 = vmatprep.subr.bf16.mxu0 %v13412_v7 }
 0xcb8   :  { %6069 = vmatpush1.bf16.msra.mxu0 %v13415_v21 }
 0xcb9   :  { %6070 = vmatprep.subr.bf16.mxu0 %v13418_v6 }
 0xcbc   :  { %6071 = vmatpush1.bf16.msra.mxu0 %v13498_v33 }
 0xcbd   :  { %6072 = vmatprep.subr.bf16.mxu0 %v13501_v58 }
 0xcc0   :  { %6073 = vmatpush1.bf16.msra.mxu0 %v13504_v20 }
 0xcc1   :  { %v5749_v12 = vpop.f32.mrf.mxu1  ;;  %6074 = vmatprep.subr.bf16.mxu0 %v13507_v24 }
 0xcc2   :  { %v5750_v32 = vadd.f32 %v5749_v12, %v12819_v48  ;;  %v12225_v12 = vld [vmem:[#allocation6 + $0xcb0] sm:$0xff]  }
 0xcc3   :  { %v5751_v8 = vpop.f32.mrf.mxu1 }
 0xcc4   :  { %v5758_v55 = vmax.f32 %v5750_v32, 0.0  ;;  %v5752_v56 = vadd.f32 %v5751_v8, %v12825_v50  ;;  %6075 = vmatpush1.bf16.msra.mxu0 %v13427_v61  ;;  %v12226_v32 = vld [vmem:[#allocation6 + $0xcf8] sm:$0xff]   ;;  %v12227_v8 = vld [vmem:[#allocation6 + $0xcf0] sm:$0xff]  }
 0xcc5   :  { %6076 = vmatprep.subr.bf16.mxu0 %v13430_v62  ;;  %v5753_v42 = vpop.f32.mrf.mxu1 }
 0xcc6   :  { %v5759_v60 = vmax.f32 %v5752_v56, 0.0  ;;  %v5762_v49 = vpack.c.bf16 %v5758_v55, %v5758_v55 }
 0xcc7   :  { %v5754_v30 = vpop.f32.mrf.mxu1 }
 0xcc8   :  { %v5763_v31 = vpack.c.bf16 %v5759_v60, %v5759_v60  ;;  %6077 = vmatpush1.bf16.msra.mxu0 %v13433_v34 }
 0xcc9   :  { %10847 = vmatprep.subr.msk.bf16.mxu0 %vm231_vm0, %v12758_v16 }
 0xcca   :  { %10843 = vmatprep.mubr.msk.bf16.mxu1 %vm690_vm2, %v5763_v31 }
 0xccb   :  { %10846 = vmatmul.mubr.msk.bf16.vlgmr.msra.gmra.mxu0 %vm227_vm1, %v10844_v3  ;;  %6049 = vmatmul.mubr.bf16.vlgmr.msra.gmra.mxu1 %v5762_v49 }
 0xccc   :  { %6108 = vmatpush1.bf16.msra.mxu0 %v12771_v22  ;;  %6135 = vmatprep.mubr.bf16.mxu0 %v12702_v0 }
 0xccd   :  { %6109 = vmatprep.subr.bf16.mxu0 %v13445_v17  ;;  %11528 = vmatpush3.bf16.msra.mxu1 %v12203_v14 }
 0xcce   :  { %11529 = vmatprep.subr.bf16.mxu1 %v12204_v43 }
 0xcd0   :  { %6110 = vmatpush1.bf16.msra.mxu0 %v13448_v51 }
 0xcd1   :  { %6111 = vmatprep.subr.bf16.mxu0 %v13451_v18  ;;  %11530 = vmatpush3.bf16.msra.mxu1 %v12205_v44 }
 0xcd2   :  { %11531 = vmatprep.subr.bf16.mxu1 %v12206_v45 }
 0xcd4   :  { %6112 = vmatpush1.bf16.msra.mxu0 %v13454_v19 }
 0xcd5   :  { %6113 = vmatprep.subr.bf16.mxu0 %v13457_v9  ;;  %11532 = vmatpush3.bf16.msra.mxu1 %v12207_v52 }
 0xcd6   :  { %11533 = vmatprep.subr.bf16.mxu1 %v12208_v39 }
 0xcd8   :  { %6114 = vmatpush1.bf16.msra.mxu0 %v13460_v10 }
 0xcd9   :  { %6115 = vmatprep.subr.bf16.mxu0 %v13463_v36  ;;  %11534 = vmatpush3.bf16.msra.mxu1 %v12209_v41 }
 0xcda   :  { %11535 = vmatprep.subr.bf16.mxu1 %v12210_v59 }
 0xcdc   :  { %6116 = vmatpush1.bf16.msra.mxu0 %v13466_v38 }
 0xcdd   :  { %6117 = vmatprep.subr.bf16.mxu0 %v13469_v37  ;;  %11536 = vmatpush3.bf16.msra.mxu1 %v12211_v23 }
 0xcde   :  { %11537 = vmatprep.subr.bf16.mxu1 %v12213_v25 }
 0xce0   :  { %6118 = vmatpush1.bf16.msra.mxu0 %v13472_v13 }
 0xce1   :  { %6404 = vmatprep.subr.bf16.mxu0 %v12702_v0  ;;  %11538 = vmatpush3.bf16.msra.mxu1 %v12214_v26 }
 0xce2   :  { %11539 = vmatprep.subr.bf16.mxu1 %v12216_v28 }
 0xce3   :  { %10848 = vmatmul.mubr.msk.bf16.vlgmr.msra.gmra.mxu0 %vm227_vm1, %v10844_v3 }
 0xce4   :  { %6405 = vmatpush1.bf16.msra.mxu0 %v12212_v40 }
 0xce5   :  { %6406 = vmatprep.subr.bf16.mxu0 %v12702_v0  ;;  %11540 = vmatpush3.bf16.msra.mxu1 %v12217_v29 }
 0xce6   :  { %11541 = vmatprep.subr.bf16.mxu1 %v12219_v47 }
 0xce8   :  { %6407 = vmatpush1.bf16.msra.mxu0 %v12215_v57 }
 0xce9   :  { %6408 = vmatprep.subr.bf16.mxu0 %v12702_v0  ;;  %11542 = vmatpush3.bf16.msra.mxu1 %v12220_v46 }
 0xcea   :  { %10877 = vmatprep.subr.msk.bf16.mxu1 %vm231_vm0, %v12747_v2 }
 0xcec   :  { %6409 = vmatpush1.bf16.msra.mxu0 %v12218_v35 }
 0xced   :  { %6410 = vmatprep.subr.bf16.mxu0 %v12702_v0 }
 0xcf0   :  { %6411 = vmatpush1.bf16.msra.mxu0 %v12221_v53  ;;  %v10876_v53 = vld [vmem:[%s14250_s4 + $0x40] sm:$0xf] }
 0xcf1   :  { %6412 = vmatprep.subr.bf16.mxu0 %v12702_v0 }
 0xcf4   :  { %6413 = vmatpush1.bf16.msra.mxu0 %v12222_v54  ;;  %v12240_v54 = vld [vmem:[#allocation6 + $0xd10] sm:$0xff]  }
 0xcf5   :  { %6414 = vmatprep.subr.bf16.mxu0 %v12702_v0 }
 0xcf8   :  { %6415 = vmatpush1.bf16.msra.mxu0 %v12223_v4  ;;  %v12242_v4 = vld [vmem:[#allocation6 + $0xd48] sm:$0xff]  }
 0xcf9   :  { %6416 = vmatprep.subr.bf16.mxu0 %v12702_v0 }
 0xcfc   :  { %6417 = vmatpush1.bf16.msra.mxu0 %v12224_v11  ;;  %v12243_v11 = vld [vmem:[#allocation6 + $0xd08] sm:$0xff]  }
 0xcfd   :  { %6418 = vmatprep.subr.bf16.mxu0 %v12702_v0 }
 0xd00   :  { %6419 = vmatpush1.bf16.msra.mxu0 %v12225_v12  ;;  %v12244_v12 = vld [vmem:[#allocation6 + $0xda8] sm:$0xff]  }
 0xd01   :  { %6432 = vmatprep.subr.bf16.mxu0 %v12702_v0 }
 0xd04   :  { %6433 = vmatpush2.bf16.msra.mxu0 %v12226_v32  ;;  %v12245_v32 = vld [vmem:[#allocation6 + $0xd40] sm:$0xff]  }
 0xd05   :  { %6434 = vmatprep.subr.bf16.mxu0 %v12702_v0 }
 0xd08   :  { %6435 = vmatpush2.bf16.msra.mxu0 %v12227_v8  ;;  %v12246_v8 = vld [vmem:[#allocation6 + $0xd00] sm:$0xff]  }
 0xd73   :  { %v11521_v55 = vpop.f32.mrf.mxu0 }
 0xd75   :  { %v11522_v56 = vpop.f32.mrf.mxu0 }
 0xd76   :  { %v11523_v42 = vadd.f32 %v11522_v56, %v11521_v55  ;;  %v12247_v55 = vld [vmem:[#allocation6 + $0xda0] sm:$0xff]   ;;  %v12248_v56 = vld [vmem:[#allocation6 + $0xd98] sm:$0xff]  }
 0xd77   :  { %v11524_v60 = vpop.f32.mrf.mxu0 }
 0xd78   :  { %v12250_v60 = vld [vmem:[#allocation6 + $0xd88] sm:$0xff]  }
 0xd79   :  { %v11525_v49 = vpop.f32.mrf.mxu0 }
 0xd7a   :  { %v12251_v49 = vld [vmem:[#allocation6 + $0xd80] sm:$0xff]  }
 0xd8b   :  { %v6096_v30 = vpop.f32.mrf.mxu0  ;;  %v6050_v31 = vpop.f32.mrf.mxu1 }
 0xd8c   :  { %v6097_v3 = vadd.f32 %v6096_v30, %v12803_v63  ;;  %v6051_v15 = vadd.f32 %v11523_v42, %v6050_v31  ;;  %v12249_v42 = vld [vmem:[#allocation6 + $0xd90] sm:$0xff]   ;;  %v12252_v30 = vld [vmem:[#allocation6 + $0xdc8] sm:$0xff]   ;;  %v12253_v31 = vld [vmem:[#allocation6 + $0xdc0] sm:$0xff]  }
 0xd8d   :  { %v6098_v14 = vpop.f32.mrf.mxu0  ;;  %v6052_v43 = vpop.f32.mrf.mxu1 }
 0xd8e   :  { %v13651_v44 = vadd.f32 %v6051_v15, %v13600_v27  ;;  %v6099_v45 = vadd.f32 %v6098_v14, %v12806_v1  ;;  %v6144_v52 = vmax.f32 %v6097_v3, 0.0 }
 0xd8f   :  { %v6100_v39 = vpop.f32.mrf.mxu0  ;;  %v6053_v40 = vpop.f32.mrf.mxu1 }
 0xd90   :  { %v6145_v41 = vmax.f32 %v6099_v45, 0.0  ;;  %v6148_v25 = vpack.c.bf16 %v6144_v52, %v6144_v52 }
 0xd91   :  { %v6101_v57 = vpop.f32.mrf.mxu0  ;;  %v6054_v59 = vpop.f32.mrf.mxu1 }
 0xd92   :  { %v6149_v23 = vpack.c.bf16 %v6145_v41, %v6145_v41 }
 0xd94   :  { %6396 = vmatprep.mubr.bf16.mxu1 %v6149_v23 }
 0xd95   :  { %6397 = vmatmul.mubr.bf16.vlgmr.msra.gmra.mxu1 %v6148_v25 }
 0xd96   :  { %6455 = vmatpush1.bf16.msra.mxu1 %v12754_v5  ;;  %6482 = vmatprep.mubr.bf16.mxu1 %v12702_v0 }
 0xd97   :  { %6456 = vmatprep.subr.bf16.mxu1 %v13412_v7 }
 0xd9a   :  { %6457 = vmatpush1.bf16.msra.mxu1 %v13415_v21 }
 0xd9b   :  { %6458 = vmatprep.subr.bf16.mxu1 %v13418_v6 }
 0xd9e   :  { %6459 = vmatpush1.bf16.msra.mxu1 %v13498_v33 }
 0xd9f   :  { %6460 = vmatprep.subr.bf16.mxu1 %v13501_v58 }
 0xda2   :  { %6461 = vmatpush1.bf16.msra.mxu1 %v13504_v20 }
 0xda3   :  { %v6137_v27 = vpop.f32.mrf.mxu0  ;;  %6462 = vmatprep.subr.bf16.mxu1 %v13507_v24 }
 0xda4   :  { %v6138_v26 = vadd.f32 %v6137_v27, %v12819_v48 }
 0xda5   :  { %v6139_v28 = vpop.f32.mrf.mxu0 }
 0xda6   :  { %v6146_v29 = vmax.f32 %v6138_v26, 0.0  ;;  %v6140_v35 = vadd.f32 %v6139_v28, %v12825_v50  ;;  %6463 = vmatpush1.bf16.msra.mxu1 %v13427_v61  ;;  %v12228_v61 = vld [vmem:[#allocation6 + $0xd78] sm:$0xff]  }
 0xda7   :  { %6464 = vmatprep.subr.bf16.mxu1 %v13430_v62  ;;  %v6141_v7 = vpop.f32.mrf.mxu0  ;;  %v12229_v62 = vld [vmem:[#allocation6 + $0xd38] sm:$0xff]   ;;  %11549 = vmatprep.subr.bf16.mxu0 %v12228_v61 }
 0xda8   :  { %v6147_v21 = vmax.f32 %v6140_v35, 0.0  ;;  %v6150_v6 = vpack.c.bf16 %v6146_v29, %v6146_v29 }
 0xda9   :  { %v6142_v47 = vpop.f32.mrf.mxu0 }
 0xdaa   :  { %v6151_v46 = vpack.c.bf16 %v6147_v21, %v6147_v21  ;;  %6465 = vmatpush1.bf16.msra.mxu1 %v13433_v34  ;;  %v12230_v34 = vld [vmem:[#allocation6 + $0xd70] sm:$0xff]  }
 0xdab   :  { %10879 = vmatprep.subr.msk.bf16.mxu1 %vm231_vm0, %v12758_v16  ;;  %v13707_v47 = vld [vmem:[#allocation2 + $0x84] ss:$16 sps:$4 sm:$0xff]  }
 0xdac   :  { %10875 = vmatprep.mubr.msk.bf16.mxu0 %vm690_vm2, %v6151_v46  ;;  %v13713_v46 = vld [vmem:[#allocation2 + $0x64] ss:$16 sps:$4 sm:$0xff]  }
 0xdad   :  { %10878 = vmatmul.mubr.msk.bf16.vlgmr.msra.gmra.mxu1 %vm227_vm1, %v10876_v53  ;;  %6437 = vmatmul.mubr.bf16.vlgmr.msra.gmra.mxu0 %v6150_v6 }
 0xdae   :  { %6496 = vmatpush1.bf16.msra.mxu1 %v12771_v22  ;;  %6523 = vmatprep.mubr.bf16.mxu1 %v12702_v0 }
 0xdaf   :  { %6497 = vmatprep.subr.bf16.mxu1 %v13445_v17  ;;  %11550 = vmatpush3.bf16.msra.mxu0 %v12229_v62  ;;  %v12231_v17 = vld [vmem:[#allocation6 + $0xd30] sm:$0xff]  }
 0xdb0   :  { %11551 = vmatprep.subr.bf16.mxu0 %v12230_v34 }
 0xdb2   :  { %6498 = vmatpush1.bf16.msra.mxu1 %v13448_v51  ;;  %v12232_v51 = vld [vmem:[#allocation6 + $0xd68] sm:$0xff]  }
 0xdb3   :  { %6499 = vmatprep.subr.bf16.mxu1 %v13451_v18  ;;  %11552 = vmatpush3.bf16.msra.mxu0 %v12231_v17  ;;  %v12233_v18 = vld [vmem:[#allocation6 + $0xd28] sm:$0xff]  }
 0xdb4   :  { %11553 = vmatprep.subr.bf16.mxu0 %v12232_v51  ;;  %v13722_v51 = vld [vmem:[#allocation2 + $0x20] ss:$16 sps:$4 sm:$0xff]  }
 0xdb6   :  { %6500 = vmatpush1.bf16.msra.mxu1 %v13454_v19  ;;  %v12234_v19 = vld [vmem:[#allocation6 + $0xd60] sm:$0xff]  }
 0xdb7   :  { %6501 = vmatprep.subr.bf16.mxu1 %v13457_v9  ;;  %v12238_v9 = vld [vmem:[#allocation6 + $0xdb8] sm:$0xff]   ;;  %11554 = vmatpush3.bf16.msra.mxu0 %v12233_v18  ;;  %v13725_v18 = vld [vmem:[#allocation2 + $0x4] ss:$16 sps:$4 sm:$0xff]  }
 0xdb8   :  { %11555 = vmatprep.subr.bf16.mxu0 %v12234_v19 }
 0xdba   :  { %6502 = vmatpush1.bf16.msra.mxu1 %v13460_v10  ;;  %v12235_v10 = vld [vmem:[#allocation6 + $0xd20] sm:$0xff]  }
 0xdbb   :  { %6503 = vmatprep.subr.bf16.mxu1 %v13463_v36  ;;  %v12241_v36 = vld [vmem:[#allocation6 + $0xdb0] sm:$0xff]   ;;  %11556 = vmatpush3.bf16.msra.mxu0 %v12235_v10 }
 0xdbc   :  { %v10908_v10 = vld [vmem:[%s14250_s4 + $0x44] sm:$0xf] }
 0xdbe   :  { %6504 = vmatpush1.bf16.msra.mxu1 %v13466_v38  ;;  %v12236_v38 = vld [vmem:[#allocation6 + $0xd58] sm:$0xff]  }
 0xdbf   :  { %6505 = vmatprep.subr.bf16.mxu1 %v13469_v37  ;;  %v12237_v37 = vld [vmem:[#allocation6 + $0xd18] sm:$0xff]   ;;  %11557 = vmatprep.subr.bf16.mxu0 %v12236_v38  ;;  %v13743_v38 = vld [vmem:[#allocation2 + $0x88] ss:$16 sps:$4 sm:$0xff]  }
 0xdc0   :  { %11558 = vmatpush3.bf16.msra.mxu0 %v12237_v37  ;;  %v13746_v37 = vld [vmem:[#allocation2 + $0x6c] ss:$16 sps:$4 sm:$0xff]  }
 0xdc2   :  { %6506 = vmatpush1.bf16.msra.mxu1 %v13472_v13  ;;  %v12239_v13 = vld [vmem:[#allocation6 + $0xd50] sm:$0xff]  }
 0xdc3   :  { %6792 = vmatprep.subr.bf16.mxu1 %v12702_v0  ;;  %11559 = vmatprep.subr.bf16.mxu0 %v12239_v13  ;;  %v13749_v13 = vld [vmem:[#allocation2 + $0x68] ss:$16 sps:$4 sm:$0xff]  }
 0xdc4   :  { %11560 = vmatpush3.bf16.msra.mxu0 %v12240_v54  ;;  %v13752_v54 = vld [vmem:[#allocation2 + $0x4c] ss:$16 sps:$4 sm:$0xff]  }
 0xdc5   :  { %10880 = vmatmul.mubr.msk.bf16.vlgmr.msra.gmra.mxu1 %vm227_vm1, %v10876_v53  ;;  %11561 = vmatprep.subr.bf16.mxu0 %v12242_v4  ;;  %v13755_v4 = vld [vmem:[#allocation2 + $0x48] ss:$16 sps:$4 sm:$0xff]  }
 0xdc6   :  { %6793 = vmatpush1.bf16.msra.mxu1 %v12238_v9 }
 0xdc7   :  { %6794 = vmatprep.subr.bf16.mxu1 %v12702_v0 }
 0xdc8   :  { %11562 = vmatpush3.bf16.msra.mxu0 %v12243_v11  ;;  %v13758_v11 = vld [vmem:[#allocation2 + $0x2c] ss:$16 sps:$4 sm:$0xff]  }
 0xdc9   :  { %11563 = vmatprep.subr.bf16.mxu0 %v12245_v32  ;;  %v13764_v32 = vld [vmem:[#allocation2 + $0xc] ss:$16 sps:$4 sm:$0xff]  }
 0xdca   :  { %6795 = vmatpush1.bf16.msra.mxu1 %v12241_v36  ;;  %v13740_v36 = vld [vmem:[#allocation2 + $0x8c] ss:$16 sps:$4 sm:$0xff]  }
 0xdcb   :  { %6796 = vmatprep.subr.bf16.mxu1 %v12702_v0 }
 0xdcc   :  { %11564 = vmatpush3.bf16.msra.mxu0 %v12246_v8  ;;  %v13767_v8 = vld [vmem:[#allocation2 + $0x8] ss:$16 sps:$4 sm:$0xff]  }
 0xdcd   :  { %10909 = vmatprep.subr.msk.bf16.mxu0 %vm231_vm0, %v12747_v2 }
 0xdce   :  { %6797 = vmatpush1.bf16.msra.mxu1 %v12244_v12  ;;  %v13761_v12 = vld [vmem:[#allocation2 + $0x28] ss:$16 sps:$4 sm:$0xff]  }
 0xdcf   :  { %6798 = vmatprep.subr.bf16.mxu1 %v12702_v0 }
 0xdd2   :  { %6799 = vmatpush1.bf16.msra.mxu1 %v12247_v55  ;;  %v12254_v55 = vld [vmem:[#allocation6 + $0xe48] sm:$0xff]  }
 0xdd3   :  { %6800 = vmatprep.subr.bf16.mxu1 %v12702_v0 }
 0xdd6   :  { %6801 = vmatpush1.bf16.msra.mxu1 %v12248_v56  ;;  %v12255_v56 = vld [vmem:[#allocation6 + $0xe08] sm:$0xff]  }
 0xdd7   :  { %6802 = vmatprep.subr.bf16.mxu1 %v12702_v0 }
 0xdda   :  { %6803 = vmatpush1.bf16.msra.mxu1 %v12249_v42  ;;  %v12256_v42 = vld [vmem:[#allocation6 + $0xe40] sm:$0xff]  }
 0xddb   :  { %6804 = vmatprep.subr.bf16.mxu1 %v12702_v0 }
 0xdde   :  { %6805 = vmatpush1.bf16.msra.mxu1 %v12250_v60  ;;  %v12257_v60 = vld [vmem:[#allocation6 + $0xe00] sm:$0xff]  }
 0xddf   :  { %6806 = vmatprep.subr.bf16.mxu1 %v12702_v0 }
 0xde2   :  { %6807 = vmatpush1.bf16.msra.mxu1 %v12251_v49  ;;  %v12258_v49 = vld [vmem:[#allocation6 + $0xe38] sm:$0xff]  }
 0xde3   :  { %6820 = vmatprep.subr.bf16.mxu1 %v12702_v0 }
 0xde6   :  { %6821 = vmatpush2.bf16.msra.mxu1 %v12252_v30  ;;  %v12259_v30 = vld [vmem:[#allocation6 + $0xdf8] sm:$0xff]  }
 0xde7   :  { %6822 = vmatprep.subr.bf16.mxu1 %v12702_v0 }
 0xdea   :  { %6823 = vmatpush2.bf16.msra.mxu1 %v12253_v31  ;;  %v12260_v31 = vld [vmem:[#allocation6 + $0xe30] sm:$0xff]  }
 0xdeb   :  { %11571 = vmatprep.subr.bf16.mxu1 %v12254_v55 }
 0xe55   :  { %v11543_v3 = vpop.f32.mrf.mxu1 }
 0xe57   :  { %v11544_v15 = vpop.f32.mrf.mxu1 }
 0xe58   :  { %v11545_v14 = vadd.f32 %v11544_v15, %v11543_v3  ;;  %v12264_v3 = vld [vmem:[#allocation6 + $0xe88] sm:$0xff]   ;;  %v12261_v15 = vld [vmem:[#allocation6 + $0xdf0] sm:$0xff]  }
 0xe59   :  { %v11546_v43 = vpop.f32.mrf.mxu1 }
 0xe5a   :  { %v12262_v43 = vld [vmem:[#allocation6 + $0xe28] sm:$0xff]  }
 0xe5b   :  { %v11547_v45 = vpop.f32.mrf.mxu1 }
 0xe5c   :  { %v12263_v45 = vld [vmem:[#allocation6 + $0xde8] sm:$0xff]  }
 0xe6d   :  { %v6484_v52 = vpop.f32.mrf.mxu1  ;;  %v6438_v39 = vpop.f32.mrf.mxu0 }
 0xe6e   :  { %v6485_v40 = vadd.f32 %v6484_v52, %v12803_v63  ;;  %v6439_v41 = vadd.f32 %v11545_v14, %v6438_v39  ;;  %v12267_v14 = vld [vmem:[#allocation6 + $0xe80] sm:$0xff]  }
 0xe6f   :  { %v6486_v57 = vpop.f32.mrf.mxu1  ;;  %v6440_v59 = vpop.f32.mrf.mxu0  ;;  %v12265_v52 = vld [vmem:[#allocation6 + $0xe20] sm:$0xff]  }
 0xe70   :  { %v13702_v23 = vadd.f32 %v6439_v41, %v13651_v44  ;;  %v6487_v25 = vadd.f32 %v6486_v57, %v12806_v1  ;;  %v6532_v27 = vmax.f32 %v6485_v40, 0.0  ;;  %v13710_v44 = vld [vmem:[#allocation2 + $0x80] ss:$16 sps:$4 sm:$0xff]   ;;  %v12266_v39 = vld [vmem:[#allocation6 + $0xde0] sm:$0xff]   ;;  %v12271_v59 = vld [vmem:[#allocation6 + $0xe10] sm:$0xff]  }
 0xe71   :  { %v6488_v26 = vpop.f32.mrf.mxu1  ;;  %v6441_v28 = vpop.f32.mrf.mxu0  ;;  %v12268_v40 = vld [vmem:[#allocation6 + $0xe18] sm:$0xff]  }
 0xe72   :  { %v6533_v29 = vmax.f32 %v6487_v25, 0.0  ;;  %v6536_v6 = vpack.c.bf16 %v6532_v27, %v6532_v27  ;;  %v12269_v41 = vld [vmem:[#allocation6 + $0xdd8] sm:$0xff]   ;;  %v12272_v25 = vld [vmem:[#allocation6 + $0xdd0] sm:$0xff]   ;;  %v12274_v26 = vld [vmem:[#allocation6 + $0xe68] sm:$0xff]  }
 0xe73   :  { %v6489_v35 = vpop.f32.mrf.mxu1  ;;  %v6442_v7 = vpop.f32.mrf.mxu0  ;;  %v12270_v57 = vld [vmem:[#allocation6 + $0xe78] sm:$0xff]   ;;  %v12273_v27 = vld [vmem:[#allocation6 + $0xe70] sm:$0xff]   ;;  %v12275_v28 = vld [vmem:[#allocation6 + $0xe60] sm:$0xff]  }
 0xe74   :  { %v6537_v21 = vpack.c.bf16 %v6533_v29, %v6533_v29  ;;  %v12276_v29 = vld [vmem:[#allocation6 + $0xe58] sm:$0xff]   ;;  %v12277_v35 = vld [vmem:[#allocation6 + $0xe50] sm:$0xff]  }
 0xe75   :  { %v12278_v7 = vld [vmem:[#allocation6 + $0xe98] sm:$0xff]  }
 0xe76   :  { %6784 = vmatprep.mubr.bf16.mxu0 %v6537_v21  ;;  %v12279_v21 = vld [vmem:[#allocation6 + $0xe90] sm:$0xff]  }
 0xe77   :  { %6785 = vmatmul.mubr.bf16.vlgmr.msra.gmra.mxu0 %v6536_v6 }
 0xe78   :  { %6843 = vmatpush1.bf16.msra.mxu0 %v12754_v5  ;;  %6870 = vmatprep.mubr.bf16.mxu0 %v12702_v0 }
 0xe79   :  { %6844 = vmatprep.subr.bf16.mxu0 %v13707_v47 }
 0xe7c   :  { %6845 = vmatpush1.bf16.msra.mxu0 %v13710_v44 }
 0xe7d   :  { %6846 = vmatprep.subr.bf16.mxu0 %v13713_v46 }
 0xe80   :  { %6847 = vmatpush1.bf16.msra.mxu0 %v13498_v33 }
 0xe81   :  { %6848 = vmatprep.subr.bf16.mxu0 %v13501_v58 }
 0xe84   :  { %6849 = vmatpush1.bf16.msra.mxu0 %v13504_v20 }
 0xe85   :  { %v6525_v53 = vpop.f32.mrf.mxu1  ;;  %6850 = vmatprep.subr.bf16.mxu0 %v13507_v24  ;;  %v13728_v24 = vld [vmem:[#allocation2] ss:$16 sps:$4 sm:$0xff]  }
 0xe86   :  { %v6526_v61 = vadd.f32 %v6525_v53, %v12819_v48 }
 0xe87   :  { %v6527_v62 = vpop.f32.mrf.mxu1 }
 0xe88   :  { %v6534_v34 = vmax.f32 %v6526_v61, 0.0  ;;  %v6528_v17 = vadd.f32 %v6527_v62, %v12825_v50  ;;  %6851 = vmatpush1.bf16.msra.mxu0 %v13722_v51 }
 0xe89   :  { %6852 = vmatprep.subr.bf16.mxu0 %v13725_v18  ;;  %v6529_v33 = vpop.f32.mrf.mxu1 }
 0xe8a   :  { %v6535_v58 = vmax.f32 %v6528_v17, 0.0  ;;  %v6538_v20 = vpack.c.bf16 %v6534_v34, %v6534_v34 }
 0xe8b   :  { %v6530_v19 = vpop.f32.mrf.mxu1 }
 0xe8c   :  { %v6539_v9 = vpack.c.bf16 %v6535_v58, %v6535_v58  ;;  %6853 = vmatpush1.bf16.msra.mxu0 %v13728_v24 }
 0xe8d   :  { %10911 = vmatprep.subr.msk.bf16.mxu0 %vm231_vm0, %v12758_v16 }
 0xe8e   :  { %10907 = vmatprep.mubr.msk.bf16.mxu1 %vm690_vm2, %v6539_v9 }
 0xe8f   :  { %10910 = vmatmul.mubr.msk.bf16.vlgmr.msra.gmra.mxu0 %vm227_vm1, %v10908_v10  ;;  %6825 = vmatmul.mubr.bf16.vlgmr.msra.gmra.mxu1 %v6538_v20 }
 0xe90   :  { %6884 = vmatpush1.bf16.msra.mxu0 %v12771_v22  ;;  %6911 = vmatprep.mubr.bf16.mxu0 %v12702_v0 }
 0xe91   :  { %6885 = vmatprep.subr.bf16.mxu0 %v13740_v36  ;;  %11572 = vmatpush3.bf16.msra.mxu1 %v12255_v56 }
 0xe92   :  { %11573 = vmatprep.subr.bf16.mxu1 %v12256_v42 }
 0xe94   :  { %6886 = vmatpush1.bf16.msra.mxu0 %v13743_v38 }
 0xe95   :  { %6887 = vmatprep.subr.bf16.mxu0 %v13746_v37  ;;  %11574 = vmatpush3.bf16.msra.mxu1 %v12257_v60 }
 0xe96   :  { %11575 = vmatprep.subr.bf16.mxu1 %v12258_v49 }
 0xe98   :  { %6888 = vmatpush1.bf16.msra.mxu0 %v13749_v13 }
 0xe99   :  { %6889 = vmatprep.subr.bf16.mxu0 %v13752_v54  ;;  %11576 = vmatpush3.bf16.msra.mxu1 %v12259_v30 }
 0xe9a   :  { %11577 = vmatprep.subr.bf16.mxu1 %v12260_v31 }
 0xe9c   :  { %6890 = vmatpush1.bf16.msra.mxu0 %v13755_v4 }
 0xe9d   :  { %6891 = vmatprep.subr.bf16.mxu0 %v13758_v11  ;;  %11578 = vmatpush3.bf16.msra.mxu1 %v12261_v15 }
 0xe9e   :  { %11579 = vmatprep.subr.bf16.mxu1 %v12262_v43  ;;  %v13799_v43 = vld [vmem:[#allocation2 + $0x40] ss:$16 sps:$4 sm:$0xff]  }
 0xea0   :  { %6892 = vmatpush1.bf16.msra.mxu0 %v13761_v12 }
 0xea1   :  { %6893 = vmatprep.subr.bf16.mxu0 %v13764_v32  ;;  %11580 = vmatpush3.bf16.msra.mxu1 %v12263_v45 }
 0xea2   :  { %11581 = vmatprep.subr.bf16.mxu1 %v12265_v52  ;;  %v13802_v52 = vld [vmem:[#allocation2 + $0x24] ss:$16 sps:$4 sm:$0xff]  }
 0xea4   :  { %6894 = vmatpush1.bf16.msra.mxu0 %v13767_v8 }
 0xea5   :  { %7180 = vmatprep.subr.bf16.mxu0 %v12702_v0  ;;  %11582 = vmatpush3.bf16.msra.mxu1 %v12266_v39 }
 0xea6   :  { %11583 = vmatprep.subr.bf16.mxu1 %v12268_v40 }
 0xea7   :  { %10912 = vmatmul.mubr.msk.bf16.vlgmr.msra.gmra.mxu0 %vm227_vm1, %v10908_v10 }
 0xea8   :  { %7181 = vmatpush1.bf16.msra.mxu0 %v12264_v3 }
 0xea9   :  { %7182 = vmatprep.subr.bf16.mxu0 %v12702_v0  ;;  %11584 = vmatpush3.bf16.msra.mxu1 %v12269_v41 }
 0xeaa   :  { %11585 = vmatprep.subr.bf16.mxu1 %v12271_v59 }
 0xeac   :  { %7183 = vmatpush1.bf16.msra.mxu0 %v12267_v14  ;;  %v13796_v14 = vld [vmem:[#allocation2 + $0x44] ss:$16 sps:$4 sm:$0xff]  }
 0xead   :  { %7184 = vmatprep.subr.bf16.mxu0 %v12702_v0  ;;  %11586 = vmatpush3.bf16.msra.mxu1 %v12272_v25 }
 0xeae   :  { %10941 = vmatprep.subr.msk.bf16.mxu1 %vm231_vm0, %v12747_v2 }
 0xeb0   :  { %7185 = vmatpush1.bf16.msra.mxu0 %v12270_v57 }
 0xeb1   :  { %7186 = vmatprep.subr.bf16.mxu0 %v12702_v0 }
 0xeb4   :  { %7187 = vmatpush1.bf16.msra.mxu0 %v12273_v27 }
 0xeb5   :  { %7188 = vmatprep.subr.bf16.mxu0 %v12702_v0 }
 0xeb8   :  { %7189 = vmatpush1.bf16.msra.mxu0 %v12274_v26 }
 0xeb9   :  { %7190 = vmatprep.subr.bf16.mxu0 %v12702_v0 }
 0xebc   :  { %7191 = vmatpush1.bf16.msra.mxu0 %v12275_v28 }
 0xebd   :  { %7192 = vmatprep.subr.bf16.mxu0 %v12702_v0 }
 0xec0   :  { %7193 = vmatpush1.bf16.msra.mxu0 %v12276_v29  ;;  %v10940_v29 = vld [vmem:[%s14250_s4 + $0x48] sm:$0xf] }
 0xec1   :  { %7194 = vmatprep.subr.bf16.mxu0 %v12702_v0 }
 0xec4   :  { %7195 = vmatpush1.bf16.msra.mxu0 %v12277_v35  ;;  %v12280_v35 = vld [vmem:[#allocation6 + $0xf18] sm:$0xff]  }
 0xec5   :  { %7208 = vmatprep.subr.bf16.mxu0 %v12702_v0 }
 0xec8   :  { %7209 = vmatpush2.bf16.msra.mxu0 %v12278_v7  ;;  %v12281_v7 = vld [vmem:[#allocation6 + $0xed8] sm:$0xff]  }
 0xec9   :  { %7210 = vmatprep.subr.bf16.mxu0 %v12702_v0 }
 0xecc   :  { %7211 = vmatpush2.bf16.msra.mxu0 %v12279_v21  ;;  %v12282_v21 = vld [vmem:[#allocation6 + $0xf10] sm:$0xff]  }
 0xecd   :  { %11593 = vmatprep.subr.bf16.mxu0 %v12280_v35 }
 0xf37   :  { %v11565_v6 = vpop.f32.mrf.mxu0 }
 0xf39   :  { %v11566_v53 = vpop.f32.mrf.mxu0 }
 0xf3a   :  { %v11567_v61 = vadd.f32 %v11566_v53, %v11565_v6  ;;  %v12283_v6 = vld [vmem:[#allocation6 + $0xed0] sm:$0xff]   ;;  %v12284_v53 = vld [vmem:[#allocation6 + $0xf08] sm:$0xff]  }
 0xf3b   :  { %v11568_v62 = vpop.f32.mrf.mxu0 }
 0xf3c   :  { %v12286_v62 = vld [vmem:[#allocation6 + $0xf00] sm:$0xff]  }
 0xf3d   :  { %v11569_v34 = vpop.f32.mrf.mxu0 }
 0xf3e   :  { %v12290_v34 = vld [vmem:[#allocation6 + $0xf58] sm:$0xff]  }
 0xf4f   :  { %v6872_v17 = vpop.f32.mrf.mxu0  ;;  %v6826_v33 = vpop.f32.mrf.mxu1 }
 0xf50   :  { %v6873_v58 = vadd.f32 %v6872_v17, %v12803_v63  ;;  %v6827_v20 = vadd.f32 %v11567_v61, %v6826_v33  ;;  %v12285_v61 = vld [vmem:[#allocation6 + $0xec8] sm:$0xff]   ;;  %v12287_v17 = vld [vmem:[#allocation6 + $0xec0] sm:$0xff]   ;;  %v12293_v33 = vld [vmem:[#allocation6 + $0xf50] sm:$0xff]  }
 0xf51   :  { %v6874_v19 = vpop.f32.mrf.mxu0  ;;  %v6828_v9 = vpop.f32.mrf.mxu1 }
 0xf52   :  { %v13785_v10 = vadd.f32 %v6827_v20, %v13702_v23  ;;  %v6875_v55 = vadd.f32 %v6874_v19, %v12806_v1  ;;  %v6920_v56 = vmax.f32 %v6873_v58, 0.0  ;;  %v13793_v23 = vld [vmem:[#allocation2 + $0x60] ss:$16 sps:$4 sm:$0xff]   ;;  %v12291_v19 = vld [vmem:[#allocation6 + $0xef0] sm:$0xff]  }
 0xf53   :  { %v6876_v42 = vpop.f32.mrf.mxu0  ;;  %v6829_v60 = vpop.f32.mrf.mxu1  ;;  %v12288_v58 = vld [vmem:[#allocation6 + $0xef8] sm:$0xff]   ;;  %v12292_v9 = vld [vmem:[#allocation6 + $0xeb0] sm:$0xff]  }
 0xf54   :  { %v6921_v49 = vmax.f32 %v6875_v55, 0.0  ;;  %v6924_v15 = vpack.c.bf16 %v6920_v56, %v6920_v56  ;;  %v12289_v20 = vld [vmem:[#allocation6 + $0xeb8] sm:$0xff]   ;;  %v12294_v55 = vld [vmem:[#allocation6 + $0xee8] sm:$0xff]   ;;  %v12297_v60 = vld [vmem:[#allocation6 + $0xee0] sm:$0xff]  }
 0xf55   :  { %v6877_v30 = vpop.f32.mrf.mxu0  ;;  %v6830_v31 = vpop.f32.mrf.mxu1  ;;  %v12295_v56 = vld [vmem:[#allocation6 + $0xea8] sm:$0xff]  }
 0xf56   :  { %v6925_v3 = vpack.c.bf16 %v6921_v49, %v6921_v49  ;;  %v12296_v42 = vld [vmem:[#allocation6 + $0xf48] sm:$0xff]   ;;  %v12298_v49 = vld [vmem:[#allocation6 + $0xea0] sm:$0xff]   ;;  %v12300_v31 = vld [vmem:[#allocation6 + $0xf38] sm:$0xff]  }
 0xf57   :  { %v12299_v30 = vld [vmem:[#allocation6 + $0xf40] sm:$0xff]  }
 0xf58   :  { %7172 = vmatprep.mubr.bf16.mxu1 %v6925_v3  ;;  %v12301_v3 = vld [vmem:[#allocation6 + $0xf30] sm:$0xff]  }
 0xf59   :  { %7173 = vmatmul.mubr.bf16.vlgmr.msra.gmra.mxu1 %v6924_v15  ;;  %v12302_v15 = vld [vmem:[#allocation6 + $0xf28] sm:$0xff]  }
 0xf5a   :  { %7231 = vmatpush1.bf16.msra.mxu1 %v12754_v5  ;;  %7258 = vmatprep.mubr.bf16.mxu1 %v12702_v0 }
 0xf5b   :  { %7232 = vmatprep.subr.bf16.mxu1 %v13707_v47 }
 0xf5e   :  { %7233 = vmatpush1.bf16.msra.mxu1 %v13710_v44 }
 0xf5f   :  { %7234 = vmatprep.subr.bf16.mxu1 %v13713_v46 }
 0xf62   :  { %7235 = vmatpush1.bf16.msra.mxu1 %v13793_v23 }
 0xf63   :  { %7236 = vmatprep.subr.bf16.mxu1 %v13796_v14 }
 0xf66   :  { %7237 = vmatpush1.bf16.msra.mxu1 %v13799_v43 }
 0xf67   :  { %v6913_v45 = vpop.f32.mrf.mxu0  ;;  %7238 = vmatprep.subr.bf16.mxu1 %v13802_v52 }
 0xf68   :  { %v6914_v39 = vadd.f32 %v6913_v45, %v12819_v48  ;;  %v12303_v45 = vld [vmem:[#allocation6 + $0xf20] sm:$0xff]  }
 0xf69   :  { %v6915_v40 = vpop.f32.mrf.mxu0 }
 0xf6a   :  { %v6922_v41 = vmax.f32 %v6914_v39, 0.0  ;;  %v6916_v57 = vadd.f32 %v6915_v40, %v12825_v50  ;;  %7239 = vmatpush1.bf16.msra.mxu1 %v13722_v51  ;;  %v12304_v39 = vld [vmem:[#allocation6 + $0xf68] sm:$0xff]   ;;  %v12305_v40 = vld [vmem:[#allocation6 + $0xf60] sm:$0xff]  }
 0xf6b   :  { %7240 = vmatprep.subr.bf16.mxu1 %v13725_v18  ;;  %v6917_v59 = vpop.f32.mrf.mxu0 }
 0xf6c   :  { %v6923_v25 = vmax.f32 %v6916_v57, 0.0  ;;  %v6926_v27 = vpack.c.bf16 %v6922_v41, %v6922_v41 }
 0xf6d   :  { %v6918_v26 = vpop.f32.mrf.mxu0 }
 0xf6e   :  { %v6927_v28 = vpack.c.bf16 %v6923_v25, %v6923_v25  ;;  %7241 = vmatpush1.bf16.msra.mxu1 %v13728_v24 }
 0xf6f   :  { %10943 = vmatprep.subr.msk.bf16.mxu1 %vm231_vm0, %v12758_v16 }
 0xf70   :  { %10939 = vmatprep.mubr.msk.bf16.mxu0 %vm690_vm2, %v6927_v28 }
 0xf71   :  { %10942 = vmatmul.mubr.msk.bf16.vlgmr.msra.gmra.mxu1 %vm227_vm1, %v10940_v29  ;;  %7213 = vmatmul.mubr.bf16.vlgmr.msra.gmra.mxu0 %v6926_v27 }
 0xf72   :  { %7272 = vmatpush1.bf16.msra.mxu1 %v12771_v22  ;;  %7299 = vmatprep.mubr.bf16.mxu1 %v12702_v0 }
 0xf73   :  { %7273 = vmatprep.subr.bf16.mxu1 %v13740_v36  ;;  %11594 = vmatpush3.bf16.msra.mxu0 %v12281_v7 }
 0xf74   :  { %11595 = vmatprep.subr.bf16.mxu0 %v12282_v21 }
 0xf76   :  { %7274 = vmatpush1.bf16.msra.mxu1 %v13743_v38 }
 0xf77   :  { %7275 = vmatprep.subr.bf16.mxu1 %v13746_v37  ;;  %11596 = vmatpush3.bf16.msra.mxu0 %v12283_v6 }
 0xf78   :  { %11597 = vmatprep.subr.bf16.mxu0 %v12284_v53 }
 0xf7a   :  { %7276 = vmatpush1.bf16.msra.mxu1 %v13749_v13 }
 0xf7b   :  { %7277 = vmatprep.subr.bf16.mxu1 %v13752_v54  ;;  %11598 = vmatpush3.bf16.msra.mxu0 %v12285_v61 }
 0xf7c   :  { %11599 = vmatprep.subr.bf16.mxu0 %v12286_v62 }
 0xf7e   :  { %7278 = vmatpush1.bf16.msra.mxu1 %v13755_v4 }
 0xf7f   :  { %7279 = vmatprep.subr.bf16.mxu1 %v13758_v11  ;;  %11600 = vmatpush3.bf16.msra.mxu0 %v12287_v17 }
 0xf80   :  { %11601 = vmatprep.subr.bf16.mxu0 %v12288_v58 }
 0xf82   :  { %7280 = vmatpush1.bf16.msra.mxu1 %v13761_v12 }
 0xf83   :  { %7281 = vmatprep.subr.bf16.mxu1 %v13764_v32  ;;  %11602 = vmatpush3.bf16.msra.mxu0 %v12289_v20 }
 0xf84   :  { %11603 = vmatprep.subr.bf16.mxu0 %v12291_v19 }
 0xf86   :  { %7282 = vmatpush1.bf16.msra.mxu1 %v13767_v8 }
 0xf87   :  { %7568 = vmatprep.subr.bf16.mxu1 %v12702_v0  ;;  %11604 = vmatpush3.bf16.msra.mxu0 %v12292_v9 }
 0xf88   :  { %11605 = vmatprep.subr.bf16.mxu0 %v12294_v55 }
 0xf89   :  { %10944 = vmatmul.mubr.msk.bf16.vlgmr.msra.gmra.mxu1 %vm227_vm1, %v10940_v29 }
 0xf8a   :  { %7569 = vmatpush1.bf16.msra.mxu1 %v12290_v34 }
 0xf8b   :  { %7570 = vmatprep.subr.bf16.mxu1 %v12702_v0  ;;  %11606 = vmatpush3.bf16.msra.mxu0 %v12295_v56 }
 0xf8c   :  { %11607 = vmatprep.subr.bf16.mxu0 %v12297_v60 }
 0xf8e   :  { %7571 = vmatpush1.bf16.msra.mxu1 %v12293_v33 }
 0xf8f   :  { %7572 = vmatprep.subr.bf16.mxu1 %v12702_v0  ;;  %11608 = vmatpush3.bf16.msra.mxu0 %v12298_v49 }
 0xf90   :  { %10973 = vmatprep.subr.msk.bf16.mxu0 %vm231_vm0, %v12747_v2 }
 0xf92   :  { %7573 = vmatpush1.bf16.msra.mxu1 %v12296_v42 }
 0xf93   :  { %7574 = vmatprep.subr.bf16.mxu1 %v12702_v0 }
 0xf96   :  { %7575 = vmatpush1.bf16.msra.mxu1 %v12299_v30 }
 0xf97   :  { %7576 = vmatprep.subr.bf16.mxu1 %v12702_v0 }
 0xf9a   :  { %7577 = vmatpush1.bf16.msra.mxu1 %v12300_v31 }
 0xf9b   :  { %7578 = vmatprep.subr.bf16.mxu1 %v12702_v0 }
 0xf9e   :  { %7579 = vmatpush1.bf16.msra.mxu1 %v12301_v3 }
 0xf9f   :  { %7580 = vmatprep.subr.bf16.mxu1 %v12702_v0 }
 0xfa2   :  { %7581 = vmatpush1.bf16.msra.mxu1 %v12302_v15  ;;  %v10972_v15 = vld [vmem:[%s14250_s4 + $0x4c] sm:$0xf] }
 0xfa3   :  { %7582 = vmatprep.subr.bf16.mxu1 %v12702_v0 }
 0xfa6   :  { %7583 = vmatpush1.bf16.msra.mxu1 %v12303_v45  ;;  %v12306_v45 = vld [vmem:[#allocation6 + $0xfe8] sm:$0xff]  }
 0xfa7   :  { %7596 = vmatprep.subr.bf16.mxu1 %v12702_v0 }
 0xfaa   :  { %7597 = vmatpush2.bf16.msra.mxu1 %v12304_v39  ;;  %v12307_v39 = vld [vmem:[#allocation6 + $0xfa8] sm:$0xff]  }
 0xfab   :  { %7598 = vmatprep.subr.bf16.mxu1 %v12702_v0 }
 0xfae   :  { %7599 = vmatpush2.bf16.msra.mxu1 %v12305_v40  ;;  %v12308_v40 = vld [vmem:[#allocation6 + $0xfe0] sm:$0xff]  }
 0xfaf   :  { %11615 = vmatprep.subr.bf16.mxu1 %v12306_v45 }
0x1019   :  { %v11587_v41 = vpop.f32.mrf.mxu1 }
0x101b   :  { %v11588_v57 = vpop.f32.mrf.mxu1 }
0x101c   :  { %v11589_v59 = vadd.f32 %v11588_v57, %v11587_v41  ;;  %v12309_v41 = vld [vmem:[#allocation6 + $0xfa0] sm:$0xff]   ;;  %v12310_v57 = vld [vmem:[#allocation6 + $0xfd8] sm:$0xff]  }
0x101d   :  { %v11590_v25 = vpop.f32.mrf.mxu1 }
0x101e   :  { %v12312_v25 = vld [vmem:[#allocation6 + $0xfd0] sm:$0xff]  }
0x101f   :  { %v11591_v27 = vpop.f32.mrf.mxu1 }
0x1020   :  { %v12316_v27 = vld [vmem:[#allocation6 + $0x1028] sm:$0xff]  }
0x1031   :  { %v7260_v26 = vpop.f32.mrf.mxu1  ;;  %v7214_v28 = vpop.f32.mrf.mxu0 }
0x1032   :  { %v7261_v29 = vadd.f32 %v7260_v26, %v12803_v63  ;;  %v7215_v35 = vadd.f32 %v11589_v59, %v7214_v28  ;;  %v12311_v59 = vld [vmem:[#allocation6 + $0xf98] sm:$0xff]   ;;  %v12313_v26 = vld [vmem:[#allocation6 + $0xf90] sm:$0xff]   ;;  %v12319_v28 = vld [vmem:[#allocation6 + $0x1020] sm:$0xff]  }
0x1033   :  { %v7262_v7 = vpop.f32.mrf.mxu1  ;;  %v7216_v21 = vpop.f32.mrf.mxu0 }
0x1034   :  { %v13844_v6 = vadd.f32 %v7215_v35, %v13785_v10  ;;  %v7263_v53 = vadd.f32 %v7262_v7, %v12806_v1  ;;  %v7308_v61 = vmax.f32 %v7261_v29, 0.0  ;;  %v12314_v29 = vld [vmem:[#allocation6 + $0xfc8] sm:$0xff]   ;;  %v12317_v7 = vld [vmem:[#allocation6 + $0xfc0] sm:$0xff]  }
0x1035   :  { %v7264_v62 = vpop.f32.mrf.mxu1  ;;  %v7217_v34 = vpop.f32.mrf.mxu0  ;;  %v12315_v35 = vld [vmem:[#allocation6 + $0xf88] sm:$0xff]   ;;  %v12318_v21 = vld [vmem:[#allocation6 + $0xf80] sm:$0xff]  }
0x1036   :  { %v7309_v17 = vmax.f32 %v7263_v53, 0.0  ;;  %v7312_v19 = vpack.c.bf16 %v7308_v61, %v7308_v61  ;;  %v12320_v53 = vld [vmem:[#allocation6 + $0xfb8] sm:$0xff]   ;;  %v12323_v34 = vld [vmem:[#allocation6 + $0xfb0] sm:$0xff]  }
0x1037   :  { %v7265_v33 = vpop.f32.mrf.mxu1  ;;  %v7218_v58 = vpop.f32.mrf.mxu0  ;;  %v12321_v61 = vld [vmem:[#allocation6 + $0xf78] sm:$0xff]  }
0x1038   :  { %v7313_v20 = vpack.c.bf16 %v7309_v17, %v7309_v17  ;;  %v12322_v62 = vld [vmem:[#allocation6 + $0x1018] sm:$0xff]   ;;  %v12324_v17 = vld [vmem:[#allocation6 + $0xf70] sm:$0xff]   ;;  %v12326_v58 = vld [vmem:[#allocation6 + $0x1008] sm:$0xff]  }
0x1039   :  { %v12325_v33 = vld [vmem:[#allocation6 + $0x1010] sm:$0xff]  }
0x103a   :  { %7560 = vmatprep.mubr.bf16.mxu0 %v7313_v20  ;;  %v12327_v20 = vld [vmem:[#allocation6 + $0x1000] sm:$0xff]  }
0x103b   :  { %7561 = vmatmul.mubr.bf16.vlgmr.msra.gmra.mxu0 %v7312_v19  ;;  %v12328_v19 = vld [vmem:[#allocation6 + $0xff8] sm:$0xff]  }
0x103c   :  { %7619 = vmatpush1.bf16.msra.mxu0 %v12754_v5  ;;  %7646 = vmatprep.mubr.bf16.mxu0 %v12702_v0 }
0x103d   :  { %7620 = vmatprep.subr.bf16.mxu0 %v13707_v47 }
0x1040   :  { %7621 = vmatpush1.bf16.msra.mxu0 %v13710_v44 }
0x1041   :  { %7622 = vmatprep.subr.bf16.mxu0 %v13713_v46 }
0x1044   :  { %7623 = vmatpush1.bf16.msra.mxu0 %v13793_v23 }
0x1045   :  { %7624 = vmatprep.subr.bf16.mxu0 %v13796_v14 }
0x1048   :  { %7625 = vmatpush1.bf16.msra.mxu0 %v13799_v43 }
0x1049   :  { %v7301_v10 = vpop.f32.mrf.mxu1  ;;  %7626 = vmatprep.subr.bf16.mxu0 %v13802_v52 }
0x104a   :  { %v7302_v9 = vadd.f32 %v7301_v10, %v12819_v48  ;;  %v12329_v10 = vld [vmem:[#allocation6 + $0xff0] sm:$0xff]  }
0x104b   :  { %v7303_v55 = vpop.f32.mrf.mxu1 }
0x104c   :  { %v7310_v56 = vmax.f32 %v7302_v9, 0.0  ;;  %v7304_v42 = vadd.f32 %v7303_v55, %v12825_v50  ;;  %7627 = vmatpush1.bf16.msra.mxu0 %v13722_v51  ;;  %v12330_v9 = vld [vmem:[#allocation6 + $0x1038] sm:$0xff]   ;;  %v12331_v55 = vld [vmem:[#allocation6 + $0x1030] sm:$0xff]  }
0x104d   :  { %7628 = vmatprep.subr.bf16.mxu0 %v13725_v18  ;;  %v7305_v60 = vpop.f32.mrf.mxu1 }
0x104e   :  { %v7311_v49 = vmax.f32 %v7304_v42, 0.0  ;;  %v7314_v30 = vpack.c.bf16 %v7310_v56, %v7310_v56 }
0x104f   :  { %v7306_v31 = vpop.f32.mrf.mxu1 }
0x1050   :  { %v7315_v3 = vpack.c.bf16 %v7311_v49, %v7311_v49  ;;  %7629 = vmatpush1.bf16.msra.mxu0 %v13728_v24 }
0x1051   :  { %10975 = vmatprep.subr.msk.bf16.mxu0 %vm231_vm0, %v12758_v16 }
0x1052   :  { %10971 = vmatprep.mubr.msk.bf16.mxu1 %vm690_vm2, %v7315_v3 }
0x1053   :  { %10974 = vmatmul.mubr.msk.bf16.vlgmr.msra.gmra.mxu0 %vm227_vm1, %v10972_v15  ;;  %7601 = vmatmul.mubr.bf16.vlgmr.msra.gmra.mxu1 %v7314_v30 }
0x1054   :  { %7660 = vmatpush1.bf16.msra.mxu0 %v12771_v22  ;;  %7687 = vmatprep.mubr.bf16.mxu0 %v12702_v0 }
0x1055   :  { %7661 = vmatprep.subr.bf16.mxu0 %v13740_v36  ;;  %11616 = vmatpush3.bf16.msra.mxu1 %v12307_v39 }
0x1056   :  { %11617 = vmatprep.subr.bf16.mxu1 %v12308_v40 }
0x1058   :  { %7662 = vmatpush1.bf16.msra.mxu0 %v13743_v38 }
0x1059   :  { %7663 = vmatprep.subr.bf16.mxu0 %v13746_v37  ;;  %11618 = vmatpush3.bf16.msra.mxu1 %v12309_v41 }
0x105a   :  { %11619 = vmatprep.subr.bf16.mxu1 %v12310_v57 }
0x105c   :  { %7664 = vmatpush1.bf16.msra.mxu0 %v13749_v13 }
0x105d   :  { %7665 = vmatprep.subr.bf16.mxu0 %v13752_v54  ;;  %11620 = vmatpush3.bf16.msra.mxu1 %v12311_v59 }
0x105e   :  { %11621 = vmatprep.subr.bf16.mxu1 %v12312_v25 }
0x1060   :  { %7666 = vmatpush1.bf16.msra.mxu0 %v13755_v4 }
0x1061   :  { %7667 = vmatprep.subr.bf16.mxu0 %v13758_v11  ;;  %11622 = vmatpush3.bf16.msra.mxu1 %v12313_v26 }
0x1062   :  { %11623 = vmatprep.subr.bf16.mxu1 %v12314_v29 }
0x1064   :  { %7668 = vmatpush1.bf16.msra.mxu0 %v13761_v12 }
0x1065   :  { %7669 = vmatprep.subr.bf16.mxu0 %v13764_v32  ;;  %11624 = vmatpush3.bf16.msra.mxu1 %v12315_v35 }
0x1066   :  { %11625 = vmatprep.subr.bf16.mxu1 %v12317_v7 }
0x1068   :  { %7670 = vmatpush1.bf16.msra.mxu0 %v13767_v8 }
0x1069   :  { %7956 = vmatprep.subr.bf16.mxu0 %v12702_v0  ;;  %11626 = vmatpush3.bf16.msra.mxu1 %v12318_v21 }
0x106a   :  { %11627 = vmatprep.subr.bf16.mxu1 %v12320_v53 }
0x106b   :  { %10976 = vmatmul.mubr.msk.bf16.vlgmr.msra.gmra.mxu0 %vm227_vm1, %v10972_v15 }
0x106c   :  { %7957 = vmatpush1.bf16.msra.mxu0 %v12316_v27 }
0x106d   :  { %7958 = vmatprep.subr.bf16.mxu0 %v12702_v0  ;;  %11628 = vmatpush3.bf16.msra.mxu1 %v12321_v61 }
0x106e   :  { %11629 = vmatprep.subr.bf16.mxu1 %v12323_v34 }
0x1070   :  { %7959 = vmatpush1.bf16.msra.mxu0 %v12319_v28 }
0x1071   :  { %7960 = vmatprep.subr.bf16.mxu0 %v12702_v0  ;;  %11630 = vmatpush3.bf16.msra.mxu1 %v12324_v17 }
0x1072   :  { %11005 = vmatprep.subr.msk.bf16.mxu1 %vm231_vm0, %v12747_v2 }
0x1074   :  { %7961 = vmatpush1.bf16.msra.mxu0 %v12322_v62 }
0x1075   :  { %7962 = vmatprep.subr.bf16.mxu0 %v12702_v0 }
0x1078   :  { %7963 = vmatpush1.bf16.msra.mxu0 %v12325_v33 }
0x1079   :  { %7964 = vmatprep.subr.bf16.mxu0 %v12702_v0 }
0x107c   :  { %7965 = vmatpush1.bf16.msra.mxu0 %v12326_v58 }
0x107d   :  { %7966 = vmatprep.subr.bf16.mxu0 %v12702_v0 }
0x1080   :  { %7967 = vmatpush1.bf16.msra.mxu0 %v12327_v20 }
0x1081   :  { %7968 = vmatprep.subr.bf16.mxu0 %v12702_v0 }
0x1084   :  { %7969 = vmatpush1.bf16.msra.mxu0 %v12328_v19  ;;  %v11004_v19 = vld [vmem:[%s14250_s4 + $0x50] sm:$0xf] }
0x1085   :  { %7970 = vmatprep.subr.bf16.mxu0 %v12702_v0 }
0x1088   :  { %7971 = vmatpush1.bf16.msra.mxu0 %v12329_v10  ;;  %v12332_v10 = vld [vmem:[#allocation6 + $0x10b8] sm:$0xff]  }
0x1089   :  { %7984 = vmatprep.subr.bf16.mxu0 %v12702_v0 }
0x108c   :  { %7985 = vmatpush2.bf16.msra.mxu0 %v12330_v9  ;;  %v12333_v9 = vld [vmem:[#allocation6 + $0x1078] sm:$0xff]  }
0x108d   :  { %7986 = vmatprep.subr.bf16.mxu0 %v12702_v0 }
0x1090   :  { %7987 = vmatpush2.bf16.msra.mxu0 %v12331_v55  ;;  %v12334_v55 = vld [vmem:[#allocation6 + $0x10b0] sm:$0xff]  }
0x1091   :  { %11637 = vmatprep.subr.bf16.mxu0 %v12332_v10 }
0x10fb   :  { %v11609_v56 = vpop.f32.mrf.mxu0 }
0x10fd   :  { %v11610_v42 = vpop.f32.mrf.mxu0 }
0x10fe   :  { %v11611_v60 = vadd.f32 %v11610_v42, %v11609_v56  ;;  %v12335_v56 = vld [vmem:[#allocation6 + $0x1070] sm:$0xff]   ;;  %v12336_v42 = vld [vmem:[#allocation6 + $0x10a8] sm:$0xff]  }
0x10ff   :  { %v11612_v49 = vpop.f32.mrf.mxu0 }
0x1100   :  { %v12338_v49 = vld [vmem:[#allocation6 + $0x10a0] sm:$0xff]  }
0x1101   :  { %v11613_v30 = vpop.f32.mrf.mxu0 }
0x1102   :  { %v12342_v30 = vld [vmem:[#allocation6 + $0x10f8] sm:$0xff]  }
0x1113   :  { %v7648_v31 = vpop.f32.mrf.mxu0  ;;  %v7602_v3 = vpop.f32.mrf.mxu1 }
0x1114   :  { %v7649_v15 = vadd.f32 %v7648_v31, %v12803_v63  ;;  %v7603_v45 = vadd.f32 %v11611_v60, %v7602_v3  ;;  %v12337_v60 = vld [vmem:[#allocation6 + $0x1068] sm:$0xff]   ;;  %v12339_v31 = vld [vmem:[#allocation6 + $0x1060] sm:$0xff]   ;;  %v12345_v3 = vld [vmem:[#allocation6 + $0x10f0] sm:$0xff]  }
0x1115   :  { %v7650_v39 = vpop.f32.mrf.mxu0  ;;  %v7604_v40 = vpop.f32.mrf.mxu1 }
0x1116   :  { %v13895_v41 = vadd.f32 %v7603_v45, %v13844_v6  ;;  %v7651_v57 = vadd.f32 %v7650_v39, %v12806_v1  ;;  %v7696_v59 = vmax.f32 %v7649_v15, 0.0  ;;  %v12340_v15 = vld [vmem:[#allocation6 + $0x1098] sm:$0xff]   ;;  %v12343_v39 = vld [vmem:[#allocation6 + $0x1090] sm:$0xff]  }
0x1117   :  { %v7652_v25 = vpop.f32.mrf.mxu0  ;;  %v7605_v27 = vpop.f32.mrf.mxu1  ;;  %v12341_v45 = vld [vmem:[#allocation6 + $0x1058] sm:$0xff]   ;;  %v12344_v40 = vld [vmem:[#allocation6 + $0x1050] sm:$0xff]  }
0x1118   :  { %v7697_v26 = vmax.f32 %v7651_v57, 0.0  ;;  %v7700_v7 = vpack.c.bf16 %v7696_v59, %v7696_v59  ;;  %v12346_v57 = vld [vmem:[#allocation6 + $0x1088] sm:$0xff]   ;;  %v12349_v27 = vld [vmem:[#allocation6 + $0x1080] sm:$0xff]  }
0x1119   :  { %v7653_v28 = vpop.f32.mrf.mxu0  ;;  %v7606_v29 = vpop.f32.mrf.mxu1  ;;  %v12347_v59 = vld [vmem:[#allocation6 + $0x1048] sm:$0xff]  }
0x111a   :  { %v7701_v35 = vpack.c.bf16 %v7697_v26, %v7697_v26  ;;  %v12348_v25 = vld [vmem:[#allocation6 + $0x10e8] sm:$0xff]   ;;  %v12350_v26 = vld [vmem:[#allocation6 + $0x1040] sm:$0xff]   ;;  %v12352_v29 = vld [vmem:[#allocation6 + $0x10d8] sm:$0xff]  }
0x111b   :  { %v12351_v28 = vld [vmem:[#allocation6 + $0x10e0] sm:$0xff]  }
0x111c   :  { %7948 = vmatprep.mubr.bf16.mxu1 %v7701_v35  ;;  %v12353_v35 = vld [vmem:[#allocation6 + $0x10d0] sm:$0xff]  }
0x111d   :  { %7949 = vmatmul.mubr.bf16.vlgmr.msra.gmra.mxu1 %v7700_v7  ;;  %v12354_v7 = vld [vmem:[#allocation6 + $0x10c8] sm:$0xff]  }
0x111e   :  { %8007 = vmatpush1.bf16.msra.mxu1 %v12754_v5  ;;  %8034 = vmatprep.mubr.bf16.mxu1 %v12702_v0 }
0x111f   :  { %8008 = vmatprep.subr.bf16.mxu1 %v13707_v47 }
0x1122   :  { %8009 = vmatpush1.bf16.msra.mxu1 %v13710_v44 }
0x1123   :  { %8010 = vmatprep.subr.bf16.mxu1 %v13713_v46 }
0x1126   :  { %8011 = vmatpush1.bf16.msra.mxu1 %v13793_v23 }
0x1127   :  { %8012 = vmatprep.subr.bf16.mxu1 %v13796_v14 }
0x112a   :  { %8013 = vmatpush1.bf16.msra.mxu1 %v13799_v43 }
0x112b   :  { %v7689_v6 = vpop.f32.mrf.mxu0  ;;  %8014 = vmatprep.subr.bf16.mxu1 %v13802_v52 }
0x112c   :  { %v7690_v21 = vadd.f32 %v7689_v6, %v12819_v48  ;;  %v12355_v6 = vld [vmem:[#allocation6 + $0x10c0] sm:$0xff]  }
0x112d   :  { %v7691_v53 = vpop.f32.mrf.mxu0 }
0x112e   :  { %v7698_v61 = vmax.f32 %v7690_v21, 0.0  ;;  %v7692_v62 = vadd.f32 %v7691_v53, %v12825_v50  ;;  %8015 = vmatpush1.bf16.msra.mxu1 %v13722_v51  ;;  %v12356_v21 = vld [vmem:[#allocation6 + $0x1108] sm:$0xff]   ;;  %v12357_v53 = vld [vmem:[#allocation6 + $0x1100] sm:$0xff]  }
0x112f   :  { %8016 = vmatprep.subr.bf16.mxu1 %v13725_v18  ;;  %v7693_v34 = vpop.f32.mrf.mxu0 }
0x1130   :  { %v7699_v17 = vmax.f32 %v7692_v62, 0.0  ;;  %v7702_v33 = vpack.c.bf16 %v7698_v61, %v7698_v61 }
0x1131   :  { %v7694_v58 = vpop.f32.mrf.mxu0 }
0x1132   :  { %v7703_v20 = vpack.c.bf16 %v7699_v17, %v7699_v17  ;;  %8017 = vmatpush1.bf16.msra.mxu1 %v13728_v24 }
0x1133   :  { %11007 = vmatprep.subr.msk.bf16.mxu1 %vm231_vm0, %v12758_v16 }
0x1134   :  { %11003 = vmatprep.mubr.msk.bf16.mxu0 %vm690_vm2, %v7703_v20 }
0x1135   :  { %11006 = vmatmul.mubr.msk.bf16.vlgmr.msra.gmra.mxu1 %vm227_vm1, %v11004_v19  ;;  %7989 = vmatmul.mubr.bf16.vlgmr.msra.gmra.mxu0 %v7702_v33 }
0x1136   :  { %8048 = vmatpush1.bf16.msra.mxu1 %v12771_v22  ;;  %8075 = vmatprep.mubr.bf16.mxu1 %v12702_v0 }
0x1137   :  { %8049 = vmatprep.subr.bf16.mxu1 %v13740_v36  ;;  %11638 = vmatpush3.bf16.msra.mxu0 %v12333_v9 }
0x1138   :  { %11639 = vmatprep.subr.bf16.mxu0 %v12334_v55 }
0x113a   :  { %8050 = vmatpush1.bf16.msra.mxu1 %v13743_v38 }
0x113b   :  { %8051 = vmatprep.subr.bf16.mxu1 %v13746_v37  ;;  %11640 = vmatpush3.bf16.msra.mxu0 %v12335_v56 }
0x113c   :  { %11641 = vmatprep.subr.bf16.mxu0 %v12336_v42 }
0x113e   :  { %8052 = vmatpush1.bf16.msra.mxu1 %v13749_v13 }
0x113f   :  { %8053 = vmatprep.subr.bf16.mxu1 %v13752_v54  ;;  %11642 = vmatpush3.bf16.msra.mxu0 %v12337_v60 }
0x1140   :  { %11643 = vmatprep.subr.bf16.mxu0 %v12338_v49 }
0x1142   :  { %8054 = vmatpush1.bf16.msra.mxu1 %v13755_v4 }
0x1143   :  { %8055 = vmatprep.subr.bf16.mxu1 %v13758_v11  ;;  %11644 = vmatpush3.bf16.msra.mxu0 %v12339_v31 }
0x1144   :  { %11645 = vmatprep.subr.bf16.mxu0 %v12340_v15 }
0x1146   :  { %8056 = vmatpush1.bf16.msra.mxu1 %v13761_v12 }
0x1147   :  { %8057 = vmatprep.subr.bf16.mxu1 %v13764_v32  ;;  %11646 = vmatpush3.bf16.msra.mxu0 %v12341_v45 }
0x1148   :  { %11647 = vmatprep.subr.bf16.mxu0 %v12343_v39 }
0x114a   :  { %8058 = vmatpush1.bf16.msra.mxu1 %v13767_v8 }
0x114b   :  { %8344 = vmatprep.subr.bf16.mxu1 %v12702_v0  ;;  %11648 = vmatpush3.bf16.msra.mxu0 %v12344_v40 }
0x114c   :  { %11649 = vmatprep.subr.bf16.mxu0 %v12346_v57 }
0x114d   :  { %11008 = vmatmul.mubr.msk.bf16.vlgmr.msra.gmra.mxu1 %vm227_vm1, %v11004_v19 }
0x114e   :  { %8345 = vmatpush1.bf16.msra.mxu1 %v12342_v30 }
0x114f   :  { %8346 = vmatprep.subr.bf16.mxu1 %v12702_v0  ;;  %11650 = vmatpush3.bf16.msra.mxu0 %v12347_v59 }
0x1150   :  { %11651 = vmatprep.subr.bf16.mxu0 %v12349_v27 }
0x1152   :  { %8347 = vmatpush1.bf16.msra.mxu1 %v12345_v3 }
0x1153   :  { %8348 = vmatprep.subr.bf16.mxu1 %v12702_v0  ;;  %11652 = vmatpush3.bf16.msra.mxu0 %v12350_v26 }
0x1154   :  { %11037 = vmatprep.subr.msk.bf16.mxu0 %vm231_vm0, %v12747_v2 }
0x1156   :  { %8349 = vmatpush1.bf16.msra.mxu1 %v12348_v25 }
0x1157   :  { %8350 = vmatprep.subr.bf16.mxu1 %v12702_v0 }
0x115a   :  { %8351 = vmatpush1.bf16.msra.mxu1 %v12351_v28  ;;  %v11036_v28 = vld [vmem:[%s14250_s4 + $0x54] sm:$0xf] }
0x115b   :  { %8352 = vmatprep.subr.bf16.mxu1 %v12702_v0 }
0x115e   :  { %8353 = vmatpush1.bf16.msra.mxu1 %v12352_v29  ;;  %v12370_v29 = vld [vmem:[#allocation6 + $0x1120] sm:$0xff]  }
0x115f   :  { %8354 = vmatprep.subr.bf16.mxu1 %v12702_v0 }
0x1162   :  { %8355 = vmatpush1.bf16.msra.mxu1 %v12353_v35  ;;  %v12372_v35 = vld [vmem:[#allocation6 + $0x1158] sm:$0xff]  }
0x1163   :  { %8356 = vmatprep.subr.bf16.mxu1 %v12702_v0 }
0x1166   :  { %8357 = vmatpush1.bf16.msra.mxu1 %v12354_v7  ;;  %v12373_v7 = vld [vmem:[#allocation6 + $0x1118] sm:$0xff]  }
0x1167   :  { %8358 = vmatprep.subr.bf16.mxu1 %v12702_v0 }
0x116a   :  { %8359 = vmatpush1.bf16.msra.mxu1 %v12355_v6  ;;  %v12374_v6 = vld [vmem:[#allocation6 + $0x11b8] sm:$0xff]  }
0x116b   :  { %8372 = vmatprep.subr.bf16.mxu1 %v12702_v0 }
0x116e   :  { %8373 = vmatpush2.bf16.msra.mxu1 %v12356_v21  ;;  %v12375_v21 = vld [vmem:[#allocation6 + $0x1150] sm:$0xff]  }
0x116f   :  { %8374 = vmatprep.subr.bf16.mxu1 %v12702_v0 }
0x1172   :  { %8375 = vmatpush2.bf16.msra.mxu1 %v12357_v53  ;;  %v12376_v53 = vld [vmem:[#allocation6 + $0x1110] sm:$0xff]  }
0x11dd   :  { %v11631_v61 = vpop.f32.mrf.mxu1 }
0x11df   :  { %v11632_v62 = vpop.f32.mrf.mxu1 }
0x11e0   :  { %v11633_v34 = vadd.f32 %v11632_v62, %v11631_v61  ;;  %v12377_v61 = vld [vmem:[#allocation6 + $0x11b0] sm:$0xff]   ;;  %v12378_v62 = vld [vmem:[#allocation6 + $0x11a8] sm:$0xff]  }
0x11e1   :  { %v11634_v17 = vpop.f32.mrf.mxu1 }
0x11e2   :  { %v12380_v17 = vld [vmem:[#allocation6 + $0x1198] sm:$0xff]  }
0x11e3   :  { %v11635_v33 = vpop.f32.mrf.mxu1 }
0x11e4   :  { %v12381_v33 = vld [vmem:[#allocation6 + $0x1190] sm:$0xff]  }
0x11f5   :  { %v8036_v58 = vpop.f32.mrf.mxu1  ;;  %v7990_v20 = vpop.f32.mrf.mxu0 }
0x11f6   :  { %v8037_v19 = vadd.f32 %v8036_v58, %v12803_v63  ;;  %v7991_v10 = vadd.f32 %v11633_v34, %v7990_v20  ;;  %v12379_v34 = vld [vmem:[#allocation6 + $0x11a0] sm:$0xff]   ;;  %v12382_v58 = vld [vmem:[#allocation6 + $0x11d8] sm:$0xff]   ;;  %v12383_v20 = vld [vmem:[#allocation6 + $0x11d0] sm:$0xff]  }
0x11f7   :  { %v8038_v9 = vpop.f32.mrf.mxu1  ;;  %v7992_v55 = vpop.f32.mrf.mxu0 }
0x11f8   :  { %v13946_v56 = vadd.f32 %v7991_v10, %v13895_v41  ;;  %v8039_v42 = vadd.f32 %v8038_v9, %v12806_v1  ;;  %v8084_v60 = vmax.f32 %v8037_v19, 0.0 }
0x11f9   :  { %v8040_v49 = vpop.f32.mrf.mxu1  ;;  %v7993_v30 = vpop.f32.mrf.mxu0 }
0x11fa   :  { %v8085_v31 = vmax.f32 %v8039_v42, 0.0  ;;  %v8088_v39 = vpack.c.bf16 %v8084_v60, %v8084_v60 }
0x11fb   :  { %v8041_v3 = vpop.f32.mrf.mxu1  ;;  %v7994_v15 = vpop.f32.mrf.mxu0 }
0x11fc   :  { %v8089_v45 = vpack.c.bf16 %v8085_v31, %v8085_v31 }
0x11fe   :  { %8336 = vmatprep.mubr.bf16.mxu0 %v8089_v45 }
0x11ff   :  { %8337 = vmatmul.mubr.bf16.vlgmr.msra.gmra.mxu0 %v8088_v39 }
0x1200   :  { %8395 = vmatpush1.bf16.msra.mxu0 %v12754_v5  ;;  %8422 = vmatprep.mubr.bf16.mxu0 %v12702_v0 }
0x1201   :  { %8396 = vmatprep.subr.bf16.mxu0 %v13707_v47 }
0x1204   :  { %8397 = vmatpush1.bf16.msra.mxu0 %v13710_v44 }
0x1205   :  { %8398 = vmatprep.subr.bf16.mxu0 %v13713_v46 }
0x1208   :  { %8399 = vmatpush1.bf16.msra.mxu0 %v13793_v23 }
0x1209   :  { %8400 = vmatprep.subr.bf16.mxu0 %v13796_v14 }
0x120c   :  { %8401 = vmatpush1.bf16.msra.mxu0 %v13799_v43 }
0x120d   :  { %v8077_v41 = vpop.f32.mrf.mxu1  ;;  %8402 = vmatprep.subr.bf16.mxu0 %v13802_v52 }
0x120e   :  { %v8078_v40 = vadd.f32 %v8077_v41, %v12819_v48 }
0x120f   :  { %v8079_v57 = vpop.f32.mrf.mxu1 }
0x1210   :  { %v8086_v59 = vmax.f32 %v8078_v40, 0.0  ;;  %v8080_v25 = vadd.f32 %v8079_v57, %v12825_v50  ;;  %8403 = vmatpush1.bf16.msra.mxu0 %v13722_v51  ;;  %v12358_v51 = vld [vmem:[#allocation6 + $0x1188] sm:$0xff]  }
0x1211   :  { %8404 = vmatprep.subr.bf16.mxu0 %v13725_v18  ;;  %v8081_v47 = vpop.f32.mrf.mxu1  ;;  %v12359_v18 = vld [vmem:[#allocation6 + $0x1148] sm:$0xff]   ;;  %11659 = vmatprep.subr.bf16.mxu1 %v12358_v51 }
0x1212   :  { %v8087_v44 = vmax.f32 %v8080_v25, 0.0  ;;  %v8090_v46 = vpack.c.bf16 %v8086_v59, %v8086_v59 }
0x1213   :  { %v8082_v27 = vpop.f32.mrf.mxu1 }
0x1214   :  { %v8091_v26 = vpack.c.bf16 %v8087_v44, %v8087_v44  ;;  %8405 = vmatpush1.bf16.msra.mxu0 %v13728_v24  ;;  %v12360_v24 = vld [vmem:[#allocation6 + $0x1180] sm:$0xff]  }
0x1215   :  { %11039 = vmatprep.subr.msk.bf16.mxu0 %vm231_vm0, %v12758_v16  ;;  %v14002_v27 = vld [vmem:[#allocation2 + $0x84] ss:$16 sps:$4 sm:$0xff]  }
0x1216   :  { %11035 = vmatprep.mubr.msk.bf16.mxu1 %vm690_vm2, %v8091_v26  ;;  %v14008_v26 = vld [vmem:[#allocation2 + $0x64] ss:$16 sps:$4 sm:$0xff]  }
0x1217   :  { %11038 = vmatmul.mubr.msk.bf16.vlgmr.msra.gmra.mxu0 %vm227_vm1, %v11036_v28  ;;  %8377 = vmatmul.mubr.bf16.vlgmr.msra.gmra.mxu1 %v8090_v46 }
0x1218   :  { %8436 = vmatpush1.bf16.msra.mxu0 %v12771_v22  ;;  %8463 = vmatprep.mubr.bf16.mxu0 %v12702_v0 }
0x1219   :  { %8437 = vmatprep.subr.bf16.mxu0 %v13740_v36  ;;  %11660 = vmatpush3.bf16.msra.mxu1 %v12359_v18  ;;  %v12361_v36 = vld [vmem:[#allocation6 + $0x1140] sm:$0xff]  }
0x121a   :  { %11661 = vmatprep.subr.bf16.mxu1 %v12360_v24 }
0x121c   :  { %8438 = vmatpush1.bf16.msra.mxu0 %v13743_v38  ;;  %v12362_v38 = vld [vmem:[#allocation6 + $0x1178] sm:$0xff]  }
0x121d   :  { %8439 = vmatprep.subr.bf16.mxu0 %v13746_v37  ;;  %11662 = vmatpush3.bf16.msra.mxu1 %v12361_v36  ;;  %v12363_v37 = vld [vmem:[#allocation6 + $0x1138] sm:$0xff]  }
0x121e   :  { %11663 = vmatprep.subr.bf16.mxu1 %v12362_v38  ;;  %v14017_v38 = vld [vmem:[#allocation2 + $0x20] ss:$16 sps:$4 sm:$0xff]  }
0x1220   :  { %8440 = vmatpush1.bf16.msra.mxu0 %v13749_v13  ;;  %v12364_v13 = vld [vmem:[#allocation6 + $0x1170] sm:$0xff]  }
0x1221   :  { %8441 = vmatprep.subr.bf16.mxu0 %v13752_v54  ;;  %v12368_v54 = vld [vmem:[#allocation6 + $0x11c8] sm:$0xff]   ;;  %11664 = vmatpush3.bf16.msra.mxu1 %v12363_v37  ;;  %v14020_v37 = vld [vmem:[#allocation2 + $0x4] ss:$16 sps:$4 sm:$0xff]  }
0x1222   :  { %11665 = vmatprep.subr.bf16.mxu1 %v12364_v13 }
0x1224   :  { %8442 = vmatpush1.bf16.msra.mxu0 %v13755_v4  ;;  %v12365_v4 = vld [vmem:[#allocation6 + $0x1130] sm:$0xff]  }
0x1225   :  { %8443 = vmatprep.subr.bf16.mxu0 %v13758_v11  ;;  %v12371_v11 = vld [vmem:[#allocation6 + $0x11c0] sm:$0xff]   ;;  %11666 = vmatpush3.bf16.msra.mxu1 %v12365_v4 }
0x1226   :  { %v11068_v4 = vld [vmem:[%s14250_s4 + $0x58] sm:$0xf] }
0x1228   :  { %8444 = vmatpush1.bf16.msra.mxu0 %v13761_v12  ;;  %v12366_v12 = vld [vmem:[#allocation6 + $0x1168] sm:$0xff]  }
0x1229   :  { %8445 = vmatprep.subr.bf16.mxu0 %v13764_v32  ;;  %v12367_v32 = vld [vmem:[#allocation6 + $0x1128] sm:$0xff]   ;;  %11667 = vmatprep.subr.bf16.mxu1 %v12366_v12  ;;  %v14038_v12 = vld [vmem:[#allocation2 + $0x88] ss:$16 sps:$4 sm:$0xff]  }
0x122a   :  { %11668 = vmatpush3.bf16.msra.mxu1 %v12367_v32  ;;  %v14041_v32 = vld [vmem:[#allocation2 + $0x6c] ss:$16 sps:$4 sm:$0xff]  }
0x122c   :  { %8446 = vmatpush1.bf16.msra.mxu0 %v13767_v8  ;;  %v12369_v8 = vld [vmem:[#allocation6 + $0x1160] sm:$0xff]  }
0x122d   :  { %8732 = vmatprep.subr.bf16.mxu0 %v12702_v0  ;;  %11669 = vmatprep.subr.bf16.mxu1 %v12369_v8  ;;  %v14044_v8 = vld [vmem:[#allocation2 + $0x68] ss:$16 sps:$4 sm:$0xff]  }
0x122e   :  { %11670 = vmatpush3.bf16.msra.mxu1 %v12370_v29  ;;  %v14047_v29 = vld [vmem:[#allocation2 + $0x4c] ss:$16 sps:$4 sm:$0xff]  }
0x122f   :  { %11040 = vmatmul.mubr.msk.bf16.vlgmr.msra.gmra.mxu0 %vm227_vm1, %v11036_v28  ;;  %11671 = vmatprep.subr.bf16.mxu1 %v12372_v35  ;;  %v14050_v35 = vld [vmem:[#allocation2 + $0x48] ss:$16 sps:$4 sm:$0xff]  }
0x1230   :  { %8733 = vmatpush1.bf16.msra.mxu0 %v12368_v54 }
0x1231   :  { %8734 = vmatprep.subr.bf16.mxu0 %v12702_v0 }
0x1232   :  { %11672 = vmatpush3.bf16.msra.mxu1 %v12373_v7  ;;  %v14053_v7 = vld [vmem:[#allocation2 + $0x2c] ss:$16 sps:$4 sm:$0xff]  }
0x1233   :  { %11673 = vmatprep.subr.bf16.mxu1 %v12375_v21  ;;  %v14059_v21 = vld [vmem:[#allocation2 + $0xc] ss:$16 sps:$4 sm:$0xff]  }
0x1234   :  { %8735 = vmatpush1.bf16.msra.mxu0 %v12371_v11  ;;  %v14035_v11 = vld [vmem:[#allocation2 + $0x8c] ss:$16 sps:$4 sm:$0xff]  }
0x1235   :  { %8736 = vmatprep.subr.bf16.mxu0 %v12702_v0 }
0x1236   :  { %11674 = vmatpush3.bf16.msra.mxu1 %v12376_v53  ;;  %v14062_v53 = vld [vmem:[#allocation2 + $0x8] ss:$16 sps:$4 sm:$0xff]  }
0x1237   :  { %11069 = vmatprep.subr.msk.bf16.mxu1 %vm231_vm0, %v12747_v2 }
0x1238   :  { %8737 = vmatpush1.bf16.msra.mxu0 %v12374_v6  ;;  %v14056_v6 = vld [vmem:[#allocation2 + $0x28] ss:$16 sps:$4 sm:$0xff]  }
0x1239   :  { %8738 = vmatprep.subr.bf16.mxu0 %v12702_v0 }
0x123c   :  { %8739 = vmatpush1.bf16.msra.mxu0 %v12377_v61  ;;  %v12384_v61 = vld [vmem:[#allocation6 + $0x1258] sm:$0xff]  }
0x123d   :  { %8740 = vmatprep.subr.bf16.mxu0 %v12702_v0 }
0x1240   :  { %8741 = vmatpush1.bf16.msra.mxu0 %v12378_v62  ;;  %v12385_v62 = vld [vmem:[#allocation6 + $0x1218] sm:$0xff]  }
0x1241   :  { %8742 = vmatprep.subr.bf16.mxu0 %v12702_v0 }
0x1244   :  { %8743 = vmatpush1.bf16.msra.mxu0 %v12379_v34  ;;  %v12386_v34 = vld [vmem:[#allocation6 + $0x1250] sm:$0xff]  }
0x1245   :  { %8744 = vmatprep.subr.bf16.mxu0 %v12702_v0 }
0x1248   :  { %8745 = vmatpush1.bf16.msra.mxu0 %v12380_v17  ;;  %v12387_v17 = vld [vmem:[#allocation6 + $0x1210] sm:$0xff]  }
0x1249   :  { %8746 = vmatprep.subr.bf16.mxu0 %v12702_v0 }
0x124c   :  { %8747 = vmatpush1.bf16.msra.mxu0 %v12381_v33  ;;  %v12388_v33 = vld [vmem:[#allocation6 + $0x1248] sm:$0xff]  }
0x124d   :  { %8760 = vmatprep.subr.bf16.mxu0 %v12702_v0 }
0x1250   :  { %8761 = vmatpush2.bf16.msra.mxu0 %v12382_v58  ;;  %v12389_v58 = vld [vmem:[#allocation6 + $0x1208] sm:$0xff]  }
0x1251   :  { %8762 = vmatprep.subr.bf16.mxu0 %v12702_v0 }
0x1254   :  { %8763 = vmatpush2.bf16.msra.mxu0 %v12383_v20  ;;  %v12390_v20 = vld [vmem:[#allocation6 + $0x1240] sm:$0xff]  }
0x1255   :  { %11681 = vmatprep.subr.bf16.mxu0 %v12384_v61 }
0x12bf   :  { %v11653_v19 = vpop.f32.mrf.mxu0 }
0x12c1   :  { %v11654_v10 = vpop.f32.mrf.mxu0 }
0x12c2   :  { %v11655_v9 = vadd.f32 %v11654_v10, %v11653_v19  ;;  %v12394_v19 = vld [vmem:[#allocation6 + $0x1298] sm:$0xff]   ;;  %v12391_v10 = vld [vmem:[#allocation6 + $0x1200] sm:$0xff]  }
0x12c3   :  { %v11656_v55 = vpop.f32.mrf.mxu0 }
0x12c4   :  { %v12392_v55 = vld [vmem:[#allocation6 + $0x1238] sm:$0xff]  }
0x12c5   :  { %v11657_v42 = vpop.f32.mrf.mxu0 }
0x12c6   :  { %v12393_v42 = vld [vmem:[#allocation6 + $0x11f8] sm:$0xff]  }
0x12d7   :  { %v8424_v60 = vpop.f32.mrf.mxu0  ;;  %v8378_v49 = vpop.f32.mrf.mxu1 }
0x12d8   :  { %v8425_v30 = vadd.f32 %v8424_v60, %v12803_v63  ;;  %v8379_v31 = vadd.f32 %v11655_v9, %v8378_v49  ;;  %v12397_v9 = vld [vmem:[#allocation6 + $0x1290] sm:$0xff]  }
0x12d9   :  { %v8426_v3 = vpop.f32.mrf.mxu0  ;;  %v8380_v15 = vpop.f32.mrf.mxu1  ;;  %v12395_v60 = vld [vmem:[#allocation6 + $0x1230] sm:$0xff]  }
0x12da   :  { %v13997_v45 = vadd.f32 %v8379_v31, %v13946_v56  ;;  %v8427_v39 = vadd.f32 %v8426_v3, %v12806_v1  ;;  %v8472_v41 = vmax.f32 %v8425_v30, 0.0  ;;  %v14005_v56 = vld [vmem:[#allocation2 + $0x80] ss:$16 sps:$4 sm:$0xff]   ;;  %v12396_v49 = vld [vmem:[#allocation6 + $0x11f0] sm:$0xff]   ;;  %v12401_v15 = vld [vmem:[#allocation6 + $0x1220] sm:$0xff]  }
0x12db   :  { %v8428_v40 = vpop.f32.mrf.mxu0  ;;  %v8381_v57 = vpop.f32.mrf.mxu1  ;;  %v12398_v30 = vld [vmem:[#allocation6 + $0x1228] sm:$0xff]  }
0x12dc   :  { %v8473_v59 = vmax.f32 %v8427_v39, 0.0  ;;  %v8476_v46 = vpack.c.bf16 %v8472_v41, %v8472_v41  ;;  %v12399_v31 = vld [vmem:[#allocation6 + $0x11e8] sm:$0xff]   ;;  %v12402_v39 = vld [vmem:[#allocation6 + $0x11e0] sm:$0xff]   ;;  %v12404_v40 = vld [vmem:[#allocation6 + $0x1278] sm:$0xff]  }
0x12dd   :  { %v8429_v25 = vpop.f32.mrf.mxu0  ;;  %v8382_v47 = vpop.f32.mrf.mxu1  ;;  %v12400_v3 = vld [vmem:[#allocation6 + $0x1288] sm:$0xff]   ;;  %v12403_v41 = vld [vmem:[#allocation6 + $0x1280] sm:$0xff]   ;;  %v12405_v57 = vld [vmem:[#allocation6 + $0x1270] sm:$0xff]  }
0x12de   :  { %v8477_v44 = vpack.c.bf16 %v8473_v59, %v8473_v59  ;;  %v12406_v59 = vld [vmem:[#allocation6 + $0x1268] sm:$0xff]   ;;  %v12407_v25 = vld [vmem:[#allocation6 + $0x1260] sm:$0xff]  }
0x12df   :  { %v12408_v47 = vld [vmem:[#allocation6 + $0x12a8] sm:$0xff]  }
0x12e0   :  { %8724 = vmatprep.mubr.bf16.mxu1 %v8477_v44  ;;  %v12409_v44 = vld [vmem:[#allocation6 + $0x12a0] sm:$0xff]  }
0x12e1   :  { %8725 = vmatmul.mubr.bf16.vlgmr.msra.gmra.mxu1 %v8476_v46 }
0x12e2   :  { %8783 = vmatpush1.bf16.msra.mxu1 %v12754_v5  ;;  %8810 = vmatprep.mubr.bf16.mxu1 %v12702_v0 }
0x12e3   :  { %8784 = vmatprep.subr.bf16.mxu1 %v14002_v27 }
0x12e6   :  { %8785 = vmatpush1.bf16.msra.mxu1 %v14005_v56 }
0x12e7   :  { %8786 = vmatprep.subr.bf16.mxu1 %v14008_v26 }
0x12ea   :  { %8787 = vmatpush1.bf16.msra.mxu1 %v13793_v23 }
0x12eb   :  { %8788 = vmatprep.subr.bf16.mxu1 %v13796_v14 }
0x12ee   :  { %8789 = vmatpush1.bf16.msra.mxu1 %v13799_v43 }
0x12ef   :  { %v8465_v28 = vpop.f32.mrf.mxu0  ;;  %8790 = vmatprep.subr.bf16.mxu1 %v13802_v52  ;;  %v14023_v52 = vld [vmem:[#allocation2] ss:$16 sps:$4 sm:$0xff]  }
0x12f0   :  { %v8466_v51 = vadd.f32 %v8465_v28, %v12819_v48 }
0x12f1   :  { %v8467_v18 = vpop.f32.mrf.mxu0 }
0x12f2   :  { %v8474_v24 = vmax.f32 %v8466_v51, 0.0  ;;  %v8468_v36 = vadd.f32 %v8467_v18, %v12825_v50  ;;  %8791 = vmatpush1.bf16.msra.mxu1 %v14017_v38 }
0x12f3   :  { %8792 = vmatprep.subr.bf16.mxu1 %v14020_v37  ;;  %v8469_v23 = vpop.f32.mrf.mxu0 }
0x12f4   :  { %v8475_v14 = vmax.f32 %v8468_v36, 0.0  ;;  %v8478_v43 = vpack.c.bf16 %v8474_v24, %v8474_v24 }
0x12f5   :  { %v8470_v13 = vpop.f32.mrf.mxu0 }
0x12f6   :  { %v8479_v54 = vpack.c.bf16 %v8475_v14, %v8475_v14  ;;  %8793 = vmatpush1.bf16.msra.mxu1 %v14023_v52 }
0x12f7   :  { %11071 = vmatprep.subr.msk.bf16.mxu1 %vm231_vm0, %v12758_v16 }
0x12f8   :  { %11067 = vmatprep.mubr.msk.bf16.mxu0 %vm690_vm2, %v8479_v54 }
0x12f9   :  { %11070 = vmatmul.mubr.msk.bf16.vlgmr.msra.gmra.mxu1 %vm227_vm1, %v11068_v4  ;;  %8765 = vmatmul.mubr.bf16.vlgmr.msra.gmra.mxu0 %v8478_v43 }
0x12fa   :  { %8824 = vmatpush1.bf16.msra.mxu1 %v12771_v22  ;;  %8851 = vmatprep.mubr.bf16.mxu1 %v12702_v0 }
0x12fb   :  { %8825 = vmatprep.subr.bf16.mxu1 %v14035_v11  ;;  %11682 = vmatpush3.bf16.msra.mxu0 %v12385_v62 }
0x12fc   :  { %11683 = vmatprep.subr.bf16.mxu0 %v12386_v34 }
0x12fe   :  { %8826 = vmatpush1.bf16.msra.mxu1 %v14038_v12 }
0x12ff   :  { %8827 = vmatprep.subr.bf16.mxu1 %v14041_v32  ;;  %11684 = vmatpush3.bf16.msra.mxu0 %v12387_v17 }
0x1300   :  { %11685 = vmatprep.subr.bf16.mxu0 %v12388_v33 }
0x1302   :  { %8828 = vmatpush1.bf16.msra.mxu1 %v14044_v8 }
0x1303   :  { %8829 = vmatprep.subr.bf16.mxu1 %v14047_v29  ;;  %11686 = vmatpush3.bf16.msra.mxu0 %v12389_v58 }
0x1304   :  { %11687 = vmatprep.subr.bf16.mxu0 %v12390_v20 }
0x1306   :  { %8830 = vmatpush1.bf16.msra.mxu1 %v14050_v35 }
0x1307   :  { %8831 = vmatprep.subr.bf16.mxu1 %v14053_v7  ;;  %11688 = vmatpush3.bf16.msra.mxu0 %v12391_v10 }
0x1308   :  { %11689 = vmatprep.subr.bf16.mxu0 %v12392_v55  ;;  %v14094_v55 = vld [vmem:[#allocation2 + $0x40] ss:$16 sps:$4 sm:$0xff]  }
0x130a   :  { %8832 = vmatpush1.bf16.msra.mxu1 %v14056_v6 }
0x130b   :  { %8833 = vmatprep.subr.bf16.mxu1 %v14059_v21  ;;  %11690 = vmatpush3.bf16.msra.mxu0 %v12393_v42 }
0x130c   :  { %11691 = vmatprep.subr.bf16.mxu0 %v12395_v60  ;;  %v14097_v60 = vld [vmem:[#allocation2 + $0x24] ss:$16 sps:$4 sm:$0xff]  }
0x130e   :  { %8834 = vmatpush1.bf16.msra.mxu1 %v14062_v53 }
0x130f   :  { %9120 = vmatprep.subr.bf16.mxu1 %v12702_v0  ;;  %11692 = vmatpush3.bf16.msra.mxu0 %v12396_v49 }
0x1310   :  { %11693 = vmatprep.subr.bf16.mxu0 %v12398_v30 }
0x1311   :  { %11072 = vmatmul.mubr.msk.bf16.vlgmr.msra.gmra.mxu1 %vm227_vm1, %v11068_v4 }
0x1312   :  { %9121 = vmatpush1.bf16.msra.mxu1 %v12394_v19 }
0x1313   :  { %9122 = vmatprep.subr.bf16.mxu1 %v12702_v0  ;;  %11694 = vmatpush3.bf16.msra.mxu0 %v12399_v31 }
0x1314   :  { %11695 = vmatprep.subr.bf16.mxu0 %v12401_v15 }
0x1316   :  { %9123 = vmatpush1.bf16.msra.mxu1 %v12397_v9  ;;  %v14091_v9 = vld [vmem:[#allocation2 + $0x44] ss:$16 sps:$4 sm:$0xff]  }
0x1317   :  { %9124 = vmatprep.subr.bf16.mxu1 %v12702_v0  ;;  %11696 = vmatpush3.bf16.msra.mxu0 %v12402_v39 }
0x1318   :  { %11101 = vmatprep.subr.msk.bf16.mxu0 %vm231_vm0, %v12747_v2 }
0x131a   :  { %9125 = vmatpush1.bf16.msra.mxu1 %v12400_v3 }
0x131b   :  { %9126 = vmatprep.subr.bf16.mxu1 %v12702_v0 }
0x131e   :  { %9127 = vmatpush1.bf16.msra.mxu1 %v12403_v41 }
0x131f   :  { %9128 = vmatprep.subr.bf16.mxu1 %v12702_v0 }
0x1322   :  { %9129 = vmatpush1.bf16.msra.mxu1 %v12404_v40 }
0x1323   :  { %9130 = vmatprep.subr.bf16.mxu1 %v12702_v0 }
0x1326   :  { %9131 = vmatpush1.bf16.msra.mxu1 %v12405_v57 }
0x1327   :  { %9132 = vmatprep.subr.bf16.mxu1 %v12702_v0 }
0x132a   :  { %9133 = vmatpush1.bf16.msra.mxu1 %v12406_v59  ;;  %v11100_v59 = vld [vmem:[%s14250_s4 + $0x5c] sm:$0xf] }
0x132b   :  { %9134 = vmatprep.subr.bf16.mxu1 %v12702_v0 }
0x132e   :  { %9135 = vmatpush1.bf16.msra.mxu1 %v12407_v25  ;;  %v12410_v25 = vld [vmem:[#allocation6 + $0x1328] sm:$0xff]  }
0x132f   :  { %9148 = vmatprep.subr.bf16.mxu1 %v12702_v0 }
0x1332   :  { %9149 = vmatpush2.bf16.msra.mxu1 %v12408_v47  ;;  %v12411_v47 = vld [vmem:[#allocation6 + $0x12e8] sm:$0xff]  }
0x1333   :  { %9150 = vmatprep.subr.bf16.mxu1 %v12702_v0 }
0x1336   :  { %9151 = vmatpush2.bf16.msra.mxu1 %v12409_v44  ;;  %v12412_v44 = vld [vmem:[#allocation6 + $0x1320] sm:$0xff]  }
0x1337   :  { %11703 = vmatprep.subr.bf16.mxu1 %v12410_v25 }
0x13a1   :  { %v11675_v46 = vpop.f32.mrf.mxu1 }
0x13a3   :  { %v11676_v28 = vpop.f32.mrf.mxu1 }
0x13a4   :  { %v11677_v51 = vadd.f32 %v11676_v28, %v11675_v46  ;;  %v12413_v46 = vld [vmem:[#allocation6 + $0x12e0] sm:$0xff]   ;;  %v12414_v28 = vld [vmem:[#allocation6 + $0x1318] sm:$0xff]  }
0x13a5   :  { %v11678_v18 = vpop.f32.mrf.mxu1 }
0x13a6   :  { %v12416_v18 = vld [vmem:[#allocation6 + $0x1310] sm:$0xff]  }
0x13a7   :  { %v11679_v24 = vpop.f32.mrf.mxu1 }
0x13a8   :  { %v12420_v24 = vld [vmem:[#allocation6 + $0x1368] sm:$0xff]  }
0x13b9   :  { %v8812_v36 = vpop.f32.mrf.mxu1  ;;  %v8766_v23 = vpop.f32.mrf.mxu0 }
0x13ba   :  { %v8813_v14 = vadd.f32 %v8812_v36, %v12803_v63  ;;  %v8767_v43 = vadd.f32 %v11677_v51, %v8766_v23  ;;  %v12415_v51 = vld [vmem:[#allocation6 + $0x12d8] sm:$0xff]   ;;  %v12417_v36 = vld [vmem:[#allocation6 + $0x12d0] sm:$0xff]   ;;  %v12423_v23 = vld [vmem:[#allocation6 + $0x1360] sm:$0xff]  }
0x13bb   :  { %v8814_v13 = vpop.f32.mrf.mxu1  ;;  %v8768_v54 = vpop.f32.mrf.mxu0 }
0x13bc   :  { %v14080_v4 = vadd.f32 %v8767_v43, %v13997_v45  ;;  %v8815_v61 = vadd.f32 %v8814_v13, %v12806_v1  ;;  %v8860_v62 = vmax.f32 %v8813_v14, 0.0  ;;  %v14088_v45 = vld [vmem:[#allocation2 + $0x60] ss:$16 sps:$4 sm:$0xff]   ;;  %v12421_v13 = vld [vmem:[#allocation6 + $0x1300] sm:$0xff]  }
0x13bd   :  { %v8816_v34 = vpop.f32.mrf.mxu1  ;;  %v8769_v17 = vpop.f32.mrf.mxu0  ;;  %v12418_v14 = vld [vmem:[#allocation6 + $0x1308] sm:$0xff]   ;;  %v12422_v54 = vld [vmem:[#allocation6 + $0x12c0] sm:$0xff]  }
0x13be   :  { %v8861_v33 = vmax.f32 %v8815_v61, 0.0  ;;  %v8864_v10 = vpack.c.bf16 %v8860_v62, %v8860_v62  ;;  %v12419_v43 = vld [vmem:[#allocation6 + $0x12c8] sm:$0xff]   ;;  %v12424_v61 = vld [vmem:[#allocation6 + $0x12f8] sm:$0xff]   ;;  %v12427_v17 = vld [vmem:[#allocation6 + $0x12f0] sm:$0xff]  }
0x13bf   :  { %v8817_v58 = vpop.f32.mrf.mxu1  ;;  %v8770_v20 = vpop.f32.mrf.mxu0  ;;  %v12425_v62 = vld [vmem:[#allocation6 + $0x12b8] sm:$0xff]  }
0x13c0   :  { %v8865_v19 = vpack.c.bf16 %v8861_v33, %v8861_v33  ;;  %v12426_v34 = vld [vmem:[#allocation6 + $0x1358] sm:$0xff]   ;;  %v12428_v33 = vld [vmem:[#allocation6 + $0x12b0] sm:$0xff]   ;;  %v12430_v20 = vld [vmem:[#allocation6 + $0x1348] sm:$0xff]  }
0x13c1   :  { %v12429_v58 = vld [vmem:[#allocation6 + $0x1350] sm:$0xff]  }
0x13c2   :  { %9112 = vmatprep.mubr.bf16.mxu0 %v8865_v19  ;;  %v12431_v19 = vld [vmem:[#allocation6 + $0x1340] sm:$0xff]  }
0x13c3   :  { %9113 = vmatmul.mubr.bf16.vlgmr.msra.gmra.mxu0 %v8864_v10  ;;  %v12432_v10 = vld [vmem:[#allocation6 + $0x1338] sm:$0xff]  }
0x13c4   :  { %9171 = vmatpush1.bf16.msra.mxu0 %v12754_v5  ;;  %9198 = vmatprep.mubr.bf16.mxu0 %v12702_v0 }
0x13c5   :  { %9172 = vmatprep.subr.bf16.mxu0 %v14002_v27 }
0x13c8   :  { %9173 = vmatpush1.bf16.msra.mxu0 %v14005_v56 }
0x13c9   :  { %9174 = vmatprep.subr.bf16.mxu0 %v14008_v26 }
0x13cc   :  { %9175 = vmatpush1.bf16.msra.mxu0 %v14088_v45 }
0x13cd   :  { %9176 = vmatprep.subr.bf16.mxu0 %v14091_v9 }
0x13d0   :  { %9177 = vmatpush1.bf16.msra.mxu0 %v14094_v55 }
0x13d1   :  { %v8853_v42 = vpop.f32.mrf.mxu1  ;;  %9178 = vmatprep.subr.bf16.mxu0 %v14097_v60 }
0x13d2   :  { %v8854_v49 = vadd.f32 %v8853_v42, %v12819_v48  ;;  %v12433_v42 = vld [vmem:[#allocation6 + $0x1330] sm:$0xff]  }
0x13d3   :  { %v8855_v30 = vpop.f32.mrf.mxu1 }
0x13d4   :  { %v8862_v31 = vmax.f32 %v8854_v49, 0.0  ;;  %v8856_v3 = vadd.f32 %v8855_v30, %v12825_v50  ;;  %9179 = vmatpush1.bf16.msra.mxu0 %v14017_v38  ;;  %v12434_v49 = vld [vmem:[#allocation6 + $0x1378] sm:$0xff]   ;;  %v12435_v30 = vld [vmem:[#allocation6 + $0x1370] sm:$0xff]  }
0x13d5   :  { %9180 = vmatprep.subr.bf16.mxu0 %v14020_v37  ;;  %v8857_v15 = vpop.f32.mrf.mxu1 }
0x13d6   :  { %v8863_v39 = vmax.f32 %v8856_v3, 0.0  ;;  %v8866_v41 = vpack.c.bf16 %v8862_v31, %v8862_v31 }
0x13d7   :  { %v8858_v40 = vpop.f32.mrf.mxu1 }
0x13d8   :  { %v8867_v57 = vpack.c.bf16 %v8863_v39, %v8863_v39  ;;  %9181 = vmatpush1.bf16.msra.mxu0 %v14023_v52 }
0x13d9   :  { %11103 = vmatprep.subr.msk.bf16.mxu0 %vm231_vm0, %v12758_v16 }
0x13da   :  { %11099 = vmatprep.mubr.msk.bf16.mxu1 %vm690_vm2, %v8867_v57 }
0x13db   :  { %11102 = vmatmul.mubr.msk.bf16.vlgmr.msra.gmra.mxu0 %vm227_vm1, %v11100_v59  ;;  %9153 = vmatmul.mubr.bf16.vlgmr.msra.gmra.mxu1 %v8866_v41 }
0x13dc   :  { %9212 = vmatpush1.bf16.msra.mxu0 %v12771_v22  ;;  %9239 = vmatprep.mubr.bf16.mxu0 %v12702_v0 }
0x13dd   :  { %9213 = vmatprep.subr.bf16.mxu0 %v14035_v11  ;;  %11704 = vmatpush3.bf16.msra.mxu1 %v12411_v47 }
0x13de   :  { %11705 = vmatprep.subr.bf16.mxu1 %v12412_v44 }
0x13e0   :  { %9214 = vmatpush1.bf16.msra.mxu0 %v14038_v12 }
0x13e1   :  { %9215 = vmatprep.subr.bf16.mxu0 %v14041_v32  ;;  %11706 = vmatpush3.bf16.msra.mxu1 %v12413_v46 }
0x13e2   :  { %11707 = vmatprep.subr.bf16.mxu1 %v12414_v28 }
0x13e4   :  { %9216 = vmatpush1.bf16.msra.mxu0 %v14044_v8 }
0x13e5   :  { %9217 = vmatprep.subr.bf16.mxu0 %v14047_v29  ;;  %11708 = vmatpush3.bf16.msra.mxu1 %v12415_v51 }
0x13e6   :  { %11709 = vmatprep.subr.bf16.mxu1 %v12416_v18 }
0x13e8   :  { %9218 = vmatpush1.bf16.msra.mxu0 %v14050_v35 }
0x13e9   :  { %9219 = vmatprep.subr.bf16.mxu0 %v14053_v7  ;;  %11710 = vmatpush3.bf16.msra.mxu1 %v12417_v36 }
0x13ea   :  { %11711 = vmatprep.subr.bf16.mxu1 %v12418_v14 }
0x13ec   :  { %9220 = vmatpush1.bf16.msra.mxu0 %v14056_v6 }
0x13ed   :  { %9221 = vmatprep.subr.bf16.mxu0 %v14059_v21  ;;  %11712 = vmatpush3.bf16.msra.mxu1 %v12419_v43 }
0x13ee   :  { %11713 = vmatprep.subr.bf16.mxu1 %v12421_v13 }
0x13f0   :  { %9222 = vmatpush1.bf16.msra.mxu0 %v14062_v53 }
0x13f1   :  { %9508 = vmatprep.subr.bf16.mxu0 %v12702_v0  ;;  %11714 = vmatpush3.bf16.msra.mxu1 %v12422_v54 }
0x13f2   :  { %11715 = vmatprep.subr.bf16.mxu1 %v12424_v61 }
0x13f3   :  { %11104 = vmatmul.mubr.msk.bf16.vlgmr.msra.gmra.mxu0 %vm227_vm1, %v11100_v59 }
0x13f4   :  { %9509 = vmatpush1.bf16.msra.mxu0 %v12420_v24 }
0x13f5   :  { %9510 = vmatprep.subr.bf16.mxu0 %v12702_v0  ;;  %11716 = vmatpush3.bf16.msra.mxu1 %v12425_v62 }
0x13f6   :  { %11717 = vmatprep.subr.bf16.mxu1 %v12427_v17 }
0x13f8   :  { %9511 = vmatpush1.bf16.msra.mxu0 %v12423_v23 }
0x13f9   :  { %9512 = vmatprep.subr.bf16.mxu0 %v12702_v0  ;;  %11718 = vmatpush3.bf16.msra.mxu1 %v12428_v33 }
0x13fa   :  { %11133 = vmatprep.subr.msk.bf16.mxu1 %vm231_vm0, %v12747_v2 }
0x13fc   :  { %9513 = vmatpush1.bf16.msra.mxu0 %v12426_v34 }
0x13fd   :  { %9514 = vmatprep.subr.bf16.mxu0 %v12702_v0 }
0x1400   :  { %9515 = vmatpush1.bf16.msra.mxu0 %v12429_v58 }
0x1401   :  { %9516 = vmatprep.subr.bf16.mxu0 %v12702_v0 }
0x1404   :  { %9517 = vmatpush1.bf16.msra.mxu0 %v12430_v20 }
0x1405   :  { %9518 = vmatprep.subr.bf16.mxu0 %v12702_v0 }
0x1408   :  { %9519 = vmatpush1.bf16.msra.mxu0 %v12431_v19 }
0x1409   :  { %9520 = vmatprep.subr.bf16.mxu0 %v12702_v0 }
0x140c   :  { %9521 = vmatpush1.bf16.msra.mxu0 %v12432_v10  ;;  %v11132_v10 = vld [vmem:[%s14250_s4 + $0x60] sm:$0xf] }
0x140d   :  { %9522 = vmatprep.subr.bf16.mxu0 %v12702_v0 }
0x1410   :  { %9523 = vmatpush1.bf16.msra.mxu0 %v12433_v42  ;;  %v12436_v42 = vld [vmem:[#allocation6 + $0x13f8] sm:$0xff]  }
0x1411   :  { %9536 = vmatprep.subr.bf16.mxu0 %v12702_v0 }
0x1414   :  { %9537 = vmatpush2.bf16.msra.mxu0 %v12434_v49  ;;  %v12437_v49 = vld [vmem:[#allocation6 + $0x13b8] sm:$0xff]  }
0x1415   :  { %9538 = vmatprep.subr.bf16.mxu0 %v12702_v0 }
0x1418   :  { %9539 = vmatpush2.bf16.msra.mxu0 %v12435_v30  ;;  %v12438_v30 = vld [vmem:[#allocation6 + $0x13f0] sm:$0xff]  }
0x1419   :  { %11725 = vmatprep.subr.bf16.mxu0 %v12436_v42 }
0x1483   :  { %v11697_v31 = vpop.f32.mrf.mxu0 }
0x1485   :  { %v11698_v3 = vpop.f32.mrf.mxu0 }
0x1486   :  { %v11699_v15 = vadd.f32 %v11698_v3, %v11697_v31  ;;  %v12439_v31 = vld [vmem:[#allocation6 + $0x13b0] sm:$0xff]   ;;  %v12440_v3 = vld [vmem:[#allocation6 + $0x13e8] sm:$0xff]  }
0x1487   :  { %v11700_v39 = vpop.f32.mrf.mxu0 }
0x1488   :  { %v12442_v39 = vld [vmem:[#allocation6 + $0x13e0] sm:$0xff]  }
0x1489   :  { %v11701_v41 = vpop.f32.mrf.mxu0 }
0x148a   :  { %v12446_v41 = vld [vmem:[#allocation6 + $0x1438] sm:$0xff]  }
0x149b   :  { %v9200_v40 = vpop.f32.mrf.mxu0  ;;  %v9154_v57 = vpop.f32.mrf.mxu1 }
0x149c   :  { %v9201_v59 = vadd.f32 %v9200_v40, %v12803_v63  ;;  %v9155_v25 = vadd.f32 %v11699_v15, %v9154_v57  ;;  %v12441_v15 = vld [vmem:[#allocation6 + $0x13a8] sm:$0xff]   ;;  %v12443_v40 = vld [vmem:[#allocation6 + $0x13a0] sm:$0xff]   ;;  %v12449_v57 = vld [vmem:[#allocation6 + $0x1430] sm:$0xff]  }
0x149d   :  { %v9202_v47 = vpop.f32.mrf.mxu0  ;;  %v9156_v44 = vpop.f32.mrf.mxu1 }
0x149e   :  { %v14139_v46 = vadd.f32 %v9155_v25, %v14080_v4  ;;  %v9203_v28 = vadd.f32 %v9202_v47, %v12806_v1  ;;  %v9248_v51 = vmax.f32 %v9201_v59, 0.0  ;;  %v12444_v59 = vld [vmem:[#allocation6 + $0x13d8] sm:$0xff]   ;;  %v12447_v47 = vld [vmem:[#allocation6 + $0x13d0] sm:$0xff]  }
0x149f   :  { %v9204_v18 = vpop.f32.mrf.mxu0  ;;  %v9157_v24 = vpop.f32.mrf.mxu1  ;;  %v12445_v25 = vld [vmem:[#allocation6 + $0x1398] sm:$0xff]   ;;  %v12448_v44 = vld [vmem:[#allocation6 + $0x1390] sm:$0xff]  }
0x14a0   :  { %v9249_v36 = vmax.f32 %v9203_v28, 0.0  ;;  %v9252_v13 = vpack.c.bf16 %v9248_v51, %v9248_v51  ;;  %v12450_v28 = vld [vmem:[#allocation6 + $0x13c8] sm:$0xff]   ;;  %v12453_v24 = vld [vmem:[#allocation6 + $0x13c0] sm:$0xff]  }
0x14a1   :  { %v9205_v23 = vpop.f32.mrf.mxu0  ;;  %v9158_v14 = vpop.f32.mrf.mxu1  ;;  %v12451_v51 = vld [vmem:[#allocation6 + $0x1388] sm:$0xff]  }
0x14a2   :  { %v9253_v43 = vpack.c.bf16 %v9249_v36, %v9249_v36  ;;  %v12452_v18 = vld [vmem:[#allocation6 + $0x1428] sm:$0xff]   ;;  %v12454_v36 = vld [vmem:[#allocation6 + $0x1380] sm:$0xff]   ;;  %v12456_v14 = vld [vmem:[#allocation6 + $0x1418] sm:$0xff]  }
0x14a3   :  { %v12455_v23 = vld [vmem:[#allocation6 + $0x1420] sm:$0xff]  }
0x14a4   :  { %9500 = vmatprep.mubr.bf16.mxu1 %v9253_v43  ;;  %v12457_v43 = vld [vmem:[#allocation6 + $0x1410] sm:$0xff]  }
0x14a5   :  { %9501 = vmatmul.mubr.bf16.vlgmr.msra.gmra.mxu1 %v9252_v13  ;;  %v12458_v13 = vld [vmem:[#allocation6 + $0x1408] sm:$0xff]  }
0x14a6   :  { %9559 = vmatpush1.bf16.msra.mxu1 %v12754_v5  ;;  %9586 = vmatprep.mubr.bf16.mxu1 %v12702_v0 }
0x14a7   :  { %9560 = vmatprep.subr.bf16.mxu1 %v14002_v27 }
0x14aa   :  { %9561 = vmatpush1.bf16.msra.mxu1 %v14005_v56 }
0x14ab   :  { %9562 = vmatprep.subr.bf16.mxu1 %v14008_v26 }
0x14ae   :  { %9563 = vmatpush1.bf16.msra.mxu1 %v14088_v45 }
0x14af   :  { %9564 = vmatprep.subr.bf16.mxu1 %v14091_v9 }
0x14b2   :  { %9565 = vmatpush1.bf16.msra.mxu1 %v14094_v55 }
0x14b3   :  { %v9241_v4 = vpop.f32.mrf.mxu0  ;;  %9566 = vmatprep.subr.bf16.mxu1 %v14097_v60 }
0x14b4   :  { %v9242_v54 = vadd.f32 %v9241_v4, %v12819_v48  ;;  %v12459_v4 = vld [vmem:[#allocation6 + $0x1400] sm:$0xff]  }
0x14b5   :  { %v9243_v61 = vpop.f32.mrf.mxu0 }
0x14b6   :  { %v9250_v62 = vmax.f32 %v9242_v54, 0.0  ;;  %v9244_v34 = vadd.f32 %v9243_v61, %v12825_v50  ;;  %9567 = vmatpush1.bf16.msra.mxu1 %v14017_v38  ;;  %v12460_v54 = vld [vmem:[#allocation6 + $0x1448] sm:$0xff]  }
0x14b7   :  { %9568 = vmatprep.subr.bf16.mxu1 %v14020_v37  ;;  %v9245_v17 = vpop.f32.mrf.mxu0 }
0x14b8   :  { %v9251_v33 = vmax.f32 %v9244_v34, 0.0  ;;  %v9254_v58 = vpack.c.bf16 %v9250_v62, %v9250_v62 }
0x14b9   :  { %v9246_v20 = vpop.f32.mrf.mxu0 }
0x14ba   :  { %v9255_v19 = vpack.c.bf16 %v9251_v33, %v9251_v33  ;;  %9569 = vmatpush1.bf16.msra.mxu1 %v14023_v52 }
0x14bb   :  { %11135 = vmatprep.subr.msk.bf16.mxu1 %vm231_vm0, %v12758_v16 }
0x14bc   :  { %11131 = vmatprep.mubr.msk.bf16.mxu0 %vm690_vm2, %v9255_v19 }
0x14bd   :  { %11134 = vmatmul.mubr.msk.bf16.vlgmr.msra.gmra.mxu1 %vm227_vm1, %v11132_v10  ;;  %9541 = vmatmul.mubr.bf16.vlgmr.msra.gmra.mxu0 %v9254_v58 }
0x14be   :  { %9600 = vmatpush1.bf16.msra.mxu1 %v12771_v22  ;;  %9627 = vmatprep.mubr.bf16.mxu1 %v12702_v0 }
0x14bf   :  { %9601 = vmatprep.subr.bf16.mxu1 %v14035_v11  ;;  %11726 = vmatpush3.bf16.msra.mxu0 %v12437_v49 }
0x14c0   :  { %11727 = vmatprep.subr.bf16.mxu0 %v12438_v30 }
0x14c2   :  { %9602 = vmatpush1.bf16.msra.mxu1 %v14038_v12 }
0x14c3   :  { %9603 = vmatprep.subr.bf16.mxu1 %v14041_v32  ;;  %11728 = vmatpush3.bf16.msra.mxu0 %v12439_v31 }
0x14c4   :  { %11729 = vmatprep.subr.bf16.mxu0 %v12440_v3 }
0x14c6   :  { %9604 = vmatpush1.bf16.msra.mxu1 %v14044_v8 }
0x14c7   :  { %9605 = vmatprep.subr.bf16.mxu1 %v14047_v29  ;;  %11730 = vmatpush3.bf16.msra.mxu0 %v12441_v15 }
0x14c8   :  { %11731 = vmatprep.subr.bf16.mxu0 %v12442_v39 }
0x14ca   :  { %9606 = vmatpush1.bf16.msra.mxu1 %v14050_v35 }
0x14cb   :  { %9607 = vmatprep.subr.bf16.mxu1 %v14053_v7  ;;  %11732 = vmatpush3.bf16.msra.mxu0 %v12443_v40 }
0x14cc   :  { %11733 = vmatprep.subr.bf16.mxu0 %v12444_v59 }
0x14ce   :  { %9608 = vmatpush1.bf16.msra.mxu1 %v14056_v6 }
0x14cf   :  { %9609 = vmatprep.subr.bf16.mxu1 %v14059_v21  ;;  %11734 = vmatpush3.bf16.msra.mxu0 %v12445_v25 }
0x14d0   :  { %11735 = vmatprep.subr.bf16.mxu0 %v12447_v47 }
0x14d2   :  { %9610 = vmatpush1.bf16.msra.mxu1 %v14062_v53 }
0x14d3   :  { %9896 = vmatprep.subr.bf16.mxu1 %v12702_v0  ;;  %11736 = vmatpush3.bf16.msra.mxu0 %v12448_v44 }
0x14d4   :  { %11737 = vmatprep.subr.bf16.mxu0 %v12450_v28 }
0x14d5   :  { %11136 = vmatmul.mubr.msk.bf16.vlgmr.msra.gmra.mxu1 %vm227_vm1, %v11132_v10 }
0x14d6   :  { %9897 = vmatpush1.bf16.msra.mxu1 %v12446_v41 }
0x14d7   :  { %9898 = vmatprep.subr.bf16.mxu1 %v12702_v0  ;;  %11738 = vmatpush3.bf16.msra.mxu0 %v12451_v51  ;;  %v12478_v51 = vld [vmem:[#allocation6 + $0x14f8] sm:$0xff]  }
0x14d8   :  { %11739 = vmatprep.subr.bf16.mxu0 %v12453_v24  ;;  %v12480_v24 = vld [vmem:[#allocation6 + $0x1450] sm:$0xff]  }
0x14da   :  { %9899 = vmatpush1.bf16.msra.mxu1 %v12449_v57 }
0x14db   :  { %9900 = vmatprep.subr.bf16.mxu1 %v12702_v0  ;;  %11740 = vmatpush3.bf16.msra.mxu0 %v12454_v36  ;;  %v12481_v36 = vld [vmem:[#allocation6 + $0x14f0] sm:$0xff]  }
0x14dc   :  { %11165 = vmatprep.subr.msk.bf16.mxu0 %vm231_vm0, %v12747_v2  ;;  %v12461_v2 = vld [vmem:[#allocation6 + $0x1440] sm:$0xff]  }
0x14de   :  { %9901 = vmatpush1.bf16.msra.mxu1 %v12452_v18  ;;  %v12479_v18 = vld [vmem:[#allocation6 + $0x1490] sm:$0xff]  }
0x14df   :  { %9902 = vmatprep.subr.bf16.mxu1 %v12702_v0 }
0x14e2   :  { %9903 = vmatpush1.bf16.msra.mxu1 %v12455_v23  ;;  %v12482_v23 = vld [vmem:[#allocation6 + $0x14e8] sm:$0xff]  }
0x14e3   :  { %9904 = vmatprep.subr.bf16.mxu1 %v12702_v0 }
0x14e6   :  { %9905 = vmatpush1.bf16.msra.mxu1 %v12456_v14  ;;  %v12483_v14 = vld [vmem:[#allocation6 + $0x14e0] sm:$0xff]  }
0x14e7   :  { %9906 = vmatprep.subr.bf16.mxu1 %v12702_v0 }
0x14ea   :  { %9907 = vmatpush1.bf16.msra.mxu1 %v12457_v43  ;;  %v12484_v43 = vld [vmem:[#allocation6 + $0x14d8] sm:$0xff]  }
0x14eb   :  { %9908 = vmatprep.subr.bf16.mxu1 %v12702_v0 }
0x14ee   :  { %9909 = vmatpush1.bf16.msra.mxu1 %v12458_v13  ;;  %v12485_v13 = vld [vmem:[#allocation6 + $0x14d0] sm:$0xff]  }
0x14ef   :  { %9910 = vmatprep.subr.bf16.mxu1 %v12702_v0 }
0x14f2   :  { %9911 = vmatpush1.bf16.msra.mxu1 %v12459_v4  ;;  %v12486_v4 = vld [vmem:[#allocation6 + $0x1518] sm:$0xff]  }
0x14f3   :  { %9924 = vmatprep.subr.bf16.mxu1 %v12702_v0 }
0x14f6   :  { %9925 = vmatpush2.bf16.msra.mxu1 %v12460_v54  ;;  %v12487_v54 = vld [vmem:[#allocation6 + $0x1510] sm:$0xff]  }
0x14f7   :  { %9926 = vmatprep.subr.bf16.mxu1 %v12702_v0 }
0x14fa   :  { %9927 = vmatpush2.bf16.msra.mxu1 %v12461_v2 }
0x1565   :  { %v11719_v61 = vpop.f32.mrf.mxu1 }
0x1567   :  { %v11720_v62 = vpop.f32.mrf.mxu1 }
0x1568   :  { %v11721_v34 = vadd.f32 %v11720_v62, %v11719_v61 }
0x1569   :  { %v11722_v17 = vpop.f32.mrf.mxu1 }
0x156b   :  { %v11723_v33 = vpop.f32.mrf.mxu1 }
0x157d   :  { %v9588_v58 = vpop.f32.mrf.mxu1  ;;  %v9542_v20 = vpop.f32.mrf.mxu0 }
0x157e   :  { %v9589_v19 = vadd.f32 %v9588_v58, %v12803_v63  ;;  %v9543_v10 = vadd.f32 %v11721_v34, %v9542_v20 }
0x157f   :  { %v9590_v42 = vpop.f32.mrf.mxu1  ;;  %v9544_v49 = vpop.f32.mrf.mxu0 }
0x1580   :  { %v14190_v30 = vadd.f32 %v9543_v10, %v14139_v46  ;;  %v9591_v31 = vadd.f32 %v9590_v42, %v12806_v1  ;;  %v9636_v3 = vmax.f32 %v9589_v19, 0.0 }
0x1581   :  { %v9592_v15 = vpop.f32.mrf.mxu1  ;;  %v9545_v39 = vpop.f32.mrf.mxu0 }
0x1582   :  { %v9637_v41 = vmax.f32 %v9591_v31, 0.0  ;;  %v9640_v25 = vpack.c.bf16 %v9636_v3, %v9636_v3 }
0x1583   :  { %v9593_v40 = vpop.f32.mrf.mxu1  ;;  %v9546_v57 = vpop.f32.mrf.mxu0 }
0x1584   :  { %v9641_v59 = vpack.c.bf16 %v9637_v41, %v9637_v41 }
0x1586   :  { %9888 = vmatprep.mubr.bf16.mxu0 %v9641_v59 }
0x1587   :  { %9889 = vmatmul.mubr.bf16.vlgmr.msra.gmra.mxu0 %v9640_v25 }
0x1588   :  { %9947 = vmatpush1.bf16.msra.mxu0 %v12754_v5  ;;  %9974 = vmatprep.mubr.bf16.mxu0 %v12702_v0 }
0x1589   :  { %9948 = vmatprep.subr.bf16.mxu0 %v14002_v27 }
0x158c   :  { %9949 = vmatpush1.bf16.msra.mxu0 %v14005_v56 }
0x158d   :  { %9950 = vmatprep.subr.bf16.mxu0 %v14008_v26 }
0x1590   :  { %9951 = vmatpush1.bf16.msra.mxu0 %v14088_v45 }
0x1591   :  { %9952 = vmatprep.subr.bf16.mxu0 %v14091_v9 }
0x1594   :  { %9953 = vmatpush1.bf16.msra.mxu0 %v14094_v55  ;;  %v11164_v55 = vld [vmem:[%s14250_s4 + $0x64] sm:$0xf] }
0x1595   :  { %v9629_v46 = vpop.f32.mrf.mxu1  ;;  %9954 = vmatprep.subr.bf16.mxu0 %v14097_v60  ;;  %v12477_v60 = vld [vmem:[#allocation6 + $0x1458] sm:$0xff]  }
0x1596   :  { %v9630_v47 = vadd.f32 %v9629_v46, %v12819_v48 }
0x1597   :  { %v9631_v5 = vpop.f32.mrf.mxu1 }
0x1598   :  { %v9638_v44 = vmax.f32 %v9630_v47, 0.0  ;;  %v9632_v28 = vadd.f32 %v9631_v5, %v12825_v50  ;;  %9955 = vmatpush1.bf16.msra.mxu0 %v14017_v38  ;;  %v12464_v38 = vld [vmem:[#allocation6 + $0x14c0] sm:$0xff]  }
0x1599   :  { %9956 = vmatprep.subr.bf16.mxu0 %v14020_v37  ;;  %v9633_v27 = vpop.f32.mrf.mxu1  ;;  %v12465_v37 = vld [vmem:[#allocation6 + $0x1480] sm:$0xff]  }
0x159a   :  { %v9639_v56 = vmax.f32 %v9632_v28, 0.0  ;;  %v9642_v26 = vpack.c.bf16 %v9638_v44, %v9638_v44 }
0x159b   :  { %v9634_v45 = vpop.f32.mrf.mxu1 }
0x159c   :  { %v9643_v9 = vpack.c.bf16 %v9639_v56, %v9639_v56  ;;  %9957 = vmatpush1.bf16.msra.mxu0 %v14023_v52  ;;  %v12466_v52 = vld [vmem:[#allocation6 + $0x14b8] sm:$0xff]  }
0x159d   :  { %11167 = vmatprep.subr.msk.bf16.mxu0 %vm231_vm0, %v12758_v16  ;;  %v12462_v16 = vld [vmem:[#allocation6 + $0x14c8] sm:$0xff]  }
0x159e   :  { %11163 = vmatprep.mubr.msk.bf16.mxu1 %vm690_vm2, %v9643_v9  ;;  %11747 = vmatprep.subr.bf16.mxu1 %v12462_v16 }
0x159f   :  { %11166 = vmatmul.mubr.msk.bf16.vlgmr.msra.gmra.mxu0 %vm227_vm1, %v11164_v55  ;;  %9929 = vmatmul.mubr.bf16.vlgmr.msra.gmra.mxu1 %v9642_v26 }
0x15a0   :  { %9988 = vmatpush1.bf16.msra.mxu0 %v12771_v22  ;;  %10015 = vmatprep.mubr.bf16.mxu0 %v12702_v0  ;;  %v12463_v22 = vld [vmem:[#allocation6 + $0x1488] sm:$0xff]  }
0x15a1   :  { %9989 = vmatprep.subr.bf16.mxu0 %v14035_v11  ;;  %11748 = vmatpush3.bf16.msra.mxu1 %v12463_v22  ;;  %v12467_v11 = vld [vmem:[#allocation6 + $0x1478] sm:$0xff]  }
0x15a2   :  { %11749 = vmatprep.subr.bf16.mxu1 %v12464_v38 }
0x15a4   :  { %9990 = vmatpush1.bf16.msra.mxu0 %v14038_v12  ;;  %v12468_v12 = vld [vmem:[#allocation6 + $0x14b0] sm:$0xff]  }
0x15a5   :  { %9991 = vmatprep.subr.bf16.mxu0 %v14041_v32  ;;  %11750 = vmatpush3.bf16.msra.mxu1 %v12465_v37  ;;  %v12472_v32 = vld [vmem:[#allocation6 + $0x1508] sm:$0xff]  }
0x15a6   :  { %11751 = vmatprep.subr.bf16.mxu1 %v12466_v52 }
0x15a8   :  { %9992 = vmatpush1.bf16.msra.mxu0 %v14044_v8  ;;  %v12475_v8 = vld [vmem:[#allocation6 + $0x1500] sm:$0xff]  }
0x15a9   :  { %9993 = vmatprep.subr.bf16.mxu0 %v14047_v29  ;;  %11752 = vmatpush3.bf16.msra.mxu1 %v12467_v11  ;;  %v12469_v29 = vld [vmem:[#allocation6 + $0x1470] sm:$0xff]  }
0x15aa   :  { %11753 = vmatprep.subr.bf16.mxu1 %v12468_v12 }
0x15ac   :  { %9994 = vmatpush1.bf16.msra.mxu0 %v14050_v35  ;;  %v12470_v35 = vld [vmem:[#allocation6 + $0x14a8] sm:$0xff]  }
0x15ad   :  { %9995 = vmatprep.subr.bf16.mxu0 %v14053_v7  ;;  %11754 = vmatpush3.bf16.msra.mxu1 %v12469_v29  ;;  %v12471_v7 = vld [vmem:[#allocation6 + $0x1468] sm:$0xff]  }
0x15ae   :  { %11755 = vmatprep.subr.bf16.mxu1 %v12470_v35 }
0x15b0   :  { %9996 = vmatpush1.bf16.msra.mxu0 %v14056_v6  ;;  %v12473_v6 = vld [vmem:[#allocation6 + $0x14a0] sm:$0xff]  }
0x15b1   :  { %9997 = vmatprep.subr.bf16.mxu0 %v14059_v21  ;;  %11756 = vmatpush3.bf16.msra.mxu1 %v12471_v7  ;;  %v12474_v21 = vld [vmem:[#allocation6 + $0x1460] sm:$0xff]  }
0x15b2   :  { %11757 = vmatprep.subr.bf16.mxu1 %v12473_v6 }
0x15b4   :  { %9998 = vmatpush1.bf16.msra.mxu0 %v14062_v53  ;;  %v12476_v53 = vld [vmem:[#allocation6 + $0x1498] sm:$0xff]  }
0x15b5   :  { %10284 = vmatprep.subr.bf16.mxu0 %v12702_v0  ;;  %11758 = vmatpush3.bf16.msra.mxu1 %v12474_v21 }
0x15b6   :  { %11759 = vmatprep.subr.bf16.mxu1 %v12476_v53 }
0x15b7   :  { %11168 = vmatmul.mubr.msk.bf16.vlgmr.msra.gmra.mxu0 %vm227_vm1, %v11164_v55 }
0x15b8   :  { %10285 = vmatpush1.bf16.msra.mxu0 %v12472_v32 }
0x15b9   :  { %10286 = vmatprep.subr.bf16.mxu0 %v12702_v0  ;;  %11760 = vmatpush3.bf16.msra.mxu1 %v12477_v60 }
0x15ba   :  { %11761 = vmatprep.subr.bf16.mxu1 %v12479_v18 }
0x15bc   :  { %10287 = vmatpush1.bf16.msra.mxu0 %v12475_v8 }
0x15bd   :  { %10288 = vmatprep.subr.bf16.mxu0 %v12702_v0  ;;  %11762 = vmatpush3.bf16.msra.mxu1 %v12480_v24 }
0x15c0   :  { %10289 = vmatpush1.bf16.msra.mxu0 %v12478_v51 }
0x15c1   :  { %10290 = vmatprep.subr.bf16.mxu0 %v12702_v0 }
0x15c4   :  { %10291 = vmatpush1.bf16.msra.mxu0 %v12481_v36 }
0x15c5   :  { %10292 = vmatprep.subr.bf16.mxu0 %v12702_v0 }
0x15c8   :  { %10293 = vmatpush1.bf16.msra.mxu0 %v12482_v23 }
0x15c9   :  { %10294 = vmatprep.subr.bf16.mxu0 %v12702_v0 }
0x15cc   :  { %10295 = vmatpush1.bf16.msra.mxu0 %v12483_v14 }
0x15cd   :  { %10296 = vmatprep.subr.bf16.mxu0 %v12702_v0 }
0x15d0   :  { %10297 = vmatpush1.bf16.msra.mxu0 %v12484_v43 }
0x15d1   :  { %10298 = vmatprep.subr.bf16.mxu0 %v12702_v0 }
0x15d4   :  { %10299 = vmatpush1.bf16.msra.mxu0 %v12485_v13 }
0x15d5   :  { %10312 = vmatprep.subr.bf16.mxu0 %v12702_v0 }
0x15d8   :  { %10313 = vmatpush2.bf16.msra.mxu0 %v12486_v4 }
0x15d9   :  { %10314 = vmatprep.subr.bf16.mxu0 %v12702_v0 }
0x15dc   :  { %10315 = vmatpush2.bf16.msra.mxu0 %v12487_v54 }
0x1647   :  { %v11741_v2 = vpop.f32.mrf.mxu0 }
0x1649   :  { %v11742_v61 = vpop.f32.mrf.mxu0 }
0x164a   :  { %v11743_v62 = vadd.f32 %v11742_v61, %v11741_v2 }
0x164b   :  { %v11744_v34 = vpop.f32.mrf.mxu0 }
0x164d   :  { %v11745_v17 = vpop.f32.mrf.mxu0 }
0x165f   :  { %v9976_v33 = vpop.f32.mrf.mxu0  ;;  %v9930_v58 = vpop.f32.mrf.mxu1 }
0x1660   :  { %v9977_v20 = vadd.f32 %v9976_v33, %v12803_v63  ;;  %v9931_v19 = vadd.f32 %v11743_v62, %v9930_v58 }
0x1661   :  { %v9978_v10 = vpop.f32.mrf.mxu0  ;;  %v9932_v42 = vpop.f32.mrf.mxu1 }
0x1662   :  { %v9936_v49 = vadd.f32 %v9931_v19, %v14190_v30  ;;  %v9979_v31 = vadd.f32 %v9978_v10, %v12806_v1  ;;  %v10024_v3 = vmax.f32 %v9977_v20, 0.0 }
0x1663   :  { %v9980_v0 = vpop.f32.mrf.mxu0  ;;  %v9933_v15 = vpop.f32.mrf.mxu1 }
0x1664   :  { %v10025_v39 = vmax.f32 %v9979_v31, 0.0  ;;  %v10028_v59 = vpack.c.bf16 %v10024_v3, %v10024_v3 }
0x1665   :  { %v9981_v41 = vpop.f32.mrf.mxu0  ;;  %v9934_v40 = vpop.f32.mrf.mxu1 }
0x1666   :  { %v10029_v57 = vpack.c.bf16 %v10025_v39, %v10025_v39 }
0x1668   :  { %10276 = vmatprep.mubr.bf16.mxu1 %v10029_v57 }
0x1669   :  { %10277 = vmatmul.mubr.bf16.vlgmr.msra.gmra.mxu1 %v10028_v59 }
0x1677   :  { %v10017_v25 = vpop.f32.mrf.mxu0 }
0x1678   :  { %v10018_v63 = vadd.f32 %v10017_v25, %v12819_v48  ;;  %v11196_v48 = vld [vmem:[#allocation7] ss:$0 sm:$0xff] }
0x1679   :  { %v10019_v46 = vpop.f32.mrf.mxu0 }
0x167a   :  { %v10020_v47 = vadd.f32 %v10019_v46, %v12825_v50  ;;  %v10026_v5 = vmax.f32 %v10018_v63, 0.0 }
0x167b   :  { %v10021_v30 = vpop.f32.mrf.mxu0 }
0x167c   :  { %v10027_v44 = vmax.f32 %v10020_v47, 0.0  ;;  %v10030_v27 = vpack.c.bf16 %v10026_v5, %v10026_v5 }
0x167d   :  { %v10022_v1 = vpop.f32.mrf.mxu0 }
0x167e   :  { %v10031_v28 = vpack.c.bf16 %v10027_v44, %v10027_v44 }
0x1680   :  { %11195 = vmatprep.mubr.msk.bf16.mxu0 %vm690_vm2, %v10031_v28 }
0x1681   :  { %10317 = vmatmul.mubr.bf16.vlgmr.msra.gmra.mxu0 %v10030_v27 }
0x1729   :  { %v11763_v56 = vpop.f32.mrf.mxu1 }
0x172b   :  { %v11764_v26 = vpop.f32.mrf.mxu1 }
0x172c   :  { %v11765_v55 = vadd.f32 %v11764_v26, %v11763_v56 }
0x172d   :  { %v11766_v45 = vpop.f32.mrf.mxu1 }
0x172f   :  { %v11767_v9 = vpop.f32.mrf.mxu1 }
0x1741   :  { %v10318_v16 = vpop.f32.mrf.mxu0 }
0x1742   :  { %v10319_v22 = vadd.f32 %v11765_v55, %v10318_v16 }
0x1743   :  { %v10320_v38 = vpop.f32.mrf.mxu0 }
0x1744   :  { %v10324_v37 = vadd.f32 %v10319_v22, %v9936_v49 }
0x1745   :  { %v10321_v50 = vpop.f32.mrf.mxu0 }
0x1746   :  { %v10332_v52 = vadd.f32 %v11196_v48, %v10324_v37 }
0x1747   :  { %v10322_v11 = vpop.f32.mrf.mxu0 }
0x1748   :  { %10333 = vst [vmem:[%s14251_s5] sm:$0xff] %v10332_v52 }
0x1749   :  { %10338 = vsyncpa [#allocation3], 1 }
0x174a   :  { %10339 = vsyncpa [#allocation5], 1 }
0x174b   :  { %10340 = vsyncpa [#allocation8], 1 }

</bundles_post_ra>
